<compile_context>
chip_gen: v7x
topology: tpu7x:2x2x1
jax: 0.10.0
libtpu: 0.0.40
codegen_flags: <defaults>
</compile_context>

<pallas_src>
import functools
import numpy as np
import jax
import jax.numpy as jnp
from jax.experimental import pallas as pl
from jax.experimental.pallas import tpu as pltpu

LEAKY_SLOPE = 0.01           # torch F.leaky_relu / nn.LeakyReLU default
EPS = 1e-5


def _leaky(y):
    return jnp.where(y >= 0, y, LEAKY_SLOPE * y)


def _apply_act(y, act):
    if act == "leaky":
        return _leaky(y)
    if act == "tanh":
        return jnp.tanh(y)
    return y


def _row_tile(rows, target=512):
    """Largest tile <= target that divides `rows` (rows itself if small/odd)."""
    if rows <= target:
        return rows
    for t in (target, 256, 128, 64, 32, 16, 8):
        if rows % t == 0:
            return t
    return rows


# ----------------- Kernel 1: matmul + bias + activation (conv hot path) -----
def _mm_bias_act_kernel(x_ref, w_ref, b_ref, o_ref, *, act):
    y = jnp.dot(x_ref[...], w_ref[...], preferred_element_type=jnp.float32)
    y = y + b_ref[...]
    o_ref[...] = _apply_act(y, act).astype(o_ref.dtype)


def mm_bias_act(x, w, b, act="none", tm=512, tn=256):
    M, K = x.shape
    _, N = w.shape
    xb = x.astype(jnp.bfloat16)              # bf16 MXU operands, f32 accumulate
    wb = w.astype(jnp.bfloat16)
    b2 = b.reshape(1, N).astype(jnp.float32)
    tm_e = M if M <= tm else tm
    tn_e = N if N <= tn else tn
    gm, gn = pl.cdiv(M, tm_e), pl.cdiv(N, tn_e)
    return pl.pallas_call(
        functools.partial(_mm_bias_act_kernel, act=act),
        out_shape=jax.ShapeDtypeStruct((M, N), jnp.float32),
        grid=(gm, gn),
        in_specs=[
            pl.BlockSpec((tm_e, K), lambda i, j: (i, 0)),
            pl.BlockSpec((K, tn_e), lambda i, j: (0, j)),
            pl.BlockSpec((1, tn_e), lambda i, j: (0, j)),
        ],
        out_specs=pl.BlockSpec((tm_e, tn_e), lambda i, j: (i, j)),
        compiler_params=pltpu.CompilerParams(
            dimension_semantics=("parallel", "parallel"),
            vmem_limit_bytes=48 * 1024 * 1024),
        cost_estimate=pl.CostEstimate(
            flops=2 * M * K * N, transcendentals=0,
            bytes_accessed=M * K * 2 + K * N * 2 + M * N * 4),
    )(xb, wb, b2)


# -------- Kernel 2: per-channel affine + LeakyReLU (BatchNorm apply) --------
def _affine_act_kernel(x_ref, sc_ref, sh_ref, o_ref):
    o_ref[...] = _leaky(x_ref[...] * sc_ref[...] + sh_ref[...])


def affine_leaky(x2, scale, shift, tm=512):
    M, C = x2.shape
    tm_e = M if M <= tm else tm
    return pl.pallas_call(
        _affine_act_kernel,
        out_shape=jax.ShapeDtypeStruct((M, C), jnp.float32),
        grid=(pl.cdiv(M, tm_e),),
        in_specs=[
            pl.BlockSpec((tm_e, C), lambda i: (i, 0)),
            pl.BlockSpec((1, C), lambda i: (0, 0)),
            pl.BlockSpec((1, C), lambda i: (0, 0)),
        ],
        out_specs=pl.BlockSpec((tm_e, C), lambda i: (i, 0)),
        compiler_params=pltpu.CompilerParams(dimension_semantics=("parallel",)),
    )(x2, scale, shift)


# -------- Kernel 3: InstanceNorm apply + SPADE modulation + LeakyReLU -------
def _in_spade_act_kernel(x_ref, gb_ref, mu_ref, rs_ref, o_ref):
    C = o_ref.shape[-1]
    xn = (x_ref[...] - mu_ref[...]) * rs_ref[...]
    gamma = gb_ref[:, :C]
    beta = gb_ref[:, C:]
    o_ref[...] = _leaky(xn * (1.0 + gamma) + beta)


def in_spade_act(x2, gb, mu, rstd, n_img, hw):
    M, C = x2.shape
    thw = _row_tile(hw)
    T = hw // thw
    return pl.pallas_call(
        _in_spade_act_kernel,
        out_shape=jax.ShapeDtypeStruct((M, C), jnp.float32),
        grid=(n_img, T),
        in_specs=[
            pl.BlockSpec((thw, C), lambda i, t: (i * T + t, 0)),
            pl.BlockSpec((thw, 2 * C), lambda i, t: (i * T + t, 0)),
            pl.BlockSpec((1, C), lambda i, t: (i, 0)),
            pl.BlockSpec((1, C), lambda i, t: (i, 0)),
        ],
        out_specs=pl.BlockSpec((thw, C), lambda i, t: (i * T + t, 0)),
        compiler_params=pltpu.CompilerParams(
            dimension_semantics=("parallel", "parallel")),
    )(x2, gb, mu, rstd)


# -------- Kernel 4: SE gate (fc->leaky->fc->sigmoid) + scale + residual -----
def _se_scale_kernel(x_ref, r_ref, p_ref, w1_ref, w2_ref, o_ref):
    h = jnp.dot(p_ref[...], w1_ref[...], preferred_element_type=jnp.float32)
    h = _leaky(h)
    s = jax.nn.sigmoid(jnp.dot(h, w2_ref[...], preferred_element_type=jnp.float32))
    o_ref[...] = x_ref[...] * s + r_ref[...]


def se_scale_residual(h, res, w1t, w2t):
    N, H, W, C = h.shape
    hw = H * W
    pooled = jnp.mean(h, axis=(1, 2))                      # (N, C) global avg pool
    thw = _row_tile(hw)
    T = hw // thw
    x2 = h.reshape(N * hw, C)
    r2 = res.reshape(N * hw, C)
    out = pl.pallas_call(
        _se_scale_kernel,
        out_shape=jax.ShapeDtypeStruct((N * hw, C), jnp.float32),
        grid=(N, T),
        in_specs=[
            pl.BlockSpec((thw, C), lambda i, t: (i * T + t, 0)),
            pl.BlockSpec((thw, C), lambda i, t: (i * T + t, 0)),
            pl.BlockSpec((1, C), lambda i, t: (i, 0)),
            pl.BlockSpec(w1t.shape, lambda i, t: (0, 0)),
            pl.BlockSpec(w2t.shape, lambda i, t: (0, 0)),
        ],
        out_specs=pl.BlockSpec((thw, C), lambda i, t: (i * T + t, 0)),
        compiler_params=pltpu.CompilerParams(
            dimension_semantics=("parallel", "parallel")),
    )(x2, r2, pooled, w1t, w2t)
    return out.reshape(N, H, W, C)


# ----------------------------- im2col glue (NHWC) ---------------------------
def _im2col_nhwc(x, kh, kw, stride, pad):
    N, H, W, C = x.shape
    xp = jnp.pad(x, ((0, 0), (pad, pad), (pad, pad), (0, 0)))
    Ho = (H + 2 * pad - kh) // stride + 1
    Wo = (W + 2 * pad - kw) // stride + 1
    cols = []
    for a in range(kh):
        for b in range(kw):
            cols.append(xp[:, a:a + stride * Ho:stride, b:b + stride * Wo:stride, :])
    col = jnp.concatenate(cols, axis=-1)       # (N, Ho, Wo, kh*kw*C), tap-major
    return col.reshape(N * Ho * Wo, kh * kw * C), Ho, Wo


def conv2d_nhwc(x, w, b, stride, pad, act):
    # w: (O, I, kh, kw) torch Conv2d layout; x: NHWC
    O, I, kh, kw = w.shape
    col, Ho, Wo = _im2col_nhwc(x, kh, kw, stride, pad)
    wm = jnp.transpose(w, (2, 3, 1, 0)).reshape(kh * kw * I, O)
    y = mm_bias_act(col, wm, b, act=act)
    return y.reshape(x.shape[0], Ho, Wo, O)


# ---------- ConvTranspose2d(k=4,s=2,p=1) as one sub-pixel 3x3 conv ----------
def _deconv_to_conv3(w, b):
    # w: (I, O, 4, 4) torch ConvTranspose2d layout.
    # Returns W3: (9*I, 4*O) for a 3x3/pad-1 conv whose 4*O outputs are the
    # (r, s) sub-pixel phases; out[2m+r, 2p+s, o] = conv3(x)[m, p, (r,s,o)].
    I, O = w.shape[0], w.shape[1]
    W3 = jnp.zeros((3, 3, I, 2, 2, O), dtype=w.dtype)
    for dh in range(3):
        for r in range(2):
            kh = r + 3 - 2 * dh
            if kh < 0 or kh > 3:
                continue
            for dw in range(3):
                for s in range(2):
                    kw = s + 3 - 2 * dw
                    if kw < 0 or kw > 3:
                        continue
                    W3 = W3.at[dh, dw, :, r, s, :].set(w[:, :, kh, kw])
    return W3.reshape(9 * I, 4 * O), jnp.tile(b, 4)


def deconv2x_nhwc(x, w, b, act):
    N, H, W, _ = x.shape
    O = w.shape[1]
    W3, b3 = _deconv_to_conv3(w, b)
    col, _, _ = _im2col_nhwc(x, 3, 3, 1, 1)
    y = mm_bias_act(col, W3, b3, act=act)                    # (N*H*W, 4*O)
    y = y.reshape(N, H, W, 2, 2, O).transpose(0, 1, 3, 2, 4, 5)
    return y.reshape(N, 2 * H, 2 * W, O)


# ------------------------ bilinear interp (glue) ----------------------------
def _bilinear_matrix(in_size, out_size):
    # matches torch F.interpolate(mode='bilinear', align_corners=False)
    i = np.arange(out_size)
    src = (i + 0.5) * (in_size / out_size) - 0.5
    src = np.clip(src, 0.0, None)
    i0 = np.minimum(np.floor(src).astype(np.int64), in_size - 1)
    i1 = np.minimum(i0 + 1, in_size - 1)
    frac = np.clip(src - i0, 0.0, 1.0)
    M = np.zeros((out_size, in_size), dtype=np.float32)
    M[np.arange(out_size), i0] += (1.0 - frac)
    M[np.arange(out_size), i1] += frac
    return M


# ------------------------------ blocks --------------------------------------
def residual_block(x, p):
    res = x
    h = conv2d_nhwc(x, p["c1_w"], p["c1_b"], 1, 1, "leaky")
    h = conv2d_nhwc(h, p["c2_w"], p["c2_b"], 1, 1, "none")
    return se_scale_residual(h, res, p["fc1_w"].T, p["fc2_w"].T)


def spade_leaky_nhwc(x, segmap_nhwc, p):
    # returns leaky_relu(SPADE(x, segmap)) as used in DecoderBlock, NHWC in/out
    N, H, W, C = x.shape
    Hs, Ws = segmap_nhwc.shape[1], segmap_nhwc.shape[2]
    R = jnp.asarray(_bilinear_matrix(Hs, H))
    Cm = jnp.asarray(_bilinear_matrix(Ws, W))
    seg = jnp.einsum("oh,nhwc,pw->nopc", R, segmap_nhwc.astype(jnp.float32), Cm)

    # mlp_shared: conv3x3 -> BatchNorm2d (training-mode batch stats) -> LeakyReLU
    a = conv2d_nhwc(seg, p["shared_w"], p["shared_b"], 1, 1, "none")
    nh = a.shape[-1]
    a2 = a.reshape(N * H * W, nh)
    m1 = jnp.mean(a2, axis=0, keepdims=True)
    m2 = jnp.mean(a2 * a2, axis=0, keepdims=True)
    rstd = jax.lax.rsqrt(jnp.maximum(m2 - m1 * m1, 0.0) + EPS)
    scale = p["bn_g"].reshape(1, nh) * rstd
    shift = p["bn_b"].reshape(1, nh) - m1 * scale
    actv = affine_leaky(a2, scale, shift).reshape(N, H, W, nh)

    # gamma and beta convs fused into one matmul (concat along out-channels)
    wgb = jnp.concatenate([p["gamma_w"], p["beta_w"]], axis=0)   # (2C, nh, 3, 3)
    bgb = jnp.concatenate([p["gamma_b"], p["beta_b"]], axis=0)
    gb = conv2d_nhwc(actv, wgb, bgb, 1, 1, "none").reshape(N * H * W, 2 * C)

    # InstanceNorm statistics of x (per image, per channel)
    mu = jnp.mean(x, axis=(1, 2))                                # (N, C)
    m2x = jnp.mean(x * x, axis=(1, 2))
    rstd_x = jax.lax.rsqrt(jnp.maximum(m2x - mu * mu, 0.0) + EPS)

    y = in_spade_act(x.reshape(N * H * W, C), gb, mu, rstd_x, N, H * W)
    return y.reshape(N, H, W, C)


# ---------------------------- parameters ------------------------------------
class _KeyGen:
    def __init__(self, key):
        self.key = key

    def __call__(self):
        self.key, sub = jax.random.split(self.key)
        return sub


def init_params(key, curr_dim=3, label_nc=4, num_layers=3, base_channels=16,
                repeat_num=2):
    kg = _KeyGen(key)

    def w(shape, scale=0.1):
        return scale * jax.random.normal(kg(), shape, dtype=jnp.float32)

    p = {}
    channels = []
    c, bc = curr_dim, base_channels
    enc = []
    for _ in range(num_layers):
        enc.append({"w": w((bc, c, 4, 4)), "b": w((bc,), 0.01)})
        channels.append(bc)
        c = bc
        bc *= 2
    p["enc"] = enc

    res = []
    for _ in range(repeat_num):
        res.append({
            "c1_w": w((c, c, 3, 3)), "c1_b": w((c,), 0.01),
            "c2_w": w((c, c, 3, 3)), "c2_b": w((c,), 0.01),
            "fc1_w": w((c // 16, c)),     # torch Linear (out, in), no bias
            "fc2_w": w((c, c // 16)),
        })
    p["res"] = res

    channels = channels[::-1]
    dec = []
    cd = c
    for i in range(num_layers - 1):
        out_c = channels[i + 1]
        nh = max(256, out_c // 2)
        dec.append({
            "w": w((cd, out_c, 4, 4)), "b": w((out_c,), 0.01),
            "spade": {
                "shared_w": w((nh, label_nc, 3, 3)), "shared_b": w((nh,), 0.01),
                "bn_g": 1.0 + w((nh,), 0.01), "bn_b": w((nh,), 0.01),
                "gamma_w": w((out_c, nh, 3, 3)), "gamma_b": w((out_c,), 0.01),
                "beta_w": w((out_c, nh, 3, 3)), "beta_b": w((out_c,), 0.01),
            },
        })
        cd = out_c
    p["dec"] = dec
    p["out_w"] = w((cd, 3, 4, 4)); p["out_b"] = w((3,), 0.01)
    p["md_w"] = w((cd, 1, 4, 4)); p["md_b"] = w((1,), 0.01)
    return p


# ------------------------------ forward --------------------------------------
def foreground_forward(params, sample, segmap):
    x = jnp.transpose(sample, (0, 2, 3, 1)).astype(jnp.float32)   # NCHW -> NHWC
    seg = jnp.transpose(segmap, (0, 2, 3, 1)).astype(jnp.float32)

    for blk in params["enc"]:
        x = conv2d_nhwc(x, blk["w"], blk["b"], stride=2, pad=1, act="leaky")
        # AdaptiveNoiseLayer(training=False) -> identity
    for blk in params["res"]:
        x = residual_block(x, blk)
    for blk in params["dec"]:
        x = deconv2x_nhwc(x, blk["w"], blk["b"], act="none")
        x = spade_leaky_nhwc(x, seg, blk["spade"])
        # AdaptiveNoiseLayer(training=False) -> identity

    # Fused output heads: one sub-pixel deconv with O = 3 (fg) + 1 (spatial map);
    # both heads end in tanh, so tanh is applied per-lane inside the matmul kernel.
    w_heads = jnp.concatenate([params["out_w"], params["md_w"]], axis=1)
    b_heads = jnp.concatenate([params["out_b"], params["md_b"]], axis=0)
    y = deconv2x_nhwc(x, w_heads, b_heads, act="tanh")            # (N, 2H, 2W, 4)

    foreground = jnp.transpose(y[..., :3], (0, 3, 1, 2))          # back to NCHW
    spatial_map = jnp.transpose((y[..., 3:4] + 1.0) * 0.5, (0, 3, 1, 2))
    return foreground, spatial_map


if __name__ == "__main__":
    key = jax.random.PRNGKey(0)
    kp, ks1, ks2 = jax.random.split(key, 3)
    params = init_params(kp, curr_dim=3, label_nc=4, num_layers=3,
                         base_channels=16, repeat_num=2)
    sample = jax.random.normal(ks1, (1, 3, 32, 32), dtype=jnp.float32)
    segmap = jax.random.normal(ks2, (1, 4, 32, 32), dtype=jnp.float32)

    fwd = jax.jit(functools.partial(foreground_forward, params))
    fg, sm = fwd(sample, segmap)
    jax.block_until_ready((fg, sm))

    assert fg.shape == (1, 3, 32, 32), fg.shape
    assert sm.shape == (1, 1, 32, 32), sm.shape
    assert bool(jnp.all(jnp.isfinite(fg))) and bool(jnp.all(jnp.isfinite(sm)))
    print("KERNEL_OK")
</pallas_src>

<mosaic_0001>
module attributes {stable_mosaic.version = 11 : i64} {
  func.func @_mm_bias_act_kernel(%arg0: i32, %arg1: i32, %arg2: memref<256x36xbf16, #tpu.memory_space<vmem>>, %arg3: memref<36x256xbf16, #tpu.memory_space<vmem>>, %arg4: memref<1x256xf32, #tpu.memory_space<vmem>>, %arg5: memref<256x256xf32, #tpu.memory_space<vmem>>) attributes {dimension_semantics = [#tpu.dimension_semantics<parallel>, #tpu.dimension_semantics<parallel>], iteration_bounds = array<i64: 1, 1>, scalar_prefetch = 0 : i64, scratch_operands = 0 : i64, tpu.core_type = #tpu.core_type<tc>, window_params = [{transform_indices = @transform_0, window_bounds = array<i64: 256, 36>}, {transform_indices = @transform_1, window_bounds = array<i64: 36, 256>}, {transform_indices = @transform_2, window_bounds = array<i64: 1, 256>}, {transform_indices = @transform_3, window_bounds = array<i64: 256, 256>}]} {
    %c0 = arith.constant 0 : index
    %c0_0 = arith.constant 0 : index
    %0 = vector.load %arg2[%c0, %c0_0] : memref<256x36xbf16, #tpu.memory_space<vmem>>, vector<256x36xbf16>
    %c0_1 = arith.constant 0 : index
    %c0_2 = arith.constant 0 : index
    %1 = vector.load %arg3[%c0_1, %c0_2] : memref<36x256xbf16, #tpu.memory_space<vmem>>, vector<36x256xbf16>
    %cst = arith.constant dense<0.000000e+00> : vector<256x256xf32>
    %2 = tpu.matmul %0, %1, %cst {dimension_numbers = #tpu.dot_dimension_numbers<[1], [0], [0], [1], [0, 0, 1, 1], [], []>} : vector<256x36xbf16>, vector<36x256xbf16>, vector<256x256xf32> -> vector<256x256xf32>
    %c0_3 = arith.constant 0 : index
    %c0_4 = arith.constant 0 : index
    %3 = vector.load %arg4[%c0_3, %c0_4] : memref<1x256xf32, #tpu.memory_space<vmem>>, vector<1x256xf32>
    %4 = vector.broadcast %3 : vector<1x256xf32> to vector<256x256xf32>
    %5 = arith.addf %2, %4 : vector<256x256xf32>
    %c0_5 = arith.constant 0 : index
    %c0_6 = arith.constant 0 : index
    %6 = vector.load %arg5[%c0_5, %c0_6] : memref<256x256xf32, #tpu.memory_space<vmem>>, vector<256x256xf32>
    tpu.vector_store %arg5[%c0_5, %c0_6], %5 {strides = array<i32>} : memref<256x256xf32, #tpu.memory_space<vmem>>, vector<256x256xf32>,
    return
  }
  func.func @transform_0(%arg0: i32, %arg1: i32) -> (i32, i32) {
    %c0_i32 = arith.constant 0 : i32
    %c0_i32_0 = arith.constant 0 : i32
    return %arg0, %c0_i32 : i32, i32
  }
  func.func @transform_1(%arg0: i32, %arg1: i32) -> (i32, i32) {
    %c0_i32 = arith.constant 0 : i32
    %c0_i32_0 = arith.constant 0 : i32
    return %c0_i32, %arg1 : i32, i32
  }
  func.func @transform_2(%arg0: i32, %arg1: i32) -> (i32, i32) {
    %c0_i32 = arith.constant 0 : i32
    %c0_i32_0 = arith.constant 0 : i32
    return %c0_i32, %arg1 : i32, i32
  }
  func.func @transform_3(%arg0: i32, %arg1: i32) -> (i32, i32) {
    %c0_i32 = arith.constant 0 : i32
    return %arg0, %arg1 : i32, i32
  }
}

module attributes {stable_mosaic.version = 11 : i64} {
  func.func @_affine_act_kernel(%arg0: i32, %arg1: memref<256x256xf32, #tpu.memory_space<vmem>>, %arg2: memref<1x256xf32, #tpu.memory_space<vmem>>, %arg3: memref<1x256xf32, #tpu.memory_space<vmem>>, %arg4: memref<256x256xf32, #tpu.memory_space<vmem>>) attributes {dimension_semantics = [#tpu.dimension_semantics<parallel>], iteration_bounds = array<i64: 1>, scalar_prefetch = 0 : i64, scratch_operands = 0 : i64, tpu.core_type = #tpu.core_type<tc>, window_params = [{transform_indices = @transform_0, window_bounds = array<i64: 256, 256>}, {pipeline_mode = #tpu.pipeline_mode<synchronous>, transform_indices = @transform_1, window_bounds = array<i64: 1, 256>}, {pipeline_mode = #tpu.pipeline_mode<synchronous>, transform_indices = @transform_2, window_bounds = array<i64: 1, 256>}, {transform_indices = @transform_3, window_bounds = array<i64: 256, 256>}]} {
    %c0 = arith.constant 0 : index
    %c0_0 = arith.constant 0 : index
    %0 = vector.load %arg1[%c0, %c0_0] : memref<256x256xf32, #tpu.memory_space<vmem>>, vector<256x256xf32>
    %c0_1 = arith.constant 0 : index
    %c0_2 = arith.constant 0 : index
    %1 = vector.load %arg2[%c0_1, %c0_2] : memref<1x256xf32, #tpu.memory_space<vmem>>, vector<1x256xf32>
    %2 = vector.broadcast %1 : vector<1x256xf32> to vector<256x256xf32>
    %3 = arith.mulf %0, %2 : vector<256x256xf32>
    %c0_3 = arith.constant 0 : index
    %c0_4 = arith.constant 0 : index
    %4 = vector.load %arg3[%c0_3, %c0_4] : memref<1x256xf32, #tpu.memory_space<vmem>>, vector<1x256xf32>
    %5 = vector.broadcast %4 : vector<1x256xf32> to vector<256x256xf32>
    %6 = arith.addf %3, %5 : vector<256x256xf32>
    %cst = arith.constant 0.000000e+00 : f32
    %7 = vector.broadcast %cst : f32 to vector<256x256xf32>
    %8 = arith.cmpf oge, %6, %7 : vector<256x256xf32>
    %cst_5 = arith.constant 0.00999999977 : f32
    %9 = vector.broadcast %cst_5 : f32 to vector<256x256xf32>
    %10 = arith.mulf %9, %6 : vector<256x256xf32>
    %11 = arith.select %8, %6, %10 : vector<256x256xi1>, vector<256x256xf32>
    %c0_6 = arith.constant 0 : index
    %c0_7 = arith.constant 0 : index
    %12 = vector.load %arg4[%c0_6, %c0_7] : memref<256x256xf32, #tpu.memory_space<vmem>>, vector<256x256xf32>
    tpu.vector_store %arg4[%c0_6, %c0_7], %11 {strides = array<i32>} : memref<256x256xf32, #tpu.memory_space<vmem>>, vector<256x256xf32>,
    return
  }
  func.func @transform_0(%arg0: i32) -> (i32, i32) {
    %c0_i32 = arith.constant 0 : i32
    %c0_i32_0 = arith.constant 0 : i32
    return %arg0, %c0_i32 : i32, i32
  }
  func.func @transform_1(%arg0: i32) -> (i32, i32) {
    %c0_i32 = arith.constant 0 : i32
    %c0_i32_0 = arith.constant 0 : i32
    %c0_i32_1 = arith.constant 0 : i32
    return %c0_i32, %c0_i32_0 : i32, i32
  }
  func.func @transform_2(%arg0: i32) -> (i32, i32) {
    %c0_i32 = arith.constant 0 : i32
    %c0_i32_0 = arith.constant 0 : i32
    %c0_i32_1 = arith.constant 0 : i32
    return %c0_i32, %c0_i32_0 : i32, i32
  }
  func.func @transform_3(%arg0: i32) -> (i32, i32) {
    %c0_i32 = arith.constant 0 : i32
    %c0_i32_0 = arith.constant 0 : i32
    return %arg0, %c0_i32 : i32, i32
  }
}

module attributes {stable_mosaic.version = 11 : i64} {
  func.func @_mm_bias_act_kernel(%arg0: i32, %arg1: i32, %arg2: memref<256x2304xbf16, #tpu.memory_space<vmem>>, %arg3: memref<2304x32xbf16, #tpu.memory_space<vmem>>, %arg4: memref<1x32xf32, #tpu.memory_space<vmem>>, %arg5: memref<256x32xf32, #tpu.memory_space<vmem>>) attributes {dimension_semantics = [#tpu.dimension_semantics<parallel>, #tpu.dimension_semantics<parallel>], iteration_bounds = array<i64: 1, 1>, scalar_prefetch = 0 : i64, scratch_operands = 0 : i64, tpu.core_type = #tpu.core_type<tc>, window_params = [{transform_indices = @transform_0, window_bounds = array<i64: 256, 2304>}, {transform_indices = @transform_1, window_bounds = array<i64: 2304, 32>}, {transform_indices = @transform_2, window_bounds = array<i64: 1, 32>}, {transform_indices = @transform_3, window_bounds = array<i64: 256, 32>}]} {
    %c0 = arith.constant 0 : index
    %c0_0 = arith.constant 0 : index
    %0 = vector.load %arg2[%c0, %c0_0] : memref<256x2304xbf16, #tpu.memory_space<vmem>>, vector<256x2304xbf16>
    %c0_1 = arith.constant 0 : index
    %c0_2 = arith.constant 0 : index
    %1 = vector.load %arg3[%c0_1, %c0_2] : memref<2304x32xbf16, #tpu.memory_space<vmem>>, vector<2304x32xbf16>
    %cst = arith.constant dense<0.000000e+00> : vector<256x32xf32>
    %2 = tpu.matmul %0, %1, %cst {dimension_numbers = #tpu.dot_dimension_numbers<[1], [0], [0], [1], [0, 0, 1, 1], [], []>} : vector<256x2304xbf16>, vector<2304x32xbf16>, vector<256x32xf32> -> vector<256x32xf32>
    %c0_3 = arith.constant 0 : index
    %c0_4 = arith.constant 0 : index
    %3 = vector.load %arg4[%c0_3, %c0_4] : memref<1x32xf32, #tpu.memory_space<vmem>>, vector<1x32xf32>
    %4 = vector.broadcast %3 : vector<1x32xf32> to vector<256x32xf32>
    %5 = arith.addf %2, %4 : vector<256x32xf32>
    %c0_5 = arith.constant 0 : index
    %c0_6 = arith.constant 0 : index
    %6 = vector.load %arg5[%c0_5, %c0_6] : memref<256x32xf32, #tpu.memory_space<vmem>>, vector<256x32xf32>
    tpu.vector_store %arg5[%c0_5, %c0_6], %5 {strides = array<i32>} : memref<256x32xf32, #tpu.memory_space<vmem>>, vector<256x32xf32>,
    return
  }
  func.func @transform_0(%arg0: i32, %arg1: i32) -> (i32, i32) {
    %c0_i32 = arith.constant 0 : i32
    %c0_i32_0 = arith.constant 0 : i32
    return %arg0, %c0_i32 : i32, i32
  }
  func.func @transform_1(%arg0: i32, %arg1: i32) -> (i32, i32) {
    %c0_i32 = arith.constant 0 : i32
    %c0_i32_0 = arith.constant 0 : i32
    return %c0_i32, %arg1 : i32, i32
  }
  func.func @transform_2(%arg0: i32, %arg1: i32) -> (i32, i32) {
    %c0_i32 = arith.constant 0 : i32
    %c0_i32_0 = arith.constant 0 : i32
    return %c0_i32, %arg1 : i32, i32
  }
  func.func @transform_3(%arg0: i32, %arg1: i32) -> (i32, i32) {
    %c0_i32 = arith.constant 0 : i32
    return %arg0, %arg1 : i32, i32
  }
}

module attributes {stable_mosaic.version = 11 : i64} {
  func.func @_mm_bias_act_kernel(%arg0: i32, %arg1: i32, %arg2: memref<64x36xbf16, #tpu.memory_space<vmem>>, %arg3: memref<36x256xbf16, #tpu.memory_space<vmem>>, %arg4: memref<1x256xf32, #tpu.memory_space<vmem>>, %arg5: memref<64x256xf32, #tpu.memory_space<vmem>>) attributes {dimension_semantics = [#tpu.dimension_semantics<parallel>, #tpu.dimension_semantics<parallel>], iteration_bounds = array<i64: 1, 1>, scalar_prefetch = 0 : i64, scratch_operands = 0 : i64, tpu.core_type = #tpu.core_type<tc>, window_params = [{transform_indices = @transform_0, window_bounds = array<i64: 64, 36>}, {transform_indices = @transform_1, window_bounds = array<i64: 36, 256>}, {transform_indices = @transform_2, window_bounds = array<i64: 1, 256>}, {transform_indices = @transform_3, window_bounds = array<i64: 64, 256>}]} {
    %c0 = arith.constant 0 : index
    %c0_0 = arith.constant 0 : index
    %0 = vector.load %arg2[%c0, %c0_0] : memref<64x36xbf16, #tpu.memory_space<vmem>>, vector<64x36xbf16>
    %c0_1 = arith.constant 0 : index
    %c0_2 = arith.constant 0 : index
    %1 = vector.load %arg3[%c0_1, %c0_2] : memref<36x256xbf16, #tpu.memory_space<vmem>>, vector<36x256xbf16>
    %cst = arith.constant dense<0.000000e+00> : vector<64x256xf32>
    %2 = tpu.matmul %0, %1, %cst {dimension_numbers = #tpu.dot_dimension_numbers<[1], [0], [0], [1], [0, 0, 1, 1], [], []>} : vector<64x36xbf16>, vector<36x256xbf16>, vector<64x256xf32> -> vector<64x256xf32>
    %c0_3 = arith.constant 0 : index
    %c0_4 = arith.constant 0 : index
    %3 = vector.load %arg4[%c0_3, %c0_4] : memref<1x256xf32, #tpu.memory_space<vmem>>, vector<1x256xf32>
    %4 = vector.broadcast %3 : vector<1x256xf32> to vector<64x256xf32>
    %5 = arith.addf %2, %4 : vector<64x256xf32>
    %c0_5 = arith.constant 0 : index
    %c0_6 = arith.constant 0 : index
    %6 = vector.load %arg5[%c0_5, %c0_6] : memref<64x256xf32, #tpu.memory_space<vmem>>, vector<64x256xf32>
    tpu.vector_store %arg5[%c0_5, %c0_6], %5 {strides = array<i32>} : memref<64x256xf32, #tpu.memory_space<vmem>>, vector<64x256xf32>,
    return
  }
  func.func @transform_0(%arg0: i32, %arg1: i32) -> (i32, i32) {
    %c0_i32 = arith.constant 0 : i32
    %c0_i32_0 = arith.constant 0 : i32
    return %arg0, %c0_i32 : i32, i32
  }
  func.func @transform_1(%arg0: i32, %arg1: i32) -> (i32, i32) {
    %c0_i32 = arith.constant 0 : i32
    %c0_i32_0 = arith.constant 0 : i32
    return %c0_i32, %arg1 : i32, i32
  }
  func.func @transform_2(%arg0: i32, %arg1: i32) -> (i32, i32) {
    %c0_i32 = arith.constant 0 : i32
    %c0_i32_0 = arith.constant 0 : i32
    return %c0_i32, %arg1 : i32, i32
  }
  func.func @transform_3(%arg0: i32, %arg1: i32) -> (i32, i32) {
    %c0_i32 = arith.constant 0 : i32
    return %arg0, %arg1 : i32, i32
  }
}

module attributes {stable_mosaic.version = 11 : i64} {
  func.func @_affine_act_kernel(%arg0: i32, %arg1: memref<64x256xf32, #tpu.memory_space<vmem>>, %arg2: memref<1x256xf32, #tpu.memory_space<vmem>>, %arg3: memref<1x256xf32, #tpu.memory_space<vmem>>, %arg4: memref<64x256xf32, #tpu.memory_space<vmem>>) attributes {dimension_semantics = [#tpu.dimension_semantics<parallel>], iteration_bounds = array<i64: 1>, scalar_prefetch = 0 : i64, scratch_operands = 0 : i64, tpu.core_type = #tpu.core_type<tc>, window_params = [{transform_indices = @transform_0, window_bounds = array<i64: 64, 256>}, {pipeline_mode = #tpu.pipeline_mode<synchronous>, transform_indices = @transform_1, window_bounds = array<i64: 1, 256>}, {pipeline_mode = #tpu.pipeline_mode<synchronous>, transform_indices = @transform_2, window_bounds = array<i64: 1, 256>}, {transform_indices = @transform_3, window_bounds = array<i64: 64, 256>}]} {
    %c0 = arith.constant 0 : index
    %c0_0 = arith.constant 0 : index
    %0 = vector.load %arg1[%c0, %c0_0] : memref<64x256xf32, #tpu.memory_space<vmem>>, vector<64x256xf32>
    %c0_1 = arith.constant 0 : index
    %c0_2 = arith.constant 0 : index
    %1 = vector.load %arg2[%c0_1, %c0_2] : memref<1x256xf32, #tpu.memory_space<vmem>>, vector<1x256xf32>
    %2 = vector.broadcast %1 : vector<1x256xf32> to vector<64x256xf32>
    %3 = arith.mulf %0, %2 : vector<64x256xf32>
    %c0_3 = arith.constant 0 : index
    %c0_4 = arith.constant 0 : index
    %4 = vector.load %arg3[%c0_3, %c0_4] : memref<1x256xf32, #tpu.memory_space<vmem>>, vector<1x256xf32>
    %5 = vector.broadcast %4 : vector<1x256xf32> to vector<64x256xf32>
    %6 = arith.addf %3, %5 : vector<64x256xf32>
    %cst = arith.constant 0.000000e+00 : f32
    %7 = vector.broadcast %cst : f32 to vector<64x256xf32>
    %8 = arith.cmpf oge, %6, %7 : vector<64x256xf32>
    %cst_5 = arith.constant 0.00999999977 : f32
    %9 = vector.broadcast %cst_5 : f32 to vector<64x256xf32>
    %10 = arith.mulf %9, %6 : vector<64x256xf32>
    %11 = arith.select %8, %6, %10 : vector<64x256xi1>, vector<64x256xf32>
    %c0_6 = arith.constant 0 : index
    %c0_7 = arith.constant 0 : index
    %12 = vector.load %arg4[%c0_6, %c0_7] : memref<64x256xf32, #tpu.memory_space<vmem>>, vector<64x256xf32>
    tpu.vector_store %arg4[%c0_6, %c0_7], %11 {strides = array<i32>} : memref<64x256xf32, #tpu.memory_space<vmem>>, vector<64x256xf32>,
    return
  }
  func.func @transform_0(%arg0: i32) -> (i32, i32) {
    %c0_i32 = arith.constant 0 : i32
    %c0_i32_0 = arith.constant 0 : i32
    return %arg0, %c0_i32 : i32, i32
  }
  func.func @transform_1(%arg0: i32) -> (i32, i32) {
    %c0_i32 = arith.constant 0 : i32
    %c0_i32_0 = arith.constant 0 : i32
    %c0_i32_1 = arith.constant 0 : i32
    return %c0_i32, %c0_i32_0 : i32, i32
  }
  func.func @transform_2(%arg0: i32) -> (i32, i32) {
    %c0_i32 = arith.constant 0 : i32
    %c0_i32_0 = arith.constant 0 : i32
    %c0_i32_1 = arith.constant 0 : i32
    return %c0_i32, %c0_i32_0 : i32, i32
  }
  func.func @transform_3(%arg0: i32) -> (i32, i32) {
    %c0_i32 = arith.constant 0 : i32
    %c0_i32_0 = arith.constant 0 : i32
    return %arg0, %c0_i32 : i32, i32
  }
}

module attributes {stable_mosaic.version = 11 : i64} {
  func.func @_mm_bias_act_kernel(%arg0: i32, %arg1: i32, %arg2: memref<64x2304xbf16, #tpu.memory_space<vmem>>, %arg3: memref<2304x64xbf16, #tpu.memory_space<vmem>>, %arg4: memref<1x64xf32, #tpu.memory_space<vmem>>, %arg5: memref<64x64xf32, #tpu.memory_space<vmem>>) attributes {dimension_semantics = [#tpu.dimension_semantics<parallel>, #tpu.dimension_semantics<parallel>], iteration_bounds = array<i64: 1, 1>, scalar_prefetch = 0 : i64, scratch_operands = 0 : i64, tpu.core_type = #tpu.core_type<tc>, window_params = [{transform_indices = @transform_0, window_bounds = array<i64: 64, 2304>}, {transform_indices = @transform_1, window_bounds = array<i64: 2304, 64>}, {transform_indices = @transform_2, window_bounds = array<i64: 1, 64>}, {transform_indices = @transform_3, window_bounds = array<i64: 64, 64>}]} {
    %c0 = arith.constant 0 : index
    %c0_0 = arith.constant 0 : index
    %0 = vector.load %arg2[%c0, %c0_0] : memref<64x2304xbf16, #tpu.memory_space<vmem>>, vector<64x2304xbf16>
    %c0_1 = arith.constant 0 : index
    %c0_2 = arith.constant 0 : index
    %1 = vector.load %arg3[%c0_1, %c0_2] : memref<2304x64xbf16, #tpu.memory_space<vmem>>, vector<2304x64xbf16>
    %cst = arith.constant dense<0.000000e+00> : vector<64x64xf32>
    %2 = tpu.matmul %0, %1, %cst {dimension_numbers = #tpu.dot_dimension_numbers<[1], [0], [0], [1], [0, 0, 1, 1], [], []>} : vector<64x2304xbf16>, vector<2304x64xbf16>, vector<64x64xf32> -> vector<64x64xf32>
    %c0_3 = arith.constant 0 : index
    %c0_4 = arith.constant 0 : index
    %3 = vector.load %arg4[%c0_3, %c0_4] : memref<1x64xf32, #tpu.memory_space<vmem>>, vector<1x64xf32>
    %4 = vector.broadcast %3 : vector<1x64xf32> to vector<64x64xf32>
    %5 = arith.addf %2, %4 : vector<64x64xf32>
    %c0_5 = arith.constant 0 : index
    %c0_6 = arith.constant 0 : index
    %6 = vector.load %arg5[%c0_5, %c0_6] : memref<64x64xf32, #tpu.memory_space<vmem>>, vector<64x64xf32>
    tpu.vector_store %arg5[%c0_5, %c0_6], %5 {strides = array<i32>} : memref<64x64xf32, #tpu.memory_space<vmem>>, vector<64x64xf32>,
    return
  }
  func.func @transform_0(%arg0: i32, %arg1: i32) -> (i32, i32) {
    %c0_i32 = arith.constant 0 : i32
    %c0_i32_0 = arith.constant 0 : i32
    return %arg0, %c0_i32 : i32, i32
  }
  func.func @transform_1(%arg0: i32, %arg1: i32) -> (i32, i32) {
    %c0_i32 = arith.constant 0 : i32
    %c0_i32_0 = arith.constant 0 : i32
    return %c0_i32, %arg1 : i32, i32
  }
  func.func @transform_2(%arg0: i32, %arg1: i32) -> (i32, i32) {
    %c0_i32 = arith.constant 0 : i32
    %c0_i32_0 = arith.constant 0 : i32
    return %c0_i32, %arg1 : i32, i32
  }
  func.func @transform_3(%arg0: i32, %arg1: i32) -> (i32, i32) {
    %c0_i32 = arith.constant 0 : i32
    return %arg0, %arg1 : i32, i32
  }
}

module attributes {stable_mosaic.version = 11 : i64} {
  func.func @_mm_bias_act_kernel(%arg0: i32, %arg1: i32, %arg2: memref<256x48xbf16, #tpu.memory_space<vmem>>, %arg3: memref<48x16xbf16, #tpu.memory_space<vmem>>, %arg4: memref<1x16xf32, #tpu.memory_space<vmem>>, %arg5: memref<256x16xf32, #tpu.memory_space<vmem>>) attributes {dimension_semantics = [#tpu.dimension_semantics<parallel>, #tpu.dimension_semantics<parallel>], iteration_bounds = array<i64: 1, 1>, scalar_prefetch = 0 : i64, scratch_operands = 0 : i64, tpu.core_type = #tpu.core_type<tc>, window_params = [{transform_indices = @transform_0, window_bounds = array<i64: 256, 48>}, {transform_indices = @transform_1, window_bounds = array<i64: 48, 16>}, {transform_indices = @transform_2, window_bounds = array<i64: 1, 16>}, {transform_indices = @transform_3, window_bounds = array<i64: 256, 16>}]} {
    %c0 = arith.constant 0 : index
    %c0_0 = arith.constant 0 : index
    %0 = vector.load %arg2[%c0, %c0_0] : memref<256x48xbf16, #tpu.memory_space<vmem>>, vector<256x48xbf16>
    %c0_1 = arith.constant 0 : index
    %c0_2 = arith.constant 0 : index
    %1 = vector.load %arg3[%c0_1, %c0_2] : memref<48x16xbf16, #tpu.memory_space<vmem>>, vector<48x16xbf16>
    %cst = arith.constant dense<0.000000e+00> : vector<256x16xf32>
    %2 = tpu.matmul %0, %1, %cst {dimension_numbers = #tpu.dot_dimension_numbers<[1], [0], [0], [1], [0, 0, 1, 1], [], []>} : vector<256x48xbf16>, vector<48x16xbf16>, vector<256x16xf32> -> vector<256x16xf32>
    %c0_3 = arith.constant 0 : index
    %c0_4 = arith.constant 0 : index
    %3 = vector.load %arg4[%c0_3, %c0_4] : memref<1x16xf32, #tpu.memory_space<vmem>>, vector<1x16xf32>
    %4 = vector.broadcast %3 : vector<1x16xf32> to vector<256x16xf32>
    %5 = arith.addf %2, %4 : vector<256x16xf32>
    %cst_5 = arith.constant 0.000000e+00 : f32
    %6 = vector.broadcast %cst_5 : f32 to vector<256x16xf32>
    %7 = arith.cmpf oge, %5, %6 : vector<256x16xf32>
    %cst_6 = arith.constant 0.00999999977 : f32
    %8 = vector.broadcast %cst_6 : f32 to vector<256x16xf32>
    %9 = arith.mulf %8, %5 : vector<256x16xf32>
    %10 = arith.select %7, %5, %9 : vector<256x16xi1>, vector<256x16xf32>
    %c0_7 = arith.constant 0 : index
    %c0_8 = arith.constant 0 : index
    %11 = vector.load %arg5[%c0_7, %c0_8] : memref<256x16xf32, #tpu.memory_space<vmem>>, vector<256x16xf32>
    tpu.vector_store %arg5[%c0_7, %c0_8], %10 {strides = array<i32>} : memref<256x16xf32, #tpu.memory_space<vmem>>, vector<256x16xf32>,
    return
  }
  func.func @transform_0(%arg0: i32, %arg1: i32) -> (i32, i32) {
    %c0_i32 = arith.constant 0 : i32
    %c0_i32_0 = arith.constant 0 : i32
    return %arg0, %c0_i32 : i32, i32
  }
  func.func @transform_1(%arg0: i32, %arg1: i32) -> (i32, i32) {
    %c0_i32 = arith.constant 0 : i32
    %c0_i32_0 = arith.constant 0 : i32
    return %c0_i32, %arg1 : i32, i32
  }
  func.func @transform_2(%arg0: i32, %arg1: i32) -> (i32, i32) {
    %c0_i32 = arith.constant 0 : i32
    %c0_i32_0 = arith.constant 0 : i32
    return %c0_i32, %arg1 : i32, i32
  }
  func.func @transform_3(%arg0: i32, %arg1: i32) -> (i32, i32) {
    %c0_i32 = arith.constant 0 : i32
    return %arg0, %arg1 : i32, i32
  }
}

module attributes {stable_mosaic.version = 11 : i64} {
  func.func @_mm_bias_act_kernel(%arg0: i32, %arg1: i32, %arg2: memref<64x256xbf16, #tpu.memory_space<vmem>>, %arg3: memref<256x32xbf16, #tpu.memory_space<vmem>>, %arg4: memref<1x32xf32, #tpu.memory_space<vmem>>, %arg5: memref<64x32xf32, #tpu.memory_space<vmem>>) attributes {dimension_semantics = [#tpu.dimension_semantics<parallel>, #tpu.dimension_semantics<parallel>], iteration_bounds = array<i64: 1, 1>, scalar_prefetch = 0 : i64, scratch_operands = 0 : i64, tpu.core_type = #tpu.core_type<tc>, window_params = [{transform_indices = @transform_0, window_bounds = array<i64: 64, 256>}, {transform_indices = @transform_1, window_bounds = array<i64: 256, 32>}, {transform_indices = @transform_2, window_bounds = array<i64: 1, 32>}, {transform_indices = @transform_3, window_bounds = array<i64: 64, 32>}]} {
    %c0 = arith.constant 0 : index
    %c0_0 = arith.constant 0 : index
    %0 = vector.load %arg2[%c0, %c0_0] : memref<64x256xbf16, #tpu.memory_space<vmem>>, vector<64x256xbf16>
    %c0_1 = arith.constant 0 : index
    %c0_2 = arith.constant 0 : index
    %1 = vector.load %arg3[%c0_1, %c0_2] : memref<256x32xbf16, #tpu.memory_space<vmem>>, vector<256x32xbf16>
    %cst = arith.constant dense<0.000000e+00> : vector<64x32xf32>
    %2 = tpu.matmul %0, %1, %cst {dimension_numbers = #tpu.dot_dimension_numbers<[1], [0], [0], [1], [0, 0, 1, 1], [], []>} : vector<64x256xbf16>, vector<256x32xbf16>, vector<64x32xf32> -> vector<64x32xf32>
    %c0_3 = arith.constant 0 : index
    %c0_4 = arith.constant 0 : index
    %3 = vector.load %arg4[%c0_3, %c0_4] : memref<1x32xf32, #tpu.memory_space<vmem>>, vector<1x32xf32>
    %4 = vector.broadcast %3 : vector<1x32xf32> to vector<64x32xf32>
    %5 = arith.addf %2, %4 : vector<64x32xf32>
    %cst_5 = arith.constant 0.000000e+00 : f32
    %6 = vector.broadcast %cst_5 : f32 to vector<64x32xf32>
    %7 = arith.cmpf oge, %5, %6 : vector<64x32xf32>
    %cst_6 = arith.constant 0.00999999977 : f32
    %8 = vector.broadcast %cst_6 : f32 to vector<64x32xf32>
    %9 = arith.mulf %8, %5 : vector<64x32xf32>
    %10 = arith.select %7, %5, %9 : vector<64x32xi1>, vector<64x32xf32>
    %c0_7 = arith.constant 0 : index
    %c0_8 = arith.constant 0 : index
    %11 = vector.load %arg5[%c0_7, %c0_8] : memref<64x32xf32, #tpu.memory_space<vmem>>, vector<64x32xf32>
    tpu.vector_store %arg5[%c0_7, %c0_8], %10 {strides = array<i32>} : memref<64x32xf32, #tpu.memory_space<vmem>>, vector<64x32xf32>,
    return
  }
  func.func @transform_0(%arg0: i32, %arg1: i32) -> (i32, i32) {
    %c0_i32 = arith.constant 0 : i32
    %c0_i32_0 = arith.constant 0 : i32
    return %arg0, %c0_i32 : i32, i32
  }
  func.func @transform_1(%arg0: i32, %arg1: i32) -> (i32, i32) {
    %c0_i32 = arith.constant 0 : i32
    %c0_i32_0 = arith.constant 0 : i32
    return %c0_i32, %arg1 : i32, i32
  }
  func.func @transform_2(%arg0: i32, %arg1: i32) -> (i32, i32) {
    %c0_i32 = arith.constant 0 : i32
    %c0_i32_0 = arith.constant 0 : i32
    return %c0_i32, %arg1 : i32, i32
  }
  func.func @transform_3(%arg0: i32, %arg1: i32) -> (i32, i32) {
    %c0_i32 = arith.constant 0 : i32
    return %arg0, %arg1 : i32, i32
  }
}

module attributes {stable_mosaic.version = 11 : i64} {
  func.func @_mm_bias_act_kernel(%arg0: i32, %arg1: i32, %arg2: memref<16x512xbf16, #tpu.memory_space<vmem>>, %arg3: memref<512x64xbf16, #tpu.memory_space<vmem>>, %arg4: memref<1x64xf32, #tpu.memory_space<vmem>>, %arg5: memref<16x64xf32, #tpu.memory_space<vmem>>) attributes {dimension_semantics = [#tpu.dimension_semantics<parallel>, #tpu.dimension_semantics<parallel>], iteration_bounds = array<i64: 1, 1>, scalar_prefetch = 0 : i64, scratch_operands = 0 : i64, tpu.core_type = #tpu.core_type<tc>, window_params = [{transform_indices = @transform_0, window_bounds = array<i64: 16, 512>}, {transform_indices = @transform_1, window_bounds = array<i64: 512, 64>}, {transform_indices = @transform_2, window_bounds = array<i64: 1, 64>}, {transform_indices = @transform_3, window_bounds = array<i64: 16, 64>}]} {
    %c0 = arith.constant 0 : index
    %c0_0 = arith.constant 0 : index
    %0 = vector.load %arg2[%c0, %c0_0] : memref<16x512xbf16, #tpu.memory_space<vmem>>, vector<16x512xbf16>
    %c0_1 = arith.constant 0 : index
    %c0_2 = arith.constant 0 : index
    %1 = vector.load %arg3[%c0_1, %c0_2] : memref<512x64xbf16, #tpu.memory_space<vmem>>, vector<512x64xbf16>
    %cst = arith.constant dense<0.000000e+00> : vector<16x64xf32>
    %2 = tpu.matmul %0, %1, %cst {dimension_numbers = #tpu.dot_dimension_numbers<[1], [0], [0], [1], [0, 0, 1, 1], [], []>} : vector<16x512xbf16>, vector<512x64xbf16>, vector<16x64xf32> -> vector<16x64xf32>
    %c0_3 = arith.constant 0 : index
    %c0_4 = arith.constant 0 : index
    %3 = vector.load %arg4[%c0_3, %c0_4] : memref<1x64xf32, #tpu.memory_space<vmem>>, vector<1x64xf32>
    %4 = vector.broadcast %3 : vector<1x64xf32> to vector<16x64xf32>
    %5 = arith.addf %2, %4 : vector<16x64xf32>
    %cst_5 = arith.constant 0.000000e+00 : f32
    %6 = vector.broadcast %cst_5 : f32 to vector<16x64xf32>
    %7 = arith.cmpf oge, %5, %6 : vector<16x64xf32>
    %cst_6 = arith.constant 0.00999999977 : f32
    %8 = vector.broadcast %cst_6 : f32 to vector<16x64xf32>
    %9 = arith.mulf %8, %5 : vector<16x64xf32>
    %10 = arith.select %7, %5, %9 : vector<16x64xi1>, vector<16x64xf32>
    %c0_7 = arith.constant 0 : index
    %c0_8 = arith.constant 0 : index
    %11 = vector.load %arg5[%c0_7, %c0_8] : memref<16x64xf32, #tpu.memory_space<vmem>>, vector<16x64xf32>
    tpu.vector_store %arg5[%c0_7, %c0_8], %10 {strides = array<i32>} : memref<16x64xf32, #tpu.memory_space<vmem>>, vector<16x64xf32>,
    return
  }
  func.func @transform_0(%arg0: i32, %arg1: i32) -> (i32, i32) {
    %c0_i32 = arith.constant 0 : i32
    %c0_i32_0 = arith.constant 0 : i32
    return %arg0, %c0_i32 : i32, i32
  }
  func.func @transform_1(%arg0: i32, %arg1: i32) -> (i32, i32) {
    %c0_i32 = arith.constant 0 : i32
    %c0_i32_0 = arith.constant 0 : i32
    return %c0_i32, %arg1 : i32, i32
  }
  func.func @transform_2(%arg0: i32, %arg1: i32) -> (i32, i32) {
    %c0_i32 = arith.constant 0 : i32
    %c0_i32_0 = arith.constant 0 : i32
    return %c0_i32, %arg1 : i32, i32
  }
  func.func @transform_3(%arg0: i32, %arg1: i32) -> (i32, i32) {
    %c0_i32 = arith.constant 0 : i32
    return %arg0, %arg1 : i32, i32
  }
}

module attributes {stable_mosaic.version = 11 : i64} {
  func.func @_mm_bias_act_kernel(%arg0: i32, %arg1: i32, %arg2: memref<16x576xbf16, #tpu.memory_space<vmem>>, %arg3: memref<576x64xbf16, #tpu.memory_space<vmem>>, %arg4: memref<1x64xf32, #tpu.memory_space<vmem>>, %arg5: memref<16x64xf32, #tpu.memory_space<vmem>>) attributes {dimension_semantics = [#tpu.dimension_semantics<parallel>, #tpu.dimension_semantics<parallel>], iteration_bounds = array<i64: 1, 1>, scalar_prefetch = 0 : i64, scratch_operands = 0 : i64, tpu.core_type = #tpu.core_type<tc>, window_params = [{transform_indices = @transform_0, window_bounds = array<i64: 16, 576>}, {transform_indices = @transform_1, window_bounds = array<i64: 576, 64>}, {transform_indices = @transform_2, window_bounds = array<i64: 1, 64>}, {transform_indices = @transform_3, window_bounds = array<i64: 16, 64>}]} {
    %c0 = arith.constant 0 : index
    %c0_0 = arith.constant 0 : index
    %0 = vector.load %arg2[%c0, %c0_0] : memref<16x576xbf16, #tpu.memory_space<vmem>>, vector<16x576xbf16>
    %c0_1 = arith.constant 0 : index
    %c0_2 = arith.constant 0 : index
    %1 = vector.load %arg3[%c0_1, %c0_2] : memref<576x64xbf16, #tpu.memory_space<vmem>>, vector<576x64xbf16>
    %cst = arith.constant dense<0.000000e+00> : vector<16x64xf32>
    %2 = tpu.matmul %0, %1, %cst {dimension_numbers = #tpu.dot_dimension_numbers<[1], [0], [0], [1], [0, 0, 1, 1], [], []>} : vector<16x576xbf16>, vector<576x64xbf16>, vector<16x64xf32> -> vector<16x64xf32>
    %c0_3 = arith.constant 0 : index
    %c0_4 = arith.constant 0 : index
    %3 = vector.load %arg4[%c0_3, %c0_4] : memref<1x64xf32, #tpu.memory_space<vmem>>, vector<1x64xf32>
    %4 = vector.broadcast %3 : vector<1x64xf32> to vector<16x64xf32>
    %5 = arith.addf %2, %4 : vector<16x64xf32>
    %cst_5 = arith.constant 0.000000e+00 : f32
    %6 = vector.broadcast %cst_5 : f32 to vector<16x64xf32>
    %7 = arith.cmpf oge, %5, %6 : vector<16x64xf32>
    %cst_6 = arith.constant 0.00999999977 : f32
    %8 = vector.broadcast %cst_6 : f32 to vector<16x64xf32>
    %9 = arith.mulf %8, %5 : vector<16x64xf32>
    %10 = arith.select %7, %5, %9 : vector<16x64xi1>, vector<16x64xf32>
    %c0_7 = arith.constant 0 : index
    %c0_8 = arith.constant 0 : index
    %11 = vector.load %arg5[%c0_7, %c0_8] : memref<16x64xf32, #tpu.memory_space<vmem>>, vector<16x64xf32>
    tpu.vector_store %arg5[%c0_7, %c0_8], %10 {strides = array<i32>} : memref<16x64xf32, #tpu.memory_space<vmem>>, vector<16x64xf32>,
    return
  }
  func.func @transform_0(%arg0: i32, %arg1: i32) -> (i32, i32) {
    %c0_i32 = arith.constant 0 : i32
    %c0_i32_0 = arith.constant 0 : i32
    return %arg0, %c0_i32 : i32, i32
  }
  func.func @transform_1(%arg0: i32, %arg1: i32) -> (i32, i32) {
    %c0_i32 = arith.constant 0 : i32
    %c0_i32_0 = arith.constant 0 : i32
    return %c0_i32, %arg1 : i32, i32
  }
  func.func @transform_2(%arg0: i32, %arg1: i32) -> (i32, i32) {
    %c0_i32 = arith.constant 0 : i32
    %c0_i32_0 = arith.constant 0 : i32
    return %c0_i32, %arg1 : i32, i32
  }
  func.func @transform_3(%arg0: i32, %arg1: i32) -> (i32, i32) {
    %c0_i32 = arith.constant 0 : i32
    return %arg0, %arg1 : i32, i32
  }
}

module attributes {stable_mosaic.version = 11 : i64} {
  func.func @_mm_bias_act_kernel(%arg0: i32, %arg1: i32, %arg2: memref<16x576xbf16, #tpu.memory_space<vmem>>, %arg3: memref<576x64xbf16, #tpu.memory_space<vmem>>, %arg4: memref<1x64xf32, #tpu.memory_space<vmem>>, %arg5: memref<16x64xf32, #tpu.memory_space<vmem>>) attributes {dimension_semantics = [#tpu.dimension_semantics<parallel>, #tpu.dimension_semantics<parallel>], iteration_bounds = array<i64: 1, 1>, scalar_prefetch = 0 : i64, scratch_operands = 0 : i64, tpu.core_type = #tpu.core_type<tc>, window_params = [{transform_indices = @transform_0, window_bounds = array<i64: 16, 576>}, {transform_indices = @transform_1, window_bounds = array<i64: 576, 64>}, {transform_indices = @transform_2, window_bounds = array<i64: 1, 64>}, {transform_indices = @transform_3, window_bounds = array<i64: 16, 64>}]} {
    %c0 = arith.constant 0 : index
    %c0_0 = arith.constant 0 : index
    %0 = vector.load %arg2[%c0, %c0_0] : memref<16x576xbf16, #tpu.memory_space<vmem>>, vector<16x576xbf16>
    %c0_1 = arith.constant 0 : index
    %c0_2 = arith.constant 0 : index
    %1 = vector.load %arg3[%c0_1, %c0_2] : memref<576x64xbf16, #tpu.memory_space<vmem>>, vector<576x64xbf16>
    %cst = arith.constant dense<0.000000e+00> : vector<16x64xf32>
    %2 = tpu.matmul %0, %1, %cst {dimension_numbers = #tpu.dot_dimension_numbers<[1], [0], [0], [1], [0, 0, 1, 1], [], []>} : vector<16x576xbf16>, vector<576x64xbf16>, vector<16x64xf32> -> vector<16x64xf32>
    %c0_3 = arith.constant 0 : index
    %c0_4 = arith.constant 0 : index
    %3 = vector.load %arg4[%c0_3, %c0_4] : memref<1x64xf32, #tpu.memory_space<vmem>>, vector<1x64xf32>
    %4 = vector.broadcast %3 : vector<1x64xf32> to vector<16x64xf32>
    %5 = arith.addf %2, %4 : vector<16x64xf32>
    %c0_5 = arith.constant 0 : index
    %c0_6 = arith.constant 0 : index
    %6 = vector.load %arg5[%c0_5, %c0_6] : memref<16x64xf32, #tpu.memory_space<vmem>>, vector<16x64xf32>
    tpu.vector_store %arg5[%c0_5, %c0_6], %5 {strides = array<i32>} : memref<16x64xf32, #tpu.memory_space<vmem>>, vector<16x64xf32>,
    return
  }
  func.func @transform_0(%arg0: i32, %arg1: i32) -> (i32, i32) {
    %c0_i32 = arith.constant 0 : i32
    %c0_i32_0 = arith.constant 0 : i32
    return %arg0, %c0_i32 : i32, i32
  }
  func.func @transform_1(%arg0: i32, %arg1: i32) -> (i32, i32) {
    %c0_i32 = arith.constant 0 : i32
    %c0_i32_0 = arith.constant 0 : i32
    return %c0_i32, %arg1 : i32, i32
  }
  func.func @transform_2(%arg0: i32, %arg1: i32) -> (i32, i32) {
    %c0_i32 = arith.constant 0 : i32
    %c0_i32_0 = arith.constant 0 : i32
    return %c0_i32, %arg1 : i32, i32
  }
  func.func @transform_3(%arg0: i32, %arg1: i32) -> (i32, i32) {
    %c0_i32 = arith.constant 0 : i32
    return %arg0, %arg1 : i32, i32
  }
}

module attributes {stable_mosaic.version = 11 : i64} {
  func.func @_se_scale_kernel(%arg0: i32, %arg1: i32, %arg2: memref<16x64xf32, #tpu.memory_space<vmem>>, %arg3: memref<16x64xf32, #tpu.memory_space<vmem>>, %arg4: memref<1x64xf32, #tpu.memory_space<vmem>>, %arg5: memref<64x4xf32, #tpu.memory_space<vmem>>, %arg6: memref<4x64xf32, #tpu.memory_space<vmem>>, %arg7: memref<16x64xf32, #tpu.memory_space<vmem>>) attributes {dimension_semantics = [#tpu.dimension_semantics<parallel>, #tpu.dimension_semantics<parallel>], iteration_bounds = array<i64: 1, 1>, scalar_prefetch = 0 : i64, scratch_operands = 0 : i64, tpu.core_type = #tpu.core_type<tc>, window_params = [{transform_indices = @transform_0, window_bounds = array<i64: 16, 64>}, {transform_indices = @transform_1, window_bounds = array<i64: 16, 64>}, {transform_indices = @transform_2, window_bounds = array<i64: 1, 64>}, {pipeline_mode = #tpu.pipeline_mode<synchronous>, transform_indices = @transform_3, window_bounds = array<i64: 64, 4>}, {pipeline_mode = #tpu.pipeline_mode<synchronous>, transform_indices = @transform_4, window_bounds = array<i64: 4, 64>}, {transform_indices = @transform_5, window_bounds = array<i64: 16, 64>}]} {
    %c0 = arith.constant 0 : index
    %c0_0 = arith.constant 0 : index
    %0 = vector.load %arg4[%c0, %c0_0] : memref<1x64xf32, #tpu.memory_space<vmem>>, vector<1x64xf32>
    %c0_1 = arith.constant 0 : index
    %c0_2 = arith.constant 0 : index
    %1 = vector.load %arg5[%c0_1, %c0_2] : memref<64x4xf32, #tpu.memory_space<vmem>>, vector<64x4xf32>
    %cst = arith.constant dense<0.000000e+00> : vector<1x4xf32>
    %2 = tpu.matmul %0, %1, %cst {dimension_numbers = #tpu.dot_dimension_numbers<[1], [0], [0], [1], [0, 0, 1, 1], [], []>} : vector<1x64xf32>, vector<64x4xf32>, vector<1x4xf32> -> vector<1x4xf32>
    %cst_3 = arith.constant 0.000000e+00 : f32
    %3 = vector.broadcast %cst_3 : f32 to vector<1x4xf32>
    %4 = arith.cmpf oge, %2, %3 : vector<1x4xf32>
    %cst_4 = arith.constant 0.00999999977 : f32
    %5 = vector.broadcast %cst_4 : f32 to vector<1x4xf32>
    %6 = arith.mulf %5, %2 : vector<1x4xf32>
    %7 = arith.select %4, %2, %6 : vector<1x4xi1>, vector<1x4xf32>
    %c0_5 = arith.constant 0 : index
    %c0_6 = arith.constant 0 : index
    %8 = vector.load %arg6[%c0_5, %c0_6] : memref<4x64xf32, #tpu.memory_space<vmem>>, vector<4x64xf32>
    %cst_7 = arith.constant dense<0.000000e+00> : vector<1x64xf32>
    %9 = tpu.matmul %7, %8, %cst_7 {dimension_numbers = #tpu.dot_dimension_numbers<[1], [0], [0], [1], [0, 0, 1, 1], [], []>} : vector<1x4xf32>, vector<4x64xf32>, vector<1x64xf32> -> vector<1x64xf32>
    %10 = arith.negf %9 : vector<1x64xf32>
    %11 = math.exp %10 : vector<1x64xf32>
    %cst_8 = arith.constant 1.000000e+00 : f32
    %12 = vector.broadcast %cst_8 : f32 to vector<1x64xf32>
    %13 = arith.addf %12, %11 : vector<1x64xf32>
    %14 = arith.divf %12, %13 : vector<1x64xf32>
    %c0_9 = arith.constant 0 : index
    %c0_10 = arith.constant 0 : index
    %15 = vector.load %arg2[%c0_9, %c0_10] : memref<16x64xf32, #tpu.memory_space<vmem>>, vector<16x64xf32>
    %16 = vector.broadcast %14 : vector<1x64xf32> to vector<16x64xf32>
    %17 = arith.mulf %15, %16 : vector<16x64xf32>
    %c0_11 = arith.constant 0 : index
    %c0_12 = arith.constant 0 : index
    %18 = vector.load %arg3[%c0_11, %c0_12] : memref<16x64xf32, #tpu.memory_space<vmem>>, vector<16x64xf32>
    %19 = arith.addf %17, %18 : vector<16x64xf32>
    %c0_13 = arith.constant 0 : index
    %c0_14 = arith.constant 0 : index
    %20 = vector.load %arg7[%c0_13, %c0_14] : memref<16x64xf32, #tpu.memory_space<vmem>>, vector<16x64xf32>
    tpu.vector_store %arg7[%c0_13, %c0_14], %19 {strides = array<i32>} : memref<16x64xf32, #tpu.memory_space<vmem>>, vector<16x64xf32>,
    return
  }
  func.func @transform_0(%arg0: i32, %arg1: i32) -> (i32, i32) {
    %c1_i32 = arith.constant 1 : i32
    %0 = arith.muli %arg0, %c1_i32 : i32
    %1 = arith.addi %0, %arg1 : i32
    %c0_i32 = arith.constant 0 : i32
    %c0_i32_0 = arith.constant 0 : i32
    return %1, %c0_i32 : i32, i32
  }
  func.func @transform_1(%arg0: i32, %arg1: i32) -> (i32, i32) {
    %c1_i32 = arith.constant 1 : i32
    %0 = arith.muli %arg0, %c1_i32 : i32
    %1 = arith.addi %0, %arg1 : i32
    %c0_i32 = arith.constant 0 : i32
    %c0_i32_0 = arith.constant 0 : i32
    return %1, %c0_i32 : i32, i32
  }
  func.func @transform_2(%arg0: i32, %arg1: i32) -> (i32, i32) {
    %c0_i32 = arith.constant 0 : i32
    %c0_i32_0 = arith.constant 0 : i32
    return %arg0, %c0_i32 : i32, i32
  }
  func.func @transform_3(%arg0: i32, %arg1: i32) -> (i32, i32) {
    %c0_i32 = arith.constant 0 : i32
    %c0_i32_0 = arith.constant 0 : i32
    %c0_i32_1 = arith.constant 0 : i32
    return %c0_i32, %c0_i32_0 : i32, i32
  }
  func.func @transform_4(%arg0: i32, %arg1: i32) -> (i32, i32) {
    %c0_i32 = arith.constant 0 : i32
    %c0_i32_0 = arith.constant 0 : i32
    %c0_i32_1 = arith.constant 0 : i32
    return %c0_i32, %c0_i32_0 : i32, i32
  }
  func.func @transform_5(%arg0: i32, %arg1: i32) -> (i32, i32) {
    %c1_i32 = arith.constant 1 : i32
    %0 = arith.muli %arg0, %c1_i32 : i32
    %1 = arith.addi %0, %arg1 : i32
    %c0_i32 = arith.constant 0 : i32
    %c0_i32_0 = arith.constant 0 : i32
    return %1, %c0_i32 : i32, i32
  }
}

module attributes {stable_mosaic.version = 11 : i64} {
  func.func @_mm_bias_act_kernel(%arg0: i32, %arg1: i32, %arg2: memref<16x576xbf16, #tpu.memory_space<vmem>>, %arg3: memref<576x128xbf16, #tpu.memory_space<vmem>>, %arg4: memref<1x128xf32, #tpu.memory_space<vmem>>, %arg5: memref<16x128xf32, #tpu.memory_space<vmem>>) attributes {dimension_semantics = [#tpu.dimension_semantics<parallel>, #tpu.dimension_semantics<parallel>], iteration_bounds = array<i64: 1, 1>, scalar_prefetch = 0 : i64, scratch_operands = 0 : i64, tpu.core_type = #tpu.core_type<tc>, window_params = [{transform_indices = @transform_0, window_bounds = array<i64: 16, 576>}, {transform_indices = @transform_1, window_bounds = array<i64: 576, 128>}, {transform_indices = @transform_2, window_bounds = array<i64: 1, 128>}, {transform_indices = @transform_3, window_bounds = array<i64: 16, 128>}]} {
    %c0 = arith.constant 0 : index
    %c0_0 = arith.constant 0 : index
    %0 = vector.load %arg2[%c0, %c0_0] : memref<16x576xbf16, #tpu.memory_space<vmem>>, vector<16x576xbf16>
    %c0_1 = arith.constant 0 : index
    %c0_2 = arith.constant 0 : index
    %1 = vector.load %arg3[%c0_1, %c0_2] : memref<576x128xbf16, #tpu.memory_space<vmem>>, vector<576x128xbf16>
    %cst = arith.constant dense<0.000000e+00> : vector<16x128xf32>
    %2 = tpu.matmul %0, %1, %cst {dimension_numbers = #tpu.dot_dimension_numbers<[1], [0], [0], [1], [0, 0, 1, 1], [], []>} : vector<16x576xbf16>, vector<576x128xbf16>, vector<16x128xf32> -> vector<16x128xf32>
    %c0_3 = arith.constant 0 : index
    %c0_4 = arith.constant 0 : index
    %3 = vector.load %arg4[%c0_3, %c0_4] : memref<1x128xf32, #tpu.memory_space<vmem>>, vector<1x128xf32>
    %4 = vector.broadcast %3 : vector<1x128xf32> to vector<16x128xf32>
    %5 = arith.addf %2, %4 : vector<16x128xf32>
    %c0_5 = arith.constant 0 : index
    %c0_6 = arith.constant 0 : index
    %6 = vector.load %arg5[%c0_5, %c0_6] : memref<16x128xf32, #tpu.memory_space<vmem>>, vector<16x128xf32>
    tpu.vector_store %arg5[%c0_5, %c0_6], %5 {strides = array<i32>} : memref<16x128xf32, #tpu.memory_space<vmem>>, vector<16x128xf32>,
    return
  }
  func.func @transform_0(%arg0: i32, %arg1: i32) -> (i32, i32) {
    %c0_i32 = arith.constant 0 : i32
    %c0_i32_0 = arith.constant 0 : i32
    return %arg0, %c0_i32 : i32, i32
  }
  func.func @transform_1(%arg0: i32, %arg1: i32) -> (i32, i32) {
    %c0_i32 = arith.constant 0 : i32
    %c0_i32_0 = arith.constant 0 : i32
    return %c0_i32, %arg1 : i32, i32
  }
  func.func @transform_2(%arg0: i32, %arg1: i32) -> (i32, i32) {
    %c0_i32 = arith.constant 0 : i32
    %c0_i32_0 = arith.constant 0 : i32
    return %c0_i32, %arg1 : i32, i32
  }
  func.func @transform_3(%arg0: i32, %arg1: i32) -> (i32, i32) {
    %c0_i32 = arith.constant 0 : i32
    return %arg0, %arg1 : i32, i32
  }
}

module attributes {stable_mosaic.version = 11 : i64} {
  func.func @_in_spade_act_kernel(%arg0: i32, %arg1: i32, %arg2: memref<64x32xf32, #tpu.memory_space<vmem>>, %arg3: memref<64x64xf32, #tpu.memory_space<vmem>>, %arg4: memref<1x32xf32, #tpu.memory_space<vmem>>, %arg5: memref<1x32xf32, #tpu.memory_space<vmem>>, %arg6: memref<64x32xf32, #tpu.memory_space<vmem>>) attributes {dimension_semantics = [#tpu.dimension_semantics<parallel>, #tpu.dimension_semantics<parallel>], iteration_bounds = array<i64: 1, 1>, scalar_prefetch = 0 : i64, scratch_operands = 0 : i64, tpu.core_type = #tpu.core_type<tc>, window_params = [{transform_indices = @transform_0, window_bounds = array<i64: 64, 32>}, {transform_indices = @transform_1, window_bounds = array<i64: 64, 64>}, {transform_indices = @transform_2, window_bounds = array<i64: 1, 32>}, {transform_indices = @transform_3, window_bounds = array<i64: 1, 32>}, {transform_indices = @transform_4, window_bounds = array<i64: 64, 32>}]} {
    %c0 = arith.constant 0 : index
    %c0_0 = arith.constant 0 : index
    %0 = vector.load %arg2[%c0, %c0_0] : memref<64x32xf32, #tpu.memory_space<vmem>>, vector<64x32xf32>
    %c0_1 = arith.constant 0 : index
    %c0_2 = arith.constant 0 : index
    %1 = vector.load %arg4[%c0_1, %c0_2] : memref<1x32xf32, #tpu.memory_space<vmem>>, vector<1x32xf32>
    %2 = vector.broadcast %1 : vector<1x32xf32> to vector<64x32xf32>
    %3 = arith.subf %0, %2 : vector<64x32xf32>
    %c0_3 = arith.constant 0 : index
    %c0_4 = arith.constant 0 : index
    %4 = vector.load %arg5[%c0_3, %c0_4] : memref<1x32xf32, #tpu.memory_space<vmem>>, vector<1x32xf32>
    %5 = vector.broadcast %4 : vector<1x32xf32> to vector<64x32xf32>
    %6 = arith.mulf %3, %5 : vector<64x32xf32>
    %c0_5 = arith.constant 0 : index
    %c0_6 = arith.constant 0 : index
    %7 = vector.load %arg3[%c0_5, %c0_6] : memref<64x64xf32, #tpu.memory_space<vmem>>, vector<64x32xf32>
    %c0_7 = arith.constant 0 : index
    %c32 = arith.constant 32 : index
    %8 = vector.load %arg3[%c0_7, %c32] : memref<64x64xf32, #tpu.memory_space<vmem>>, vector<64x32xf32>
    %cst = arith.constant 1.000000e+00 : f32
    %9 = vector.broadcast %cst : f32 to vector<64x32xf32>
    %10 = arith.addf %9, %7 : vector<64x32xf32>
    %11 = arith.mulf %6, %10 : vector<64x32xf32>
    %12 = arith.addf %11, %8 : vector<64x32xf32>
    %cst_8 = arith.constant 0.000000e+00 : f32
    %13 = vector.broadcast %cst_8 : f32 to vector<64x32xf32>
    %14 = arith.cmpf oge, %12, %13 : vector<64x32xf32>
    %cst_9 = arith.constant 0.00999999977 : f32
    %15 = vector.broadcast %cst_9 : f32 to vector<64x32xf32>
    %16 = arith.mulf %15, %12 : vector<64x32xf32>
    %17 = arith.select %14, %12, %16 : vector<64x32xi1>, vector<64x32xf32>
    %c0_10 = arith.constant 0 : index
    %c0_11 = arith.constant 0 : index
    %18 = vector.load %arg6[%c0_10, %c0_11] : memref<64x32xf32, #tpu.memory_space<vmem>>, vector<64x32xf32>
    tpu.vector_store %arg6[%c0_10, %c0_11], %17 {strides = array<i32>} : memref<64x32xf32, #tpu.memory_space<vmem>>, vector<64x32xf32>,
    return
  }
  func.func @transform_0(%arg0: i32, %arg1: i32) -> (i32, i32) {
    %c1_i32 = arith.constant 1 : i32
    %0 = arith.muli %arg0, %c1_i32 : i32
    %1 = arith.addi %0, %arg1 : i32
    %c0_i32 = arith.constant 0 : i32
    %c0_i32_0 = arith.constant 0 : i32
    return %1, %c0_i32 : i32, i32
  }
  func.func @transform_1(%arg0: i32, %arg1: i32) -> (i32, i32) {
    %c1_i32 = arith.constant 1 : i32
    %0 = arith.muli %arg0, %c1_i32 : i32
    %1 = arith.addi %0, %arg1 : i32
    %c0_i32 = arith.constant 0 : i32
    %c0_i32_0 = arith.constant 0 : i32
    return %1, %c0_i32 : i32, i32
  }
  func.func @transform_2(%arg0: i32, %arg1: i32) -> (i32, i32) {
    %c0_i32 = arith.constant 0 : i32
    %c0_i32_0 = arith.constant 0 : i32
    return %arg0, %c0_i32 : i32, i32
  }
  func.func @transform_3(%arg0: i32, %arg1: i32) -> (i32, i32) {
    %c0_i32 = arith.constant 0 : i32
    %c0_i32_0 = arith.constant 0 : i32
    return %arg0, %c0_i32 : i32, i32
  }
  func.func @transform_4(%arg0: i32, %arg1: i32) -> (i32, i32) {
    %c1_i32 = arith.constant 1 : i32
    %0 = arith.muli %arg0, %c1_i32 : i32
    %1 = arith.addi %0, %arg1 : i32
    %c0_i32 = arith.constant 0 : i32
    %c0_i32_0 = arith.constant 0 : i32
    return %1, %c0_i32 : i32, i32
  }
}

module attributes {stable_mosaic.version = 11 : i64} {
  func.func @_mm_bias_act_kernel(%arg0: i32, %arg1: i32, %arg2: memref<64x288xbf16, #tpu.memory_space<vmem>>, %arg3: memref<288x64xbf16, #tpu.memory_space<vmem>>, %arg4: memref<1x64xf32, #tpu.memory_space<vmem>>, %arg5: memref<64x64xf32, #tpu.memory_space<vmem>>) attributes {dimension_semantics = [#tpu.dimension_semantics<parallel>, #tpu.dimension_semantics<parallel>], iteration_bounds = array<i64: 1, 1>, scalar_prefetch = 0 : i64, scratch_operands = 0 : i64, tpu.core_type = #tpu.core_type<tc>, window_params = [{transform_indices = @transform_0, window_bounds = array<i64: 64, 288>}, {transform_indices = @transform_1, window_bounds = array<i64: 288, 64>}, {transform_indices = @transform_2, window_bounds = array<i64: 1, 64>}, {transform_indices = @transform_3, window_bounds = array<i64: 64, 64>}]} {
    %c0 = arith.constant 0 : index
    %c0_0 = arith.constant 0 : index
    %0 = vector.load %arg2[%c0, %c0_0] : memref<64x288xbf16, #tpu.memory_space<vmem>>, vector<64x288xbf16>
    %c0_1 = arith.constant 0 : index
    %c0_2 = arith.constant 0 : index
    %1 = vector.load %arg3[%c0_1, %c0_2] : memref<288x64xbf16, #tpu.memory_space<vmem>>, vector<288x64xbf16>
    %cst = arith.constant dense<0.000000e+00> : vector<64x64xf32>
    %2 = tpu.matmul %0, %1, %cst {dimension_numbers = #tpu.dot_dimension_numbers<[1], [0], [0], [1], [0, 0, 1, 1], [], []>} : vector<64x288xbf16>, vector<288x64xbf16>, vector<64x64xf32> -> vector<64x64xf32>
    %c0_3 = arith.constant 0 : index
    %c0_4 = arith.constant 0 : index
    %3 = vector.load %arg4[%c0_3, %c0_4] : memref<1x64xf32, #tpu.memory_space<vmem>>, vector<1x64xf32>
    %4 = vector.broadcast %3 : vector<1x64xf32> to vector<64x64xf32>
    %5 = arith.addf %2, %4 : vector<64x64xf32>
    %c0_5 = arith.constant 0 : index
    %c0_6 = arith.constant 0 : index
    %6 = vector.load %arg5[%c0_5, %c0_6] : memref<64x64xf32, #tpu.memory_space<vmem>>, vector<64x64xf32>
    tpu.vector_store %arg5[%c0_5, %c0_6], %5 {strides = array<i32>} : memref<64x64xf32, #tpu.memory_space<vmem>>, vector<64x64xf32>,
    return
  }
  func.func @transform_0(%arg0: i32, %arg1: i32) -> (i32, i32) {
    %c0_i32 = arith.constant 0 : i32
    %c0_i32_0 = arith.constant 0 : i32
    return %arg0, %c0_i32 : i32, i32
  }
  func.func @transform_1(%arg0: i32, %arg1: i32) -> (i32, i32) {
    %c0_i32 = arith.constant 0 : i32
    %c0_i32_0 = arith.constant 0 : i32
    return %c0_i32, %arg1 : i32, i32
  }
  func.func @transform_2(%arg0: i32, %arg1: i32) -> (i32, i32) {
    %c0_i32 = arith.constant 0 : i32
    %c0_i32_0 = arith.constant 0 : i32
    return %c0_i32, %arg1 : i32, i32
  }
  func.func @transform_3(%arg0: i32, %arg1: i32) -> (i32, i32) {
    %c0_i32 = arith.constant 0 : i32
    return %arg0, %arg1 : i32, i32
  }
}

module attributes {stable_mosaic.version = 11 : i64} {
  func.func @_in_spade_act_kernel(%arg0: i32, %arg1: i32, %arg2: memref<256x16xf32, #tpu.memory_space<vmem>>, %arg3: memref<256x32xf32, #tpu.memory_space<vmem>>, %arg4: memref<1x16xf32, #tpu.memory_space<vmem>>, %arg5: memref<1x16xf32, #tpu.memory_space<vmem>>, %arg6: memref<256x16xf32, #tpu.memory_space<vmem>>) attributes {dimension_semantics = [#tpu.dimension_semantics<parallel>, #tpu.dimension_semantics<parallel>], iteration_bounds = array<i64: 1, 1>, scalar_prefetch = 0 : i64, scratch_operands = 0 : i64, tpu.core_type = #tpu.core_type<tc>, window_params = [{transform_indices = @transform_0, window_bounds = array<i64: 256, 16>}, {transform_indices = @transform_1, window_bounds = array<i64: 256, 32>}, {transform_indices = @transform_2, window_bounds = array<i64: 1, 16>}, {transform_indices = @transform_3, window_bounds = array<i64: 1, 16>}, {transform_indices = @transform_4, window_bounds = array<i64: 256, 16>}]} {
    %c0 = arith.constant 0 : index
    %c0_0 = arith.constant 0 : index
    %0 = vector.load %arg2[%c0, %c0_0] : memref<256x16xf32, #tpu.memory_space<vmem>>, vector<256x16xf32>
    %c0_1 = arith.constant 0 : index
    %c0_2 = arith.constant 0 : index
    %1 = vector.load %arg4[%c0_1, %c0_2] : memref<1x16xf32, #tpu.memory_space<vmem>>, vector<1x16xf32>
    %2 = vector.broadcast %1 : vector<1x16xf32> to vector<256x16xf32>
    %3 = arith.subf %0, %2 : vector<256x16xf32>
    %c0_3 = arith.constant 0 : index
    %c0_4 = arith.constant 0 : index
    %4 = vector.load %arg5[%c0_3, %c0_4] : memref<1x16xf32, #tpu.memory_space<vmem>>, vector<1x16xf32>
    %5 = vector.broadcast %4 : vector<1x16xf32> to vector<256x16xf32>
    %6 = arith.mulf %3, %5 : vector<256x16xf32>
    %c0_5 = arith.constant 0 : index
    %c0_6 = arith.constant 0 : index
    %7 = vector.load %arg3[%c0_5, %c0_6] : memref<256x32xf32, #tpu.memory_space<vmem>>, vector<256x16xf32>
    %c0_7 = arith.constant 0 : index
    %c16 = arith.constant 16 : index
    %8 = vector.load %arg3[%c0_7, %c16] : memref<256x32xf32, #tpu.memory_space<vmem>>, vector<256x16xf32>
    %cst = arith.constant 1.000000e+00 : f32
    %9 = vector.broadcast %cst : f32 to vector<256x16xf32>
    %10 = arith.addf %9, %7 : vector<256x16xf32>
    %11 = arith.mulf %6, %10 : vector<256x16xf32>
    %12 = arith.addf %11, %8 : vector<256x16xf32>
    %cst_8 = arith.constant 0.000000e+00 : f32
    %13 = vector.broadcast %cst_8 : f32 to vector<256x16xf32>
    %14 = arith.cmpf oge, %12, %13 : vector<256x16xf32>
    %cst_9 = arith.constant 0.00999999977 : f32
    %15 = vector.broadcast %cst_9 : f32 to vector<256x16xf32>
    %16 = arith.mulf %15, %12 : vector<256x16xf32>
    %17 = arith.select %14, %12, %16 : vector<256x16xi1>, vector<256x16xf32>
    %c0_10 = arith.constant 0 : index
    %c0_11 = arith.constant 0 : index
    %18 = vector.load %arg6[%c0_10, %c0_11] : memref<256x16xf32, #tpu.memory_space<vmem>>, vector<256x16xf32>
    tpu.vector_store %arg6[%c0_10, %c0_11], %17 {strides = array<i32>} : memref<256x16xf32, #tpu.memory_space<vmem>>, vector<256x16xf32>,
    return
  }
  func.func @transform_0(%arg0: i32, %arg1: i32) -> (i32, i32) {
    %c1_i32 = arith.constant 1 : i32
    %0 = arith.muli %arg0, %c1_i32 : i32
    %1 = arith.addi %0, %arg1 : i32
    %c0_i32 = arith.constant 0 : i32
    %c0_i32_0 = arith.constant 0 : i32
    return %1, %c0_i32 : i32, i32
  }
  func.func @transform_1(%arg0: i32, %arg1: i32) -> (i32, i32) {
    %c1_i32 = arith.constant 1 : i32
    %0 = arith.muli %arg0, %c1_i32 : i32
    %1 = arith.addi %0, %arg1 : i32
    %c0_i32 = arith.constant 0 : i32
    %c0_i32_0 = arith.constant 0 : i32
    return %1, %c0_i32 : i32, i32
  }
  func.func @transform_2(%arg0: i32, %arg1: i32) -> (i32, i32) {
    %c0_i32 = arith.constant 0 : i32
    %c0_i32_0 = arith.constant 0 : i32
    return %arg0, %c0_i32 : i32, i32
  }
  func.func @transform_3(%arg0: i32, %arg1: i32) -> (i32, i32) {
    %c0_i32 = arith.constant 0 : i32
    %c0_i32_0 = arith.constant 0 : i32
    return %arg0, %c0_i32 : i32, i32
  }
  func.func @transform_4(%arg0: i32, %arg1: i32) -> (i32, i32) {
    %c1_i32 = arith.constant 1 : i32
    %0 = arith.muli %arg0, %c1_i32 : i32
    %1 = arith.addi %0, %arg1 : i32
    %c0_i32 = arith.constant 0 : i32
    %c0_i32_0 = arith.constant 0 : i32
    return %1, %c0_i32 : i32, i32
  }
}

module attributes {stable_mosaic.version = 11 : i64} {
  func.func @_mm_bias_act_kernel(%arg0: i32, %arg1: i32, %arg2: memref<256x144xbf16, #tpu.memory_space<vmem>>, %arg3: memref<144x16xbf16, #tpu.memory_space<vmem>>, %arg4: memref<1x16xf32, #tpu.memory_space<vmem>>, %arg5: memref<256x16xf32, #tpu.memory_space<vmem>>) attributes {dimension_semantics = [#tpu.dimension_semantics<parallel>, #tpu.dimension_semantics<parallel>], iteration_bounds = array<i64: 1, 1>, scalar_prefetch = 0 : i64, scratch_operands = 0 : i64, tpu.core_type = #tpu.core_type<tc>, window_params = [{transform_indices = @transform_0, window_bounds = array<i64: 256, 144>}, {transform_indices = @transform_1, window_bounds = array<i64: 144, 16>}, {transform_indices = @transform_2, window_bounds = array<i64: 1, 16>}, {transform_indices = @transform_3, window_bounds = array<i64: 256, 16>}]} {
    %c0 = arith.constant 0 : index
    %c0_0 = arith.constant 0 : index
    %0 = vector.load %arg2[%c0, %c0_0] : memref<256x144xbf16, #tpu.memory_space<vmem>>, vector<256x144xbf16>
    %c0_1 = arith.constant 0 : index
    %c0_2 = arith.constant 0 : index
    %1 = vector.load %arg3[%c0_1, %c0_2] : memref<144x16xbf16, #tpu.memory_space<vmem>>, vector<144x16xbf16>
    %cst = arith.constant dense<0.000000e+00> : vector<256x16xf32>
    %2 = tpu.matmul %0, %1, %cst {dimension_numbers = #tpu.dot_dimension_numbers<[1], [0], [0], [1], [0, 0, 1, 1], [], []>} : vector<256x144xbf16>, vector<144x16xbf16>, vector<256x16xf32> -> vector<256x16xf32>
    %c0_3 = arith.constant 0 : index
    %c0_4 = arith.constant 0 : index
    %3 = vector.load %arg4[%c0_3, %c0_4] : memref<1x16xf32, #tpu.memory_space<vmem>>, vector<1x16xf32>
    %4 = vector.broadcast %3 : vector<1x16xf32> to vector<256x16xf32>
    %5 = arith.addf %2, %4 : vector<256x16xf32>
    %6 = math.tanh %5 : vector<256x16xf32>
    %c0_5 = arith.constant 0 : index
    %c0_6 = arith.constant 0 : index
    %7 = vector.load %arg5[%c0_5, %c0_6] : memref<256x16xf32, #tpu.memory_space<vmem>>, vector<256x16xf32>
    tpu.vector_store %arg5[%c0_5, %c0_6], %6 {strides = array<i32>} : memref<256x16xf32, #tpu.memory_space<vmem>>, vector<256x16xf32>,
    return
  }
  func.func @transform_0(%arg0: i32, %arg1: i32) -> (i32, i32) {
    %c0_i32 = arith.constant 0 : i32
    %c0_i32_0 = arith.constant 0 : i32
    return %arg0, %c0_i32 : i32, i32
  }
  func.func @transform_1(%arg0: i32, %arg1: i32) -> (i32, i32) {
    %c0_i32 = arith.constant 0 : i32
    %c0_i32_0 = arith.constant 0 : i32
    return %c0_i32, %arg1 : i32, i32
  }
  func.func @transform_2(%arg0: i32, %arg1: i32) -> (i32, i32) {
    %c0_i32 = arith.constant 0 : i32
    %c0_i32_0 = arith.constant 0 : i32
    return %c0_i32, %arg1 : i32, i32
  }
  func.func @transform_3(%arg0: i32, %arg1: i32) -> (i32, i32) {
    %c0_i32 = arith.constant 0 : i32
    return %arg0, %arg1 : i32, i32
  }
}

</mosaic_0001>

<bundles_post_ra>
// kernel: foreground_forward.36
= control target key start
LH: loop header
LB: loop body
LE: loop exit
PB: predicated region body
PF: predicated region fallthrough
CT: control target
= control target key end

     0   :  { %v80_v0 = vlaneseq  ;;  %s1037_s1 = inlined_call_operand.vmem [shape: f32[1,256], index: 1, kind: input, shape index: {}]   ;;  %s1038_s2 = inlined_call_operand.vmem [shape: f32[1,256], index: 2, kind: input, shape index: {}]   ;;  %s1039_s0 = inlined_call_operand.vmem [shape: f32[256,256], index: 0, kind: input, shape index: {}]   ;;  %s1040_s3 = inlined_call_operand.vmem [shape: f32[256,256], index: 3, kind: output, shape index: {}]  }
   0x1   :  { %v78_v2 = vld [vmem:[%s1037_s1] sm:$0x3]  ;;  %v15_v6 = vld [vmem:[%s1039_s0 + $0x8] sm:$0xff]  ;;  %v16_v8 = vld [vmem:[%s1039_s0 + $0x10] sm:$0xff] }
   0x2   :  { %v81_v1 = vshrl.u32 %v80_v0, 7  ;;  %v154_v3 = vld [vmem:[%s1038_s2] sm:$0x3]  ;;  %v17_v9 = vld [vmem:[%s1039_s0 + $0x18] sm:$0xff]  ;;  %v19_v15 = vld [vmem:[%s1039_s0 + $0x28] sm:$0xff] }
   0x3   :  { %v14_v4 = vld [vmem:[%s1039_s0] sm:$0xff]  ;;  %v20_v16 = vld [vmem:[%s1039_s0 + $0x30] sm:$0xff]  ;;  %v21_v17 = vld [vmem:[%s1039_s0 + $0x38] sm:$0xff] }
   0x4   :  { %v82_v5 = vsub.s32 0, %v81_v1  ;;  %v86_v7 = vsub.s32 1, %v81_v1  ;;  %v18_v10 = vld [vmem:[%s1039_s0 + $0x20] sm:$0xff]  ;;  %v23_v42 = vld [vmem:[%s1039_s0 + $0x48] sm:$0xff]  ;;  %v24_v46 = vld [vmem:[%s1039_s0 + $0x50] sm:$0xff] }
   0x5   :  { %v22_v41 = vld [vmem:[%s1039_s0 + $0x40] sm:$0xff]  ;;  %v25_v47 = vld [vmem:[%s1039_s0 + $0x58] sm:$0xff]  ;;  %v27_v51 = vld [vmem:[%s1039_s0 + $0x68] sm:$0xff] }
   0x6   :  { %v531_v11 = vrot.slane %v78_v2, %v82_v5  ;;  %v533_v12 = vrot.slane %v154_v3, %v82_v5  ;;  %v535_v13 = vrot.slane %v78_v2, %v86_v7  ;;  %v537_v14 = vrot.slane %v154_v3, %v86_v7  ;;  %v26_v48 = vld [vmem:[%s1039_s0 + $0x60] sm:$0xff]  ;;  %v28_v56 = vld [vmem:[%s1039_s0 + $0x70] sm:$0xff]  ;;  %v29_v5 = vld [vmem:[%s1039_s0 + $0x78] sm:$0xff] }
   0x7   :  { %v31_v7 = vld [vmem:[%s1039_s0 + $0x88] sm:$0xff] }
   0x8   :  { %v90_v18 = vmul.f32 %v531_v11, %v14_v4  ;;  %v91_v19 = vmul.f32 %v535_v13, %v15_v6  ;;  %v92_v20 = vmul.f32 %v531_v11, %v16_v8  ;;  %v93_v21 = vmul.f32 %v535_v13, %v17_v9  ;;  %v30_v6 = vld [vmem:[%s1039_s0 + $0x80] sm:$0xff] }
   0x9   :  { %v94_v22 = vmul.f32 %v531_v11, %v18_v10  ;;  %v95_v23 = vmul.f32 %v535_v13, %v19_v15  ;;  %v96_v24 = vmul.f32 %v531_v11, %v20_v16  ;;  %v97_v25 = vmul.f32 %v535_v13, %v21_v17 }
   0xa   :  { %v166_v26 = vadd.f32 %v533_v12, %v90_v18  ;;  %v167_v27 = vadd.f32 %v537_v14, %v91_v19  ;;  %v168_v28 = vadd.f32 %v533_v12, %v92_v20  ;;  %v169_v29 = vadd.f32 %v537_v14, %v93_v21 }
   0xb   :  { %v170_v30 = vadd.f32 %v533_v12, %v94_v22  ;;  %v171_v31 = vadd.f32 %v537_v14, %v95_v23  ;;  %v172_v32 = vadd.f32 %v533_v12, %v96_v24  ;;  %v173_v33 = vadd.f32 %v537_v14, %v97_v25  ;;  %v32_v23 = vld [vmem:[%s1039_s0 + $0x90] sm:$0xff] }
   0xc   :  { %vm230_vm0 = vcmp.ge.f32.partialorder %v166_v26, 0.0  ;;  %v294_v34 = vmul.f32 0.01, %v166_v26  ;;  %vm231_vm1 = vcmp.ge.f32.partialorder %v167_v27, 0.0  ;;  %v295_v35 = vmul.f32 0.01, %v167_v27 }
   0xd   :  { %vm232_vm2 = vcmp.ge.f32.partialorder %v168_v28, 0.0  ;;  %v296_v36 = vmul.f32 0.01, %v168_v28  ;;  %vm233_vm3 = vcmp.ge.f32.partialorder %v169_v29, 0.0  ;;  %v297_v37 = vmul.f32 0.01, %v169_v29 }
   0xe   :  { %v358_v38 = vsel %vm230_vm0, %v166_v26, %v294_v34  ;;  %v359_v39 = vsel %vm231_vm1, %v167_v27, %v295_v35  ;;  %vm234_vm4 = vcmp.ge.f32.partialorder %v170_v30, 0.0  ;;  %v298_v40 = vmul.f32 0.01, %v170_v30 }
   0xf   :  { %422 = vst [vmem:[%s1040_s3] sm:$0xff] %v358_v38  ;;  %423 = vst [vmem:[%s1040_s3 + $0x8] sm:$0xff] %v359_v39  ;;  %v360_v43 = vsel %vm232_vm2, %v168_v28, %v296_v36  ;;  %v361_v44 = vsel %vm233_vm3, %v169_v29, %v297_v37  ;;  %vm235_vm5 = vcmp.ge.f32.partialorder %v171_v31, 0.0  ;;  %v299_v45 = vmul.f32 0.01, %v171_v31  ;;  %v33_v28 = vld [vmem:[%s1039_s0 + $0x98] sm:$0xff]  ;;  %v34_v29 = vld [vmem:[%s1039_s0 + $0xa0] sm:$0xff] }
  0x10   :  { %424 = vst [vmem:[%s1040_s3 + $0x10] sm:$0xff] %v360_v43  ;;  %425 = vst [vmem:[%s1040_s3 + $0x18] sm:$0xff] %v361_v44  ;;  %v362_v49 = vsel %vm234_vm4, %v170_v30, %v298_v40  ;;  %vm236_vm6 = vcmp.ge.f32.partialorder %v172_v32, 0.0  ;;  %v300_v50 = vmul.f32 0.01, %v172_v32  ;;  %vm237_vm7 = vcmp.ge.f32.partialorder %v173_v33, 0.0 }
  0x11   :  { %426 = vst [vmem:[%s1040_s3 + $0x20] sm:$0xff] %v362_v49  ;;  %v363_v52 = vsel %vm235_vm5, %v171_v31, %v299_v45  ;;  %v301_v53 = vmul.f32 0.01, %v173_v33  ;;  %v98_v54 = vmul.f32 %v531_v11, %v22_v41  ;;  %v99_v55 = vmul.f32 %v535_v13, %v23_v42  ;;  %v35_v40 = vld [vmem:[%s1039_s0 + $0xa8] sm:$0xff] }
  0x12   :  { %427 = vst [vmem:[%s1040_s3 + $0x28] sm:$0xff] %v363_v52  ;;  %v364_v57 = vsel %vm236_vm6, %v172_v32, %v300_v50  ;;  %v100_v58 = vmul.f32 %v531_v11, %v24_v46  ;;  %v101_v59 = vmul.f32 %v535_v13, %v25_v47  ;;  %v102_v60 = vmul.f32 %v531_v11, %v26_v48  ;;  %v36_v50 = vld [vmem:[%s1039_s0 + $0xb0] sm:$0xff]  ;;  %v38_v52 = vld [vmem:[%s1039_s0 + $0xc0] sm:$0xff] }
  0x13   :  { %428 = vst [vmem:[%s1040_s3 + $0x30] sm:$0xff] %v364_v57  ;;  %v365_v61 = vsel %vm237_vm7, %v173_v33, %v301_v53  ;;  %v174_v62 = vadd.f32 %v533_v12, %v98_v54  ;;  %v175_v63 = vadd.f32 %v537_v14, %v99_v55  ;;  %v103_v0 = vmul.f32 %v535_v13, %v27_v51  ;;  %v37_v51 = vld [vmem:[%s1039_s0 + $0xb8] sm:$0xff] }
  0x14   :  { %429 = vst [vmem:[%s1040_s3 + $0x38] sm:$0xff] %v365_v61  ;;  %v176_v1 = vadd.f32 %v533_v12, %v100_v58  ;;  %v177_v2 = vadd.f32 %v537_v14, %v101_v59  ;;  %v178_v3 = vadd.f32 %v533_v12, %v102_v60  ;;  %v104_v4 = vmul.f32 %v531_v11, %v28_v56  ;;  %v39_v58 = vld [vmem:[%s1039_s0 + $0xc8] sm:$0xff] }
  0x15   :  { %vm238_vm8 = vcmp.ge.f32.partialorder %v174_v62, 0.0  ;;  %v302_v8 = vmul.f32 0.01, %v174_v62  ;;  %vm239_vm9 = vcmp.ge.f32.partialorder %v175_v63, 0.0  ;;  %v303_v9 = vmul.f32 0.01, %v175_v63 }
  0x16   :  { %vm240_vm10 = vcmp.ge.f32.partialorder %v176_v1, 0.0  ;;  %v304_v10 = vmul.f32 0.01, %v176_v1  ;;  %vm241_vm11 = vcmp.ge.f32.partialorder %v177_v2, 0.0  ;;  %v305_v15 = vmul.f32 0.01, %v177_v2 }
  0x17   :  { %v366_v16 = vsel %vm238_vm8, %v174_v62, %v302_v8  ;;  %v367_v17 = vsel %vm239_vm9, %v175_v63, %v303_v9  ;;  %vm242_vm12 = vcmp.ge.f32.partialorder %v178_v3, 0.0  ;;  %v306_v18 = vmul.f32 0.01, %v178_v3  ;;  %v40_v63 = vld [vmem:[%s1039_s0 + $0xd0] sm:$0xff] }
  0x18   :  { %430 = vst [vmem:[%s1040_s3 + $0x40] sm:$0xff] %v366_v16  ;;  %431 = vst [vmem:[%s1040_s3 + $0x48] sm:$0xff] %v367_v17  ;;  %v368_v19 = vsel %vm240_vm10, %v176_v1, %v304_v10  ;;  %v369_v20 = vsel %vm241_vm11, %v177_v2, %v305_v15  ;;  %v179_v21 = vadd.f32 %v537_v14, %v103_v0  ;;  %v41_v0 = vld [vmem:[%s1039_s0 + $0xd8] sm:$0xff]  ;;  %v42_v1 = vld [vmem:[%s1039_s0 + $0xe0] sm:$0xff] }
  0x19   :  { %v180_v22 = vadd.f32 %v533_v12, %v104_v4  ;;  %432 = vst [vmem:[%s1040_s3 + $0x50] sm:$0xff] %v368_v19  ;;  %433 = vst [vmem:[%s1040_s3 + $0x58] sm:$0xff] %v369_v20  ;;  %v370_v24 = vsel %vm242_vm12, %v178_v3, %v306_v18  ;;  %v105_v25 = vmul.f32 %v535_v13, %v29_v5 }
  0x1a   :  { %v106_v26 = vmul.f32 %v531_v11, %v30_v6  ;;  %v107_v27 = vmul.f32 %v535_v13, %v31_v7  ;;  %434 = vst [vmem:[%s1040_s3 + $0x60] sm:$0xff] %v370_v24  ;;  %vm243_vm13 = vcmp.ge.f32.partialorder %v179_v21, 0.0  ;;  %v307_v30 = vmul.f32 0.01, %v179_v21 }
  0x1b   :  { %vm244_vm14 = vcmp.ge.f32.partialorder %v180_v22, 0.0  ;;  %v308_v31 = vmul.f32 0.01, %v180_v22  ;;  %v181_v32 = vadd.f32 %v537_v14, %v105_v25  ;;  %v108_v35 = vmul.f32 %v531_v11, %v32_v23 }
  0x1c   :  { %v182_v33 = vadd.f32 %v533_v12, %v106_v26  ;;  %v183_v34 = vadd.f32 %v537_v14, %v107_v27  ;;  %v371_v36 = vsel %vm243_vm13, %v179_v21, %v307_v30  ;;  %v109_v38 = vmul.f32 %v535_v13, %v33_v28  ;;  %v43_v26 = vld [vmem:[%s1039_s0 + $0xe8] sm:$0xff]  ;;  %v44_v27 = vld [vmem:[%s1039_s0 + $0xf0] sm:$0xff]  ;;  %v45_v28 = vld [vmem:[%s1039_s0 + $0xf8] sm:$0xff] }
  0x1d   :  { %v372_v37 = vsel %vm244_vm14, %v180_v22, %v308_v31  ;;  %v110_v39 = vmul.f32 %v531_v11, %v34_v29  ;;  %435 = vst [vmem:[%s1040_s3 + $0x68] sm:$0xff] %v371_v36  ;;  %vm245_vm15 = vcmp.ge.f32.partialorder %v181_v32, 0.0  ;;  %v309_v41 = vmul.f32 0.01, %v181_v32  ;;  %v46_v31 = vld [vmem:[%s1039_s0 + $0x100] sm:$0xff] }
  0x1e   :  { %436 = vst [vmem:[%s1040_s3 + $0x70] sm:$0xff] %v372_v37  ;;  %vm246_vm0 = vcmp.ge.f32.partialorder %v182_v33, 0.0  ;;  %v310_v42 = vmul.f32 0.01, %v182_v33  ;;  %vm247_vm1 = vcmp.ge.f32.partialorder %v183_v34, 0.0  ;;  %v184_v44 = vadd.f32 %v533_v12, %v108_v35 }
  0x1f   :  { %v311_v43 = vmul.f32 0.01, %v183_v34  ;;  %v185_v45 = vadd.f32 %v537_v14, %v109_v38  ;;  %v373_v46 = vsel %vm245_vm15, %v181_v32, %v309_v41  ;;  %v186_v48 = vadd.f32 %v533_v12, %v110_v39  ;;  %v47_v32 = vld [vmem:[%s1039_s0 + $0x108] sm:$0xff]  ;;  %v48_v39 = vld [vmem:[%s1039_s0 + $0x110] sm:$0xff] }
  0x20   :  { %v374_v47 = vsel %vm246_vm0, %v182_v33, %v310_v42  ;;  %v111_v49 = vmul.f32 %v535_v13, %v35_v40  ;;  %437 = vst [vmem:[%s1040_s3 + $0x78] sm:$0xff] %v373_v46  ;;  %vm248_vm2 = vcmp.ge.f32.partialorder %v184_v44, 0.0  ;;  %v312_v54 = vmul.f32 0.01, %v184_v44  ;;  %v49_v40 = vld [vmem:[%s1039_s0 + $0x118] sm:$0xff] }
  0x21   :  { %438 = vst [vmem:[%s1040_s3 + $0x80] sm:$0xff] %v374_v47  ;;  %v375_v53 = vsel %vm247_vm1, %v183_v34, %v311_v43  ;;  %vm249_vm3 = vcmp.ge.f32.partialorder %v185_v45, 0.0  ;;  %v313_v55 = vmul.f32 0.01, %v185_v45  ;;  %vm250_vm4 = vcmp.ge.f32.partialorder %v186_v48, 0.0 }
  0x22   :  { %439 = vst [vmem:[%s1040_s3 + $0x88] sm:$0xff] %v375_v53  ;;  %v314_v56 = vmul.f32 0.01, %v186_v48  ;;  %v187_v57 = vadd.f32 %v537_v14, %v111_v49  ;;  %v376_v59 = vsel %vm248_vm2, %v184_v44, %v312_v54  ;;  %v112_v60 = vmul.f32 %v531_v11, %v36_v50  ;;  %v50_v53 = vld [vmem:[%s1039_s0 + $0x120] sm:$0xff] }
  0x23   :  { %v113_v61 = vmul.f32 %v535_v13, %v37_v51  ;;  %v114_v62 = vmul.f32 %v531_v11, %v38_v52  ;;  %440 = vst [vmem:[%s1040_s3 + $0x90] sm:$0xff] %v376_v59  ;;  %v377_v2 = vsel %vm249_vm3, %v185_v45, %v313_v55  ;;  %v115_v8 = vmul.f32 %v535_v13, %v39_v58 }
  0x24   :  { %v378_v3 = vsel %vm250_vm4, %v186_v48, %v314_v56  ;;  %vm251_vm5 = vcmp.ge.f32.partialorder %v187_v57, 0.0  ;;  %v315_v4 = vmul.f32 0.01, %v187_v57  ;;  %441 = vst [vmem:[%s1040_s3 + $0x98] sm:$0xff] %v377_v2  ;;  %v188_v5 = vadd.f32 %v533_v12, %v112_v60 }
  0x25   :  { %442 = vst [vmem:[%s1040_s3 + $0xa0] sm:$0xff] %v378_v3  ;;  %v189_v6 = vadd.f32 %v537_v14, %v113_v61  ;;  %v190_v7 = vadd.f32 %v533_v12, %v114_v62  ;;  %v116_v10 = vmul.f32 %v531_v11, %v40_v63  ;;  %v117_v15 = vmul.f32 %v535_v13, %v41_v0  ;;  %v51_v62 = vld [vmem:[%s1039_s0 + $0x128] sm:$0xff]  ;;  %v52_v3 = vld [vmem:[%s1039_s0 + $0x130] sm:$0xff] }
  0x26   :  { %v379_v9 = vsel %vm251_vm5, %v187_v57, %v315_v4  ;;  %v118_v16 = vmul.f32 %v531_v11, %v42_v1  ;;  %vm252_vm6 = vcmp.ge.f32.partialorder %v188_v5, 0.0  ;;  %v316_v17 = vmul.f32 0.01, %v188_v5  ;;  %v53_v4 = vld [vmem:[%s1039_s0 + $0x138] sm:$0xff] }
  0x27   :  { %443 = vst [vmem:[%s1040_s3 + $0xa8] sm:$0xff] %v379_v9  ;;  %vm253_vm7 = vcmp.ge.f32.partialorder %v189_v6, 0.0  ;;  %v317_v18 = vmul.f32 0.01, %v189_v6  ;;  %vm254_vm8 = vcmp.ge.f32.partialorder %v190_v7, 0.0  ;;  %v191_v20 = vadd.f32 %v537_v14, %v115_v8 }
  0x28   :  { %v318_v19 = vmul.f32 0.01, %v190_v7  ;;  %v192_v21 = vadd.f32 %v533_v12, %v116_v10  ;;  %v380_v22 = vsel %vm252_vm6, %v188_v5, %v316_v17  ;;  %v193_v24 = vadd.f32 %v537_v14, %v117_v15  ;;  %v54_v10 = vld [vmem:[%s1039_s0 + $0x140] sm:$0xff]  ;;  %v55_v15 = vld [vmem:[%s1039_s0 + $0x148] sm:$0xff] }
  0x29   :  { %v381_v23 = vsel %vm253_vm7, %v189_v6, %v317_v18  ;;  %v194_v25 = vadd.f32 %v533_v12, %v118_v16  ;;  %444 = vst [vmem:[%s1040_s3 + $0xb0] sm:$0xff] %v380_v22  ;;  %vm255_vm9 = vcmp.ge.f32.partialorder %v191_v20, 0.0  ;;  %v319_v30 = vmul.f32 0.01, %v191_v20 }
  0x2a   :  { %445 = vst [vmem:[%s1040_s3 + $0xb8] sm:$0xff] %v381_v23  ;;  %v382_v29 = vsel %vm254_vm8, %v190_v7, %v318_v19  ;;  %vm256_vm10 = vcmp.ge.f32.partialorder %v192_v21, 0.0  ;;  %v320_v33 = vmul.f32 0.01, %v192_v21  ;;  %vm257_vm11 = vcmp.ge.f32.partialorder %v193_v24, 0.0 }
  0x2b   :  { %446 = vst [vmem:[%s1040_s3 + $0xc0] sm:$0xff] %v382_v29  ;;  %v321_v34 = vmul.f32 0.01, %v193_v24  ;;  %vm258_vm12 = vcmp.ge.f32.partialorder %v194_v25, 0.0  ;;  %v383_v35 = vsel %vm255_vm9, %v191_v20, %v319_v30  ;;  %v322_v36 = vmul.f32 0.01, %v194_v25 }
  0x2c   :  { %v119_v37 = vmul.f32 %v535_v13, %v43_v26  ;;  %v120_v38 = vmul.f32 %v531_v11, %v44_v27  ;;  %447 = vst [vmem:[%s1040_s3 + $0xc8] sm:$0xff] %v383_v35  ;;  %v384_v41 = vsel %vm256_vm10, %v192_v21, %v320_v33  ;;  %v121_v43 = vmul.f32 %v535_v13, %v45_v28  ;;  %v56_v20 = vld [vmem:[%s1039_s0 + $0x150] sm:$0xff] }
  0x2d   :  { %v385_v42 = vsel %vm257_vm11, %v193_v24, %v321_v34  ;;  %v122_v44 = vmul.f32 %v531_v11, %v46_v31  ;;  %448 = vst [vmem:[%s1040_s3 + $0xd0] sm:$0xff] %v384_v41  ;;  %v386_v45 = vsel %vm258_vm12, %v194_v25, %v322_v36  ;;  %v123_v48 = vmul.f32 %v535_v13, %v47_v32  ;;  %v57_v31 = vld [vmem:[%s1039_s0 + $0x158] sm:$0xff]  ;;  %v58_v32 = vld [vmem:[%s1039_s0 + $0x160] sm:$0xff] }
  0x2e   :  { %449 = vst [vmem:[%s1040_s3 + $0xd8] sm:$0xff] %v385_v42  ;;  %v195_v46 = vadd.f32 %v537_v14, %v119_v37  ;;  %v196_v47 = vadd.f32 %v533_v12, %v120_v38  ;;  %450 = vst [vmem:[%s1040_s3 + $0xe0] sm:$0xff] %v386_v45  ;;  %v197_v49 = vadd.f32 %v537_v14, %v121_v43  ;;  %v59_v43 = vld [vmem:[%s1039_s0 + $0x168] sm:$0xff] }
  0x2f   :  { %v198_v50 = vadd.f32 %v533_v12, %v122_v44  ;;  %v124_v51 = vmul.f32 %v531_v11, %v48_v39  ;;  %v125_v52 = vmul.f32 %v535_v13, %v49_v40  ;;  %v199_v60 = vadd.f32 %v537_v14, %v123_v48  ;;  %v60_v44 = vld [vmem:[%s1039_s0 + $0x170] sm:$0xff] }
  0x30   :  { %vm259_vm13 = vcmp.ge.f32.partialorder %v195_v46, 0.0  ;;  %v323_v54 = vmul.f32 0.01, %v195_v46  ;;  %vm260_vm14 = vcmp.ge.f32.partialorder %v196_v47, 0.0  ;;  %v324_v55 = vmul.f32 0.01, %v196_v47 }
  0x31   :  { %vm261_vm15 = vcmp.ge.f32.partialorder %v197_v49, 0.0  ;;  %v325_v56 = vmul.f32 0.01, %v197_v49  ;;  %vm262_vm0 = vcmp.ge.f32.partialorder %v198_v50, 0.0  ;;  %v326_v57 = vmul.f32 0.01, %v198_v50 }
  0x32   :  { %v387_v58 = vsel %vm259_vm13, %v195_v46, %v323_v54  ;;  %v388_v59 = vsel %vm260_vm14, %v196_v47, %v324_v55  ;;  %v200_v61 = vadd.f32 %v533_v12, %v124_v51  ;;  %v201_v1 = vadd.f32 %v537_v14, %v125_v52  ;;  %v62_v55 = vld [vmem:[%s1039_s0 + $0x180] sm:$0xff] }
  0x33   :  { %451 = vst [vmem:[%s1040_s3 + $0xe8] sm:$0xff] %v387_v58  ;;  %452 = vst [vmem:[%s1040_s3 + $0xf0] sm:$0xff] %v388_v59  ;;  %v389_v63 = vsel %vm261_vm15, %v197_v49, %v325_v56  ;;  %v390_v0 = vsel %vm262_vm0, %v198_v50, %v326_v57  ;;  %v126_v2 = vmul.f32 %v531_v11, %v50_v53  ;;  %vm263_vm1 = vcmp.ge.f32.partialorder %v199_v60, 0.0  ;;  %v61_v50 = vld [vmem:[%s1039_s0 + $0x178] sm:$0xff]  ;;  %v63_v56 = vld [vmem:[%s1039_s0 + $0x188] sm:$0xff] }
  0x34   :  { %453 = vst [vmem:[%s1040_s3 + $0xf8] sm:$0xff] %v389_v63  ;;  %454 = vst [vmem:[%s1040_s3 + $0x100] sm:$0xff] %v390_v0  ;;  %v327_v5 = vmul.f32 0.01, %v199_v60  ;;  %vm264_vm2 = vcmp.ge.f32.partialorder %v200_v61, 0.0  ;;  %vm265_vm3 = vcmp.ge.f32.partialorder %v201_v1, 0.0  ;;  %v127_v9 = vmul.f32 %v535_v13, %v51_v62 }
  0x35   :  { %v328_v6 = vmul.f32 0.01, %v200_v61  ;;  %v329_v7 = vmul.f32 0.01, %v201_v1  ;;  %v202_v8 = vadd.f32 %v533_v12, %v126_v2  ;;  %v128_v18 = vmul.f32 %v531_v11, %v52_v3  ;;  %v64_v57 = vld [vmem:[%s1039_s0 + $0x190] sm:$0xff] }
  0x36   :  { %v391_v16 = vsel %vm263_vm1, %v199_v60, %v327_v5  ;;  %v129_v19 = vmul.f32 %v535_v13, %v53_v4  ;;  %v203_v23 = vadd.f32 %v537_v14, %v127_v9  ;;  %v130_v26 = vmul.f32 %v531_v11, %v54_v10  ;;  %v65_v4 = vld [vmem:[%s1039_s0 + $0x198] sm:$0xff]  ;;  %v66_v5 = vld [vmem:[%s1039_s0 + $0x1a0] sm:$0xff] }
  0x37   :  { %v392_v17 = vsel %vm264_vm2, %v200_v61, %v328_v6  ;;  %455 = vst [vmem:[%s1040_s3 + $0x108] sm:$0xff] %v391_v16  ;;  %v393_v21 = vsel %vm265_vm3, %v201_v1, %v329_v7  ;;  %vm266_vm4 = vcmp.ge.f32.partialorder %v202_v8, 0.0  ;;  %v330_v22 = vmul.f32 0.01, %v202_v8 }
  0x38   :  { %456 = vst [vmem:[%s1040_s3 + $0x110] sm:$0xff] %v392_v17  ;;  %457 = vst [vmem:[%s1040_s3 + $0x118] sm:$0xff] %v393_v21  ;;  %v204_v24 = vadd.f32 %v533_v12, %v128_v18  ;;  %v205_v25 = vadd.f32 %v537_v14, %v129_v19  ;;  %v131_v27 = vmul.f32 %v535_v13, %v55_v15  ;;  %vm267_vm5 = vcmp.ge.f32.partialorder %v203_v23, 0.0 }
  0x39   :  { %v394_v28 = vsel %vm266_vm4, %v202_v8, %v330_v22  ;;  %v331_v29 = vmul.f32 0.01, %v203_v23  ;;  %v132_v30 = vmul.f32 %v531_v11, %v56_v20  ;;  %v206_v36 = vadd.f32 %v533_v12, %v130_v26  ;;  %v67_v22 = vld [vmem:[%s1039_s0 + $0x1a8] sm:$0xff] }
  0x3a   :  { %458 = vst [vmem:[%s1040_s3 + $0x120] sm:$0xff] %v394_v28  ;;  %vm268_vm6 = vcmp.ge.f32.partialorder %v204_v24, 0.0  ;;  %v332_v33 = vmul.f32 0.01, %v204_v24  ;;  %vm269_vm7 = vcmp.ge.f32.partialorder %v205_v25, 0.0  ;;  %v207_v37 = vadd.f32 %v537_v14, %v131_v27 }
  0x3b   :  { %v333_v34 = vmul.f32 0.01, %v205_v25  ;;  %v395_v35 = vsel %vm267_vm5, %v203_v23, %v331_v29  ;;  %v208_v38 = vadd.f32 %v533_v12, %v132_v30  ;;  %v133_v41 = vmul.f32 %v535_v13, %v57_v31  ;;  %v68_v23 = vld [vmem:[%s1039_s0 + $0x1b0] sm:$0xff]  ;;  %v69_v30 = vld [vmem:[%s1039_s0 + $0x1b8] sm:$0xff] }
  0x3c   :  { %459 = vst [vmem:[%s1040_s3 + $0x128] sm:$0xff] %v395_v35  ;;  %v396_v39 = vsel %vm268_vm6, %v204_v24, %v332_v33  ;;  %v134_v42 = vmul.f32 %v531_v11, %v58_v32  ;;  %vm270_vm8 = vcmp.ge.f32.partialorder %v206_v36, 0.0  ;;  %v334_v45 = vmul.f32 0.01, %v206_v36  ;;  %v70_v35 = vld [vmem:[%s1039_s0 + $0x1c0] sm:$0xff] }
  0x3d   :  { %v397_v40 = vsel %vm269_vm7, %v205_v25, %v333_v34  ;;  %460 = vst [vmem:[%s1040_s3 + $0x130] sm:$0xff] %v396_v39  ;;  %vm271_vm9 = vcmp.ge.f32.partialorder %v207_v37, 0.0  ;;  %v335_v46 = vmul.f32 0.01, %v207_v37  ;;  %vm272_vm10 = vcmp.ge.f32.partialorder %v208_v38, 0.0 }
  0x3e   :  { %461 = vst [vmem:[%s1040_s3 + $0x138] sm:$0xff] %v397_v40  ;;  %v336_v47 = vmul.f32 0.01, %v208_v38  ;;  %v209_v48 = vadd.f32 %v537_v14, %v133_v41  ;;  %v210_v49 = vadd.f32 %v533_v12, %v134_v42  ;;  %v398_v51 = vsel %vm270_vm8, %v206_v36, %v334_v45  ;;  %v71_v36 = vld [vmem:[%s1039_s0 + $0x1c8] sm:$0xff] }
  0x3f   :  { %v399_v52 = vsel %vm271_vm9, %v207_v37, %v335_v46  ;;  %v135_v53 = vmul.f32 %v535_v13, %v59_v43  ;;  %v136_v54 = vmul.f32 %v531_v11, %v60_v44  ;;  %462 = vst [vmem:[%s1040_s3 + $0x140] sm:$0xff] %v398_v51  ;;  %v137_v63 = vmul.f32 %v535_v13, %v61_v50  ;;  %v72_v37 = vld [vmem:[%s1039_s0 + $0x1d0] sm:$0xff] }
  0x40   :  { %463 = vst [vmem:[%s1040_s3 + $0x148] sm:$0xff] %v399_v52  ;;  %v400_v58 = vsel %vm272_vm10, %v208_v38, %v336_v47  ;;  %vm273_vm11 = vcmp.ge.f32.partialorder %v209_v48, 0.0  ;;  %v337_v59 = vmul.f32 0.01, %v209_v48  ;;  %vm274_vm12 = vcmp.ge.f32.partialorder %v210_v49, 0.0 }
  0x41   :  { %464 = vst [vmem:[%s1040_s3 + $0x150] sm:$0xff] %v400_v58  ;;  %v338_v60 = vmul.f32 0.01, %v210_v49  ;;  %v211_v61 = vadd.f32 %v537_v14, %v135_v53  ;;  %v212_v62 = vadd.f32 %v533_v12, %v136_v54  ;;  %v138_v1 = vmul.f32 %v531_v11, %v62_v55 }
  0x42   :  { %v401_v0 = vsel %vm273_vm11, %v209_v48, %v337_v59  ;;  %v139_v2 = vmul.f32 %v535_v13, %v63_v56  ;;  %v140_v3 = vmul.f32 %v531_v11, %v64_v57  ;;  %v213_v9 = vadd.f32 %v537_v14, %v137_v63  ;;  %v73_v48 = vld [vmem:[%s1039_s0 + $0x1d8] sm:$0xff]  ;;  %v76_v63 = vld [vmem:[%s1039_s0 + $0x1f0] sm:$0xff] }
  0x43   :  { %465 = vst [vmem:[%s1040_s3 + $0x158] sm:$0xff] %v401_v0  ;;  %v402_v6 = vsel %vm274_vm12, %v210_v49, %v338_v60  ;;  %vm275_vm13 = vcmp.ge.f32.partialorder %v211_v61, 0.0  ;;  %v339_v7 = vmul.f32 0.01, %v211_v61  ;;  %vm276_vm14 = vcmp.ge.f32.partialorder %v212_v62, 0.0  ;;  %v74_v49 = vld [vmem:[%s1039_s0 + $0x1e0] sm:$0xff] }
  0x44   :  { %466 = vst [vmem:[%s1040_s3 + $0x160] sm:$0xff] %v402_v6  ;;  %v340_v8 = vmul.f32 0.01, %v212_v62  ;;  %v214_v10 = vadd.f32 %v533_v12, %v138_v1  ;;  %v215_v15 = vadd.f32 %v537_v14, %v139_v2  ;;  %v216_v17 = vadd.f32 %v533_v12, %v140_v3  ;;  %v77_v6 = vld [vmem:[%s1039_s0 + $0x1f8] sm:$0xff] }
  0x45   :  { %v403_v16 = vsel %vm275_vm13, %v211_v61, %v339_v7  ;;  %v141_v18 = vmul.f32 %v535_v13, %v65_v4  ;;  %v142_v19 = vmul.f32 %v531_v11, %v66_v5  ;;  %vm277_vm15 = vcmp.ge.f32.partialorder %v213_v9, 0.0 }
  0x46   :  { %467 = vst [vmem:[%s1040_s3 + $0x168] sm:$0xff] %v403_v16  ;;  %v404_v20 = vsel %vm276_vm14, %v212_v62, %v340_v8  ;;  %v341_v21 = vmul.f32 0.01, %v213_v9  ;;  %vm278_vm0 = vcmp.ge.f32.partialorder %v214_v10, 0.0  ;;  %v342_v24 = vmul.f32 0.01, %v214_v10 }
  0x47   :  { %468 = vst [vmem:[%s1040_s3 + $0x170] sm:$0xff] %v404_v20  ;;  %vm279_vm1 = vcmp.ge.f32.partialorder %v215_v15, 0.0  ;;  %v343_v25 = vmul.f32 0.01, %v215_v15  ;;  %vm280_vm2 = vcmp.ge.f32.partialorder %v216_v17, 0.0  ;;  %v217_v28 = vadd.f32 %v537_v14, %v141_v18  ;;  %v75_v62 = vld [vmem:[%s1039_s0 + $0x1e8] sm:$0xff] }
  0x48   :  { %v405_v26 = vsel %vm277_vm15, %v213_v9, %v341_v21  ;;  %v344_v27 = vmul.f32 0.01, %v216_v17  ;;  %v218_v29 = vadd.f32 %v533_v12, %v142_v19  ;;  %v406_v31 = vsel %vm278_vm0, %v214_v10, %v342_v24 }
  0x49   :  { %469 = vst [vmem:[%s1040_s3 + $0x178] sm:$0xff] %v405_v26  ;;  %v407_v32 = vsel %vm279_vm1, %v215_v15, %v343_v25  ;;  %v143_v33 = vmul.f32 %v535_v13, %v67_v22  ;;  %v144_v34 = vmul.f32 %v531_v11, %v68_v23  ;;  %470 = vst [vmem:[%s1040_s3 + $0x180] sm:$0xff] %v406_v31  ;;  %vm281_vm3 = vcmp.ge.f32.partialorder %v217_v28, 0.0 }
  0x4a   :  { %471 = vst [vmem:[%s1040_s3 + $0x188] sm:$0xff] %v407_v32  ;;  %v408_v38 = vsel %vm280_vm2, %v216_v17, %v344_v27  ;;  %v345_v39 = vmul.f32 0.01, %v217_v28  ;;  %vm282_vm4 = vcmp.ge.f32.partialorder %v218_v29, 0.0  ;;  %v346_v40 = vmul.f32 0.01, %v218_v29 }
  0x4b   :  { %472 = vst [vmem:[%s1040_s3 + $0x190] sm:$0xff] %v408_v38  ;;  %v219_v41 = vadd.f32 %v537_v14, %v143_v33  ;;  %v220_v42 = vadd.f32 %v533_v12, %v144_v34  ;;  %v145_v43 = vmul.f32 %v535_v13, %v69_v30  ;;  %v146_v45 = vmul.f32 %v531_v11, %v70_v35 }
  0x4c   :  { %v409_v44 = vsel %vm281_vm3, %v217_v28, %v345_v39  ;;  %v147_v46 = vmul.f32 %v535_v13, %v71_v36  ;;  %v148_v47 = vmul.f32 %v531_v11, %v72_v37  ;;  %v410_v50 = vsel %vm282_vm4, %v218_v29, %v346_v40 }
  0x4d   :  { %473 = vst [vmem:[%s1040_s3 + $0x198] sm:$0xff] %v409_v44  ;;  %vm283_vm5 = vcmp.ge.f32.partialorder %v219_v41, 0.0  ;;  %v347_v51 = vmul.f32 0.01, %v219_v41  ;;  %vm284_vm6 = vcmp.ge.f32.partialorder %v220_v42, 0.0  ;;  %474 = vst [vmem:[%s1040_s3 + $0x1a0] sm:$0xff] %v410_v50  ;;  %v221_v53 = vadd.f32 %v537_v14, %v145_v43 }
  0x4e   :  { %v348_v52 = vmul.f32 0.01, %v220_v42  ;;  %v222_v54 = vadd.f32 %v533_v12, %v146_v45  ;;  %v223_v55 = vadd.f32 %v537_v14, %v147_v46  ;;  %v224_v57 = vadd.f32 %v533_v12, %v148_v47 }
  0x4f   :  { %v411_v56 = vsel %vm283_vm5, %v219_v41, %v347_v51  ;;  %v149_v58 = vmul.f32 %v535_v13, %v73_v48  ;;  %v150_v59 = vmul.f32 %v531_v11, %v74_v49  ;;  %vm285_vm7 = vcmp.ge.f32.partialorder %v221_v53, 0.0 }
  0x50   :  { %475 = vst [vmem:[%s1040_s3 + $0x1a8] sm:$0xff] %v411_v56  ;;  %v412_v60 = vsel %vm284_vm6, %v220_v42, %v348_v52  ;;  %v349_v61 = vmul.f32 0.01, %v221_v53  ;;  %vm286_vm8 = vcmp.ge.f32.partialorder %v222_v54, 0.0  ;;  %v350_v0 = vmul.f32 0.01, %v222_v54 }
  0x51   :  { %476 = vst [vmem:[%s1040_s3 + $0x1b0] sm:$0xff] %v412_v60  ;;  %vm287_vm9 = vcmp.ge.f32.partialorder %v223_v55, 0.0  ;;  %v351_v1 = vmul.f32 0.01, %v223_v55  ;;  %vm288_vm10 = vcmp.ge.f32.partialorder %v224_v57, 0.0  ;;  %v225_v4 = vadd.f32 %v537_v14, %v149_v58 }
  0x52   :  { %v413_v2 = vsel %vm285_vm7, %v221_v53, %v349_v61  ;;  %v352_v3 = vmul.f32 0.01, %v224_v57  ;;  %v226_v5 = vadd.f32 %v533_v12, %v150_v59  ;;  %v414_v7 = vsel %vm286_vm8, %v222_v54, %v350_v0 }
  0x53   :  { %477 = vst [vmem:[%s1040_s3 + $0x1b8] sm:$0xff] %v413_v2  ;;  %v415_v8 = vsel %vm287_vm9, %v223_v55, %v351_v1  ;;  %v151_v9 = vmul.f32 %v535_v13, %v75_v62  ;;  %v152_v10 = vmul.f32 %v531_v11, %v76_v63  ;;  %478 = vst [vmem:[%s1040_s3 + $0x1c0] sm:$0xff] %v414_v7  ;;  %vm289_vm11 = vcmp.ge.f32.partialorder %v225_v4, 0.0 }
  0x54   :  { %479 = vst [vmem:[%s1040_s3 + $0x1c8] sm:$0xff] %v415_v8  ;;  %v416_v15 = vsel %vm288_vm10, %v224_v57, %v352_v3  ;;  %v353_v16 = vmul.f32 0.01, %v225_v4  ;;  %vm290_vm12 = vcmp.ge.f32.partialorder %v226_v5, 0.0  ;;  %v354_v17 = vmul.f32 0.01, %v226_v5 }
  0x55   :  { %480 = vst [vmem:[%s1040_s3 + $0x1d0] sm:$0xff] %v416_v15  ;;  %v227_v18 = vadd.f32 %v537_v14, %v151_v9  ;;  %v228_v11 = vadd.f32 %v533_v12, %v152_v10  ;;  %v153_v19 = vmul.f32 %v535_v13, %v77_v6 }
  0x56   :  { %v417_v20 = vsel %vm289_vm11, %v225_v4, %v353_v16  ;;  %v418_v21 = vsel %vm290_vm12, %v226_v5, %v354_v17 }
  0x57   :  { %481 = vst [vmem:[%s1040_s3 + $0x1d8] sm:$0xff] %v417_v20  ;;  %vm291_vm13 = vcmp.ge.f32.partialorder %v227_v18, 0.0  ;;  %v355_v22 = vmul.f32 0.01, %v227_v18  ;;  %vm292_vm14 = vcmp.ge.f32.partialorder %v228_v11, 0.0  ;;  %482 = vst [vmem:[%s1040_s3 + $0x1e0] sm:$0xff] %v418_v21  ;;  %v229_v24 = vadd.f32 %v537_v14, %v153_v19 }
  0x58   :  { %v356_v23 = vmul.f32 0.01, %v228_v11 }
  0x59   :  { %v419_v25 = vsel %vm291_vm13, %v227_v18, %v355_v22  ;;  %vm293_vm15 = vcmp.ge.f32.partialorder %v229_v24, 0.0  ;;  %v357_v13 = vmul.f32 0.01, %v229_v24 }
  0x5a   :  { %483 = vst [vmem:[%s1040_s3 + $0x1e8] sm:$0xff] %v419_v25  ;;  %v420_v12 = vsel %vm292_vm14, %v228_v11, %v356_v23 }
  0x5b   :  { %484 = vst [vmem:[%s1040_s3 + $0x1f0] sm:$0xff] %v420_v12  ;;  %v421_v26 = vsel %vm293_vm15, %v229_v24, %v357_v13 }
  0x5c   :  { %485 = vst [vmem:[%s1040_s3 + $0x1f8] sm:$0xff] %v421_v26 }

// kernel: foreground_forward.35
= control target key start
LH: loop header
LB: loop body
LE: loop exit
PB: predicated region body
PF: predicated region fallthrough
CT: control target
= control target key end

     0   :  { %v556_v1 = vmov 0   ;;  %vm218_vm0 = vcmask 1041408   ;;  %vm169_vm1 = vcmask 293888   ;;  %v54_v25 = vlaneseq  ;;  %s935_s1 = inlined_call_operand.vmem [shape: bf16[36,256], index: 1, kind: input, shape index: {}]   ;;  %s936_s0 = inlined_call_operand.vmem [shape: bf16[256,36], index: 0, kind: input, shape index: {}]   ;;  %s937_s2 = inlined_call_operand.vmem [shape: f32[1,256], index: 2, kind: input, shape index: {}]   ;;  %s938_s3 = inlined_call_operand.vmem [shape: f32[256,256], index: 3, kind: output, shape index: {}]  }
   0x1   :  { %v532_v0 = vld [vmem:[%s935_s1 + $0x4] ss:$8 sps:$4 sm:$0xff]   ;;  %257 = vmatprep.mubr.bf16.mxu0 %v556_v1  ;;  %337 = vmatprep.mubr.bf16.mxu1 %v556_v1  ;;  %v534_v2 = vld [vmem:[%s935_s1] ss:$8 sps:$4 sm:$0xff]   ;;  %v535_v3 = vld [vmem:[%s935_s1 + $0x14] ss:$8 sps:$4 sm:$0xff]  }
   0x2   :  { %225 = vmatprep.subr.bf16.mxu0 %v532_v0  ;;  %525 = vmatprep.subr.bf16.mxu1 %v532_v0  ;;  %v51_v4 = vld [vmem:[%s935_s1 + $0x20] sm:$0x33]  ;;  %v537_v5 = vld [vmem:[%s935_s1 + $0x10] ss:$8 sps:$4 sm:$0xff]   ;;  %v542_v11 = vld [vmem:[%s936_s0 + $0x8] sm:$0xff]   ;;  %v55_v26 = vshrl.u32 %v54_v25, 7 }
   0x3   :  { %226 = vmatpush1.bf16.msra.mxu0 %v534_v2  ;;  %528 = vmatpush1.bf16.msra.mxu1 %v534_v2  ;;  %v507_v6 = vcombine.high %v51_v4, %v51_v4  ;;  %v506_v7 = vcombine.low %v51_v4, %v51_v4  ;;  %v540_v9 = vld [vmem:[%s936_s0] sm:$0xff]   ;;  %v543_v12 = vld [vmem:[%s936_s0 + $0x48] sm:$0xff]   ;;  %v544_v13 = vld [vmem:[%s936_s0 + $0x10] sm:$0xff]  }
   0x4   :  { %227 = vmatprep.subr.bf16.mxu0 %v535_v3  ;;  %526 = vmatprep.subr.bf16.mxu1 %v535_v3  ;;  %v541_v10 = vld [vmem:[%s936_s0 + $0x40] sm:$0xff]   ;;  %v545_v14 = vld [vmem:[%s936_s0 + $0x50] sm:$0xff]   ;;  %v546_v15 = vld [vmem:[%s936_s0 + $0x18] sm:$0xff]   ;;  %v56_v27 = vsub.s32 0, %v55_v26  ;;  %v60_v29 = vsub.s32 1, %v55_v26 }
   0x5   :  { %v220_v8 = vsel %vm218_vm0, %v506_v7, 0  ;;  %v547_v16 = vld [vmem:[%s936_s0 + $0x58] sm:$0xff]   ;;  %v548_v17 = vld [vmem:[%s936_s0 + $0x20] sm:$0xff]   ;;  %v550_v19 = vld [vmem:[%s936_s0 + $0x28] sm:$0xff]  }
   0x6   :  { %v549_v18 = vld [vmem:[%s936_s0 + $0x60] sm:$0xff]   ;;  %v551_v20 = vld [vmem:[%s936_s0 + $0x68] sm:$0xff]   ;;  %v552_v21 = vld [vmem:[%s936_s0 + $0x30] sm:$0xff]  }
   0x7   :  { %228 = vmatpush1.bf16.msra.mxu0 %v537_v5  ;;  %529 = vmatpush1.bf16.msra.mxu1 %v537_v5  ;;  %v553_v22 = vld [vmem:[%s936_s0 + $0x70] sm:$0xff]   ;;  %v554_v23 = vld [vmem:[%s936_s0 + $0x38] sm:$0xff]   ;;  %v52_v28 = vld [vmem:[%s937_s2] sm:$0x3] }
   0x8   :  { %508 = vmatprep.subr.msk.bf16.mxu0 %vm218_vm0, %v507_v6  ;;  %527 = vmatprep.subr.msk.bf16.mxu1 %vm218_vm0, %v507_v6  ;;  %v555_v24 = vld [vmem:[%s936_s0 + $0x78] sm:$0xff]   ;;  %v675_v30 = vrot.slane %v52_v28, %v56_v27  ;;  %v677_v31 = vrot.slane %v52_v28, %v60_v29 }
   0xb   :  { %230 = vmatpush1.bf16.msra.mxu0 %v220_v8  ;;  %530 = vmatpush1.bf16.msra.mxu1 %v220_v8 }
   0xe   :  { %509 = vmatmul.mubr.msk.bf16.vlgmr.msra.gmra.mrb[0].mxu0 %vm169_vm1, %v540_v9  ;;  %517 = vmatmul.mubr.msk.bf16.vlgmr.msra.gmra.mrb[0].mxu1 %vm169_vm1, %v541_v10 }
   0xf   :  { %267 = vmatprep.mubr.bf16.mxu0 %v556_v1  ;;  %347 = vmatprep.mubr.bf16.mxu1 %v556_v1 }
  0x16   :  { %510 = vmatmul.mubr.msk.bf16.gmra.mrb[4].mxu0 %vm169_vm1, %v542_v11  ;;  %518 = vmatmul.mubr.msk.bf16.gmra.mrb[4].mxu1 %vm169_vm1, %v543_v12 }
  0x17   :  { %277 = vmatprep.mubr.bf16.mxu0 %v556_v1  ;;  %357 = vmatprep.mubr.bf16.mxu1 %v556_v1 }
  0x1e   :  { %511 = vmatmul.mubr.msk.bf16.gmra.mrb[8].mxu0 %vm169_vm1, %v544_v13  ;;  %519 = vmatmul.mubr.msk.bf16.gmra.mrb[8].mxu1 %vm169_vm1, %v545_v14 }
  0x1f   :  { %287 = vmatprep.mubr.bf16.mxu0 %v556_v1  ;;  %367 = vmatprep.mubr.bf16.mxu1 %v556_v1 }
  0x26   :  { %512 = vmatmul.mubr.msk.bf16.gmra.mrb[12].mxu0 %vm169_vm1, %v546_v15  ;;  %520 = vmatmul.mubr.msk.bf16.gmra.mrb[12].mxu1 %vm169_vm1, %v547_v16 }
  0x27   :  { %297 = vmatprep.mubr.bf16.mxu0 %v556_v1  ;;  %377 = vmatprep.mubr.bf16.mxu1 %v556_v1 }
  0x2e   :  { %513 = vmatmul.mubr.msk.bf16.gmra.mrb[16].mxu0 %vm169_vm1, %v548_v17  ;;  %521 = vmatmul.mubr.msk.bf16.gmra.mrb[16].mxu1 %vm169_vm1, %v549_v18 }
  0x2f   :  { %307 = vmatprep.mubr.bf16.mxu0 %v556_v1  ;;  %387 = vmatprep.mubr.bf16.mxu1 %v556_v1 }
  0x36   :  { %514 = vmatmul.mubr.msk.bf16.gmra.mrb[20].mxu0 %vm169_vm1, %v550_v19  ;;  %522 = vmatmul.mubr.msk.bf16.gmra.mrb[20].mxu1 %vm169_vm1, %v551_v20 }
  0x37   :  { %317 = vmatprep.mubr.bf16.mxu0 %v556_v1  ;;  %397 = vmatprep.mubr.bf16.mxu1 %v556_v1 }
  0x3e   :  { %515 = vmatmul.mubr.msk.bf16.gmra.mrb[24].mxu0 %vm169_vm1, %v552_v21  ;;  %523 = vmatmul.mubr.msk.bf16.gmra.mrb[24].mxu1 %vm169_vm1, %v553_v22 }
  0x3f   :  { %327 = vmatprep.mubr.bf16.mxu0 %v556_v1  ;;  %407 = vmatprep.mubr.bf16.mxu1 %v556_v1 }
  0x46   :  { %516 = vmatmul.mubr.msk.bf16.gmra.mrb[28].mxu0 %vm169_vm1, %v554_v23  ;;  %524 = vmatmul.mubr.msk.bf16.gmra.mrb[28].mxu1 %vm169_vm1, %v555_v24 }
  0xe1   :  { %v259_v32 = vpop.f32.mrb[0].mxu0  ;;  %v339_v33 = vpop.f32.mrb[0].mxu1 }
  0xe2   :  { %v260_v34 = vadd.f32 %v259_v32, %v675_v30  ;;  %v340_v35 = vadd.f32 %v339_v33, %v675_v30  ;;  %v261_v36 = vpop.f32.mrb[1].mxu0  ;;  %v341_v37 = vpop.f32.mrb[1].mxu1 }
  0xe3   :  { %v262_v38 = vadd.f32 %v261_v36, %v677_v31  ;;  %v342_v39 = vadd.f32 %v341_v37, %v677_v31  ;;  %v263_v40 = vpop.f32.mrb[2].mxu0  ;;  %v343_v41 = vpop.f32.mrb[2].mxu1 }
  0xe4   :  { %418 = vst [vmem:[%s938_s3] sm:$0xff] %v260_v34  ;;  %450 = vst [vmem:[%s938_s3 + $0x100] sm:$0xff] %v340_v35  ;;  %v264_v42 = vadd.f32 %v263_v40, %v675_v30  ;;  %v344_v43 = vadd.f32 %v343_v41, %v675_v30  ;;  %v265_v44 = vpop.f32.mrb[3].mxu0  ;;  %v345_v45 = vpop.f32.mrb[3].mxu1 }
  0xe5   :  { %419 = vst [vmem:[%s938_s3 + $0x8] sm:$0xff] %v262_v38  ;;  %451 = vst [vmem:[%s938_s3 + $0x108] sm:$0xff] %v342_v39  ;;  %v266_v46 = vadd.f32 %v265_v44, %v677_v31  ;;  %v346_v47 = vadd.f32 %v345_v45, %v677_v31 }
  0xe6   :  { %420 = vst [vmem:[%s938_s3 + $0x10] sm:$0xff] %v264_v42  ;;  %452 = vst [vmem:[%s938_s3 + $0x110] sm:$0xff] %v344_v43 }
  0xe7   :  { %421 = vst [vmem:[%s938_s3 + $0x18] sm:$0xff] %v266_v46  ;;  %453 = vst [vmem:[%s938_s3 + $0x118] sm:$0xff] %v346_v47 }
  0xe9   :  { %v269_v48 = vpop.f32.mrb[4].mxu0  ;;  %v349_v49 = vpop.f32.mrb[4].mxu1 }
  0xea   :  { %v270_v50 = vadd.f32 %v269_v48, %v675_v30  ;;  %v350_v51 = vadd.f32 %v349_v49, %v675_v30  ;;  %v271_v52 = vpop.f32.mrb[5].mxu0  ;;  %v351_v53 = vpop.f32.mrb[5].mxu1 }
  0xeb   :  { %v272_v54 = vadd.f32 %v271_v52, %v677_v31  ;;  %v352_v55 = vadd.f32 %v351_v53, %v677_v31  ;;  %v273_v56 = vpop.f32.mrb[6].mxu0  ;;  %v353_v57 = vpop.f32.mrb[6].mxu1 }
  0xec   :  { %422 = vst [vmem:[%s938_s3 + $0x20] sm:$0xff] %v270_v50  ;;  %454 = vst [vmem:[%s938_s3 + $0x120] sm:$0xff] %v350_v51  ;;  %v274_v58 = vadd.f32 %v273_v56, %v675_v30  ;;  %v354_v59 = vadd.f32 %v353_v57, %v675_v30  ;;  %v275_v60 = vpop.f32.mrb[7].mxu0  ;;  %v355_v61 = vpop.f32.mrb[7].mxu1 }
  0xed   :  { %423 = vst [vmem:[%s938_s3 + $0x28] sm:$0xff] %v272_v54  ;;  %455 = vst [vmem:[%s938_s3 + $0x128] sm:$0xff] %v352_v55  ;;  %v276_v62 = vadd.f32 %v275_v60, %v677_v31  ;;  %v356_v63 = vadd.f32 %v355_v61, %v677_v31 }
  0xee   :  { %424 = vst [vmem:[%s938_s3 + $0x30] sm:$0xff] %v274_v58  ;;  %456 = vst [vmem:[%s938_s3 + $0x130] sm:$0xff] %v354_v59 }
  0xef   :  { %425 = vst [vmem:[%s938_s3 + $0x38] sm:$0xff] %v276_v62  ;;  %457 = vst [vmem:[%s938_s3 + $0x138] sm:$0xff] %v356_v63 }
  0xf1   :  { %v279_v0 = vpop.f32.mrb[8].mxu0  ;;  %v359_v1 = vpop.f32.mrb[8].mxu1 }
  0xf2   :  { %v280_v2 = vadd.f32 %v279_v0, %v675_v30  ;;  %v360_v3 = vadd.f32 %v359_v1, %v675_v30  ;;  %v281_v4 = vpop.f32.mrb[9].mxu0  ;;  %v361_v5 = vpop.f32.mrb[9].mxu1 }
  0xf3   :  { %v282_v6 = vadd.f32 %v281_v4, %v677_v31  ;;  %v362_v7 = vadd.f32 %v361_v5, %v677_v31  ;;  %v283_v8 = vpop.f32.mrb[10].mxu0  ;;  %v363_v9 = vpop.f32.mrb[10].mxu1 }
  0xf4   :  { %426 = vst [vmem:[%s938_s3 + $0x40] sm:$0xff] %v280_v2  ;;  %458 = vst [vmem:[%s938_s3 + $0x140] sm:$0xff] %v360_v3  ;;  %v284_v10 = vadd.f32 %v283_v8, %v675_v30  ;;  %v364_v11 = vadd.f32 %v363_v9, %v675_v30  ;;  %v285_v12 = vpop.f32.mrb[11].mxu0  ;;  %v365_v13 = vpop.f32.mrb[11].mxu1 }
  0xf5   :  { %427 = vst [vmem:[%s938_s3 + $0x48] sm:$0xff] %v282_v6  ;;  %459 = vst [vmem:[%s938_s3 + $0x148] sm:$0xff] %v362_v7  ;;  %v286_v14 = vadd.f32 %v285_v12, %v677_v31  ;;  %v366_v15 = vadd.f32 %v365_v13, %v677_v31 }
  0xf6   :  { %428 = vst [vmem:[%s938_s3 + $0x50] sm:$0xff] %v284_v10  ;;  %460 = vst [vmem:[%s938_s3 + $0x150] sm:$0xff] %v364_v11 }
  0xf7   :  { %429 = vst [vmem:[%s938_s3 + $0x58] sm:$0xff] %v286_v14  ;;  %461 = vst [vmem:[%s938_s3 + $0x158] sm:$0xff] %v366_v15 }
  0xf9   :  { %v289_v16 = vpop.f32.mrb[12].mxu0  ;;  %v369_v17 = vpop.f32.mrb[12].mxu1 }
  0xfa   :  { %v290_v18 = vadd.f32 %v289_v16, %v675_v30  ;;  %v370_v19 = vadd.f32 %v369_v17, %v675_v30  ;;  %v291_v20 = vpop.f32.mrb[13].mxu0  ;;  %v371_v21 = vpop.f32.mrb[13].mxu1 }
  0xfb   :  { %v292_v22 = vadd.f32 %v291_v20, %v677_v31  ;;  %v372_v23 = vadd.f32 %v371_v21, %v677_v31  ;;  %v293_v24 = vpop.f32.mrb[14].mxu0  ;;  %v373_v25 = vpop.f32.mrb[14].mxu1 }
  0xfc   :  { %430 = vst [vmem:[%s938_s3 + $0x60] sm:$0xff] %v290_v18  ;;  %462 = vst [vmem:[%s938_s3 + $0x160] sm:$0xff] %v370_v19  ;;  %v294_v26 = vadd.f32 %v293_v24, %v675_v30  ;;  %v374_v27 = vadd.f32 %v373_v25, %v675_v30  ;;  %v295_v28 = vpop.f32.mrb[15].mxu0  ;;  %v375_v29 = vpop.f32.mrb[15].mxu1 }
  0xfd   :  { %431 = vst [vmem:[%s938_s3 + $0x68] sm:$0xff] %v292_v22  ;;  %463 = vst [vmem:[%s938_s3 + $0x168] sm:$0xff] %v372_v23  ;;  %v296_v32 = vadd.f32 %v295_v28, %v677_v31  ;;  %v376_v33 = vadd.f32 %v375_v29, %v677_v31 }
  0xfe   :  { %432 = vst [vmem:[%s938_s3 + $0x70] sm:$0xff] %v294_v26  ;;  %464 = vst [vmem:[%s938_s3 + $0x170] sm:$0xff] %v374_v27 }
  0xff   :  { %433 = vst [vmem:[%s938_s3 + $0x78] sm:$0xff] %v296_v32  ;;  %465 = vst [vmem:[%s938_s3 + $0x178] sm:$0xff] %v376_v33 }
 0x101   :  { %v299_v34 = vpop.f32.mrb[16].mxu0  ;;  %v379_v35 = vpop.f32.mrb[16].mxu1 }
 0x102   :  { %v300_v36 = vadd.f32 %v299_v34, %v675_v30  ;;  %v380_v37 = vadd.f32 %v379_v35, %v675_v30  ;;  %v301_v38 = vpop.f32.mrb[17].mxu0  ;;  %v381_v39 = vpop.f32.mrb[17].mxu1 }
 0x103   :  { %v302_v40 = vadd.f32 %v301_v38, %v677_v31  ;;  %v382_v41 = vadd.f32 %v381_v39, %v677_v31  ;;  %v303_v42 = vpop.f32.mrb[18].mxu0  ;;  %v383_v43 = vpop.f32.mrb[18].mxu1 }
 0x104   :  { %434 = vst [vmem:[%s938_s3 + $0x80] sm:$0xff] %v300_v36  ;;  %466 = vst [vmem:[%s938_s3 + $0x180] sm:$0xff] %v380_v37  ;;  %v304_v44 = vadd.f32 %v303_v42, %v675_v30  ;;  %v384_v45 = vadd.f32 %v383_v43, %v675_v30  ;;  %v305_v46 = vpop.f32.mrb[19].mxu0  ;;  %v385_v47 = vpop.f32.mrb[19].mxu1 }
 0x105   :  { %435 = vst [vmem:[%s938_s3 + $0x88] sm:$0xff] %v302_v40  ;;  %467 = vst [vmem:[%s938_s3 + $0x188] sm:$0xff] %v382_v41  ;;  %v306_v48 = vadd.f32 %v305_v46, %v677_v31  ;;  %v386_v49 = vadd.f32 %v385_v47, %v677_v31 }
 0x106   :  { %436 = vst [vmem:[%s938_s3 + $0x90] sm:$0xff] %v304_v44  ;;  %468 = vst [vmem:[%s938_s3 + $0x190] sm:$0xff] %v384_v45 }
 0x107   :  { %437 = vst [vmem:[%s938_s3 + $0x98] sm:$0xff] %v306_v48  ;;  %469 = vst [vmem:[%s938_s3 + $0x198] sm:$0xff] %v386_v49 }
 0x109   :  { %v309_v50 = vpop.f32.mrb[20].mxu0  ;;  %v389_v51 = vpop.f32.mrb[20].mxu1 }
 0x10a   :  { %v310_v52 = vadd.f32 %v309_v50, %v675_v30  ;;  %v390_v53 = vadd.f32 %v389_v51, %v675_v30  ;;  %v311_v54 = vpop.f32.mrb[21].mxu0  ;;  %v391_v55 = vpop.f32.mrb[21].mxu1 }
 0x10b   :  { %v312_v56 = vadd.f32 %v311_v54, %v677_v31  ;;  %v392_v57 = vadd.f32 %v391_v55, %v677_v31  ;;  %v313_v58 = vpop.f32.mrb[22].mxu0  ;;  %v393_v59 = vpop.f32.mrb[22].mxu1 }
 0x10c   :  { %438 = vst [vmem:[%s938_s3 + $0xa0] sm:$0xff] %v310_v52  ;;  %470 = vst [vmem:[%s938_s3 + $0x1a0] sm:$0xff] %v390_v53  ;;  %v314_v60 = vadd.f32 %v313_v58, %v675_v30  ;;  %v394_v61 = vadd.f32 %v393_v59, %v675_v30  ;;  %v315_v62 = vpop.f32.mrb[23].mxu0  ;;  %v395_v63 = vpop.f32.mrb[23].mxu1 }
 0x10d   :  { %439 = vst [vmem:[%s938_s3 + $0xa8] sm:$0xff] %v312_v56  ;;  %471 = vst [vmem:[%s938_s3 + $0x1a8] sm:$0xff] %v392_v57  ;;  %v316_v0 = vadd.f32 %v315_v62, %v677_v31  ;;  %v396_v1 = vadd.f32 %v395_v63, %v677_v31 }
 0x10e   :  { %440 = vst [vmem:[%s938_s3 + $0xb0] sm:$0xff] %v314_v60  ;;  %472 = vst [vmem:[%s938_s3 + $0x1b0] sm:$0xff] %v394_v61 }
 0x10f   :  { %441 = vst [vmem:[%s938_s3 + $0xb8] sm:$0xff] %v316_v0  ;;  %473 = vst [vmem:[%s938_s3 + $0x1b8] sm:$0xff] %v396_v1 }
 0x111   :  { %v319_v2 = vpop.f32.mrb[24].mxu0  ;;  %v399_v3 = vpop.f32.mrb[24].mxu1 }
 0x112   :  { %v320_v4 = vadd.f32 %v319_v2, %v675_v30  ;;  %v400_v5 = vadd.f32 %v399_v3, %v675_v30  ;;  %v321_v6 = vpop.f32.mrb[25].mxu0  ;;  %v401_v7 = vpop.f32.mrb[25].mxu1 }
 0x113   :  { %v322_v8 = vadd.f32 %v321_v6, %v677_v31  ;;  %v402_v9 = vadd.f32 %v401_v7, %v677_v31  ;;  %v323_v10 = vpop.f32.mrb[26].mxu0  ;;  %v403_v11 = vpop.f32.mrb[26].mxu1 }
 0x114   :  { %442 = vst [vmem:[%s938_s3 + $0xc0] sm:$0xff] %v320_v4  ;;  %474 = vst [vmem:[%s938_s3 + $0x1c0] sm:$0xff] %v400_v5  ;;  %v324_v12 = vadd.f32 %v323_v10, %v675_v30  ;;  %v404_v13 = vadd.f32 %v403_v11, %v675_v30  ;;  %v325_v14 = vpop.f32.mrb[27].mxu0  ;;  %v405_v15 = vpop.f32.mrb[27].mxu1 }
 0x115   :  { %443 = vst [vmem:[%s938_s3 + $0xc8] sm:$0xff] %v322_v8  ;;  %475 = vst [vmem:[%s938_s3 + $0x1c8] sm:$0xff] %v402_v9  ;;  %v326_v16 = vadd.f32 %v325_v14, %v677_v31  ;;  %v406_v17 = vadd.f32 %v405_v15, %v677_v31 }
 0x116   :  { %444 = vst [vmem:[%s938_s3 + $0xd0] sm:$0xff] %v324_v12  ;;  %476 = vst [vmem:[%s938_s3 + $0x1d0] sm:$0xff] %v404_v13 }
 0x117   :  { %445 = vst [vmem:[%s938_s3 + $0xd8] sm:$0xff] %v326_v16  ;;  %477 = vst [vmem:[%s938_s3 + $0x1d8] sm:$0xff] %v406_v17 }
 0x119   :  { %v329_v18 = vpop.f32.mrb[28].mxu0  ;;  %v409_v19 = vpop.f32.mrb[28].mxu1 }
 0x11a   :  { %v330_v20 = vadd.f32 %v329_v18, %v675_v30  ;;  %v410_v21 = vadd.f32 %v409_v19, %v675_v30  ;;  %v331_v22 = vpop.f32.mrb[29].mxu0  ;;  %v411_v23 = vpop.f32.mrb[29].mxu1 }
 0x11b   :  { %v332_v24 = vadd.f32 %v331_v22, %v677_v31  ;;  %v412_v25 = vadd.f32 %v411_v23, %v677_v31  ;;  %v333_v26 = vpop.f32.mrb[30].mxu0  ;;  %v413_v27 = vpop.f32.mrb[30].mxu1 }
 0x11c   :  { %446 = vst [vmem:[%s938_s3 + $0xe0] sm:$0xff] %v330_v20  ;;  %478 = vst [vmem:[%s938_s3 + $0x1e0] sm:$0xff] %v410_v21  ;;  %v334_v28 = vadd.f32 %v333_v26, %v675_v30  ;;  %v414_v29 = vadd.f32 %v413_v27, %v675_v30  ;;  %v335_v32 = vpop.f32.mrb[31].mxu0  ;;  %v415_v33 = vpop.f32.mrb[31].mxu1 }
 0x11d   :  { %447 = vst [vmem:[%s938_s3 + $0xe8] sm:$0xff] %v332_v24  ;;  %479 = vst [vmem:[%s938_s3 + $0x1e8] sm:$0xff] %v412_v25  ;;  %v336_v34 = vadd.f32 %v335_v32, %v677_v31  ;;  %v416_v35 = vadd.f32 %v415_v33, %v677_v31 }
 0x11e   :  { %448 = vst [vmem:[%s938_s3 + $0xf0] sm:$0xff] %v334_v28  ;;  %480 = vst [vmem:[%s938_s3 + $0x1f0] sm:$0xff] %v414_v29 }
 0x11f   :  { %449 = vst [vmem:[%s938_s3 + $0xf8] sm:$0xff] %v336_v34  ;;  %481 = vst [vmem:[%s938_s3 + $0x1f8] sm:$0xff] %v416_v35 }

// kernel: foreground_forward.30
= control target key start
LH: loop header
LB: loop body
LE: loop exit
PB: predicated region body
PF: predicated region fallthrough
CT: control target
= control target key end

     0   :  { %v232_v1 = vmov 0   ;;  %vm98_vm0 = vcmask 1041408   ;;  %vm85_vm1 = vcmask 293888   ;;  %v30_v13 = vlaneseq  ;;  %s331_s1 = inlined_call_operand.vmem [shape: bf16[36,256], index: 1, kind: input, shape index: {}]   ;;  %s332_s0 = inlined_call_operand.vmem [shape: bf16[64,36], index: 0, kind: input, shape index: {}]   ;;  %s333_s2 = inlined_call_operand.vmem [shape: f32[1,256], index: 2, kind: input, shape index: {}]   ;;  %s334_s3 = inlined_call_operand.vmem [shape: f32[64,256], index: 3, kind: output, shape index: {}]  }
   0x1   :  { %v220_v0 = vld [vmem:[%s331_s1 + $0x4] ss:$8 sps:$4 sm:$0xff]   ;;  %137 = vmatprep.mubr.bf16.mxu0 %v232_v1  ;;  %157 = vmatprep.mubr.bf16.mxu1 %v232_v1  ;;  %v222_v2 = vld [vmem:[%s331_s1] ss:$8 sps:$4 sm:$0xff]   ;;  %v223_v3 = vld [vmem:[%s331_s1 + $0x14] ss:$8 sps:$4 sm:$0xff]  }
   0x2   :  { %105 = vmatprep.subr.bf16.mxu0 %v220_v0  ;;  %213 = vmatprep.subr.bf16.mxu1 %v220_v0  ;;  %v27_v4 = vld [vmem:[%s331_s1 + $0x20] sm:$0x33]  ;;  %v225_v5 = vld [vmem:[%s331_s1 + $0x10] ss:$8 sps:$4 sm:$0xff]   ;;  %v230_v11 = vld [vmem:[%s332_s0 + $0x8] sm:$0xff]   ;;  %v31_v14 = vshrl.u32 %v30_v13, 7 }
   0x3   :  { %106 = vmatpush1.bf16.msra.mxu0 %v222_v2  ;;  %216 = vmatpush1.bf16.msra.mxu1 %v222_v2  ;;  %v207_v6 = vcombine.high %v27_v4, %v27_v4  ;;  %v206_v7 = vcombine.low %v27_v4, %v27_v4  ;;  %v228_v9 = vld [vmem:[%s332_s0] sm:$0xff]   ;;  %v229_v10 = vld [vmem:[%s332_s0 + $0x10] sm:$0xff]   ;;  %v231_v12 = vld [vmem:[%s332_s0 + $0x18] sm:$0xff]  }
   0x4   :  { %107 = vmatprep.subr.bf16.mxu0 %v223_v3  ;;  %214 = vmatprep.subr.bf16.mxu1 %v223_v3  ;;  %v32_v15 = vsub.s32 0, %v31_v14  ;;  %v28_v16 = vld [vmem:[%s333_s2] sm:$0x3]  ;;  %v36_v17 = vsub.s32 1, %v31_v14 }
   0x5   :  { %v100_v8 = vsel %vm98_vm0, %v206_v7, 0 }
   0x6   :  { %v33_v18 = vrot.slane %v28_v16, %v32_v15  ;;  %v37_v19 = vrot.slane %v28_v16, %v36_v17 }
   0x7   :  { %108 = vmatpush1.bf16.msra.mxu0 %v225_v5  ;;  %217 = vmatpush1.bf16.msra.mxu1 %v225_v5 }
   0x8   :  { %208 = vmatprep.subr.msk.bf16.mxu0 %vm98_vm0, %v207_v6  ;;  %215 = vmatprep.subr.msk.bf16.mxu1 %vm98_vm0, %v207_v6 }
   0xb   :  { %110 = vmatpush1.bf16.msra.mxu0 %v100_v8  ;;  %218 = vmatpush1.bf16.msra.mxu1 %v100_v8 }
   0xe   :  { %209 = vmatmul.mubr.msk.bf16.vlgmr.msra.gmra.mrb[0].mxu0 %vm85_vm1, %v228_v9  ;;  %211 = vmatmul.mubr.msk.bf16.vlgmr.msra.gmra.mrb[0].mxu1 %vm85_vm1, %v229_v10 }
   0xf   :  { %147 = vmatprep.mubr.bf16.mxu0 %v232_v1  ;;  %167 = vmatprep.mubr.bf16.mxu1 %v232_v1 }
  0x16   :  { %210 = vmatmul.mubr.msk.bf16.gmra.mrb[4].mxu0 %vm85_vm1, %v230_v11  ;;  %212 = vmatmul.mubr.msk.bf16.gmra.mrb[4].mxu1 %vm85_vm1, %v231_v12 }
  0xe1   :  { %v139_v20 = vpop.f32.mrb[0].mxu0  ;;  %v159_v21 = vpop.f32.mrb[0].mxu1 }
  0xe2   :  { %v140_v22 = vadd.f32 %v139_v20, %v33_v18  ;;  %v160_v23 = vadd.f32 %v159_v21, %v33_v18  ;;  %v141_v24 = vpop.f32.mrb[1].mxu0  ;;  %v161_v25 = vpop.f32.mrb[1].mxu1 }
  0xe3   :  { %v142_v26 = vadd.f32 %v141_v24, %v37_v19  ;;  %v162_v27 = vadd.f32 %v161_v25, %v37_v19  ;;  %v143_v28 = vpop.f32.mrb[2].mxu0  ;;  %v163_v29 = vpop.f32.mrb[2].mxu1 }
  0xe4   :  { %178 = vst [vmem:[%s334_s3] sm:$0xff] %v140_v22  ;;  %186 = vst [vmem:[%s334_s3 + $0x40] sm:$0xff] %v160_v23  ;;  %v144_v30 = vadd.f32 %v143_v28, %v33_v18  ;;  %v164_v31 = vadd.f32 %v163_v29, %v33_v18  ;;  %v145_v32 = vpop.f32.mrb[3].mxu0  ;;  %v165_v33 = vpop.f32.mrb[3].mxu1 }
  0xe5   :  { %179 = vst [vmem:[%s334_s3 + $0x8] sm:$0xff] %v142_v26  ;;  %187 = vst [vmem:[%s334_s3 + $0x48] sm:$0xff] %v162_v27  ;;  %v146_v34 = vadd.f32 %v145_v32, %v37_v19  ;;  %v166_v35 = vadd.f32 %v165_v33, %v37_v19 }
  0xe6   :  { %180 = vst [vmem:[%s334_s3 + $0x10] sm:$0xff] %v144_v30  ;;  %188 = vst [vmem:[%s334_s3 + $0x50] sm:$0xff] %v164_v31 }
  0xe7   :  { %181 = vst [vmem:[%s334_s3 + $0x18] sm:$0xff] %v146_v34  ;;  %189 = vst [vmem:[%s334_s3 + $0x58] sm:$0xff] %v166_v35 }
  0xe9   :  { %v149_v36 = vpop.f32.mrb[4].mxu0  ;;  %v169_v37 = vpop.f32.mrb[4].mxu1 }
  0xea   :  { %v150_v38 = vadd.f32 %v149_v36, %v33_v18  ;;  %v170_v39 = vadd.f32 %v169_v37, %v33_v18  ;;  %v151_v40 = vpop.f32.mrb[5].mxu0  ;;  %v171_v41 = vpop.f32.mrb[5].mxu1 }
  0xeb   :  { %v152_v42 = vadd.f32 %v151_v40, %v37_v19  ;;  %v172_v43 = vadd.f32 %v171_v41, %v37_v19  ;;  %v153_v44 = vpop.f32.mrb[6].mxu0  ;;  %v173_v45 = vpop.f32.mrb[6].mxu1 }
  0xec   :  { %182 = vst [vmem:[%s334_s3 + $0x20] sm:$0xff] %v150_v38  ;;  %190 = vst [vmem:[%s334_s3 + $0x60] sm:$0xff] %v170_v39  ;;  %v154_v46 = vadd.f32 %v153_v44, %v33_v18  ;;  %v174_v47 = vadd.f32 %v173_v45, %v33_v18  ;;  %v155_v48 = vpop.f32.mrb[7].mxu0  ;;  %v175_v49 = vpop.f32.mrb[7].mxu1 }
  0xed   :  { %183 = vst [vmem:[%s334_s3 + $0x28] sm:$0xff] %v152_v42  ;;  %191 = vst [vmem:[%s334_s3 + $0x68] sm:$0xff] %v172_v43  ;;  %v156_v50 = vadd.f32 %v155_v48, %v37_v19  ;;  %v176_v51 = vadd.f32 %v175_v49, %v37_v19 }
  0xee   :  { %184 = vst [vmem:[%s334_s3 + $0x30] sm:$0xff] %v154_v46  ;;  %192 = vst [vmem:[%s334_s3 + $0x70] sm:$0xff] %v174_v47 }
  0xef   :  { %185 = vst [vmem:[%s334_s3 + $0x38] sm:$0xff] %v156_v50  ;;  %193 = vst [vmem:[%s334_s3 + $0x78] sm:$0xff] %v176_v51 }

// kernel: foreground_forward.31
= control target key start
LH: loop header
LB: loop body
LE: loop exit
PB: predicated region body
PF: predicated region fallthrough
CT: control target
= control target key end

     0   :  { %v32_v0 = vlaneseq  ;;  %s316_s1 = inlined_call_operand.vmem [shape: f32[1,256], index: 1, kind: input, shape index: {}]   ;;  %s317_s2 = inlined_call_operand.vmem [shape: f32[1,256], index: 2, kind: input, shape index: {}]   ;;  %s318_s0 = inlined_call_operand.vmem [shape: f32[64,256], index: 0, kind: input, shape index: {}]   ;;  %s319_s3 = inlined_call_operand.vmem [shape: f32[64,256], index: 3, kind: output, shape index: {}]  }
   0x1   :  { %v30_v2 = vld [vmem:[%s316_s1] sm:$0x3]  ;;  %v15_v6 = vld [vmem:[%s318_s0 + $0x8] sm:$0xff]  ;;  %v16_v8 = vld [vmem:[%s318_s0 + $0x10] sm:$0xff] }
   0x2   :  { %v33_v1 = vshrl.u32 %v32_v0, 7  ;;  %v58_v3 = vld [vmem:[%s317_s2] sm:$0x3]  ;;  %v17_v9 = vld [vmem:[%s318_s0 + $0x18] sm:$0xff]  ;;  %v19_v15 = vld [vmem:[%s318_s0 + $0x28] sm:$0xff] }
   0x3   :  { %v14_v4 = vld [vmem:[%s318_s0] sm:$0xff]  ;;  %v20_v16 = vld [vmem:[%s318_s0 + $0x30] sm:$0xff]  ;;  %v21_v17 = vld [vmem:[%s318_s0 + $0x38] sm:$0xff] }
   0x4   :  { %v34_v5 = vsub.s32 0, %v33_v1  ;;  %v38_v7 = vsub.s32 1, %v33_v1  ;;  %v18_v10 = vld [vmem:[%s318_s0 + $0x20] sm:$0xff]  ;;  %v23_v42 = vld [vmem:[%s318_s0 + $0x48] sm:$0xff]  ;;  %v24_v46 = vld [vmem:[%s318_s0 + $0x50] sm:$0xff] }
   0x5   :  { %v22_v41 = vld [vmem:[%s318_s0 + $0x40] sm:$0xff]  ;;  %v25_v47 = vld [vmem:[%s318_s0 + $0x58] sm:$0xff]  ;;  %v27_v51 = vld [vmem:[%s318_s0 + $0x68] sm:$0xff] }
   0x6   :  { %v195_v11 = vrot.slane %v30_v2, %v34_v5  ;;  %v197_v12 = vrot.slane %v58_v3, %v34_v5  ;;  %v199_v13 = vrot.slane %v30_v2, %v38_v7  ;;  %v201_v14 = vrot.slane %v58_v3, %v38_v7  ;;  %v26_v48 = vld [vmem:[%s318_s0 + $0x60] sm:$0xff]  ;;  %v28_v56 = vld [vmem:[%s318_s0 + $0x70] sm:$0xff]  ;;  %v29_v5 = vld [vmem:[%s318_s0 + $0x78] sm:$0xff] }
   0x8   :  { %v42_v18 = vmul.f32 %v195_v11, %v14_v4  ;;  %v43_v19 = vmul.f32 %v199_v13, %v15_v6  ;;  %v44_v20 = vmul.f32 %v195_v11, %v16_v8  ;;  %v45_v21 = vmul.f32 %v199_v13, %v17_v9 }
   0x9   :  { %v46_v22 = vmul.f32 %v195_v11, %v18_v10  ;;  %v47_v23 = vmul.f32 %v199_v13, %v19_v15  ;;  %v48_v24 = vmul.f32 %v195_v11, %v20_v16  ;;  %v49_v25 = vmul.f32 %v199_v13, %v21_v17 }
   0xa   :  { %v70_v26 = vadd.f32 %v197_v12, %v42_v18  ;;  %v71_v27 = vadd.f32 %v201_v14, %v43_v19  ;;  %v72_v28 = vadd.f32 %v197_v12, %v44_v20  ;;  %v73_v29 = vadd.f32 %v201_v14, %v45_v21 }
   0xb   :  { %v74_v30 = vadd.f32 %v197_v12, %v46_v22  ;;  %v75_v31 = vadd.f32 %v201_v14, %v47_v23  ;;  %v76_v32 = vadd.f32 %v197_v12, %v48_v24  ;;  %v77_v33 = vadd.f32 %v201_v14, %v49_v25 }
   0xc   :  { %vm86_vm0 = vcmp.ge.f32.partialorder %v70_v26, 0.0  ;;  %v102_v34 = vmul.f32 0.01, %v70_v26  ;;  %vm87_vm1 = vcmp.ge.f32.partialorder %v71_v27, 0.0  ;;  %v103_v35 = vmul.f32 0.01, %v71_v27 }
   0xd   :  { %vm88_vm2 = vcmp.ge.f32.partialorder %v72_v28, 0.0  ;;  %v104_v36 = vmul.f32 0.01, %v72_v28  ;;  %vm89_vm3 = vcmp.ge.f32.partialorder %v73_v29, 0.0  ;;  %v105_v37 = vmul.f32 0.01, %v73_v29 }
   0xe   :  { %v118_v38 = vsel %vm86_vm0, %v70_v26, %v102_v34  ;;  %v119_v39 = vsel %vm87_vm1, %v71_v27, %v103_v35  ;;  %vm90_vm4 = vcmp.ge.f32.partialorder %v74_v30, 0.0  ;;  %v106_v40 = vmul.f32 0.01, %v74_v30 }
   0xf   :  { %134 = vst [vmem:[%s319_s3] sm:$0xff] %v118_v38  ;;  %135 = vst [vmem:[%s319_s3 + $0x8] sm:$0xff] %v119_v39  ;;  %v120_v43 = vsel %vm88_vm2, %v72_v28, %v104_v36  ;;  %v121_v44 = vsel %vm89_vm3, %v73_v29, %v105_v37  ;;  %vm91_vm5 = vcmp.ge.f32.partialorder %v75_v31, 0.0  ;;  %v107_v45 = vmul.f32 0.01, %v75_v31 }
  0x10   :  { %136 = vst [vmem:[%s319_s3 + $0x10] sm:$0xff] %v120_v43  ;;  %137 = vst [vmem:[%s319_s3 + $0x18] sm:$0xff] %v121_v44  ;;  %v122_v49 = vsel %vm90_vm4, %v74_v30, %v106_v40  ;;  %vm92_vm6 = vcmp.ge.f32.partialorder %v76_v32, 0.0  ;;  %v108_v50 = vmul.f32 0.01, %v76_v32  ;;  %vm93_vm7 = vcmp.ge.f32.partialorder %v77_v33, 0.0 }
  0x11   :  { %138 = vst [vmem:[%s319_s3 + $0x20] sm:$0xff] %v122_v49  ;;  %v123_v52 = vsel %vm91_vm5, %v75_v31, %v107_v45  ;;  %v109_v53 = vmul.f32 0.01, %v77_v33  ;;  %v50_v54 = vmul.f32 %v195_v11, %v22_v41  ;;  %v51_v55 = vmul.f32 %v199_v13, %v23_v42 }
  0x12   :  { %139 = vst [vmem:[%s319_s3 + $0x28] sm:$0xff] %v123_v52  ;;  %v124_v57 = vsel %vm92_vm6, %v76_v32, %v108_v50  ;;  %v52_v58 = vmul.f32 %v195_v11, %v24_v46  ;;  %v53_v59 = vmul.f32 %v199_v13, %v25_v47  ;;  %v54_v60 = vmul.f32 %v195_v11, %v26_v48 }
  0x13   :  { %140 = vst [vmem:[%s319_s3 + $0x30] sm:$0xff] %v124_v57  ;;  %v125_v61 = vsel %vm93_vm7, %v77_v33, %v109_v53  ;;  %v78_v62 = vadd.f32 %v197_v12, %v50_v54  ;;  %v79_v63 = vadd.f32 %v201_v14, %v51_v55  ;;  %v55_v0 = vmul.f32 %v199_v13, %v27_v51 }
  0x14   :  { %141 = vst [vmem:[%s319_s3 + $0x38] sm:$0xff] %v125_v61  ;;  %v80_v1 = vadd.f32 %v197_v12, %v52_v58  ;;  %v81_v2 = vadd.f32 %v201_v14, %v53_v59  ;;  %v82_v3 = vadd.f32 %v197_v12, %v54_v60  ;;  %v56_v4 = vmul.f32 %v195_v11, %v28_v56 }
  0x15   :  { %vm94_vm8 = vcmp.ge.f32.partialorder %v78_v62, 0.0  ;;  %v110_v6 = vmul.f32 0.01, %v78_v62  ;;  %vm95_vm9 = vcmp.ge.f32.partialorder %v79_v63, 0.0  ;;  %v111_v7 = vmul.f32 0.01, %v79_v63 }
  0x16   :  { %vm96_vm10 = vcmp.ge.f32.partialorder %v80_v1, 0.0  ;;  %v112_v8 = vmul.f32 0.01, %v80_v1  ;;  %vm97_vm11 = vcmp.ge.f32.partialorder %v81_v2, 0.0  ;;  %v113_v9 = vmul.f32 0.01, %v81_v2 }
  0x17   :  { %v126_v10 = vsel %vm94_vm8, %v78_v62, %v110_v6  ;;  %v127_v15 = vsel %vm95_vm9, %v79_v63, %v111_v7  ;;  %vm98_vm12 = vcmp.ge.f32.partialorder %v82_v3, 0.0  ;;  %v114_v16 = vmul.f32 0.01, %v82_v3 }
  0x18   :  { %142 = vst [vmem:[%s319_s3 + $0x40] sm:$0xff] %v126_v10  ;;  %143 = vst [vmem:[%s319_s3 + $0x48] sm:$0xff] %v127_v15  ;;  %v128_v11 = vsel %vm96_vm10, %v80_v1, %v112_v8  ;;  %v129_v17 = vsel %vm97_vm11, %v81_v2, %v113_v9  ;;  %v83_v18 = vadd.f32 %v201_v14, %v55_v0 }
  0x19   :  { %v84_v19 = vadd.f32 %v197_v12, %v56_v4  ;;  %144 = vst [vmem:[%s319_s3 + $0x50] sm:$0xff] %v128_v11  ;;  %145 = vst [vmem:[%s319_s3 + $0x58] sm:$0xff] %v129_v17  ;;  %v130_v20 = vsel %vm98_vm12, %v82_v3, %v114_v16  ;;  %v57_v21 = vmul.f32 %v199_v13, %v29_v5 }
  0x1a   :  { %146 = vst [vmem:[%s319_s3 + $0x60] sm:$0xff] %v130_v20  ;;  %vm99_vm13 = vcmp.ge.f32.partialorder %v83_v18, 0.0  ;;  %v115_v22 = vmul.f32 0.01, %v83_v18 }
  0x1b   :  { %vm100_vm14 = vcmp.ge.f32.partialorder %v84_v19, 0.0  ;;  %v116_v23 = vmul.f32 0.01, %v84_v19  ;;  %v85_v12 = vadd.f32 %v201_v14, %v57_v21 }
  0x1c   :  { %v131_v24 = vsel %vm99_vm13, %v83_v18, %v115_v22 }
  0x1d   :  { %v132_v25 = vsel %vm100_vm14, %v84_v19, %v116_v23  ;;  %147 = vst [vmem:[%s319_s3 + $0x68] sm:$0xff] %v131_v24  ;;  %vm101_vm15 = vcmp.ge.f32.partialorder %v85_v12, 0.0  ;;  %v117_v13 = vmul.f32 0.01, %v85_v12 }
  0x1e   :  { %148 = vst [vmem:[%s319_s3 + $0x70] sm:$0xff] %v132_v25 }
  0x1f   :  { %v133_v26 = vsel %vm101_vm15, %v85_v12, %v117_v13 }
  0x20   :  { %149 = vst [vmem:[%s319_s3 + $0x78] sm:$0xff] %v133_v26 }

// kernel: foreground_forward.37
= control target key start
LH: loop header
LB: loop body
LE: loop exit
PB: predicated region body
PF: predicated region fallthrough
CT: control target
= control target key end

     0   :  { %vm4351_vm0 = vcmask 261120   ;;  %s8288_s1 = inlined_call_operand.vmem [shape: bf16[2304,32], index: 1, kind: input, shape index: {}]   ;;  %s8289_s0 = inlined_call_operand.vmem [shape: bf16[256,2304], index: 0, kind: input, shape index: {}]   ;;  %s8290_s2 = inlined_call_operand.vmem [shape: f32[1,32], index: 2, kind: input, shape index: {}]   ;;  %s8291_s3 = inlined_call_operand.vmem [shape: f32[256,32], index: 3, kind: output, shape index: {}]  }
   0x1   :  { %v5845_v0 = vld [vmem:[%s8288_s1 + $0x40] sm:$0xff]   ;;  %v5847_v2 = vld [vmem:[%s8288_s1 + $0x48] sm:$0xff]   ;;  %v5849_v4 = vld [vmem:[%s8288_s1 + $0x50] sm:$0xff]  }
   0x2   :  { %v5846_v1 = vld [vmem:[%s8288_s1] sm:$0xff]   ;;  %4821 = vmatprep.subr.bf16.mxu0 %v5845_v0  ;;  %5829 = vmatprep.subr.bf16.mxu1 %v5845_v0  ;;  %v5848_v3 = vld [vmem:[%s8288_s1 + $0x8] sm:$0xff]   ;;  %v5850_v5 = vld [vmem:[%s8288_s1 + $0x10] sm:$0xff]  }
   0x3   :  { %4822 = vmatpush3.bf16.msra.mxu0 %v5846_v1  ;;  %5837 = vmatpush3.bf16.msra.mxu1 %v5846_v1  ;;  %v5851_v6 = vld [vmem:[%s8288_s1 + $0x58] sm:$0xff]   ;;  %v5853_v8 = vld [vmem:[%s8288_s1 + $0x60] sm:$0xff]   ;;  %v5855_v10 = vld [vmem:[%s8288_s1 + $0x68] sm:$0xff]  }
   0x4   :  { %4823 = vmatprep.subr.bf16.mxu0 %v5847_v2  ;;  %5830 = vmatprep.subr.bf16.mxu1 %v5847_v2  ;;  %v5852_v7 = vld [vmem:[%s8288_s1 + $0x18] sm:$0xff]   ;;  %v5854_v9 = vld [vmem:[%s8288_s1 + $0x20] sm:$0xff]   ;;  %v5856_v13 = vld [vmem:[%s8288_s1 + $0x28] sm:$0xff]  }
   0x5   :  { %v5863_v11 = vld [vmem:[%s8289_s0 + $0x4] ss:$72 sps:$4 sm:$0xff]   ;;  %v5857_v14 = vld [vmem:[%s8288_s1 + $0x70] sm:$0xff]   ;;  %v5859_v16 = vld [vmem:[%s8288_s1 + $0x78] sm:$0xff]  }
   0x6   :  { %v5866_v12 = vld [vmem:[%s8289_s0 + $0x484] ss:$72 sps:$4 sm:$0xff]   ;;  %2934 = vmatprep.mubr.bf16.mxu0 %v5863_v11  ;;  %v5858_v15 = vld [vmem:[%s8288_s1 + $0x30] sm:$0xff]   ;;  %v5860_v17 = vld [vmem:[%s8288_s1 + $0x38] sm:$0xff]  }
   0x7   :  { %4824 = vmatpush3.bf16.msra.mxu0 %v5848_v3  ;;  %5838 = vmatpush3.bf16.msra.mxu1 %v5848_v3  ;;  %v5867_v18 = vld [vmem:[%s8288_s1 + $0xc0] sm:$0xff]   ;;  %v5871_v24 = vld [vmem:[%s8289_s0 + $0x94] ss:$72 sps:$4 sm:$0xff]   ;;  %v5877_v26 = vld [vmem:[%s8288_s1 + $0xc8] sm:$0xff]  }
   0x8   :  { %4825 = vmatprep.subr.bf16.mxu0 %v5849_v4  ;;  %5831 = vmatprep.subr.bf16.mxu1 %v5849_v4  ;;  %v5861_v19 = vld [vmem:[%s8289_s0] ss:$72 sps:$4 sm:$0xff]   ;;  %v5873_v25 = vld [vmem:[%s8289_s0 + $0x514] ss:$72 sps:$4 sm:$0xff]   ;;  %v5875_v31 = vld [vmem:[%s8289_s0 + $0x90] ss:$72 sps:$4 sm:$0xff]  }
   0x9   :  { %2998 = vmatprep.mubr.bf16.mxu1 %v5866_v12  ;;  %v5869_v20 = vld [vmem:[%s8288_s1 + $0x140] sm:$0xff]   ;;  %v5878_v27 = vld [vmem:[%s8288_s1 + $0x88] sm:$0xff]   ;;  %v5887_v30 = vld [vmem:[%s8288_s1 + $0xd0] sm:$0xff]  }
   0xa   :  { %v5864_v21 = vld [vmem:[%s8289_s0 + $0x480] ss:$72 sps:$4 sm:$0xff]   ;;  %v5876_v32 = vld [vmem:[%s8289_s0 + $0x510] ss:$72 sps:$4 sm:$0xff]   ;;  %v5881_v34 = vld [vmem:[%s8289_s0 + $0x124] ss:$72 sps:$4 sm:$0xff]  }
   0xb   :  { %4826 = vmatpush3.bf16.msra.mxu0 %v5850_v5  ;;  %5839 = vmatpush3.bf16.msra.mxu1 %v5850_v5  ;;  %v5868_v22 = vld [vmem:[%s8288_s1 + $0x80] sm:$0xff]   ;;  %v5879_v28 = vld [vmem:[%s8288_s1 + $0x148] sm:$0xff]   ;;  %v5889_v33 = vld [vmem:[%s8288_s1 + $0x150] sm:$0xff]  }
   0xc   :  { %4827 = vmatprep.subr.bf16.mxu0 %v5851_v6  ;;  %5832 = vmatprep.subr.bf16.mxu1 %v5851_v6  ;;  %v5870_v23 = vld [vmem:[%s8288_s1 + $0x100] sm:$0xff]   ;;  %v5880_v29 = vld [vmem:[%s8288_s1 + $0x108] sm:$0xff]   ;;  %v5888_v36 = vld [vmem:[%s8288_s1 + $0x90] sm:$0xff]  }
   0xd   :  { %v5883_v35 = vld [vmem:[%s8289_s0 + $0x5a4] ss:$72 sps:$4 sm:$0xff]   ;;  %v5890_v37 = vld [vmem:[%s8288_s1 + $0x110] sm:$0xff]   ;;  %v5897_v38 = vld [vmem:[%s8288_s1 + $0xd8] sm:$0xff]  }
   0xe   :  { %v5899_v39 = vld [vmem:[%s8288_s1 + $0x158] sm:$0xff]   ;;  %v5885_v40 = vld [vmem:[%s8289_s0 + $0x120] ss:$72 sps:$4 sm:$0xff]   ;;  %v5901_v53 = vld [vmem:[%s8289_s0 + $0x244] ss:$72 sps:$4 sm:$0xff]  }
   0xf   :  { %4828 = vmatpush3.bf16.msra.mxu0 %v5852_v7  ;;  %5840 = vmatpush3.bf16.msra.mxu1 %v5852_v7  ;;  %v5886_v41 = vld [vmem:[%s8289_s0 + $0x5a0] ss:$72 sps:$4 sm:$0xff]   ;;  %v5898_v42 = vld [vmem:[%s8288_s1 + $0x98] sm:$0xff]   ;;  %v5903_v54 = vld [vmem:[%s8289_s0 + $0x6c4] ss:$72 sps:$4 sm:$0xff]  }
  0x10   :  { %4829 = vmatprep.subr.bf16.mxu0 %v5853_v8  ;;  %5833 = vmatprep.subr.bf16.mxu1 %v5853_v8  ;;  %v5900_v43 = vld [vmem:[%s8288_s1 + $0x118] sm:$0xff]   ;;  %v5907_v46 = vld [vmem:[%s8288_s1 + $0xe0] sm:$0xff]   ;;  %v5917_v52 = vld [vmem:[%s8288_s1 + $0xe8] sm:$0xff]  }
  0x11   :  { %v5891_v44 = vld [vmem:[%s8289_s0 + $0x1b4] ss:$72 sps:$4 sm:$0xff]   ;;  %v5908_v47 = vld [vmem:[%s8288_s1 + $0xa0] sm:$0xff]   ;;  %v5895_v50 = vld [vmem:[%s8289_s0 + $0x1b0] ss:$72 sps:$4 sm:$0xff]  }
  0x12   :  { %v5893_v45 = vld [vmem:[%s8289_s0 + $0x634] ss:$72 sps:$4 sm:$0xff]   ;;  %v5909_v48 = vld [vmem:[%s8288_s1 + $0x160] sm:$0xff]   ;;  %v5896_v51 = vld [vmem:[%s8289_s0 + $0x630] ss:$72 sps:$4 sm:$0xff]  }
  0x13   :  { %4830 = vmatpush3.bf16.msra.mxu0 %v5854_v9  ;;  %5841 = vmatpush3.bf16.msra.mxu1 %v5854_v9  ;;  %v5910_v49 = vld [vmem:[%s8288_s1 + $0x120] sm:$0xff]   ;;  %v5918_v55 = vld [vmem:[%s8288_s1 + $0xa8] sm:$0xff]   ;;  %v5927_v58 = vld [vmem:[%s8288_s1 + $0xf0] sm:$0xff]  }
  0x14   :  { %4831 = vmatprep.subr.bf16.mxu0 %v5855_v10  ;;  %5834 = vmatprep.subr.bf16.mxu1 %v5855_v10  ;;  %v5919_v56 = vld [vmem:[%s8288_s1 + $0x168] sm:$0xff]   ;;  %v5928_v61 = vld [vmem:[%s8288_s1 + $0xb0] sm:$0xff]   ;;  %v5937_v2 = vld [vmem:[%s8288_s1 + $0xf8] sm:$0xff]  }
  0x15   :  { %v5920_v57 = vld [vmem:[%s8288_s1 + $0x128] sm:$0xff]   ;;  %v5911_v62 = vld [vmem:[%s8289_s0 + $0x2d4] ss:$72 sps:$4 sm:$0xff]   ;;  %v5915_v6 = vld [vmem:[%s8289_s0 + $0x2d0] ss:$72 sps:$4 sm:$0xff]  }
  0x16   :  { %v5905_v59 = vld [vmem:[%s8289_s0 + $0x240] ss:$72 sps:$4 sm:$0xff]   ;;  %v5929_v63 = vld [vmem:[%s8288_s1 + $0x170] sm:$0xff]   ;;  %v5938_v3 = vld [vmem:[%s8288_s1 + $0xb8] sm:$0xff]  }
  0x17   :  { %4832 = vmatpush3.bf16.msra.mxu0 %v5856_v13  ;;  %5842 = vmatpush3.bf16.msra.mxu1 %v5856_v13  ;;  %v5906_v60 = vld [vmem:[%s8289_s0 + $0x6c0] ss:$72 sps:$4 sm:$0xff]   ;;  %v5930_v0 = vld [vmem:[%s8288_s1 + $0x130] sm:$0xff]   ;;  %v5939_v4 = vld [vmem:[%s8288_s1 + $0x178] sm:$0xff]  }
  0x18   :  { %4833 = vmatprep.subr.bf16.mxu0 %v5857_v14  ;;  %5835 = vmatprep.subr.bf16.mxu1 %v5857_v14  ;;  %v5913_v1 = vld [vmem:[%s8289_s0 + $0x754] ss:$72 sps:$4 sm:$0xff]   ;;  %v5916_v7 = vld [vmem:[%s8289_s0 + $0x750] ss:$72 sps:$4 sm:$0xff]   ;;  %v5921_v8 = vld [vmem:[%s8289_s0 + $0x364] ss:$72 sps:$4 sm:$0xff]  }
  0x19   :  { %v5940_v5 = vld [vmem:[%s8288_s1 + $0x138] sm:$0xff]   ;;  %v5923_v9 = vld [vmem:[%s8289_s0 + $0x7e4] ss:$72 sps:$4 sm:$0xff]   ;;  %v5925_v12 = vld [vmem:[%s8289_s0 + $0x360] ss:$72 sps:$4 sm:$0xff]  }
  0x1a   :  { %v5947_v10 = vld [vmem:[%s8288_s1 + $0x1c0] sm:$0xff]   ;;  %v5931_v14 = vld [vmem:[%s8289_s0 + $0x3f4] ss:$72 sps:$4 sm:$0xff]  }
  0x1b   :  { %4834 = vmatpush3.bf16.msra.mxu0 %v5858_v15  ;;  %5843 = vmatpush3.bf16.msra.mxu1 %v5858_v15  ;;  %v5949_v11 = vld [vmem:[%s8288_s1 + $0x240] sm:$0xff]   ;;  %v5933_v15 = vld [vmem:[%s8289_s0 + $0x874] ss:$72 sps:$4 sm:$0xff]  }
  0x1c   :  { %4835 = vmatprep.subr.bf16.mxu0 %v5859_v16  ;;  %5836 = vmatprep.subr.bf16.mxu1 %v5859_v16  ;;  %v5926_v13 = vld [vmem:[%s8289_s0 + $0x7e0] ss:$72 sps:$4 sm:$0xff]   ;;  %v5935_v16 = vld [vmem:[%s8289_s0 + $0x3f0] ss:$72 sps:$4 sm:$0xff]  }
  0x1f   :  { %4836 = vmatpush3.bf16.msra.mxu0 %v5860_v17  ;;  %5844 = vmatpush3.bf16.msra.mxu1 %v5860_v17  ;;  %v5936_v17 = vld [vmem:[%s8289_s0 + $0x870] ss:$72 sps:$4 sm:$0xff]  }
  0x20   :  { %4933 = vmatprep.subr.bf16.mxu1 %v5867_v18  ;;  %5045 = vmatprep.subr.bf16.mxu0 %v5869_v20  ;;  %v5943_v18 = vld [vmem:[%s8289_s0 + $0xc] ss:$72 sps:$4 sm:$0xff]   ;;  %v5941_v20 = vld [vmem:[%s8289_s0 + $0x8] ss:$72 sps:$4 sm:$0xff]  }
  0x22   :  { %2935 = vmatmul.mubr.bf16.vlgmr.msra.gmra.mrb[0].mxu0 %v5861_v19  ;;  %2999 = vmatmul.mubr.bf16.vlgmr.msra.gmra.mrb[0].mxu1 %v5864_v21  ;;  %v5946_v19 = vld [vmem:[%s8289_s0 + $0x14] ss:$72 sps:$4 sm:$0xff]   ;;  %v5944_v21 = vld [vmem:[%s8289_s0 + $0x10] ss:$72 sps:$4 sm:$0xff]  }
  0x23   :  { %4934 = vmatpush3.bf16.msra.mxu1 %v5868_v22  ;;  %5046 = vmatpush3.bf16.msra.mxu0 %v5870_v23  ;;  %v5948_v22 = vld [vmem:[%s8288_s1 + $0x180] sm:$0xff]  }
  0x24   :  { %2942 = vmatprep.mubr.bf16.mxu0 %v5871_v24  ;;  %3006 = vmatprep.mubr.bf16.mxu1 %v5873_v25  ;;  %v5950_v23 = vld [vmem:[%s8288_s1 + $0x200] sm:$0xff]  }
  0x25   :  { %4935 = vmatprep.subr.bf16.mxu1 %v5877_v26  ;;  %5047 = vmatprep.subr.bf16.mxu0 %v5879_v28  ;;  %v5951_v24 = vld [vmem:[%s8289_s0 + $0x9c] ss:$72 sps:$4 sm:$0xff]   ;;  %v5963_v26 = vld [vmem:[%s8288_s1 + $0x1c8] sm:$0xff]  }
  0x26   :  { %v5953_v25 = vld [vmem:[%s8289_s0 + $0xa4] ss:$72 sps:$4 sm:$0xff]  }
  0x27   :  { %4936 = vmatpush3.bf16.msra.mxu1 %v5878_v27  ;;  %5048 = vmatpush3.bf16.msra.mxu0 %v5880_v29  ;;  %v5965_v27 = vld [vmem:[%s8288_s1 + $0x248] sm:$0xff]  }
  0x28   :  { %4937 = vmatprep.subr.bf16.mxu1 %v5887_v30  ;;  %5049 = vmatprep.subr.bf16.mxu0 %v5889_v33  ;;  %v5964_v28 = vld [vmem:[%s8288_s1 + $0x188] sm:$0xff]   ;;  %v5979_v30 = vld [vmem:[%s8288_s1 + $0x1d0] sm:$0xff]  }
  0x29   :  { %v5966_v29 = vld [vmem:[%s8288_s1 + $0x208] sm:$0xff]   ;;  %v5981_v33 = vld [vmem:[%s8288_s1 + $0x250] sm:$0xff]  }
  0x2a   :  { %2943 = vmatmul.mubr.bf16.gmra.mrb[4].mxu0 %v5875_v31  ;;  %3007 = vmatmul.mubr.bf16.gmra.mrb[4].mxu1 %v5876_v32  ;;  %v5955_v31 = vld [vmem:[%s8289_s0 + $0x98] ss:$72 sps:$4 sm:$0xff]  }
  0x2b   :  { %2950 = vmatprep.mubr.bf16.mxu0 %v5881_v34  ;;  %3014 = vmatprep.mubr.bf16.mxu1 %v5883_v35  ;;  %v5956_v32 = vld [vmem:[%s8289_s0 + $0xa0] ss:$72 sps:$4 sm:$0xff]   ;;  %v5957_v34 = vld [vmem:[%s8289_s0 + $0x12c] ss:$72 sps:$4 sm:$0xff]  }
  0x2c   :  { %4938 = vmatpush3.bf16.msra.mxu1 %v5888_v36  ;;  %5050 = vmatpush3.bf16.msra.mxu0 %v5890_v37  ;;  %v5959_v35 = vld [vmem:[%s8289_s0 + $0x134] ss:$72 sps:$4 sm:$0xff]  }
  0x2d   :  { %4939 = vmatprep.subr.bf16.mxu1 %v5897_v38  ;;  %5051 = vmatprep.subr.bf16.mxu0 %v5899_v39  ;;  %v5980_v36 = vld [vmem:[%s8288_s1 + $0x190] sm:$0xff]   ;;  %v5995_v38 = vld [vmem:[%s8288_s1 + $0x1d8] sm:$0xff]  }
  0x2e   :  { %v5982_v37 = vld [vmem:[%s8288_s1 + $0x210] sm:$0xff]   ;;  %v5997_v39 = vld [vmem:[%s8288_s1 + $0x258] sm:$0xff]  }
  0x30   :  { %4940 = vmatpush3.bf16.msra.mxu1 %v5898_v42  ;;  %5052 = vmatpush3.bf16.msra.mxu0 %v5900_v43  ;;  %v5996_v42 = vld [vmem:[%s8288_s1 + $0x198] sm:$0xff]  }
  0x31   :  { %4941 = vmatprep.subr.bf16.mxu1 %v5907_v46  ;;  %5053 = vmatprep.subr.bf16.mxu0 %v5909_v48  ;;  %v5998_v43 = vld [vmem:[%s8288_s1 + $0x218] sm:$0xff]   ;;  %v6011_v46 = vld [vmem:[%s8288_s1 + $0x1e0] sm:$0xff]  }
  0x32   :  { %2951 = vmatmul.mubr.bf16.gmra.mrb[8].mxu0 %v5885_v40  ;;  %3015 = vmatmul.mubr.bf16.gmra.mrb[8].mxu1 %v5886_v41  ;;  %v5961_v40 = vld [vmem:[%s8289_s0 + $0x128] ss:$72 sps:$4 sm:$0xff]   ;;  %v6013_v48 = vld [vmem:[%s8288_s1 + $0x260] sm:$0xff]  }
  0x33   :  { %2958 = vmatprep.mubr.bf16.mxu0 %v5891_v44  ;;  %3022 = vmatprep.mubr.bf16.mxu1 %v5893_v45  ;;  %v5962_v41 = vld [vmem:[%s8289_s0 + $0x130] ss:$72 sps:$4 sm:$0xff]   ;;  %v5967_v44 = vld [vmem:[%s8289_s0 + $0x1bc] ss:$72 sps:$4 sm:$0xff]  }
  0x34   :  { %4942 = vmatpush3.bf16.msra.mxu1 %v5908_v47  ;;  %5054 = vmatpush3.bf16.msra.mxu0 %v5910_v49  ;;  %v5969_v45 = vld [vmem:[%s8289_s0 + $0x1c4] ss:$72 sps:$4 sm:$0xff]  }
  0x35   :  { %4943 = vmatprep.subr.bf16.mxu1 %v5917_v52  ;;  %5055 = vmatprep.subr.bf16.mxu0 %v5919_v56  ;;  %v6012_v47 = vld [vmem:[%s8288_s1 + $0x1a0] sm:$0xff]   ;;  %v5973_v52 = vld [vmem:[%s8289_s0 + $0x24c] ss:$72 sps:$4 sm:$0xff]  }
  0x36   :  { %v6014_v49 = vld [vmem:[%s8288_s1 + $0x220] sm:$0xff]   ;;  %v6029_v56 = vld [vmem:[%s8288_s1 + $0x268] sm:$0xff]  }
  0x38   :  { %4944 = vmatpush3.bf16.msra.mxu1 %v5918_v55  ;;  %5056 = vmatpush3.bf16.msra.mxu0 %v5920_v57  ;;  %v6028_v55 = vld [vmem:[%s8288_s1 + $0x1a8] sm:$0xff]  }
  0x39   :  { %4945 = vmatprep.subr.bf16.mxu1 %v5927_v58  ;;  %5057 = vmatprep.subr.bf16.mxu0 %v5929_v63  ;;  %v6030_v57 = vld [vmem:[%s8288_s1 + $0x228] sm:$0xff]   ;;  %v6044_v63 = vld [vmem:[%s8288_s1 + $0x1b0] sm:$0xff]  }
  0x3a   :  { %2959 = vmatmul.mubr.bf16.gmra.mrb[12].mxu0 %v5895_v50  ;;  %3023 = vmatmul.mubr.bf16.gmra.mrb[12].mxu1 %v5896_v51  ;;  %v5971_v50 = vld [vmem:[%s8289_s0 + $0x1b8] ss:$72 sps:$4 sm:$0xff]   ;;  %v5977_v58 = vld [vmem:[%s8289_s0 + $0x248] ss:$72 sps:$4 sm:$0xff]  }
  0x3b   :  { %2966 = vmatprep.mubr.bf16.mxu0 %v5901_v53  ;;  %3030 = vmatprep.mubr.bf16.mxu1 %v5903_v54  ;;  %v5972_v51 = vld [vmem:[%s8289_s0 + $0x1c0] ss:$72 sps:$4 sm:$0xff]   ;;  %v5975_v53 = vld [vmem:[%s8289_s0 + $0x254] ss:$72 sps:$4 sm:$0xff]  }
  0x3c   :  { %4946 = vmatpush3.bf16.msra.mxu1 %v5928_v61  ;;  %5058 = vmatpush3.bf16.msra.mxu0 %v5930_v0  ;;  %v6027_v54 = vld [vmem:[%s8288_s1 + $0x1e8] sm:$0xff]   ;;  %v6045_v0 = vld [vmem:[%s8288_s1 + $0x270] sm:$0xff]  }
  0x3d   :  { %4947 = vmatprep.subr.bf16.mxu1 %v5937_v2  ;;  %5059 = vmatprep.subr.bf16.mxu0 %v5939_v4  ;;  %v5985_v61 = vld [vmem:[%s8289_s0 + $0x2e4] ss:$72 sps:$4 sm:$0xff]   ;;  %v5987_v2 = vld [vmem:[%s8289_s0 + $0x2d8] ss:$72 sps:$4 sm:$0xff]  }
  0x3e   :  { %v5989_v4 = vld [vmem:[%s8289_s0 + $0x36c] ss:$72 sps:$4 sm:$0xff]  }
  0x40   :  { %4948 = vmatpush3.bf16.msra.mxu1 %v5938_v3  ;;  %5060 = vmatpush3.bf16.msra.mxu0 %v5940_v5  ;;  %v5988_v3 = vld [vmem:[%s8289_s0 + $0x2e0] ss:$72 sps:$4 sm:$0xff]   ;;  %v5991_v5 = vld [vmem:[%s8289_s0 + $0x374] ss:$72 sps:$4 sm:$0xff]  }
  0x41   :  { %5157 = vmatprep.subr.bf16.mxu1 %v5947_v10  ;;  %5269 = vmatprep.subr.bf16.mxu0 %v5949_v11  ;;  %v6062_v10 = vld [vmem:[%s8288_s1 + $0x238] sm:$0xff]  }
  0x42   :  { %2967 = vmatmul.mubr.bf16.gmra.mrb[16].mxu0 %v5905_v59  ;;  %3031 = vmatmul.mubr.bf16.gmra.mrb[16].mxu1 %v5906_v60  ;;  %v5978_v59 = vld [vmem:[%s8289_s0 + $0x250] ss:$72 sps:$4 sm:$0xff]   ;;  %v5983_v60 = vld [vmem:[%s8289_s0 + $0x2dc] ss:$72 sps:$4 sm:$0xff]  }
  0x43   :  { %2974 = vmatprep.mubr.bf16.mxu0 %v5911_v62  ;;  %3038 = vmatprep.mubr.bf16.mxu1 %v5913_v1  ;;  %v6043_v62 = vld [vmem:[%s8288_s1 + $0x1f0] sm:$0xff]  }
  0x44   :  { %v6046_v1 = vld [vmem:[%s8288_s1 + $0x230] sm:$0xff]  }
  0x45   :  { %v5994_v11 = vld [vmem:[%s8289_s0 + $0x370] ss:$72 sps:$4 sm:$0xff]  }
  0x4a   :  { %2975 = vmatmul.mubr.bf16.gmra.mrb[20].mxu0 %v5915_v6  ;;  %3039 = vmatmul.mubr.bf16.gmra.mrb[20].mxu1 %v5916_v7  ;;  %v6059_v6 = vld [vmem:[%s8288_s1 + $0x1f8] sm:$0xff]  }
  0x4b   :  { %2982 = vmatprep.mubr.bf16.mxu0 %v5921_v8  ;;  %3046 = vmatprep.mubr.bf16.mxu1 %v5923_v9  ;;  %v6060_v7 = vld [vmem:[%s8288_s1 + $0x1b8] sm:$0xff]   ;;  %v5993_v8 = vld [vmem:[%s8289_s0 + $0x368] ss:$72 sps:$4 sm:$0xff]  }
  0x4c   :  { %v6061_v9 = vld [vmem:[%s8288_s1 + $0x278] sm:$0xff]  }
  0x52   :  { %2983 = vmatmul.mubr.bf16.gmra.mrb[24].mxu0 %v5925_v12  ;;  %3047 = vmatmul.mubr.bf16.gmra.mrb[24].mxu1 %v5926_v13  ;;  %v5999_v12 = vld [vmem:[%s8289_s0 + $0x3fc] ss:$72 sps:$4 sm:$0xff]  }
  0x53   :  { %2990 = vmatprep.mubr.bf16.mxu0 %v5931_v14  ;;  %3054 = vmatprep.mubr.bf16.mxu1 %v5933_v15  ;;  %v6001_v13 = vld [vmem:[%s8289_s0 + $0x404] ss:$72 sps:$4 sm:$0xff]   ;;  %v6003_v15 = vld [vmem:[%s8289_s0 + $0x3f8] ss:$72 sps:$4 sm:$0xff]  }
  0x54   :  { %v6075_v14 = vld [vmem:[%s8288_s1 + $0x2c0] sm:$0xff]  }
  0x5a   :  { %2991 = vmatmul.mubr.bf16.gmra.mrb[28].mxu0 %v5935_v16  ;;  %3055 = vmatmul.mubr.bf16.gmra.mrb[28].mxu1 %v5936_v17  ;;  %v6004_v16 = vld [vmem:[%s8289_s0 + $0x400] ss:$72 sps:$4 sm:$0xff]  }
  0x5b   :  { %3095 = vmatprep.mubr.bf16.mxu1 %v5943_v18  ;;  %3256 = vmatprep.mubr.bf16.mxu0 %v5946_v19  ;;  %v6077_v17 = vld [vmem:[%s8288_s1 + $0x340] sm:$0xff]   ;;  %v6005_v18 = vld [vmem:[%s8289_s0 + $0x48c] ss:$72 sps:$4 sm:$0xff]  }
  0x5c   :  { %v6007_v19 = vld [vmem:[%s8289_s0 + $0x494] ss:$72 sps:$4 sm:$0xff]  }
  0x62   :  { %3096 = vmatmul.mubr.bf16.vlgmr.msra.gmra.mrb[32].mxu1 %v5941_v20  ;;  %3257 = vmatmul.mubr.bf16.vlgmr.msra.gmra.mrb[32].mxu0 %v5944_v21  ;;  %v6009_v20 = vld [vmem:[%s8289_s0 + $0x488] ss:$72 sps:$4 sm:$0xff]  }
  0x63   :  { %5158 = vmatpush3.bf16.msra.mxu1 %v5948_v22  ;;  %5270 = vmatpush3.bf16.msra.mxu0 %v5950_v23  ;;  %v6010_v21 = vld [vmem:[%s8289_s0 + $0x490] ss:$72 sps:$4 sm:$0xff]   ;;  %v6015_v22 = vld [vmem:[%s8289_s0 + $0x51c] ss:$72 sps:$4 sm:$0xff]  }
  0x64   :  { %3103 = vmatprep.mubr.bf16.mxu1 %v5951_v24  ;;  %3264 = vmatprep.mubr.bf16.mxu0 %v5953_v25  ;;  %v6017_v23 = vld [vmem:[%s8289_s0 + $0x524] ss:$72 sps:$4 sm:$0xff]   ;;  %v6019_v24 = vld [vmem:[%s8289_s0 + $0x518] ss:$72 sps:$4 sm:$0xff]  }
  0x65   :  { %5159 = vmatprep.subr.bf16.mxu1 %v5963_v26  ;;  %5271 = vmatprep.subr.bf16.mxu0 %v5965_v27  ;;  %v6020_v25 = vld [vmem:[%s8289_s0 + $0x520] ss:$72 sps:$4 sm:$0xff]   ;;  %v6021_v26 = vld [vmem:[%s8289_s0 + $0x5ac] ss:$72 sps:$4 sm:$0xff]  }
  0x66   :  { %v6023_v27 = vld [vmem:[%s8289_s0 + $0x5b4] ss:$72 sps:$4 sm:$0xff]  }
  0x67   :  { %5160 = vmatpush3.bf16.msra.mxu1 %v5964_v28  ;;  %5272 = vmatpush3.bf16.msra.mxu0 %v5966_v29  ;;  %v6025_v28 = vld [vmem:[%s8289_s0 + $0x5a8] ss:$72 sps:$4 sm:$0xff]  }
  0x68   :  { %5161 = vmatprep.subr.bf16.mxu1 %v5979_v30  ;;  %5273 = vmatprep.subr.bf16.mxu0 %v5981_v33  ;;  %v6026_v29 = vld [vmem:[%s8289_s0 + $0x5b0] ss:$72 sps:$4 sm:$0xff]   ;;  %v6031_v30 = vld [vmem:[%s8289_s0 + $0x63c] ss:$72 sps:$4 sm:$0xff]   ;;  %v6036_v33 = vld [vmem:[%s8289_s0 + $0x640] ss:$72 sps:$4 sm:$0xff]  }
  0x6a   :  { %3104 = vmatmul.mubr.bf16.gmra.mrb[36].mxu1 %v5955_v31  ;;  %3265 = vmatmul.mubr.bf16.gmra.mrb[36].mxu0 %v5956_v32  ;;  %v6033_v31 = vld [vmem:[%s8289_s0 + $0x644] ss:$72 sps:$4 sm:$0xff]   ;;  %v6035_v32 = vld [vmem:[%s8289_s0 + $0x638] ss:$72 sps:$4 sm:$0xff]  }
  0x6b   :  { %3111 = vmatprep.mubr.bf16.mxu1 %v5957_v34  ;;  %3272 = vmatprep.mubr.bf16.mxu0 %v5959_v35  ;;  %v6037_v34 = vld [vmem:[%s8289_s0 + $0x6cc] ss:$72 sps:$4 sm:$0xff]  }
  0x6c   :  { %5162 = vmatpush3.bf16.msra.mxu1 %v5980_v36  ;;  %5274 = vmatpush3.bf16.msra.mxu0 %v5982_v37  ;;  %v6039_v35 = vld [vmem:[%s8289_s0 + $0x6d4] ss:$72 sps:$4 sm:$0xff]   ;;  %v6041_v36 = vld [vmem:[%s8289_s0 + $0x6c8] ss:$72 sps:$4 sm:$0xff]  }
  0x6d   :  { %5163 = vmatprep.subr.bf16.mxu1 %v5995_v38  ;;  %5275 = vmatprep.subr.bf16.mxu0 %v5997_v39  ;;  %v6042_v37 = vld [vmem:[%s8289_s0 + $0x6d0] ss:$72 sps:$4 sm:$0xff]   ;;  %v6047_v38 = vld [vmem:[%s8289_s0 + $0x75c] ss:$72 sps:$4 sm:$0xff]  }
  0x6e   :  { %v6049_v39 = vld [vmem:[%s8289_s0 + $0x764] ss:$72 sps:$4 sm:$0xff]  }
  0x70   :  { %5164 = vmatpush3.bf16.msra.mxu1 %v5996_v42  ;;  %5276 = vmatpush3.bf16.msra.mxu0 %v5998_v43  ;;  %v6053_v42 = vld [vmem:[%s8289_s0 + $0x7ec] ss:$72 sps:$4 sm:$0xff]  }
  0x71   :  { %5165 = vmatprep.subr.bf16.mxu1 %v6011_v46  ;;  %5277 = vmatprep.subr.bf16.mxu0 %v6013_v48  ;;  %v6055_v43 = vld [vmem:[%s8289_s0 + $0x7f4] ss:$72 sps:$4 sm:$0xff]   ;;  %v6067_v48 = vld [vmem:[%s8289_s0 + $0x878] ss:$72 sps:$4 sm:$0xff]  }
  0x72   :  { %3112 = vmatmul.mubr.bf16.gmra.mrb[40].mxu1 %v5961_v40  ;;  %3273 = vmatmul.mubr.bf16.gmra.mrb[40].mxu0 %v5962_v41  ;;  %v6051_v40 = vld [vmem:[%s8289_s0 + $0x758] ss:$72 sps:$4 sm:$0xff]   ;;  %v6063_v46 = vld [vmem:[%s8289_s0 + $0x87c] ss:$72 sps:$4 sm:$0xff]  }
  0x73   :  { %3119 = vmatprep.mubr.bf16.mxu1 %v5967_v44  ;;  %3280 = vmatprep.mubr.bf16.mxu0 %v5969_v45  ;;  %v6052_v41 = vld [vmem:[%s8289_s0 + $0x760] ss:$72 sps:$4 sm:$0xff]   ;;  %v6058_v45 = vld [vmem:[%s8289_s0 + $0x7f0] ss:$72 sps:$4 sm:$0xff]  }
  0x74   :  { %5166 = vmatpush3.bf16.msra.mxu1 %v6012_v47  ;;  %5278 = vmatpush3.bf16.msra.mxu0 %v6014_v49  ;;  %v6057_v44 = vld [vmem:[%s8289_s0 + $0x7e8] ss:$72 sps:$4 sm:$0xff]   ;;  %v6065_v47 = vld [vmem:[%s8289_s0 + $0x884] ss:$72 sps:$4 sm:$0xff]  }
  0x75   :  { %5167 = vmatprep.subr.bf16.mxu1 %v6027_v54  ;;  %5279 = vmatprep.subr.bf16.mxu0 %v6029_v56  ;;  %v6068_v49 = vld [vmem:[%s8289_s0 + $0x880] ss:$72 sps:$4 sm:$0xff]   ;;  %v6079_v56 = vld [vmem:[%s8289_s0 + $0xac] ss:$72 sps:$4 sm:$0xff]  }
  0x76   :  { %v6076_v54 = vld [vmem:[%s8288_s1 + $0x280] sm:$0xff]  }
  0x78   :  { %5168 = vmatpush3.bf16.msra.mxu1 %v6028_v55  ;;  %5280 = vmatpush3.bf16.msra.mxu0 %v6030_v57  ;;  %v6078_v55 = vld [vmem:[%s8288_s1 + $0x300] sm:$0xff]   ;;  %v6081_v57 = vld [vmem:[%s8289_s0 + $0xb4] ss:$72 sps:$4 sm:$0xff]  }
  0x79   :  { %5169 = vmatprep.subr.bf16.mxu1 %v6043_v62  ;;  %5281 = vmatprep.subr.bf16.mxu0 %v6045_v0  ;;  %v6107_v62 = vld [vmem:[%s8288_s1 + $0x2d0] sm:$0xff]  }
  0x7a   :  { %3120 = vmatmul.mubr.bf16.gmra.mrb[44].mxu1 %v5971_v50  ;;  %3281 = vmatmul.mubr.bf16.gmra.mrb[44].mxu0 %v5972_v51  ;;  %v6071_v50 = vld [vmem:[%s8289_s0 + $0x1c] ss:$72 sps:$4 sm:$0xff]   ;;  %v6083_v0 = vld [vmem:[%s8289_s0 + $0xa8] ss:$72 sps:$4 sm:$0xff]  }
  0x7b   :  { %3127 = vmatprep.mubr.bf16.mxu1 %v5973_v52  ;;  %3288 = vmatprep.mubr.bf16.mxu0 %v5975_v53  ;;  %v6074_v51 = vld [vmem:[%s8289_s0 + $0x24] ss:$72 sps:$4 sm:$0xff]   ;;  %v6069_v52 = vld [vmem:[%s8289_s0 + $0x18] ss:$72 sps:$4 sm:$0xff]  }
  0x7c   :  { %5170 = vmatpush3.bf16.msra.mxu1 %v6044_v63  ;;  %5282 = vmatpush3.bf16.msra.mxu0 %v6046_v1  ;;  %v6072_v53 = vld [vmem:[%s8289_s0 + $0x20] ss:$72 sps:$4 sm:$0xff]   ;;  %v6109_v63 = vld [vmem:[%s8288_s1 + $0x350] sm:$0xff]  }
  0x7d   :  { %5171 = vmatprep.subr.bf16.mxu1 %v6059_v6  ;;  %5283 = vmatprep.subr.bf16.mxu0 %v6061_v9  ;;  %v6084_v1 = vld [vmem:[%s8289_s0 + $0xb0] ss:$72 sps:$4 sm:$0xff]  }
  0x7e   :  { %v6123_v6 = vld [vmem:[%s8288_s1 + $0x2d8] sm:$0xff]  }
  0x7f   :  { %v6126_v9 = vld [vmem:[%s8288_s1 + $0x318] sm:$0xff]  }
  0x80   :  { %5172 = vmatpush3.bf16.msra.mxu1 %v6060_v7  ;;  %5284 = vmatpush3.bf16.msra.mxu0 %v6062_v10  ;;  %v6125_v7 = vld [vmem:[%s8288_s1 + $0x358] sm:$0xff]   ;;  %v6139_v10 = vld [vmem:[%s8288_s1 + $0x2e0] sm:$0xff]  }
  0x81   :  { %5381 = vmatprep.subr.bf16.mxu1 %v6075_v14  ;;  %5493 = vmatprep.subr.bf16.mxu0 %v6077_v17  ;;  %v6095_v14 = vld [vmem:[%s8289_s0 + $0x1cc] ss:$72 sps:$4 sm:$0xff]   ;;  %v6142_v17 = vld [vmem:[%s8288_s1 + $0x320] sm:$0xff]  }
  0x82   :  { %3128 = vmatmul.mubr.bf16.gmra.mrb[48].mxu1 %v5977_v58  ;;  %3289 = vmatmul.mubr.bf16.gmra.mrb[48].mxu0 %v5978_v59  ;;  %v6091_v58 = vld [vmem:[%s8288_s1 + $0x2c8] sm:$0xff]  }
  0x83   :  { %3135 = vmatprep.mubr.bf16.mxu1 %v5983_v60  ;;  %3296 = vmatprep.mubr.bf16.mxu0 %v5985_v61  ;;  %v6093_v59 = vld [vmem:[%s8288_s1 + $0x348] sm:$0xff]  }
  0x84   :  { %v6092_v60 = vld [vmem:[%s8288_s1 + $0x288] sm:$0xff]  }
  0x85   :  { %v6094_v61 = vld [vmem:[%s8288_s1 + $0x308] sm:$0xff]  }
  0x8a   :  { %3136 = vmatmul.mubr.bf16.gmra.mrb[52].mxu1 %v5987_v2  ;;  %3297 = vmatmul.mubr.bf16.gmra.mrb[52].mxu0 %v5988_v3  ;;  %v6085_v2 = vld [vmem:[%s8289_s0 + $0x13c] ss:$72 sps:$4 sm:$0xff]  }
  0x8b   :  { %3143 = vmatprep.mubr.bf16.mxu1 %v5989_v4  ;;  %3304 = vmatprep.mubr.bf16.mxu0 %v5991_v5  ;;  %v6087_v3 = vld [vmem:[%s8289_s0 + $0x144] ss:$72 sps:$4 sm:$0xff]   ;;  %v6108_v4 = vld [vmem:[%s8288_s1 + $0x290] sm:$0xff]  }
  0x8c   :  { %v6110_v5 = vld [vmem:[%s8288_s1 + $0x310] sm:$0xff]  }
  0x92   :  { %3144 = vmatmul.mubr.bf16.gmra.mrb[56].mxu1 %v5993_v8  ;;  %3305 = vmatmul.mubr.bf16.gmra.mrb[56].mxu0 %v5994_v11  ;;  %v6124_v8 = vld [vmem:[%s8288_s1 + $0x298] sm:$0xff]   ;;  %v6141_v11 = vld [vmem:[%s8288_s1 + $0x360] sm:$0xff]  }
  0x93   :  { %3151 = vmatprep.mubr.bf16.mxu1 %v5999_v12  ;;  %3312 = vmatprep.mubr.bf16.mxu0 %v6001_v13  ;;  %v6089_v12 = vld [vmem:[%s8289_s0 + $0x138] ss:$72 sps:$4 sm:$0xff]  }
  0x94   :  { %v6090_v13 = vld [vmem:[%s8289_s0 + $0x140] ss:$72 sps:$4 sm:$0xff]  }
  0x9a   :  { %3152 = vmatmul.mubr.bf16.gmra.mrb[60].mxu1 %v6003_v15  ;;  %3313 = vmatmul.mubr.bf16.gmra.mrb[60].mxu0 %v6004_v16  ;;  %v6097_v15 = vld [vmem:[%s8289_s0 + $0x1d4] ss:$72 sps:$4 sm:$0xff]   ;;  %v6140_v16 = vld [vmem:[%s8288_s1 + $0x2a0] sm:$0xff]  }
  0x9b   :  { %3159 = vmatprep.mubr.bf16.mxu1 %v6005_v18  ;;  %3320 = vmatprep.mubr.bf16.mxu0 %v6007_v19  ;;  %v6155_v18 = vld [vmem:[%s8288_s1 + $0x2e8] sm:$0xff]  }
  0x9c   :  { %v6157_v19 = vld [vmem:[%s8288_s1 + $0x368] sm:$0xff]  }
  0xa2   :  { %3160 = vmatmul.mubr.bf16.gmra.mrb[64].mxu1 %v6009_v20  ;;  %3321 = vmatmul.mubr.bf16.gmra.mrb[64].mxu0 %v6010_v21  ;;  %v6156_v20 = vld [vmem:[%s8288_s1 + $0x2a8] sm:$0xff]  }
  0xa3   :  { %3167 = vmatprep.mubr.bf16.mxu1 %v6015_v22  ;;  %3328 = vmatprep.mubr.bf16.mxu0 %v6017_v23  ;;  %v6158_v21 = vld [vmem:[%s8288_s1 + $0x328] sm:$0xff]   ;;  %v6100_v23 = vld [vmem:[%s8289_s0 + $0x1d0] ss:$72 sps:$4 sm:$0xff]  }
  0xa4   :  { %v6099_v22 = vld [vmem:[%s8289_s0 + $0x1c8] ss:$72 sps:$4 sm:$0xff]  }
  0xaa   :  { %3168 = vmatmul.mubr.bf16.gmra.mrb[68].mxu1 %v6019_v24  ;;  %3329 = vmatmul.mubr.bf16.gmra.mrb[68].mxu0 %v6020_v25 }
  0xab   :  { %3175 = vmatprep.mubr.bf16.mxu1 %v6021_v26  ;;  %3336 = vmatprep.mubr.bf16.mxu0 %v6023_v27  ;;  %v6101_v26 = vld [vmem:[%s8289_s0 + $0x25c] ss:$72 sps:$4 sm:$0xff]  }
  0xac   :  { %v6103_v27 = vld [vmem:[%s8289_s0 + $0x264] ss:$72 sps:$4 sm:$0xff]  }
  0xb2   :  { %3176 = vmatmul.mubr.bf16.gmra.mrb[72].mxu1 %v6025_v28  ;;  %3337 = vmatmul.mubr.bf16.gmra.mrb[72].mxu0 %v6026_v29  ;;  %v6171_v28 = vld [vmem:[%s8288_s1 + $0x2f0] sm:$0xff]  }
  0xb3   :  { %3183 = vmatprep.mubr.bf16.mxu1 %v6031_v30  ;;  %3344 = vmatprep.mubr.bf16.mxu0 %v6033_v31  ;;  %v6173_v29 = vld [vmem:[%s8288_s1 + $0x370] sm:$0xff]  }
  0xba   :  { %3184 = vmatmul.mubr.bf16.gmra.mrb[76].mxu1 %v6035_v32  ;;  %3345 = vmatmul.mubr.bf16.gmra.mrb[76].mxu0 %v6036_v33  ;;  %v7105_v32 = vld [vmem:[%s8290_s2] ss:$0 sm:$0xff] }
  0xbb   :  { %3191 = vmatprep.mubr.bf16.mxu1 %v6037_v34  ;;  %3352 = vmatprep.mubr.bf16.mxu0 %v6039_v35 }
  0xc2   :  { %3192 = vmatmul.mubr.bf16.gmra.mrb[80].mxu1 %v6041_v36  ;;  %3353 = vmatmul.mubr.bf16.gmra.mrb[80].mxu0 %v6042_v37 }
  0xc3   :  { %3199 = vmatprep.mubr.bf16.mxu1 %v6047_v38  ;;  %3360 = vmatprep.mubr.bf16.mxu0 %v6049_v39  ;;  %v6172_v39 = vld [vmem:[%s8288_s1 + $0x2b0] sm:$0xff]  }
  0xca   :  { %3200 = vmatmul.mubr.bf16.gmra.mrb[84].mxu1 %v6051_v40  ;;  %3361 = vmatmul.mubr.bf16.gmra.mrb[84].mxu0 %v6052_v41  ;;  %v6174_v40 = vld [vmem:[%s8288_s1 + $0x330] sm:$0xff]  }
  0xcb   :  { %3207 = vmatprep.mubr.bf16.mxu1 %v6053_v42  ;;  %3368 = vmatprep.mubr.bf16.mxu0 %v6055_v43  ;;  %v6187_v43 = vld [vmem:[%s8288_s1 + $0x2f8] sm:$0xff]  }
  0xd2   :  { %3208 = vmatmul.mubr.bf16.gmra.mrb[88].mxu1 %v6057_v44  ;;  %3369 = vmatmul.mubr.bf16.gmra.mrb[88].mxu0 %v6058_v45  ;;  %v6189_v44 = vld [vmem:[%s8288_s1 + $0x378] sm:$0xff]  }
  0xd3   :  { %3215 = vmatprep.mubr.bf16.mxu1 %v6063_v46  ;;  %3376 = vmatprep.mubr.bf16.mxu0 %v6065_v47  ;;  %v6188_v45 = vld [vmem:[%s8288_s1 + $0x2b8] sm:$0xff]  }
  0xd4   :  { %v6190_v46 = vld [vmem:[%s8288_s1 + $0x338] sm:$0xff]  }
  0xda   :  { %3216 = vmatmul.mubr.bf16.gmra.mrb[92].mxu1 %v6067_v48  ;;  %3377 = vmatmul.mubr.bf16.gmra.mrb[92].mxu0 %v6068_v49  ;;  %v6203_v48 = vld [vmem:[%s8288_s1 + $0x3c0] sm:$0xff]  }
  0xdb   :  { %3417 = vmatprep.mubr.bf16.mxu1 %v6071_v50  ;;  %3578 = vmatprep.mubr.bf16.mxu0 %v6074_v51  ;;  %v6205_v49 = vld [vmem:[%s8288_s1 + $0x440] sm:$0xff]  }
  0xdc   :  { %v6105_v51 = vld [vmem:[%s8289_s0 + $0x258] ss:$72 sps:$4 sm:$0xff]  }
  0xe2   :  { %3418 = vmatmul.mubr.bf16.vlgmr.msra.gmra.mrb[96].mxu1 %v6069_v52  ;;  %3579 = vmatmul.mubr.bf16.vlgmr.msra.gmra.mrb[96].mxu0 %v6072_v53  ;;  %v6106_v52 = vld [vmem:[%s8289_s0 + $0x260] ss:$72 sps:$4 sm:$0xff]  }
  0xe3   :  { %5382 = vmatpush3.bf16.msra.mxu1 %v6076_v54  ;;  %5494 = vmatpush3.bf16.msra.mxu0 %v6078_v55  ;;  %v6111_v55 = vld [vmem:[%s8289_s0 + $0x2ec] ss:$72 sps:$4 sm:$0xff]  }
  0xe4   :  { %3425 = vmatprep.mubr.bf16.mxu1 %v6079_v56  ;;  %3586 = vmatprep.mubr.bf16.mxu0 %v6081_v57  ;;  %v6113_v56 = vld [vmem:[%s8289_s0 + $0x2f4] ss:$72 sps:$4 sm:$0xff]  }
  0xe5   :  { %5383 = vmatprep.subr.bf16.mxu1 %v6091_v58  ;;  %5495 = vmatprep.subr.bf16.mxu0 %v6093_v59 }
  0xe7   :  { %5384 = vmatpush3.bf16.msra.mxu1 %v6092_v60  ;;  %5496 = vmatpush3.bf16.msra.mxu0 %v6094_v61 }
  0xe8   :  { %5385 = vmatprep.subr.bf16.mxu1 %v6107_v62  ;;  %5497 = vmatprep.subr.bf16.mxu0 %v6109_v63 }
  0xea   :  { %3426 = vmatmul.mubr.bf16.gmra.mrb[100].mxu1 %v6083_v0  ;;  %3587 = vmatmul.mubr.bf16.gmra.mrb[100].mxu0 %v6084_v1 }
  0xeb   :  { %3433 = vmatprep.mubr.bf16.mxu1 %v6085_v2  ;;  %3594 = vmatprep.mubr.bf16.mxu0 %v6087_v3 }
  0xec   :  { %5386 = vmatpush3.bf16.msra.mxu1 %v6108_v4  ;;  %5498 = vmatpush3.bf16.msra.mxu0 %v6110_v5  ;;  %v6115_v5 = vld [vmem:[%s8289_s0 + $0x2e8] ss:$72 sps:$4 sm:$0xff]  }
  0xed   :  { %5387 = vmatprep.subr.bf16.mxu1 %v6123_v6  ;;  %5499 = vmatprep.subr.bf16.mxu0 %v6125_v7 }
  0xf0   :  { %5388 = vmatpush3.bf16.msra.mxu1 %v6124_v8  ;;  %5500 = vmatpush3.bf16.msra.mxu0 %v6126_v9  ;;  %v6116_v8 = vld [vmem:[%s8289_s0 + $0x2f0] ss:$72 sps:$4 sm:$0xff]   ;;  %v6117_v9 = vld [vmem:[%s8289_s0 + $0x37c] ss:$72 sps:$4 sm:$0xff]  }
  0xf1   :  { %5389 = vmatprep.subr.bf16.mxu1 %v6139_v10  ;;  %5501 = vmatprep.subr.bf16.mxu0 %v6141_v11 }
  0xf2   :  { %3434 = vmatmul.mubr.bf16.gmra.mrb[104].mxu1 %v6089_v12  ;;  %3595 = vmatmul.mubr.bf16.gmra.mrb[104].mxu0 %v6090_v13  ;;  %v6119_v12 = vld [vmem:[%s8289_s0 + $0x384] ss:$72 sps:$4 sm:$0xff]  }
  0xf3   :  { %3441 = vmatprep.mubr.bf16.mxu1 %v6095_v14  ;;  %3602 = vmatprep.mubr.bf16.mxu0 %v6097_v15 }
  0xf4   :  { %5390 = vmatpush3.bf16.msra.mxu1 %v6140_v16  ;;  %5502 = vmatpush3.bf16.msra.mxu0 %v6142_v17 }
  0xf5   :  { %v4837_v24 = vpop.f32.mrb[0].mxu0  ;;  %v4885_v25 = vpop.f32.mrb[0].mxu1  ;;  %5391 = vmatprep.subr.bf16.mxu1 %v6155_v18  ;;  %5503 = vmatprep.subr.bf16.mxu0 %v6157_v19 }
  0xf6   :  { %v4838_v30 = vpop.f32.mrb[1].mxu0  ;;  %v4886_v31 = vpop.f32.mrb[1].mxu1 }
  0xf7   :  { %v7107_v33 = vadd.f32 %v4838_v30, %v4837_v24  ;;  %v4887_v34 = vadd.f32 %v4886_v31, %v4885_v25  ;;  %v4840_v35 = vpop.f32.mrb[2].mxu0  ;;  %v4888_v36 = vpop.f32.mrb[2].mxu1  ;;  %v6122_v24 = vld [vmem:[%s8289_s0 + $0x380] ss:$72 sps:$4 sm:$0xff]  }
  0xf8   :  { %v4841_v37 = vpop.f32.mrb[3].mxu0  ;;  %v4889_v38 = vpop.f32.mrb[3].mxu1  ;;  %5392 = vmatpush3.bf16.msra.mxu1 %v6156_v20  ;;  %5504 = vmatpush3.bf16.msra.mxu0 %v6158_v21 }
  0xf9   :  { %v7115_v41 = vadd.f32 %v4841_v37, %v4840_v35  ;;  %v4890_v42 = vadd.f32 %v4889_v38, %v4888_v36  ;;  %5393 = vmatprep.subr.bf16.mxu1 %v6171_v28  ;;  %5505 = vmatprep.subr.bf16.mxu0 %v6173_v29  ;;  %v7130_v47 = vadd.f32 %v4887_v34, %v7105_v32  ;;  %v6129_v28 = vld [vmem:[%s8289_s0 + $0x414] ss:$72 sps:$4 sm:$0xff]  }
  0xfa   :  { %3442 = vmatmul.mubr.bf16.gmra.mrb[108].mxu1 %v6099_v22  ;;  %3603 = vmatmul.mubr.bf16.gmra.mrb[108].mxu0 %v6100_v23  ;;  %v6121_v23 = vld [vmem:[%s8289_s0 + $0x378] ss:$72 sps:$4 sm:$0xff]  }
  0xfb   :  { %3449 = vmatprep.mubr.bf16.mxu1 %v6101_v26  ;;  %3610 = vmatprep.mubr.bf16.mxu0 %v6103_v27  ;;  %v7139_v50 = vadd.f32 %v4890_v42, %v7105_v32  ;;  %v6127_v27 = vld [vmem:[%s8289_s0 + $0x40c] ss:$72 sps:$4 sm:$0xff]  }
  0xfc   :  { %5394 = vmatpush3.bf16.msra.mxu1 %v6172_v39  ;;  %5506 = vmatpush3.bf16.msra.mxu0 %v6174_v40 }
  0xfd   :  { %v4843_v53 = vpop.f32.mrb[4].mxu0  ;;  %v4891_v54 = vpop.f32.mrb[4].mxu1  ;;  %5395 = vmatprep.subr.bf16.mxu1 %v6187_v43  ;;  %5507 = vmatprep.subr.bf16.mxu0 %v6189_v44  ;;  %v6131_v44 = vld [vmem:[%s8289_s0 + $0x408] ss:$72 sps:$4 sm:$0xff]  }
  0xfe   :  { %v4844_v57 = vpop.f32.mrb[5].mxu0  ;;  %v4892_v58 = vpop.f32.mrb[5].mxu1 }
  0xff   :  { %v7153_v59 = vadd.f32 %v4844_v57, %v4843_v53  ;;  %v4893_v60 = vadd.f32 %v4892_v58, %v4891_v54  ;;  %v4846_v61 = vpop.f32.mrb[6].mxu0  ;;  %v4894_v62 = vpop.f32.mrb[6].mxu1  ;;  %v6135_v53 = vld [vmem:[%s8289_s0 + $0x4a4] ss:$72 sps:$4 sm:$0xff]  }
 0x100   :  { %v4847_v63 = vpop.f32.mrb[7].mxu0  ;;  %v4895_v0 = vpop.f32.mrb[7].mxu1  ;;  %5396 = vmatpush3.bf16.msra.mxu1 %v6188_v45  ;;  %5508 = vmatpush3.bf16.msra.mxu0 %v6190_v46 }
 0x101   :  { %v7155_v1 = vadd.f32 %v4847_v63, %v4846_v61  ;;  %v4896_v2 = vadd.f32 %v4895_v0, %v4894_v62  ;;  %5605 = vmatprep.subr.bf16.mxu1 %v6203_v48  ;;  %5717 = vmatprep.subr.bf16.mxu0 %v6205_v49  ;;  %v7158_v3 = vadd.f32 %v4893_v60, %v7105_v32  ;;  %v6132_v48 = vld [vmem:[%s8289_s0 + $0x410] ss:$72 sps:$4 sm:$0xff]   ;;  %v6133_v49 = vld [vmem:[%s8289_s0 + $0x49c] ss:$72 sps:$4 sm:$0xff]  }
 0x102   :  { %3450 = vmatmul.mubr.bf16.gmra.mrb[112].mxu1 %v6105_v51  ;;  %3611 = vmatmul.mubr.bf16.gmra.mrb[112].mxu0 %v6106_v52 }
 0x103   :  { %3457 = vmatprep.mubr.bf16.mxu1 %v6111_v55  ;;  %3618 = vmatprep.mubr.bf16.mxu0 %v6113_v56  ;;  %v7161_v4 = vadd.f32 %v4896_v2, %v7105_v32  ;;  %v6137_v2 = vld [vmem:[%s8289_s0 + $0x498] ss:$72 sps:$4 sm:$0xff]  }
 0x105   :  { %v4849_v6 = vpop.f32.mrb[8].mxu0  ;;  %v4897_v7 = vpop.f32.mrb[8].mxu1 }
 0x106   :  { %v4850_v10 = vpop.f32.mrb[9].mxu0  ;;  %v4898_v11 = vpop.f32.mrb[9].mxu1 }
 0x107   :  { %v7175_v13 = vadd.f32 %v4850_v10, %v4849_v6  ;;  %v4899_v14 = vadd.f32 %v4898_v11, %v4897_v7  ;;  %v4852_v15 = vpop.f32.mrb[10].mxu0  ;;  %v4900_v16 = vpop.f32.mrb[10].mxu1 }
 0x108   :  { %v4853_v17 = vpop.f32.mrb[11].mxu0  ;;  %v4901_v18 = vpop.f32.mrb[11].mxu1 }
 0x109   :  { %v7177_v19 = vadd.f32 %v4853_v17, %v4852_v15  ;;  %v4902_v20 = vadd.f32 %v4901_v18, %v4900_v16  ;;  %v7180_v21 = vadd.f32 %v4899_v14, %v7105_v32 }
 0x10a   :  { %3458 = vmatmul.mubr.bf16.gmra.mrb[116].mxu1 %v6115_v5  ;;  %3619 = vmatmul.mubr.bf16.gmra.mrb[116].mxu0 %v6116_v8  ;;  %v6138_v5 = vld [vmem:[%s8289_s0 + $0x4a0] ss:$72 sps:$4 sm:$0xff]   ;;  %v6143_v8 = vld [vmem:[%s8289_s0 + $0x52c] ss:$72 sps:$4 sm:$0xff]  }
 0x10b   :  { %3465 = vmatprep.mubr.bf16.mxu1 %v6117_v9  ;;  %3626 = vmatprep.mubr.bf16.mxu0 %v6119_v12  ;;  %v7183_v22 = vadd.f32 %v4902_v20, %v7105_v32  ;;  %v6145_v9 = vld [vmem:[%s8289_s0 + $0x534] ss:$72 sps:$4 sm:$0xff]  }
 0x10d   :  { %v4855_v25 = vpop.f32.mrb[12].mxu0  ;;  %v4903_v26 = vpop.f32.mrb[12].mxu1 }
 0x10e   :  { %v4856_v29 = vpop.f32.mrb[13].mxu0  ;;  %v4904_v30 = vpop.f32.mrb[13].mxu1 }
 0x10f   :  { %v7197_v31 = vadd.f32 %v4856_v29, %v4855_v25  ;;  %v4905_v34 = vadd.f32 %v4904_v30, %v4903_v26  ;;  %v4858_v35 = vpop.f32.mrb[14].mxu0  ;;  %v4906_v36 = vpop.f32.mrb[14].mxu1  ;;  %v6147_v26 = vld [vmem:[%s8289_s0 + $0x528] ss:$72 sps:$4 sm:$0xff]   ;;  %v6149_v30 = vld [vmem:[%s8289_s0 + $0x5bc] ss:$72 sps:$4 sm:$0xff]  }
 0x110   :  { %v4859_v37 = vpop.f32.mrb[15].mxu0  ;;  %v4907_v38 = vpop.f32.mrb[15].mxu1  ;;  %v6148_v29 = vld [vmem:[%s8289_s0 + $0x530] ss:$72 sps:$4 sm:$0xff]  }
 0x111   :  { %v7199_v39 = vadd.f32 %v4859_v37, %v4858_v35  ;;  %v4908_v40 = vadd.f32 %v4907_v38, %v4906_v36  ;;  %v7202_v42 = vadd.f32 %v4905_v34, %v7105_v32  ;;  %v6151_v36 = vld [vmem:[%s8289_s0 + $0x5c4] ss:$72 sps:$4 sm:$0xff]  }
 0x112   :  { %3466 = vmatmul.mubr.bf16.gmra.mrb[120].mxu1 %v6121_v23  ;;  %3627 = vmatmul.mubr.bf16.gmra.mrb[120].mxu0 %v6122_v24 }
 0x113   :  { %3473 = vmatprep.mubr.bf16.mxu1 %v6127_v27  ;;  %3634 = vmatprep.mubr.bf16.mxu0 %v6129_v28  ;;  %v7205_v43 = vadd.f32 %v4908_v40, %v7105_v32 }
 0x115   :  { %v4861_v45 = vpop.f32.mrb[16].mxu0  ;;  %v4909_v46 = vpop.f32.mrb[16].mxu1 }
 0x116   :  { %v4862_v51 = vpop.f32.mrb[17].mxu0  ;;  %v4910_v52 = vpop.f32.mrb[17].mxu1 }
 0x117   :  { %v7219_v54 = vadd.f32 %v4862_v51, %v4861_v45  ;;  %v4911_v55 = vadd.f32 %v4910_v52, %v4909_v46  ;;  %v4864_v56 = vpop.f32.mrb[18].mxu0  ;;  %v4912_v57 = vpop.f32.mrb[18].mxu1 }
 0x118   :  { %v4865_v58 = vpop.f32.mrb[19].mxu0  ;;  %v4913_v60 = vpop.f32.mrb[19].mxu1 }
 0x119   :  { %v7221_v61 = vadd.f32 %v4865_v58, %v4864_v56  ;;  %v4914_v62 = vadd.f32 %v4913_v60, %v4912_v57  ;;  %v7224_v63 = vadd.f32 %v4911_v55, %v7105_v32  ;;  %v6154_v55 = vld [vmem:[%s8289_s0 + $0x5c0] ss:$72 sps:$4 sm:$0xff]   ;;  %v6159_v58 = vld [vmem:[%s8289_s0 + $0x64c] ss:$72 sps:$4 sm:$0xff]  }
 0x11a   :  { %3474 = vmatmul.mubr.bf16.gmra.mrb[124].mxu1 %v6131_v44  ;;  %3635 = vmatmul.mubr.bf16.gmra.mrb[124].mxu0 %v6132_v48  ;;  %v6161_v60 = vld [vmem:[%s8289_s0 + $0x654] ss:$72 sps:$4 sm:$0xff]  }
 0x11b   :  { %3481 = vmatprep.mubr.bf16.mxu1 %v6133_v49  ;;  %3642 = vmatprep.mubr.bf16.mxu0 %v6135_v53  ;;  %v7227_v0 = vadd.f32 %v4914_v62, %v7105_v32  ;;  %v6153_v53 = vld [vmem:[%s8289_s0 + $0x5b8] ss:$72 sps:$4 sm:$0xff]  }
 0x11d   :  { %v4867_v6 = vpop.f32.mrb[20].mxu0  ;;  %v4915_v7 = vpop.f32.mrb[20].mxu1 }
 0x11e   :  { %v4868_v10 = vpop.f32.mrb[21].mxu0  ;;  %v4916_v11 = vpop.f32.mrb[21].mxu1 }
 0x11f   :  { %v7241_v12 = vadd.f32 %v4868_v10, %v4867_v6  ;;  %v4917_v14 = vadd.f32 %v4916_v11, %v4915_v7  ;;  %v4870_v15 = vpop.f32.mrb[22].mxu0  ;;  %v4918_v16 = vpop.f32.mrb[22].mxu1 }
 0x120   :  { %v4871_v17 = vpop.f32.mrb[23].mxu0  ;;  %v4919_v18 = vpop.f32.mrb[23].mxu1 }
 0x121   :  { %v7243_v20 = vadd.f32 %v4871_v17, %v4870_v15  ;;  %v4920_v23 = vadd.f32 %v4919_v18, %v4918_v16  ;;  %v7246_v24 = vadd.f32 %v4917_v14, %v7105_v32 }
 0x122   :  { %3482 = vmatmul.mubr.bf16.gmra.mrb[128].mxu1 %v6137_v2  ;;  %3643 = vmatmul.mubr.bf16.gmra.mrb[128].mxu0 %v6138_v5 }
 0x123   :  { %3489 = vmatprep.mubr.bf16.mxu1 %v6143_v8  ;;  %3650 = vmatprep.mubr.bf16.mxu0 %v6145_v9  ;;  %v7249_v25 = vadd.f32 %v4920_v23, %v7105_v32 }
 0x125   :  { %v4873_v27 = vpop.f32.mrb[24].mxu0  ;;  %v4921_v28 = vpop.f32.mrb[24].mxu1 }
 0x126   :  { %v4874_v34 = vpop.f32.mrb[25].mxu0  ;;  %v4922_v35 = vpop.f32.mrb[25].mxu1 }
 0x127   :  { %v7263_v37 = vadd.f32 %v4874_v34, %v4873_v27  ;;  %v4923_v38 = vadd.f32 %v4922_v35, %v4921_v28  ;;  %v4876_v40 = vpop.f32.mrb[26].mxu0  ;;  %v4924_v44 = vpop.f32.mrb[26].mxu1  ;;  %v6163_v27 = vld [vmem:[%s8289_s0 + $0x648] ss:$72 sps:$4 sm:$0xff]  }
 0x128   :  { %v4877_v45 = vpop.f32.mrb[27].mxu0  ;;  %v4925_v46 = vpop.f32.mrb[27].mxu1  ;;  %v6164_v28 = vld [vmem:[%s8289_s0 + $0x650] ss:$72 sps:$4 sm:$0xff]  }
 0x129   :  { %v7265_v48 = vadd.f32 %v4877_v45, %v4876_v40  ;;  %v4926_v49 = vadd.f32 %v4925_v46, %v4924_v44  ;;  %v7268_v51 = vadd.f32 %v4923_v38, %v7105_v32  ;;  %v6165_v38 = vld [vmem:[%s8289_s0 + $0x6dc] ss:$72 sps:$4 sm:$0xff]  }
 0x12a   :  { %3490 = vmatmul.mubr.bf16.gmra.mrb[132].mxu1 %v6147_v26  ;;  %3651 = vmatmul.mubr.bf16.gmra.mrb[132].mxu0 %v6148_v29  ;;  %v2937_v29 = vadd.f32 %v7107_v33, %v7105_v32  ;;  %v6167_v40 = vld [vmem:[%s8289_s0 + $0x6e4] ss:$72 sps:$4 sm:$0xff]  }
 0x12b   :  { %3497 = vmatprep.mubr.bf16.mxu1 %v6149_v30  ;;  %3658 = vmatprep.mubr.bf16.mxu0 %v6151_v36  ;;  %v7271_v52 = vadd.f32 %v4926_v49, %v7105_v32  ;;  %v2940_v49 = vadd.f32 %v7115_v41, %v7105_v32  ;;  %v6170_v41 = vld [vmem:[%s8289_s0 + $0x6e0] ss:$72 sps:$4 sm:$0xff]  }
 0x12d   :  { %v4879_v56 = vpop.f32.mrb[28].mxu0  ;;  %v4927_v57 = vpop.f32.mrb[28].mxu1 }
 0x12e   :  { %v4880_v62 = vpop.f32.mrb[29].mxu0  ;;  %v4928_v2 = vpop.f32.mrb[29].mxu1 }
 0x12f   :  { %v7285_v5 = vadd.f32 %v4880_v62, %v4879_v56  ;;  %v4929_v6 = vadd.f32 %v4928_v2, %v4927_v57  ;;  %v4882_v7 = vpop.f32.mrb[30].mxu0  ;;  %v4930_v8 = vpop.f32.mrb[30].mxu1 }
 0x130   :  { %v4883_v9 = vpop.f32.mrb[31].mxu0  ;;  %v4931_v10 = vpop.f32.mrb[31].mxu1 }
 0x131   :  { %v7287_v11 = vadd.f32 %v4883_v9, %v4882_v7  ;;  %v4932_v14 = vadd.f32 %v4931_v10, %v4930_v8  ;;  %v7290_v15 = vadd.f32 %v4929_v6, %v7105_v32  ;;  %v6169_v6 = vld [vmem:[%s8289_s0 + $0x6d8] ss:$72 sps:$4 sm:$0xff]   ;;  %v2945_v7 = vadd.f32 %v7153_v59, %v7105_v32 }
 0x132   :  { %3498 = vmatmul.mubr.bf16.gmra.mrb[136].mxu1 %v6153_v53  ;;  %3659 = vmatmul.mubr.bf16.gmra.mrb[136].mxu0 %v6154_v55 }
 0x133   :  { %3505 = vmatprep.mubr.bf16.mxu1 %v6159_v58  ;;  %3666 = vmatprep.mubr.bf16.mxu0 %v6161_v60  ;;  %v7293_v16 = vadd.f32 %v4932_v14, %v7105_v32 }
 0x135   :  { %v4949_v17 = vpop.f32.mrb[32].mxu1  ;;  %v5061_v18 = vpop.f32.mrb[32].mxu0 }
 0x136   :  { %v4950_v23 = vpop.f32.mrb[33].mxu1  ;;  %v5062_v26 = vpop.f32.mrb[33].mxu0 }
 0x137   :  { %v4951_v30 = vadd.f32 %v4950_v23, %v4949_v17  ;;  %v5063_v34 = vadd.f32 %v5062_v26, %v5061_v18  ;;  %v4952_v35 = vpop.f32.mrb[34].mxu1  ;;  %v5064_v36 = vpop.f32.mrb[34].mxu0  ;;  %v6175_v17 = vld [vmem:[%s8289_s0 + $0x76c] ss:$72 sps:$4 sm:$0xff]  }
 0x138   :  { %v4953_v44 = vpop.f32.mrb[35].mxu1  ;;  %v5065_v45 = vpop.f32.mrb[35].mxu0  ;;  %v6177_v18 = vld [vmem:[%s8289_s0 + $0x774] ss:$72 sps:$4 sm:$0xff]  }
 0x139   :  { %v3098_v46 = vadd.f32 %v4951_v30, %v2937_v29  ;;  %v4954_v53 = vadd.f32 %v4953_v44, %v4952_v35  ;;  %v5066_v33 = vadd.f32 %v5065_v45, %v5064_v36  ;;  %v6179_v45 = vld [vmem:[%s8289_s0 + $0x768] ss:$72 sps:$4 sm:$0xff]  }
 0x13a   :  { %3506 = vmatmul.mubr.bf16.gmra.mrb[140].mxu1 %v6163_v27  ;;  %3667 = vmatmul.mubr.bf16.gmra.mrb[140].mxu0 %v6164_v28  ;;  %v2948_v28 = vadd.f32 %v7155_v1, %v7105_v32  ;;  %v6180_v1 = vld [vmem:[%s8289_s0 + $0x770] ss:$72 sps:$4 sm:$0xff]  }
 0x13b   :  { %v7311_v55 = vadd.f32 %v5063_v34, %v3098_v46  ;;  %v3101_v56 = vadd.f32 %v4954_v53, %v2940_v49  ;;  %3513 = vmatprep.mubr.bf16.mxu1 %v6165_v38  ;;  %3674 = vmatprep.mubr.bf16.mxu0 %v6167_v40  ;;  %v2953_v46 = vadd.f32 %v7175_v13, %v7105_v32 }
 0x13d   :  { %v7313_v57 = vadd.f32 %v5066_v33, %v3101_v56  ;;  %v4955_v58 = vpop.f32.mrb[36].mxu1  ;;  %v5067_v60 = vpop.f32.mrb[36].mxu0 }
 0x13e   :  { %v4956_v62 = vpop.f32.mrb[37].mxu1  ;;  %v5068_v2 = vpop.f32.mrb[37].mxu0 }
 0x13f   :  { %v4957_v8 = vadd.f32 %v4956_v62, %v4955_v58  ;;  %v5069_v9 = vadd.f32 %v5068_v2, %v5067_v60  ;;  %v4958_v10 = vpop.f32.mrb[38].mxu1  ;;  %v5070_v14 = vpop.f32.mrb[38].mxu0  ;;  %v6181_v58 = vld [vmem:[%s8289_s0 + $0x7fc] ss:$72 sps:$4 sm:$0xff]  }
 0x140   :  { %v4959_v23 = vpop.f32.mrb[39].mxu1  ;;  %v5071_v26 = vpop.f32.mrb[39].mxu0  ;;  %v6183_v60 = vld [vmem:[%s8289_s0 + $0x804] ss:$72 sps:$4 sm:$0xff]  }
 0x141   :  { %v3106_v27 = vadd.f32 %v4957_v8, %v2945_v7  ;;  %v4960_v29 = vadd.f32 %v4959_v23, %v4958_v10  ;;  %v5072_v59 = vadd.f32 %v5071_v26, %v5070_v14  ;;  %v6185_v26 = vld [vmem:[%s8289_s0 + $0x7f8] ss:$72 sps:$4 sm:$0xff]  }
 0x142   :  { %3514 = vmatmul.mubr.bf16.gmra.mrb[144].mxu1 %v6169_v6  ;;  %3675 = vmatmul.mubr.bf16.gmra.mrb[144].mxu0 %v6170_v41  ;;  %v2956_v41 = vadd.f32 %v7177_v19, %v7105_v32  ;;  %v6186_v19 = vld [vmem:[%s8289_s0 + $0x800] ss:$72 sps:$4 sm:$0xff]  }
 0x143   :  { %v7331_v30 = vadd.f32 %v5069_v9, %v3106_v27  ;;  %v3109_v34 = vadd.f32 %v4960_v29, %v2948_v28  ;;  %3521 = vmatprep.mubr.bf16.mxu1 %v6175_v17  ;;  %3682 = vmatprep.mubr.bf16.mxu0 %v6177_v18  ;;  %v2961_v27 = vadd.f32 %v7197_v31, %v7105_v32 }
 0x145   :  { %v7333_v35 = vadd.f32 %v5072_v59, %v3109_v34  ;;  %v4961_v36 = vpop.f32.mrb[40].mxu1  ;;  %v5073_v38 = vpop.f32.mrb[40].mxu0 }
 0x146   :  { %v4962_v40 = vpop.f32.mrb[41].mxu1  ;;  %v5074_v44 = vpop.f32.mrb[41].mxu0 }
 0x147   :  { %v4963_v49 = vadd.f32 %v4962_v40, %v4961_v36  ;;  %v5075_v53 = vadd.f32 %v5074_v44, %v5073_v38  ;;  %v4964_v33 = vpop.f32.mrb[42].mxu1  ;;  %v5076_v56 = vpop.f32.mrb[42].mxu0  ;;  %v6191_v36 = vld [vmem:[%s8289_s0 + $0x88c] ss:$72 sps:$4 sm:$0xff]  }
 0x148   :  { %v4965_v62 = vpop.f32.mrb[43].mxu1  ;;  %v5077_v2 = vpop.f32.mrb[43].mxu0  ;;  %v6193_v38 = vld [vmem:[%s8289_s0 + $0x894] ss:$72 sps:$4 sm:$0xff]  }
 0x149   :  { %v3114_v6 = vadd.f32 %v4963_v49, %v2953_v46  ;;  %v4966_v7 = vadd.f32 %v4965_v62, %v4964_v33  ;;  %v5078_v13 = vadd.f32 %v5077_v2, %v5076_v56  ;;  %v6195_v2 = vld [vmem:[%s8289_s0 + $0x888] ss:$72 sps:$4 sm:$0xff]  }
 0x14a   :  { %3522 = vmatmul.mubr.bf16.gmra.mrb[148].mxu1 %v6179_v45  ;;  %3683 = vmatmul.mubr.bf16.gmra.mrb[148].mxu0 %v6180_v1  ;;  %v2964_v1 = vadd.f32 %v7199_v39, %v7105_v32  ;;  %v6196_v39 = vld [vmem:[%s8289_s0 + $0x890] ss:$72 sps:$4 sm:$0xff]  }
 0x14b   :  { %v7351_v8 = vadd.f32 %v5075_v53, %v3114_v6  ;;  %v3117_v9 = vadd.f32 %v4966_v7, %v2956_v41  ;;  %3529 = vmatprep.mubr.bf16.mxu1 %v6181_v58  ;;  %3690 = vmatprep.mubr.bf16.mxu0 %v6183_v60  ;;  %v2969_v6 = vadd.f32 %v7219_v54, %v7105_v32 }
 0x14d   :  { %v7353_v10 = vadd.f32 %v5078_v13, %v3117_v9  ;;  %v4967_v14 = vpop.f32.mrb[44].mxu1  ;;  %v5079_v17 = vpop.f32.mrb[44].mxu0 }
 0x14e   :  { %v4968_v18 = vpop.f32.mrb[45].mxu1  ;;  %v5080_v23 = vpop.f32.mrb[45].mxu0 }
 0x14f   :  { %v4969_v28 = vadd.f32 %v4968_v18, %v4967_v14  ;;  %v5081_v29 = vadd.f32 %v5080_v23, %v5079_v17  ;;  %v4970_v59 = vpop.f32.mrb[46].mxu1  ;;  %v5082_v34 = vpop.f32.mrb[46].mxu0  ;;  %v6199_v14 = vld [vmem:[%s8289_s0 + $0x2c] ss:$72 sps:$4 sm:$0xff]  }
 0x150   :  { %v4971_v40 = vpop.f32.mrb[47].mxu1  ;;  %v5083_v44 = vpop.f32.mrb[47].mxu0  ;;  %v6202_v17 = vld [vmem:[%s8289_s0 + $0x34] ss:$72 sps:$4 sm:$0xff]  }
 0x151   :  { %v3122_v45 = vadd.f32 %v4969_v28, %v2961_v27  ;;  %v4972_v46 = vadd.f32 %v4971_v40, %v4970_v59  ;;  %v5084_v31 = vadd.f32 %v5083_v44, %v5082_v34  ;;  %v6197_v44 = vld [vmem:[%s8289_s0 + $0x28] ss:$72 sps:$4 sm:$0xff]  }
 0x152   :  { %3530 = vmatmul.mubr.bf16.gmra.mrb[152].mxu1 %v6185_v26  ;;  %3691 = vmatmul.mubr.bf16.gmra.mrb[152].mxu0 %v6186_v19  ;;  %v2972_v19 = vadd.f32 %v7221_v61, %v7105_v32  ;;  %v6200_v61 = vld [vmem:[%s8289_s0 + $0x30] ss:$72 sps:$4 sm:$0xff]  }
 0x153   :  { %v7371_v49 = vadd.f32 %v5081_v29, %v3122_v45  ;;  %v3125_v53 = vadd.f32 %v4972_v46, %v2964_v1  ;;  %3537 = vmatprep.mubr.bf16.mxu1 %v6191_v36  ;;  %3698 = vmatprep.mubr.bf16.mxu0 %v6193_v38  ;;  %v2977_v45 = vadd.f32 %v7241_v12, %v7105_v32  ;;  %v6209_v12 = vld [vmem:[%s8289_s0 + $0xc4] ss:$72 sps:$4 sm:$0xff]  }
 0x155   :  { %v7373_v33 = vadd.f32 %v5084_v31, %v3125_v53  ;;  %v4973_v56 = vpop.f32.mrb[48].mxu1  ;;  %v5085_v58 = vpop.f32.mrb[48].mxu0 }
 0x156   :  { %v4974_v60 = vpop.f32.mrb[49].mxu1  ;;  %v5086_v62 = vpop.f32.mrb[49].mxu0 }
 0x157   :  { %v4975_v41 = vadd.f32 %v4974_v60, %v4973_v56  ;;  %v5087_v7 = vadd.f32 %v5086_v62, %v5085_v58  ;;  %v4976_v13 = vpop.f32.mrb[50].mxu1  ;;  %v5088_v9 = vpop.f32.mrb[50].mxu0  ;;  %v6204_v56 = vld [vmem:[%s8288_s1 + $0x380] sm:$0xff]  }
 0x158   :  { %v4977_v18 = vpop.f32.mrb[51].mxu1  ;;  %v5089_v23 = vpop.f32.mrb[51].mxu0  ;;  %v6206_v58 = vld [vmem:[%s8288_s1 + $0x400] sm:$0xff]  }
 0x159   :  { %v3130_v26 = vadd.f32 %v4975_v41, %v2969_v6  ;;  %v4978_v27 = vadd.f32 %v4977_v18, %v4976_v13  ;;  %v5090_v54 = vadd.f32 %v5089_v23, %v5088_v9  ;;  %v2980_v6 = vadd.f32 %v7243_v20, %v7105_v32  ;;  %v6219_v13 = vld [vmem:[%s8288_s1 + $0x3c8] sm:$0xff]   ;;  %v6235_v23 = vld [vmem:[%s8288_s1 + $0x3d0] sm:$0xff]  }
 0x15a   :  { %3538 = vmatmul.mubr.bf16.gmra.mrb[156].mxu1 %v6195_v2  ;;  %3699 = vmatmul.mubr.bf16.gmra.mrb[156].mxu0 %v6196_v39  ;;  %v6207_v2 = vld [vmem:[%s8289_s0 + $0xbc] ss:$72 sps:$4 sm:$0xff]   ;;  %v6221_v9 = vld [vmem:[%s8288_s1 + $0x448] sm:$0xff]  }
 0x15b   :  { %v7391_v28 = vadd.f32 %v5087_v7, %v3130_v26  ;;  %v3133_v29 = vadd.f32 %v4978_v27, %v2972_v19  ;;  %3739 = vmatprep.mubr.bf16.mxu1 %v6199_v14  ;;  %3900 = vmatprep.mubr.bf16.mxu0 %v6202_v17  ;;  %v6220_v20 = vld [vmem:[%s8288_s1 + $0x388] sm:$0xff]   ;;  %v6237_v26 = vld [vmem:[%s8288_s1 + $0x450] sm:$0xff]  }
 0x15c   :  { %v6222_v18 = vld [vmem:[%s8288_s1 + $0x408] sm:$0xff]  }
 0x15d   :  { %v7393_v59 = vadd.f32 %v5090_v54, %v3133_v29  ;;  %v4979_v34 = vpop.f32.mrb[52].mxu1  ;;  %v5091_v36 = vpop.f32.mrb[52].mxu0 }
 0x15e   :  { %v4980_v38 = vpop.f32.mrb[53].mxu1  ;;  %v5092_v40 = vpop.f32.mrb[53].mxu0 }
 0x15f   :  { %v4981_v1 = vadd.f32 %v4980_v38, %v4979_v34  ;;  %v5093_v46 = vadd.f32 %v5092_v40, %v5091_v36  ;;  %v4982_v31 = vpop.f32.mrb[54].mxu1  ;;  %v5094_v53 = vpop.f32.mrb[54].mxu0  ;;  %v6211_v36 = vld [vmem:[%s8289_s0 + $0xb8] ss:$72 sps:$4 sm:$0xff]   ;;  %v2985_v40 = vadd.f32 %v7263_v37, %v7105_v32  ;;  %v6236_v37 = vld [vmem:[%s8288_s1 + $0x390] sm:$0xff]  }
 0x160   :  { %v4983_v60 = vpop.f32.mrb[55].mxu1  ;;  %v5095_v62 = vpop.f32.mrb[55].mxu0  ;;  %v6212_v38 = vld [vmem:[%s8289_s0 + $0xc0] ss:$72 sps:$4 sm:$0xff]  }
 0x161   :  { %v3138_v39 = vadd.f32 %v4981_v1, %v2977_v45  ;;  %v4984_v41 = vadd.f32 %v4983_v60, %v4982_v31  ;;  %v5096_v7 = vadd.f32 %v5095_v62, %v5094_v53  ;;  %v6215_v31 = vld [vmem:[%s8289_s0 + $0x154] ss:$72 sps:$4 sm:$0xff]   ;;  %v2988_v62 = vadd.f32 %v7265_v48, %v7105_v32 }
 0x162   :  { %3740 = vmatmul.mubr.bf16.vlgmr.msra.gmra.mrb[160].mxu1 %v6197_v44  ;;  %3901 = vmatmul.mubr.bf16.vlgmr.msra.gmra.mrb[160].mxu0 %v6200_v61  ;;  %v6252_v32 = vld [vmem:[%s8288_s1 + $0x398] sm:$0xff]  }
 0x163   :  { %v7423_v14 = vadd.f32 %v5093_v46, %v3138_v39  ;;  %v3141_v17 = vadd.f32 %v4984_v41, %v2980_v6  ;;  %5606 = vmatpush3.bf16.msra.mxu1 %v6204_v56  ;;  %5718 = vmatpush3.bf16.msra.mxu0 %v6206_v58  ;;  %v6213_v46 = vld [vmem:[%s8289_s0 + $0x14c] ss:$72 sps:$4 sm:$0xff]   ;;  %v6251_v39 = vld [vmem:[%s8288_s1 + $0x3d8] sm:$0xff]  }
 0x164   :  { %3747 = vmatprep.mubr.bf16.mxu1 %v6207_v2  ;;  %3908 = vmatprep.mubr.bf16.mxu0 %v6209_v12  ;;  %v6238_v58 = vld [vmem:[%s8288_s1 + $0x410] sm:$0xff]   ;;  %v6253_v6 = vld [vmem:[%s8288_s1 + $0x458] sm:$0xff]  }
 0x165   :  { %v7437_v19 = vadd.f32 %v5096_v7, %v3141_v17  ;;  %v4985_v27 = vpop.f32.mrb[56].mxu1  ;;  %v5097_v54 = vpop.f32.mrb[56].mxu0  ;;  %5607 = vmatprep.subr.bf16.mxu1 %v6219_v13  ;;  %5719 = vmatprep.subr.bf16.mxu0 %v6221_v9  ;;  %v6254_v48 = vld [vmem:[%s8288_s1 + $0x418] sm:$0xff]  }
 0x166   :  { %v4986_v29 = vpop.f32.mrb[57].mxu1  ;;  %v5098_v34 = vpop.f32.mrb[57].mxu0 }
 0x167   :  { %v4987_v44 = vadd.f32 %v4986_v29, %v4985_v27  ;;  %v5099_v61 = vadd.f32 %v5098_v34, %v5097_v54  ;;  %v4988_v45 = vpop.f32.mrb[58].mxu1  ;;  %v5100_v1 = vpop.f32.mrb[58].mxu0  ;;  %5608 = vmatpush3.bf16.msra.mxu1 %v6220_v20  ;;  %5720 = vmatpush3.bf16.msra.mxu0 %v6222_v18  ;;  %v6267_v20 = vld [vmem:[%s8288_s1 + $0x3e0] sm:$0xff]   ;;  %v6217_v27 = vld [vmem:[%s8289_s0 + $0x148] ss:$72 sps:$4 sm:$0xff]  }
 0x168   :  { %v4989_v53 = vpop.f32.mrb[59].mxu1  ;;  %v5101_v56 = vpop.f32.mrb[59].mxu0  ;;  %5609 = vmatprep.subr.bf16.mxu1 %v6235_v23  ;;  %5721 = vmatprep.subr.bf16.mxu0 %v6237_v26  ;;  %v6269_v18 = vld [vmem:[%s8288_s1 + $0x460] sm:$0xff]   ;;  %v6218_v54 = vld [vmem:[%s8289_s0 + $0x150] ss:$72 sps:$4 sm:$0xff]  }
 0x169   :  { %v3146_v60 = vadd.f32 %v4987_v44, %v2985_v40  ;;  %v4990_v2 = vadd.f32 %v4989_v53, %v4988_v45  ;;  %v5102_v12 = vadd.f32 %v5101_v56, %v5100_v1  ;;  %v6421_v29 = vld [vmem:[%s8290_s2] ss:$0 sm:$0xff]  ;;  %v6225_v45 = vld [vmem:[%s8289_s0 + $0x1e4] ss:$72 sps:$4 sm:$0xff]  }
 0x16a   :  { %3748 = vmatmul.mubr.bf16.gmra.mrb[164].mxu1 %v6211_v36  ;;  %3909 = vmatmul.mubr.bf16.gmra.mrb[164].mxu0 %v6212_v38  ;;  %v2993_v34 = vadd.f32 %v6421_v29, %v7285_v5  ;;  %v2996_v1 = vadd.f32 %v6421_v29, %v7287_v11  ;;  %v6268_v5 = vld [vmem:[%s8288_s1 + $0x3a0] sm:$0xff]   ;;  %v6283_v11 = vld [vmem:[%s8288_s1 + $0x3e8] sm:$0xff]  }
 0x16b   :  { %v7467_v41 = vadd.f32 %v5099_v61, %v3146_v60  ;;  %v3149_v7 = vadd.f32 %v4990_v2, %v2988_v62  ;;  %3755 = vmatprep.mubr.bf16.mxu1 %v6213_v46  ;;  %3916 = vmatprep.mubr.bf16.mxu0 %v6215_v31  ;;  %v6223_v61 = vld [vmem:[%s8289_s0 + $0x1dc] ss:$72 sps:$4 sm:$0xff]   ;;  %v6285_v60 = vld [vmem:[%s8288_s1 + $0x468] sm:$0xff]  }
 0x16c   :  { %5610 = vmatpush3.bf16.msra.mxu1 %v6236_v37  ;;  %5722 = vmatpush3.bf16.msra.mxu0 %v6238_v58  ;;  %v6270_v53 = vld [vmem:[%s8288_s1 + $0x420] sm:$0xff]  }
 0x16d   :  { %v7475_v13 = vadd.f32 %v5102_v12, %v3149_v7  ;;  %v4991_v9 = vpop.f32.mrb[60].mxu1  ;;  %v5103_v17 = vpop.f32.mrb[60].mxu0  ;;  %5611 = vmatprep.subr.bf16.mxu1 %v6251_v39  ;;  %5723 = vmatprep.subr.bf16.mxu0 %v6253_v6  ;;  %v6284_v12 = vld [vmem:[%s8288_s1 + $0x3a8] sm:$0xff]  }
 0x16e   :  { %v4992_v23 = vpop.f32.mrb[61].mxu1  ;;  %v5104_v26 = vpop.f32.mrb[61].mxu0  ;;  %v6286_v39 = vld [vmem:[%s8288_s1 + $0x428] sm:$0xff]  }
 0x16f   :  { %v4993_v36 = vadd.f32 %v4992_v23, %v4991_v9  ;;  %v5105_v38 = vadd.f32 %v5104_v26, %v5103_v17  ;;  %v4994_v40 = vpop.f32.mrb[62].mxu1  ;;  %v5106_v44 = vpop.f32.mrb[62].mxu0  ;;  %v6301_v9 = vld [vmem:[%s8288_s1 + $0x470] sm:$0xff]   ;;  %v6228_v23 = vld [vmem:[%s8289_s0 + $0x1e0] ss:$72 sps:$4 sm:$0xff]  }
 0x170   :  { %v4995_v46 = vpop.f32.mrb[63].mxu1  ;;  %v5107_v31 = vpop.f32.mrb[63].mxu0  ;;  %5612 = vmatpush3.bf16.msra.mxu1 %v6252_v32  ;;  %5724 = vmatpush3.bf16.msra.mxu0 %v6254_v48  ;;  %v6299_v48 = vld [vmem:[%s8288_s1 + $0x3f0] sm:$0xff]  }
 0x171   :  { %v3154_v56 = vadd.f32 %v4993_v36, %v2993_v34  ;;  %v4996_v37 = vadd.f32 %v4995_v46, %v4994_v40  ;;  %v5108_v58 = vadd.f32 %v5107_v31, %v5106_v44  ;;  %5613 = vmatprep.subr.bf16.mxu1 %v6267_v20  ;;  %5725 = vmatprep.subr.bf16.mxu0 %v6269_v18  ;;  %v6227_v18 = vld [vmem:[%s8289_s0 + $0x1d8] ss:$72 sps:$4 sm:$0xff]   ;;  %v6229_v34 = vld [vmem:[%s8289_s0 + $0x26c] ss:$72 sps:$4 sm:$0xff]  }
 0x172   :  { %3756 = vmatmul.mubr.bf16.gmra.mrb[168].mxu1 %v6217_v27  ;;  %3917 = vmatmul.mubr.bf16.gmra.mrb[168].mxu0 %v6218_v54  ;;  %v6231_v36 = vld [vmem:[%s8289_s0 + $0x274] ss:$72 sps:$4 sm:$0xff]  }
 0x173   :  { %v7512_v62 = vadd.f32 %v5105_v38, %v3154_v56  ;;  %v3157_v2 = vadd.f32 %v4996_v37, %v2996_v1  ;;  %3763 = vmatprep.mubr.bf16.mxu1 %v6223_v61  ;;  %3924 = vmatprep.mubr.bf16.mxu0 %v6225_v45  ;;  %v6300_v44 = vld [vmem:[%s8288_s1 + $0x3b0] sm:$0xff]   ;;  %v6315_v31 = vld [vmem:[%s8288_s1 + $0x3f8] sm:$0xff]  }
 0x174   :  { %5614 = vmatpush3.bf16.msra.mxu1 %v6268_v5  ;;  %5726 = vmatpush3.bf16.msra.mxu0 %v6270_v53  ;;  %v6302_v61 = vld [vmem:[%s8288_s1 + $0x430] sm:$0xff]   ;;  %v6317_v5 = vld [vmem:[%s8288_s1 + $0x478] sm:$0xff]  }
 0x175   :  { %v7520_v6 = vadd.f32 %v5108_v58, %v3157_v2  ;;  %v4997_v7 = vpop.f32.mrb[64].mxu1  ;;  %v5109_v32 = vpop.f32.mrb[64].mxu0  ;;  %5615 = vmatprep.subr.bf16.mxu1 %v6283_v11  ;;  %5727 = vmatprep.subr.bf16.mxu0 %v6285_v60  ;;  %v6318_v37 = vld [vmem:[%s8288_s1 + $0x438] sm:$0xff]  }
 0x176   :  { %v4998_v17 = vpop.f32.mrb[65].mxu1  ;;  %v5110_v20 = vpop.f32.mrb[65].mxu0 }
 0x177   :  { %v4999_v26 = vadd.f32 %v4998_v17, %v4997_v7  ;;  %v5111_v27 = vadd.f32 %v5110_v20, %v5109_v32  ;;  %v5000_v54 = vpop.f32.mrb[66].mxu1  ;;  %v5112_v29 = vpop.f32.mrb[66].mxu0  ;;  %v6239_v17 = vld [vmem:[%s8289_s0 + $0x2fc] ss:$72 sps:$4 sm:$0xff]  }
 0x178   :  { %v5001_v38 = vpop.f32.mrb[67].mxu1  ;;  %v5113_v40 = vpop.f32.mrb[67].mxu0  ;;  %5616 = vmatpush3.bf16.msra.mxu1 %v6284_v12  ;;  %5728 = vmatpush3.bf16.msra.mxu0 %v6286_v39  ;;  %v6233_v12 = vld [vmem:[%s8289_s0 + $0x268] ss:$72 sps:$4 sm:$0xff]   ;;  %v6241_v20 = vld [vmem:[%s8289_s0 + $0x304] ss:$72 sps:$4 sm:$0xff]  }
 0x179   :  { %v3162_v45 = vadd.f32 %v4999_v26, %v7130_v47  ;;  %v5002_v1 = vadd.f32 %v5001_v38, %v5000_v54  ;;  %v5114_v46 = vadd.f32 %v5113_v40, %v5112_v29  ;;  %5617 = vmatprep.subr.bf16.mxu1 %v6299_v48  ;;  %5729 = vmatprep.subr.bf16.mxu0 %v6301_v9  ;;  %v6316_v47 = vld [vmem:[%s8288_s1 + $0x3b8] sm:$0xff]  }
 0x17a   :  { %3764 = vmatmul.mubr.bf16.gmra.mrb[172].mxu1 %v6227_v18  ;;  %3925 = vmatmul.mubr.bf16.gmra.mrb[172].mxu0 %v6228_v23  ;;  %v6234_v39 = vld [vmem:[%s8289_s0 + $0x270] ss:$72 sps:$4 sm:$0xff]  }
 0x17b   :  { %v7553_v53 = vadd.f32 %v5111_v27, %v3162_v45  ;;  %v3165_v56 = vadd.f32 %v5002_v1, %v7139_v50  ;;  %3771 = vmatprep.mubr.bf16.mxu1 %v6229_v34  ;;  %3932 = vmatprep.mubr.bf16.mxu0 %v6231_v36  ;;  %v6244_v45 = vld [vmem:[%s8289_s0 + $0x300] ss:$72 sps:$4 sm:$0xff]  }
 0x17c   :  { %5618 = vmatpush3.bf16.msra.mxu1 %v6300_v44  ;;  %5730 = vmatpush3.bf16.msra.mxu0 %v6302_v61 }
 0x17d   :  { %v7562_v58 = vadd.f32 %v5114_v46, %v3165_v56  ;;  %v5003_v11 = vpop.f32.mrb[68].mxu1  ;;  %v5115_v60 = vpop.f32.mrb[68].mxu0  ;;  %5619 = vmatprep.subr.bf16.mxu1 %v6315_v31  ;;  %5731 = vmatprep.subr.bf16.mxu0 %v6317_v5  ;;  %v6245_v5 = vld [vmem:[%s8289_s0 + $0x38c] ss:$72 sps:$4 sm:$0xff]  }
 0x17e   :  { %v5004_v2 = vpop.f32.mrb[69].mxu1  ;;  %v5116_v50 = vpop.f32.mrb[69].mxu0  ;;  %v6247_v56 = vld [vmem:[%s8289_s0 + $0x394] ss:$72 sps:$4 sm:$0xff]  }
 0x17f   :  { %v5005_v7 = vadd.f32 %v5004_v2, %v5003_v11  ;;  %v5117_v32 = vadd.f32 %v5116_v50, %v5115_v60  ;;  %v5006_v48 = vpop.f32.mrb[70].mxu1  ;;  %v5118_v9 = vpop.f32.mrb[70].mxu0 }
 0x180   :  { %v5007_v18 = vpop.f32.mrb[71].mxu1  ;;  %v5119_v23 = vpop.f32.mrb[71].mxu0  ;;  %5620 = vmatpush3.bf16.msra.mxu1 %v6316_v47  ;;  %5732 = vmatpush3.bf16.msra.mxu0 %v6318_v37 }
 0x181   :  { %v3170_v26 = vadd.f32 %v5005_v7, %v7158_v3  ;;  %v5008_v27 = vadd.f32 %v5007_v18, %v5006_v48  ;;  %v5120_v54 = vadd.f32 %v5119_v23, %v5118_v9  ;;  %v6243_v3 = vld [vmem:[%s8289_s0 + $0x2f8] ss:$72 sps:$4 sm:$0xff]  }
 0x182   :  { %3772 = vmatmul.mubr.bf16.gmra.mrb[176].mxu1 %v6233_v12  ;;  %3933 = vmatmul.mubr.bf16.gmra.mrb[176].mxu0 %v6234_v39 }
 0x183   :  { %v7577_v29 = vadd.f32 %v5117_v32, %v3170_v26  ;;  %v3173_v34 = vadd.f32 %v5008_v27, %v7161_v4  ;;  %3779 = vmatprep.mubr.bf16.mxu1 %v6239_v17  ;;  %3940 = vmatprep.mubr.bf16.mxu0 %v6241_v20  ;;  %v6250_v17 = vld [vmem:[%s8289_s0 + $0x390] ss:$72 sps:$4 sm:$0xff]   ;;  %v6255_v26 = vld [vmem:[%s8289_s0 + $0x41c] ss:$72 sps:$4 sm:$0xff]  }
 0x184   :  { %v6257_v27 = vld [vmem:[%s8289_s0 + $0x424] ss:$72 sps:$4 sm:$0xff]  }
 0x185   :  { %v7580_v36 = vadd.f32 %v5120_v54, %v3173_v34  ;;  %v5009_v38 = vpop.f32.mrb[72].mxu1  ;;  %v5121_v40 = vpop.f32.mrb[72].mxu0 }
 0x186   :  { %v5010_v44 = vpop.f32.mrb[73].mxu1  ;;  %v5122_v61 = vpop.f32.mrb[73].mxu0 }
 0x187   :  { %v5011_v1 = vadd.f32 %v5010_v44, %v5009_v38  ;;  %v5123_v46 = vadd.f32 %v5122_v61, %v5121_v40  ;;  %v5012_v31 = vpop.f32.mrb[74].mxu1  ;;  %v5124_v4 = vpop.f32.mrb[74].mxu0 }
 0x188   :  { %v5013_v47 = vpop.f32.mrb[75].mxu1  ;;  %v5125_v37 = vpop.f32.mrb[75].mxu0 }
 0x189   :  { %v3178_v11 = vadd.f32 %v5011_v1, %v7180_v21  ;;  %v5014_v60 = vadd.f32 %v5013_v47, %v5012_v31  ;;  %v5126_v2 = vadd.f32 %v5125_v37, %v5124_v4  ;;  %v6249_v21 = vld [vmem:[%s8289_s0 + $0x388] ss:$72 sps:$4 sm:$0xff]  }
 0x18a   :  { %3780 = vmatmul.mubr.bf16.gmra.mrb[180].mxu1 %v6243_v3  ;;  %3941 = vmatmul.mubr.bf16.gmra.mrb[180].mxu0 %v6244_v45 }
 0x18b   :  { %v7595_v50 = vadd.f32 %v5123_v46, %v3178_v11  ;;  %v3181_v12 = vadd.f32 %v5014_v60, %v7183_v22  ;;  %3787 = vmatprep.mubr.bf16.mxu1 %v6245_v5  ;;  %3948 = vmatprep.mubr.bf16.mxu0 %v6247_v56  ;;  %v6260_v5 = vld [vmem:[%s8289_s0 + $0x420] ss:$72 sps:$4 sm:$0xff]   ;;  %v6261_v11 = vld [vmem:[%s8289_s0 + $0x4ac] ss:$72 sps:$4 sm:$0xff]  }
 0x18c   :  { %v6263_v60 = vld [vmem:[%s8289_s0 + $0x4b4] ss:$72 sps:$4 sm:$0xff]  }
 0x18d   :  { %v7598_v39 = vadd.f32 %v5126_v2, %v3181_v12  ;;  %v5015_v7 = vpop.f32.mrb[76].mxu1  ;;  %v5127_v32 = vpop.f32.mrb[76].mxu0 }
 0x18e   :  { %v5016_v48 = vpop.f32.mrb[77].mxu1  ;;  %v5128_v9 = vpop.f32.mrb[77].mxu0 }
 0x18f   :  { %v5017_v20 = vadd.f32 %v5016_v48, %v5015_v7  ;;  %v5129_v18 = vadd.f32 %v5128_v9, %v5127_v32  ;;  %v5018_v23 = vpop.f32.mrb[78].mxu1  ;;  %v5130_v22 = vpop.f32.mrb[78].mxu0 }
 0x190   :  { %v5019_v54 = vpop.f32.mrb[79].mxu1  ;;  %v5131_v34 = vpop.f32.mrb[79].mxu0 }
 0x191   :  { %v3186_v38 = vadd.f32 %v5017_v20, %v7202_v42  ;;  %v5020_v40 = vadd.f32 %v5019_v54, %v5018_v23  ;;  %v5132_v44 = vadd.f32 %v5131_v34, %v5130_v22  ;;  %v6259_v42 = vld [vmem:[%s8289_s0 + $0x418] ss:$72 sps:$4 sm:$0xff]  }
 0x192   :  { %3788 = vmatmul.mubr.bf16.gmra.mrb[184].mxu1 %v6249_v21  ;;  %3949 = vmatmul.mubr.bf16.gmra.mrb[184].mxu0 %v6250_v17 }
 0x193   :  { %v7613_v61 = vadd.f32 %v5129_v18, %v3186_v38  ;;  %v3189_v3 = vadd.f32 %v5020_v40, %v7205_v43  ;;  %3795 = vmatprep.mubr.bf16.mxu1 %v6255_v26  ;;  %3956 = vmatprep.mubr.bf16.mxu0 %v6257_v27  ;;  %v6266_v26 = vld [vmem:[%s8289_s0 + $0x4b0] ss:$72 sps:$4 sm:$0xff]   ;;  %v6271_v38 = vld [vmem:[%s8289_s0 + $0x53c] ss:$72 sps:$4 sm:$0xff]  }
 0x194   :  { %v6273_v40 = vld [vmem:[%s8289_s0 + $0x544] ss:$72 sps:$4 sm:$0xff]  }
 0x195   :  { %v7616_v45 = vadd.f32 %v5132_v44, %v3189_v3  ;;  %v5021_v1 = vpop.f32.mrb[80].mxu1  ;;  %v5133_v46 = vpop.f32.mrb[80].mxu0 }
 0x196   :  { %v5022_v31 = vpop.f32.mrb[81].mxu1  ;;  %v5134_v4 = vpop.f32.mrb[81].mxu0 }
 0x197   :  { %v5023_v56 = vadd.f32 %v5022_v31, %v5021_v1  ;;  %v5135_v47 = vadd.f32 %v5134_v4, %v5133_v46  ;;  %v5024_v37 = vpop.f32.mrb[82].mxu1  ;;  %v5136_v43 = vpop.f32.mrb[82].mxu0 }
 0x198   :  { %v5025_v2 = vpop.f32.mrb[83].mxu1  ;;  %v5137_v12 = vpop.f32.mrb[83].mxu0 }
 0x199   :  { %v3194_v7 = vadd.f32 %v5023_v56, %v7224_v63  ;;  %v5026_v32 = vadd.f32 %v5025_v2, %v5024_v37  ;;  %v5138_v48 = vadd.f32 %v5137_v12, %v5136_v43  ;;  %v6265_v63 = vld [vmem:[%s8289_s0 + $0x4a8] ss:$72 sps:$4 sm:$0xff]  }
 0x19a   :  { %3796 = vmatmul.mubr.bf16.gmra.mrb[188].mxu1 %v6259_v42  ;;  %3957 = vmatmul.mubr.bf16.gmra.mrb[188].mxu0 %v6260_v5 }
 0x19b   :  { %v7631_v9 = vadd.f32 %v5135_v47, %v3194_v7  ;;  %v3197_v21 = vadd.f32 %v5026_v32, %v7227_v0  ;;  %3803 = vmatprep.mubr.bf16.mxu1 %v6261_v11  ;;  %3964 = vmatprep.mubr.bf16.mxu0 %v6263_v60  ;;  %v6276_v11 = vld [vmem:[%s8289_s0 + $0x540] ss:$72 sps:$4 sm:$0xff]   ;;  %v6277_v7 = vld [vmem:[%s8289_s0 + $0x5cc] ss:$72 sps:$4 sm:$0xff]  }
 0x19c   :  { %v6279_v32 = vld [vmem:[%s8289_s0 + $0x5d4] ss:$72 sps:$4 sm:$0xff]  }
 0x19d   :  { %v7634_v17 = vadd.f32 %v5138_v48, %v3197_v21  ;;  %v5027_v20 = vpop.f32.mrb[84].mxu1  ;;  %v5139_v18 = vpop.f32.mrb[84].mxu0 }
 0x19e   :  { %v5028_v23 = vpop.f32.mrb[85].mxu1  ;;  %v5140_v22 = vpop.f32.mrb[85].mxu0 }
 0x19f   :  { %v5029_v27 = vadd.f32 %v5028_v23, %v5027_v20  ;;  %v5141_v54 = vadd.f32 %v5140_v22, %v5139_v18  ;;  %v5030_v34 = vpop.f32.mrb[86].mxu1  ;;  %v5142_v0 = vpop.f32.mrb[86].mxu0 }
 0x1a0   :  { %v5031_v44 = vpop.f32.mrb[87].mxu1  ;;  %v5143_v3 = vpop.f32.mrb[87].mxu0 }
 0x1a1   :  { %v3202_v1 = vadd.f32 %v5029_v27, %v7246_v24  ;;  %v5032_v46 = vadd.f32 %v5031_v44, %v5030_v34  ;;  %v5144_v31 = vadd.f32 %v5143_v3, %v5142_v0  ;;  %v6275_v24 = vld [vmem:[%s8289_s0 + $0x538] ss:$72 sps:$4 sm:$0xff]  }
 0x1a2   :  { %3804 = vmatmul.mubr.bf16.gmra.mrb[192].mxu1 %v6265_v63  ;;  %3965 = vmatmul.mubr.bf16.gmra.mrb[192].mxu0 %v6266_v26 }
 0x1a3   :  { %v7649_v4 = vadd.f32 %v5141_v54, %v3202_v1  ;;  %v3205_v42 = vadd.f32 %v5032_v46, %v7249_v25  ;;  %3811 = vmatprep.mubr.bf16.mxu1 %v6271_v38  ;;  %3972 = vmatprep.mubr.bf16.mxu0 %v6273_v40  ;;  %v6282_v38 = vld [vmem:[%s8289_s0 + $0x5d0] ss:$72 sps:$4 sm:$0xff]   ;;  %v6287_v1 = vld [vmem:[%s8289_s0 + $0x65c] ss:$72 sps:$4 sm:$0xff]  }
 0x1a4   :  { %v6289_v46 = vld [vmem:[%s8289_s0 + $0x664] ss:$72 sps:$4 sm:$0xff]  }
 0x1a5   :  { %v7652_v5 = vadd.f32 %v5144_v31, %v3205_v42  ;;  %v5033_v56 = vpop.f32.mrb[88].mxu1  ;;  %v5145_v47 = vpop.f32.mrb[88].mxu0 }
 0x1a6   :  { %v5034_v37 = vpop.f32.mrb[89].mxu1  ;;  %v5146_v43 = vpop.f32.mrb[89].mxu0 }
 0x1a7   :  { %v5035_v60 = vadd.f32 %v5034_v37, %v5033_v56  ;;  %v5147_v2 = vadd.f32 %v5146_v43, %v5145_v47  ;;  %v5036_v12 = vpop.f32.mrb[90].mxu1  ;;  %v5148_v25 = vpop.f32.mrb[90].mxu0 }
 0x1a8   :  { %v5037_v48 = vpop.f32.mrb[91].mxu1  ;;  %v5149_v21 = vpop.f32.mrb[91].mxu0 }
 0x1a9   :  { %v3210_v20 = vadd.f32 %v5035_v60, %v7268_v51  ;;  %v5038_v18 = vadd.f32 %v5037_v48, %v5036_v12  ;;  %v5150_v23 = vadd.f32 %v5149_v21, %v5148_v25  ;;  %v6281_v51 = vld [vmem:[%s8289_s0 + $0x5c8] ss:$72 sps:$4 sm:$0xff]  }
 0x1aa   :  { %3812 = vmatmul.mubr.bf16.gmra.mrb[196].mxu1 %v6275_v24  ;;  %3973 = vmatmul.mubr.bf16.gmra.mrb[196].mxu0 %v6276_v11 }
 0x1ab   :  { %v7667_v22 = vadd.f32 %v5147_v2, %v3210_v20  ;;  %v3213_v63 = vadd.f32 %v5038_v18, %v7271_v52  ;;  %3819 = vmatprep.mubr.bf16.mxu1 %v6277_v7  ;;  %3980 = vmatprep.mubr.bf16.mxu0 %v6279_v32  ;;  %v6292_v7 = vld [vmem:[%s8289_s0 + $0x660] ss:$72 sps:$4 sm:$0xff]   ;;  %v6293_v20 = vld [vmem:[%s8289_s0 + $0x6ec] ss:$72 sps:$4 sm:$0xff]  }
 0x1ac   :  { %v6295_v18 = vld [vmem:[%s8289_s0 + $0x6f4] ss:$72 sps:$4 sm:$0xff]  }
 0x1ad   :  { %v7670_v26 = vadd.f32 %v5150_v23, %v3213_v63  ;;  %v5039_v27 = vpop.f32.mrb[92].mxu1  ;;  %v5151_v54 = vpop.f32.mrb[92].mxu0 }
 0x1ae   :  { %v5040_v34 = vpop.f32.mrb[93].mxu1  ;;  %v5152_v0 = vpop.f32.mrb[93].mxu0 }
 0x1af   :  { %v5041_v40 = vadd.f32 %v5040_v34, %v5039_v27  ;;  %v5153_v44 = vadd.f32 %v5152_v0, %v5151_v54  ;;  %v5042_v3 = vpop.f32.mrb[94].mxu1  ;;  %v5154_v52 = vpop.f32.mrb[94].mxu0 }
 0x1b0   :  { %v5043_v31 = vpop.f32.mrb[95].mxu1  ;;  %v5155_v42 = vpop.f32.mrb[95].mxu0 }
 0x1b1   :  { %v3218_v56 = vadd.f32 %v5041_v40, %v7290_v15  ;;  %v5044_v47 = vadd.f32 %v5043_v31, %v5042_v3  ;;  %v5156_v37 = vadd.f32 %v5155_v42, %v5154_v52  ;;  %v6291_v15 = vld [vmem:[%s8289_s0 + $0x658] ss:$72 sps:$4 sm:$0xff]  }
 0x1b2   :  { %3820 = vmatmul.mubr.bf16.gmra.mrb[200].mxu1 %v6281_v51  ;;  %3981 = vmatmul.mubr.bf16.gmra.mrb[200].mxu0 %v6282_v38 }
 0x1b3   :  { %v7685_v43 = vadd.f32 %v5153_v44, %v3218_v56  ;;  %v3221_v24 = vadd.f32 %v5044_v47, %v7293_v16  ;;  %3827 = vmatprep.mubr.bf16.mxu1 %v6287_v1  ;;  %3988 = vmatprep.mubr.bf16.mxu0 %v6289_v46  ;;  %v6298_v1 = vld [vmem:[%s8289_s0 + $0x6f0] ss:$72 sps:$4 sm:$0xff]   ;;  %v6303_v56 = vld [vmem:[%s8289_s0 + $0x77c] ss:$72 sps:$4 sm:$0xff]  }
 0x1b4   :  { %v6305_v47 = vld [vmem:[%s8289_s0 + $0x784] ss:$72 sps:$4 sm:$0xff]  }
 0x1b5   :  { %v7688_v11 = vadd.f32 %v5156_v37, %v3221_v24  ;;  %v5173_v60 = vpop.f32.mrb[96].mxu1  ;;  %v5285_v2 = vpop.f32.mrb[96].mxu0 }
 0x1b6   :  { %v5174_v12 = vpop.f32.mrb[97].mxu1  ;;  %v5286_v25 = vpop.f32.mrb[97].mxu0 }
 0x1b7   :  { %v5175_v32 = vadd.f32 %v5174_v12, %v5173_v60  ;;  %v5287_v48 = vadd.f32 %v5286_v25, %v5285_v2  ;;  %v5176_v21 = vpop.f32.mrb[98].mxu1  ;;  %v5288_v16 = vpop.f32.mrb[98].mxu0 }
 0x1b8   :  { %v5177_v23 = vpop.f32.mrb[99].mxu1  ;;  %v5289_v63 = vpop.f32.mrb[99].mxu0 }
 0x1b9   :  { %v3420_v27 = vadd.f32 %v5175_v32, %v7311_v55  ;;  %v5178_v54 = vadd.f32 %v5177_v23, %v5176_v21  ;;  %v5290_v34 = vadd.f32 %v5289_v63, %v5288_v16  ;;  %v6297_v55 = vld [vmem:[%s8289_s0 + $0x6e8] ss:$72 sps:$4 sm:$0xff]  }
 0x1ba   :  { %3828 = vmatmul.mubr.bf16.gmra.mrb[204].mxu1 %v6291_v15  ;;  %3989 = vmatmul.mubr.bf16.gmra.mrb[204].mxu0 %v6292_v7 }
 0x1bb   :  { %v7703_v0 = vadd.f32 %v5287_v48, %v3420_v27  ;;  %v3423_v51 = vadd.f32 %v5178_v54, %v7313_v57  ;;  %3835 = vmatprep.mubr.bf16.mxu1 %v6293_v20  ;;  %3996 = vmatprep.mubr.bf16.mxu0 %v6295_v18  ;;  %v6308_v20 = vld [vmem:[%s8289_s0 + $0x780] ss:$72 sps:$4 sm:$0xff]   ;;  %v6309_v27 = vld [vmem:[%s8289_s0 + $0x80c] ss:$72 sps:$4 sm:$0xff]  }
 0x1bc   :  { %v6311_v54 = vld [vmem:[%s8289_s0 + $0x814] ss:$72 sps:$4 sm:$0xff]  }
 0x1bd   :  { %v7706_v38 = vadd.f32 %v5290_v34, %v3423_v51  ;;  %v5179_v40 = vpop.f32.mrb[100].mxu1  ;;  %v5291_v44 = vpop.f32.mrb[100].mxu0 }
 0x1be   :  { %v5180_v3 = vpop.f32.mrb[101].mxu1  ;;  %v5292_v52 = vpop.f32.mrb[101].mxu0 }
 0x1bf   :  { %v5181_v46 = vadd.f32 %v5180_v3, %v5179_v40  ;;  %v5293_v31 = vadd.f32 %v5292_v52, %v5291_v44  ;;  %v5182_v42 = vpop.f32.mrb[102].mxu1  ;;  %v5294_v57 = vpop.f32.mrb[102].mxu0 }
 0x1c0   :  { %v5183_v37 = vpop.f32.mrb[103].mxu1  ;;  %v5295_v24 = vpop.f32.mrb[103].mxu0 }
 0x1c1   :  { %v3428_v60 = vadd.f32 %v5181_v46, %v7331_v30  ;;  %v5184_v2 = vadd.f32 %v5183_v37, %v5182_v42  ;;  %v5296_v12 = vadd.f32 %v5295_v24, %v5294_v57  ;;  %v6307_v30 = vld [vmem:[%s8289_s0 + $0x778] ss:$72 sps:$4 sm:$0xff]  }
 0x1c2   :  { %3836 = vmatmul.mubr.bf16.gmra.mrb[208].mxu1 %v6297_v55  ;;  %3997 = vmatmul.mubr.bf16.gmra.mrb[208].mxu0 %v6298_v1 }
 0x1c3   :  { %v7721_v25 = vadd.f32 %v5293_v31, %v3428_v60  ;;  %v3431_v15 = vadd.f32 %v5184_v2, %v7333_v35  ;;  %3843 = vmatprep.mubr.bf16.mxu1 %v6303_v56  ;;  %4004 = vmatprep.mubr.bf16.mxu0 %v6305_v47  ;;  %v6314_v56 = vld [vmem:[%s8289_s0 + $0x810] ss:$72 sps:$4 sm:$0xff]   ;;  %v6319_v60 = vld [vmem:[%s8289_s0 + $0x89c] ss:$72 sps:$4 sm:$0xff]  }
 0x1c4   :  { %v6321_v2 = vld [vmem:[%s8289_s0 + $0x8a4] ss:$72 sps:$4 sm:$0xff]  }
 0x1c5   :  { %v7724_v7 = vadd.f32 %v5296_v12, %v3431_v15  ;;  %v5185_v32 = vpop.f32.mrb[104].mxu1  ;;  %v5297_v48 = vpop.f32.mrb[104].mxu0 }
 0x1c6   :  { %v5186_v21 = vpop.f32.mrb[105].mxu1  ;;  %v5298_v16 = vpop.f32.mrb[105].mxu0 }
 0x1c7   :  { %v5187_v18 = vadd.f32 %v5186_v21, %v5185_v32  ;;  %v5299_v23 = vadd.f32 %v5298_v16, %v5297_v48  ;;  %v5188_v63 = vpop.f32.mrb[106].mxu1  ;;  %v5300_v35 = vpop.f32.mrb[106].mxu0 }
 0x1c8   :  { %v5189_v34 = vpop.f32.mrb[107].mxu1  ;;  %v5301_v51 = vpop.f32.mrb[107].mxu0 }
 0x1c9   :  { %v3436_v40 = vadd.f32 %v5187_v18, %v7351_v8  ;;  %v5190_v44 = vadd.f32 %v5189_v34, %v5188_v63  ;;  %v5302_v3 = vadd.f32 %v5301_v51, %v5300_v35  ;;  %v6313_v8 = vld [vmem:[%s8289_s0 + $0x808] ss:$72 sps:$4 sm:$0xff]  }
 0x1ca   :  { %3844 = vmatmul.mubr.bf16.gmra.mrb[212].mxu1 %v6307_v30  ;;  %4005 = vmatmul.mubr.bf16.gmra.mrb[212].mxu0 %v6308_v20 }
 0x1cb   :  { %v7739_v52 = vadd.f32 %v5299_v23, %v3436_v40  ;;  %v3439_v55 = vadd.f32 %v5190_v44, %v7353_v10  ;;  %3851 = vmatprep.mubr.bf16.mxu1 %v6309_v27  ;;  %4012 = vmatprep.mubr.bf16.mxu0 %v6311_v54  ;;  %v6324_v27 = vld [vmem:[%s8289_s0 + $0x8a0] ss:$72 sps:$4 sm:$0xff]   ;;  %v6327_v40 = vld [vmem:[%s8289_s0 + $0x3c] ss:$72 sps:$4 sm:$0xff]  }
 0x1cc   :  { %v6330_v44 = vld [vmem:[%s8289_s0 + $0x44] ss:$72 sps:$4 sm:$0xff]  }
 0x1cd   :  { %v7742_v1 = vadd.f32 %v5302_v3, %v3439_v55  ;;  %v5191_v46 = vpop.f32.mrb[108].mxu1  ;;  %v5303_v31 = vpop.f32.mrb[108].mxu0 }
 0x1ce   :  { %v5192_v42 = vpop.f32.mrb[109].mxu1  ;;  %v5304_v57 = vpop.f32.mrb[109].mxu0 }
 0x1cf   :  { %v5193_v47 = vadd.f32 %v5192_v42, %v5191_v46  ;;  %v5305_v37 = vadd.f32 %v5304_v57, %v5303_v31  ;;  %v5194_v24 = vpop.f32.mrb[110].mxu1  ;;  %v5306_v10 = vpop.f32.mrb[110].mxu0 }
 0x1d0   :  { %v5195_v12 = vpop.f32.mrb[111].mxu1  ;;  %v5307_v15 = vpop.f32.mrb[111].mxu0 }
 0x1d1   :  { %v3444_v32 = vadd.f32 %v5193_v47, %v7371_v49  ;;  %v5196_v48 = vadd.f32 %v5195_v12, %v5194_v24  ;;  %v5308_v21 = vadd.f32 %v5307_v15, %v5306_v10  ;;  %v6323_v49 = vld [vmem:[%s8289_s0 + $0x898] ss:$72 sps:$4 sm:$0xff]  }
 0x1d2   :  { %3852 = vmatmul.mubr.bf16.gmra.mrb[216].mxu1 %v6313_v8  ;;  %4013 = vmatmul.mubr.bf16.gmra.mrb[216].mxu0 %v6314_v56 }
 0x1d3   :  { %v7757_v16 = vadd.f32 %v5305_v37, %v3444_v32  ;;  %v3447_v30 = vadd.f32 %v5196_v48, %v7373_v33  ;;  %3859 = vmatprep.mubr.bf16.mxu1 %v6319_v60  ;;  %4020 = vmatprep.mubr.bf16.mxu0 %v6321_v2  ;;  %v6328_v60 = vld [vmem:[%s8289_s0 + $0x40] ss:$72 sps:$4 sm:$0xff]   ;;  %v6331_v32 = vld [vmem:[%s8289_s0 + $0xcc] ss:$72 sps:$4 sm:$0xff]  }
 0x1d4   :  { %v6333_v48 = vld [vmem:[%s8289_s0 + $0xd4] ss:$72 sps:$4 sm:$0xff]  }
 0x1d5   :  { %v7760_v20 = vadd.f32 %v5308_v21, %v3447_v30  ;;  %v5197_v18 = vpop.f32.mrb[112].mxu1  ;;  %v5309_v23 = vpop.f32.mrb[112].mxu0 }
 0x1d6   :  { %v5198_v63 = vpop.f32.mrb[113].mxu1  ;;  %v5310_v35 = vpop.f32.mrb[113].mxu0 }
 0x1d7   :  { %v5199_v54 = vadd.f32 %v5198_v63, %v5197_v18  ;;  %v5311_v34 = vadd.f32 %v5310_v35, %v5309_v23  ;;  %v5200_v51 = vpop.f32.mrb[114].mxu1  ;;  %v5312_v33 = vpop.f32.mrb[114].mxu0 }
 0x1d8   :  { %v5201_v3 = vpop.f32.mrb[115].mxu1  ;;  %v5313_v55 = vpop.f32.mrb[115].mxu0 }
 0x1d9   :  { %v3452_v46 = vadd.f32 %v5199_v54, %v7391_v28  ;;  %v5202_v31 = vadd.f32 %v5201_v3, %v5200_v51  ;;  %v5314_v42 = vadd.f32 %v5313_v55, %v5312_v33  ;;  %v6325_v28 = vld [vmem:[%s8289_s0 + $0x38] ss:$72 sps:$4 sm:$0xff]  }
 0x1da   :  { %3860 = vmatmul.mubr.bf16.gmra.mrb[220].mxu1 %v6323_v49  ;;  %4021 = vmatmul.mubr.bf16.gmra.mrb[220].mxu0 %v6324_v27 }
 0x1db   :  { %v7775_v57 = vadd.f32 %v5311_v34, %v3452_v46  ;;  %v3455_v8 = vadd.f32 %v5202_v31, %v7393_v59  ;;  %4061 = vmatprep.mubr.bf16.mxu1 %v6327_v40  ;;  %4222 = vmatprep.mubr.bf16.mxu0 %v6330_v44  ;;  %v6336_v40 = vld [vmem:[%s8289_s0 + $0xd0] ss:$72 sps:$4 sm:$0xff]   ;;  %v6337_v46 = vld [vmem:[%s8289_s0 + $0x15c] ss:$72 sps:$4 sm:$0xff]  }
 0x1dc   :  { %v6339_v31 = vld [vmem:[%s8289_s0 + $0x164] ss:$72 sps:$4 sm:$0xff]  }
 0x1dd   :  { %v7778_v56 = vadd.f32 %v5314_v42, %v3455_v8  ;;  %v5203_v47 = vpop.f32.mrb[116].mxu1  ;;  %v5315_v37 = vpop.f32.mrb[116].mxu0 }
 0x1de   :  { %v5204_v24 = vpop.f32.mrb[117].mxu1  ;;  %v5316_v10 = vpop.f32.mrb[117].mxu0 }
 0x1df   :  { %v5205_v2 = vadd.f32 %v5204_v24, %v5203_v47  ;;  %v5317_v12 = vadd.f32 %v5316_v10, %v5315_v37  ;;  %v5206_v15 = vpop.f32.mrb[118].mxu1  ;;  %v5318_v59 = vpop.f32.mrb[118].mxu0 }
 0x1e0   :  { %v5207_v21 = vpop.f32.mrb[119].mxu1  ;;  %v5319_v30 = vpop.f32.mrb[119].mxu0 }
 0x1e1   :  { %v3460_v18 = vadd.f32 %v5205_v2, %v7423_v14  ;;  %v5208_v23 = vadd.f32 %v5207_v21, %v5206_v15  ;;  %v5320_v63 = vadd.f32 %v5319_v30, %v5318_v59  ;;  %v6335_v14 = vld [vmem:[%s8289_s0 + $0xc8] ss:$72 sps:$4 sm:$0xff]  }
 0x1e2   :  { %4062 = vmatmul.mubr.bf16.vlgmr.msra.gmra.mrb[224].mxu1 %v6325_v28  ;;  %4223 = vmatmul.mubr.bf16.vlgmr.msra.gmra.mrb[224].mxu0 %v6328_v60 }
 0x1e3   :  { %v7793_v35 = vadd.f32 %v5317_v12, %v3460_v18  ;;  %v3463_v49 = vadd.f32 %v5208_v23, %v7437_v19  ;;  %4069 = vmatprep.mubr.bf16.mxu1 %v6331_v32  ;;  %4230 = vmatprep.mubr.bf16.mxu0 %v6333_v48  ;;  %v6342_v32 = vld [vmem:[%s8289_s0 + $0x160] ss:$72 sps:$4 sm:$0xff]   ;;  %v6343_v18 = vld [vmem:[%s8289_s0 + $0x1ec] ss:$72 sps:$4 sm:$0xff]  }
 0x1e4   :  { %v6345_v23 = vld [vmem:[%s8289_s0 + $0x1f4] ss:$72 sps:$4 sm:$0xff]  }
 0x1e5   :  { %v7796_v27 = vadd.f32 %v5320_v63, %v3463_v49  ;;  %v5209_v54 = vpop.f32.mrb[120].mxu1  ;;  %v5321_v34 = vpop.f32.mrb[120].mxu0 }
 0x1e6   :  { %v5210_v51 = vpop.f32.mrb[121].mxu1  ;;  %v5322_v33 = vpop.f32.mrb[121].mxu0 }
 0x1e7   :  { %v5211_v44 = vadd.f32 %v5210_v51, %v5209_v54  ;;  %v5323_v3 = vadd.f32 %v5322_v33, %v5321_v34  ;;  %v5212_v55 = vpop.f32.mrb[122].mxu1  ;;  %v5324_v19 = vpop.f32.mrb[122].mxu0 }
 0x1e8   :  { %v5213_v42 = vpop.f32.mrb[123].mxu1  ;;  %v5325_v8 = vpop.f32.mrb[123].mxu0 }
 0x1e9   :  { %v3468_v47 = vadd.f32 %v5211_v44, %v7467_v41  ;;  %v5214_v37 = vadd.f32 %v5213_v42, %v5212_v55  ;;  %v5326_v24 = vadd.f32 %v5325_v8, %v5324_v19  ;;  %v6341_v41 = vld [vmem:[%s8289_s0 + $0x158] ss:$72 sps:$4 sm:$0xff]  }
 0x1ea   :  { %4070 = vmatmul.mubr.bf16.gmra.mrb[228].mxu1 %v6335_v14  ;;  %4231 = vmatmul.mubr.bf16.gmra.mrb[228].mxu0 %v6336_v40 }
 0x1eb   :  { %v7811_v10 = vadd.f32 %v5323_v3, %v3468_v47  ;;  %v3471_v28 = vadd.f32 %v5214_v37, %v7475_v13  ;;  %4077 = vmatprep.mubr.bf16.mxu1 %v6337_v46  ;;  %4238 = vmatprep.mubr.bf16.mxu0 %v6339_v31  ;;  %v6348_v46 = vld [vmem:[%s8289_s0 + $0x1f0] ss:$72 sps:$4 sm:$0xff]   ;;  %v6349_v47 = vld [vmem:[%s8289_s0 + $0x27c] ss:$72 sps:$4 sm:$0xff]  }
 0x1ec   :  { %v6351_v37 = vld [vmem:[%s8289_s0 + $0x284] ss:$72 sps:$4 sm:$0xff]  }
 0x1ed   :  { %v7814_v60 = vadd.f32 %v5326_v24, %v3471_v28  ;;  %v5215_v2 = vpop.f32.mrb[124].mxu1  ;;  %v5327_v12 = vpop.f32.mrb[124].mxu0 }
 0x1ee   :  { %v5216_v15 = vpop.f32.mrb[125].mxu1  ;;  %v5328_v59 = vpop.f32.mrb[125].mxu0 }
 0x1ef   :  { %v5217_v48 = vadd.f32 %v5216_v15, %v5215_v2  ;;  %v5329_v21 = vadd.f32 %v5328_v59, %v5327_v12  ;;  %v5218_v30 = vpop.f32.mrb[126].mxu1  ;;  %v5330_v13 = vpop.f32.mrb[126].mxu0 }
 0x1f0   :  { %v5219_v63 = vpop.f32.mrb[127].mxu1  ;;  %v5331_v49 = vpop.f32.mrb[127].mxu0 }
 0x1f1   :  { %v3476_v54 = vadd.f32 %v5217_v48, %v7512_v62  ;;  %v5220_v34 = vadd.f32 %v5219_v63, %v5218_v30  ;;  %v5332_v51 = vadd.f32 %v5331_v49, %v5330_v13  ;;  %v6347_v62 = vld [vmem:[%s8289_s0 + $0x1e8] ss:$72 sps:$4 sm:$0xff]  }
 0x1f2   :  { %4078 = vmatmul.mubr.bf16.gmra.mrb[232].mxu1 %v6341_v41  ;;  %4239 = vmatmul.mubr.bf16.gmra.mrb[232].mxu0 %v6342_v32 }
 0x1f3   :  { %v7829_v33 = vadd.f32 %v5329_v21, %v3476_v54  ;;  %v3479_v14 = vadd.f32 %v5220_v34, %v7520_v6  ;;  %4085 = vmatprep.mubr.bf16.mxu1 %v6343_v18  ;;  %4246 = vmatprep.mubr.bf16.mxu0 %v6345_v23  ;;  %v6354_v18 = vld [vmem:[%s8289_s0 + $0x280] ss:$72 sps:$4 sm:$0xff]   ;;  %v6355_v54 = vld [vmem:[%s8289_s0 + $0x30c] ss:$72 sps:$4 sm:$0xff]  }
 0x1f4   :  { %v6357_v34 = vld [vmem:[%s8289_s0 + $0x314] ss:$72 sps:$4 sm:$0xff]  }
 0x1f5   :  { %v7832_v40 = vadd.f32 %v5332_v51, %v3479_v14  ;;  %v5221_v44 = vpop.f32.mrb[128].mxu1  ;;  %v5333_v3 = vpop.f32.mrb[128].mxu0 }
 0x1f6   :  { %v5222_v55 = vpop.f32.mrb[129].mxu1  ;;  %v5334_v19 = vpop.f32.mrb[129].mxu0 }
 0x1f7   :  { %v5223_v31 = vadd.f32 %v5222_v55, %v5221_v44  ;;  %v5335_v42 = vadd.f32 %v5334_v19, %v5333_v3  ;;  %v5224_v8 = vpop.f32.mrb[130].mxu1  ;;  %v5336_v6 = vpop.f32.mrb[130].mxu0 }
 0x1f8   :  { %v5225_v24 = vpop.f32.mrb[131].mxu1  ;;  %v5337_v28 = vpop.f32.mrb[131].mxu0 }
 0x1f9   :  { %v3484_v2 = vadd.f32 %v5223_v31, %v7553_v53  ;;  %v5226_v12 = vadd.f32 %v5225_v24, %v5224_v8  ;;  %v5338_v15 = vadd.f32 %v5337_v28, %v5336_v6  ;;  %v6353_v53 = vld [vmem:[%s8289_s0 + $0x278] ss:$72 sps:$4 sm:$0xff]  }
 0x1fa   :  { %4086 = vmatmul.mubr.bf16.gmra.mrb[236].mxu1 %v6347_v62  ;;  %4247 = vmatmul.mubr.bf16.gmra.mrb[236].mxu0 %v6348_v46 }
 0x1fb   :  { %v7847_v59 = vadd.f32 %v5335_v42, %v3484_v2  ;;  %v3487_v41 = vadd.f32 %v5226_v12, %v7562_v58  ;;  %4093 = vmatprep.mubr.bf16.mxu1 %v6349_v47  ;;  %4254 = vmatprep.mubr.bf16.mxu0 %v6351_v37  ;;  %v6360_v47 = vld [vmem:[%s8289_s0 + $0x310] ss:$72 sps:$4 sm:$0xff]   ;;  %v6361_v2 = vld [vmem:[%s8289_s0 + $0x39c] ss:$72 sps:$4 sm:$0xff]  }
 0x1fc   :  { %v6363_v12 = vld [vmem:[%s8289_s0 + $0x3a4] ss:$72 sps:$4 sm:$0xff]  }
 0x1fd   :  { %v7850_v32 = vadd.f32 %v5338_v15, %v3487_v41  ;;  %v5227_v48 = vpop.f32.mrb[132].mxu1  ;;  %v5339_v21 = vpop.f32.mrb[132].mxu0 }
 0x1fe   :  { %v5228_v30 = vpop.f32.mrb[133].mxu1  ;;  %v5340_v13 = vpop.f32.mrb[133].mxu0 }
 0x1ff   :  { %v5229_v23 = vadd.f32 %v5228_v30, %v5227_v48  ;;  %v5341_v63 = vadd.f32 %v5340_v13, %v5339_v21  ;;  %v5230_v49 = vpop.f32.mrb[134].mxu1  ;;  %v5342_v58 = vpop.f32.mrb[134].mxu0 }
 0x200   :  { %v5231_v51 = vpop.f32.mrb[135].mxu1  ;;  %v5343_v14 = vpop.f32.mrb[135].mxu0 }
 0x201   :  { %v3492_v44 = vadd.f32 %v5229_v23, %v7577_v29  ;;  %v5232_v3 = vadd.f32 %v5231_v51, %v5230_v49  ;;  %v5344_v55 = vadd.f32 %v5343_v14, %v5342_v58  ;;  %v6359_v29 = vld [vmem:[%s8289_s0 + $0x308] ss:$72 sps:$4 sm:$0xff]  }
 0x202   :  { %4094 = vmatmul.mubr.bf16.gmra.mrb[240].mxu1 %v6353_v53  ;;  %4255 = vmatmul.mubr.bf16.gmra.mrb[240].mxu0 %v6354_v18 }
 0x203   :  { %v7865_v19 = vadd.f32 %v5341_v63, %v3492_v44  ;;  %v3495_v62 = vadd.f32 %v5232_v3, %v7580_v36  ;;  %4101 = vmatprep.mubr.bf16.mxu1 %v6355_v54  ;;  %4262 = vmatprep.mubr.bf16.mxu0 %v6357_v34  ;;  %v6366_v54 = vld [vmem:[%s8289_s0 + $0x3a0] ss:$72 sps:$4 sm:$0xff]   ;;  %v6367_v44 = vld [vmem:[%s8289_s0 + $0x42c] ss:$72 sps:$4 sm:$0xff]  }
 0x204   :  { %v6369_v3 = vld [vmem:[%s8289_s0 + $0x434] ss:$72 sps:$4 sm:$0xff]  }
 0x205   :  { %v7868_v46 = vadd.f32 %v5344_v55, %v3495_v62  ;;  %v5233_v31 = vpop.f32.mrb[136].mxu1  ;;  %v5345_v42 = vpop.f32.mrb[136].mxu0 }
 0x206   :  { %v5234_v8 = vpop.f32.mrb[137].mxu1  ;;  %v5346_v6 = vpop.f32.mrb[137].mxu0 }
 0x207   :  { %v5235_v37 = vadd.f32 %v5234_v8, %v5233_v31  ;;  %v5347_v24 = vadd.f32 %v5346_v6, %v5345_v42  ;;  %v5236_v28 = vpop.f32.mrb[138].mxu1  ;;  %v5348_v36 = vpop.f32.mrb[138].mxu0 }
 0x208   :  { %v5237_v15 = vpop.f32.mrb[139].mxu1  ;;  %v5349_v41 = vpop.f32.mrb[139].mxu0 }
 0x209   :  { %v3500_v48 = vadd.f32 %v5235_v37, %v7595_v50  ;;  %v5238_v21 = vadd.f32 %v5237_v15, %v5236_v28  ;;  %v5350_v30 = vadd.f32 %v5349_v41, %v5348_v36  ;;  %v6365_v50 = vld [vmem:[%s8289_s0 + $0x398] ss:$72 sps:$4 sm:$0xff]  }
 0x20a   :  { %4102 = vmatmul.mubr.bf16.gmra.mrb[244].mxu1 %v6359_v29  ;;  %4263 = vmatmul.mubr.bf16.gmra.mrb[244].mxu0 %v6360_v47 }
 0x20b   :  { %v7883_v13 = vadd.f32 %v5347_v24, %v3500_v48  ;;  %v3503_v53 = vadd.f32 %v5238_v21, %v7598_v39  ;;  %4109 = vmatprep.mubr.bf16.mxu1 %v6361_v2  ;;  %4270 = vmatprep.mubr.bf16.mxu0 %v6363_v12  ;;  %v6372_v2 = vld [vmem:[%s8289_s0 + $0x430] ss:$72 sps:$4 sm:$0xff]   ;;  %v6375_v48 = vld [vmem:[%s8289_s0 + $0x4bc] ss:$72 sps:$4 sm:$0xff]  }
 0x20c   :  { %v6378_v21 = vld [vmem:[%s8289_s0 + $0x4c4] ss:$72 sps:$4 sm:$0xff]  }
 0x20d   :  { %v7886_v18 = vadd.f32 %v5350_v30, %v3503_v53  ;;  %v5239_v23 = vpop.f32.mrb[140].mxu1  ;;  %v5351_v63 = vpop.f32.mrb[140].mxu0 }
 0x20e   :  { %v5240_v49 = vpop.f32.mrb[141].mxu1  ;;  %v5352_v58 = vpop.f32.mrb[141].mxu0 }
 0x20f   :  { %v5241_v34 = vadd.f32 %v5240_v49, %v5239_v23  ;;  %v5353_v51 = vadd.f32 %v5352_v58, %v5351_v63  ;;  %v5242_v14 = vpop.f32.mrb[142].mxu1  ;;  %v5354_v39 = vpop.f32.mrb[142].mxu0 }
 0x210   :  { %v5243_v55 = vpop.f32.mrb[143].mxu1  ;;  %v5355_v62 = vpop.f32.mrb[143].mxu0 }
 0x211   :  { %v3508_v31 = vadd.f32 %v5241_v34, %v7613_v61  ;;  %v5244_v42 = vadd.f32 %v5243_v55, %v5242_v14  ;;  %v5356_v8 = vadd.f32 %v5355_v62, %v5354_v39  ;;  %v6371_v61 = vld [vmem:[%s8289_s0 + $0x428] ss:$72 sps:$4 sm:$0xff]  }
 0x212   :  { %4110 = vmatmul.mubr.bf16.gmra.mrb[248].mxu1 %v6365_v50  ;;  %4271 = vmatmul.mubr.bf16.gmra.mrb[248].mxu0 %v6366_v54 }
 0x213   :  { %v7901_v6 = vadd.f32 %v5353_v51, %v3508_v31  ;;  %v3511_v29 = vadd.f32 %v5244_v42, %v7616_v45  ;;  %4117 = vmatprep.mubr.bf16.mxu1 %v6367_v44  ;;  %4278 = vmatprep.mubr.bf16.mxu0 %v6369_v3  ;;  %v6376_v44 = vld [vmem:[%s8289_s0 + $0x4c0] ss:$72 sps:$4 sm:$0xff]   ;;  %v6381_v31 = vld [vmem:[%s8289_s0 + $0x54c] ss:$72 sps:$4 sm:$0xff]  }
 0x214   :  { %v6384_v42 = vld [vmem:[%s8289_s0 + $0x554] ss:$72 sps:$4 sm:$0xff]  }
 0x215   :  { %v7904_v47 = vadd.f32 %v5356_v8, %v3511_v29  ;;  %v5245_v37 = vpop.f32.mrb[144].mxu1  ;;  %v5357_v24 = vpop.f32.mrb[144].mxu0 }
 0x216   :  { %v5246_v28 = vpop.f32.mrb[145].mxu1  ;;  %v5358_v36 = vpop.f32.mrb[145].mxu0 }
 0x217   :  { %v5247_v12 = vadd.f32 %v5246_v28, %v5245_v37  ;;  %v5359_v15 = vadd.f32 %v5358_v36, %v5357_v24  ;;  %v5248_v41 = vpop.f32.mrb[146].mxu1  ;;  %v5360_v45 = vpop.f32.mrb[146].mxu0 }
 0x218   :  { %v5249_v30 = vpop.f32.mrb[147].mxu1  ;;  %v5361_v53 = vpop.f32.mrb[147].mxu0 }
 0x219   :  { %v3516_v23 = vadd.f32 %v5247_v12, %v7631_v9  ;;  %v5250_v63 = vadd.f32 %v5249_v30, %v5248_v41  ;;  %v5362_v49 = vadd.f32 %v5361_v53, %v5360_v45  ;;  %v6373_v9 = vld [vmem:[%s8289_s0 + $0x4b8] ss:$72 sps:$4 sm:$0xff]  }
 0x21a   :  { %4118 = vmatmul.mubr.bf16.gmra.mrb[252].mxu1 %v6371_v61  ;;  %4279 = vmatmul.mubr.bf16.gmra.mrb[252].mxu0 %v6372_v2 }
 0x21b   :  { %v7919_v58 = vadd.f32 %v5359_v15, %v3516_v23  ;;  %v3519_v50 = vadd.f32 %v5250_v63, %v7634_v17  ;;  %4125 = vmatprep.mubr.bf16.mxu1 %v6375_v48  ;;  %4286 = vmatprep.mubr.bf16.mxu0 %v6378_v21  ;;  %v6382_v48 = vld [vmem:[%s8289_s0 + $0x550] ss:$72 sps:$4 sm:$0xff]   ;;  %v6387_v23 = vld [vmem:[%s8289_s0 + $0x5dc] ss:$72 sps:$4 sm:$0xff]  }
 0x21c   :  { %v6390_v63 = vld [vmem:[%s8289_s0 + $0x5e4] ss:$72 sps:$4 sm:$0xff]  }
 0x21d   :  { %v7922_v54 = vadd.f32 %v5362_v49, %v3519_v50  ;;  %v5251_v34 = vpop.f32.mrb[148].mxu1  ;;  %v5363_v51 = vpop.f32.mrb[148].mxu0 }
 0x21e   :  { %v5252_v14 = vpop.f32.mrb[149].mxu1  ;;  %v5364_v39 = vpop.f32.mrb[149].mxu0 }
 0x21f   :  { %v5253_v3 = vadd.f32 %v5252_v14, %v5251_v34  ;;  %v5365_v55 = vadd.f32 %v5364_v39, %v5363_v51  ;;  %v5254_v62 = vpop.f32.mrb[150].mxu1  ;;  %v5366_v17 = vpop.f32.mrb[150].mxu0 }
 0x220   :  { %v5255_v8 = vpop.f32.mrb[151].mxu1  ;;  %v5367_v29 = vpop.f32.mrb[151].mxu0 }
 0x221   :  { %v3524_v37 = vadd.f32 %v5253_v3, %v7649_v4  ;;  %v5256_v24 = vadd.f32 %v5255_v8, %v5254_v62  ;;  %v5368_v28 = vadd.f32 %v5367_v29, %v5366_v17  ;;  %v6379_v4 = vld [vmem:[%s8289_s0 + $0x548] ss:$72 sps:$4 sm:$0xff]  }
 0x222   :  { %4126 = vmatmul.mubr.bf16.gmra.mrb[0].mxu1 %v6373_v9  ;;  %4287 = vmatmul.mubr.bf16.gmra.mrb[0].mxu0 %v6376_v44 }
 0x223   :  { %v7937_v36 = vadd.f32 %v5365_v55, %v3524_v37  ;;  %v3527_v61 = vadd.f32 %v5256_v24, %v7652_v5  ;;  %4133 = vmatprep.mubr.bf16.mxu1 %v6381_v31  ;;  %4294 = vmatprep.mubr.bf16.mxu0 %v6384_v42  ;;  %v6388_v31 = vld [vmem:[%s8289_s0 + $0x5e0] ss:$72 sps:$4 sm:$0xff]   ;;  %v6393_v37 = vld [vmem:[%s8289_s0 + $0x66c] ss:$72 sps:$4 sm:$0xff]  }
 0x224   :  { %v6396_v24 = vld [vmem:[%s8289_s0 + $0x674] ss:$72 sps:$4 sm:$0xff]  }
 0x225   :  { %v7940_v2 = vadd.f32 %v5368_v28, %v3527_v61  ;;  %v5257_v12 = vpop.f32.mrb[152].mxu1  ;;  %v5369_v15 = vpop.f32.mrb[152].mxu0 }
 0x226   :  { %v5258_v41 = vpop.f32.mrb[153].mxu1  ;;  %v5370_v45 = vpop.f32.mrb[153].mxu0 }
 0x227   :  { %v5259_v21 = vadd.f32 %v5258_v41, %v5257_v12  ;;  %v5371_v30 = vadd.f32 %v5370_v45, %v5369_v15  ;;  %v5260_v53 = vpop.f32.mrb[154].mxu1  ;;  %v5372_v5 = vpop.f32.mrb[154].mxu0 }
 0x228   :  { %v5261_v49 = vpop.f32.mrb[155].mxu1  ;;  %v5373_v50 = vpop.f32.mrb[155].mxu0 }
 0x229   :  { %v3532_v34 = vadd.f32 %v5259_v21, %v7667_v22  ;;  %v5262_v51 = vadd.f32 %v5261_v49, %v5260_v53  ;;  %v5374_v14 = vadd.f32 %v5373_v50, %v5372_v5  ;;  %v6385_v22 = vld [vmem:[%s8289_s0 + $0x5d8] ss:$72 sps:$4 sm:$0xff]  }
 0x22a   :  { %4134 = vmatmul.mubr.bf16.gmra.mrb[4].mxu1 %v6379_v4  ;;  %4295 = vmatmul.mubr.bf16.gmra.mrb[4].mxu0 %v6382_v48 }
 0x22b   :  { %v7955_v39 = vadd.f32 %v5371_v30, %v3532_v34  ;;  %v3535_v9 = vadd.f32 %v5262_v51, %v7670_v26  ;;  %4141 = vmatprep.mubr.bf16.mxu1 %v6387_v23  ;;  %4302 = vmatprep.mubr.bf16.mxu0 %v6390_v63  ;;  %v6394_v23 = vld [vmem:[%s8289_s0 + $0x670] ss:$72 sps:$4 sm:$0xff]   ;;  %v6399_v34 = vld [vmem:[%s8289_s0 + $0x6fc] ss:$72 sps:$4 sm:$0xff]  }
 0x22c   :  { %v6402_v51 = vld [vmem:[%s8289_s0 + $0x704] ss:$72 sps:$4 sm:$0xff]  }
 0x22d   :  { %v7958_v44 = vadd.f32 %v5374_v14, %v3535_v9  ;;  %v5263_v3 = vpop.f32.mrb[156].mxu1  ;;  %v5375_v55 = vpop.f32.mrb[156].mxu0 }
 0x22e   :  { %v5264_v62 = vpop.f32.mrb[157].mxu1  ;;  %v5376_v17 = vpop.f32.mrb[157].mxu0 }
 0x22f   :  { %v5265_v42 = vadd.f32 %v5264_v62, %v5263_v3  ;;  %v5377_v8 = vadd.f32 %v5376_v17, %v5375_v55  ;;  %v5266_v29 = vpop.f32.mrb[158].mxu1  ;;  %v5378_v26 = vpop.f32.mrb[158].mxu0 }
 0x230   :  { %v5267_v28 = vpop.f32.mrb[159].mxu1  ;;  %v5379_v61 = vpop.f32.mrb[159].mxu0 }
 0x231   :  { %v3540_v12 = vadd.f32 %v5265_v42, %v7685_v43  ;;  %v5268_v15 = vadd.f32 %v5267_v28, %v5266_v29  ;;  %v5380_v41 = vadd.f32 %v5379_v61, %v5378_v26  ;;  %v6391_v43 = vld [vmem:[%s8289_s0 + $0x668] ss:$72 sps:$4 sm:$0xff]  }
 0x232   :  { %4142 = vmatmul.mubr.bf16.gmra.mrb[8].mxu1 %v6385_v22  ;;  %4303 = vmatmul.mubr.bf16.gmra.mrb[8].mxu0 %v6388_v31 }
 0x233   :  { %v7973_v45 = vadd.f32 %v5377_v8, %v3540_v12  ;;  %v3543_v4 = vadd.f32 %v5268_v15, %v7688_v11  ;;  %4149 = vmatprep.mubr.bf16.mxu1 %v6393_v37  ;;  %4310 = vmatprep.mubr.bf16.mxu0 %v6396_v24  ;;  %v6400_v37 = vld [vmem:[%s8289_s0 + $0x700] ss:$72 sps:$4 sm:$0xff]   ;;  %v6405_v12 = vld [vmem:[%s8289_s0 + $0x78c] ss:$72 sps:$4 sm:$0xff]  }
 0x234   :  { %v6408_v15 = vld [vmem:[%s8289_s0 + $0x794] ss:$72 sps:$4 sm:$0xff]  }
 0x235   :  { %v7976_v48 = vadd.f32 %v5380_v41, %v3543_v4  ;;  %v5397_v21 = vpop.f32.mrb[160].mxu1  ;;  %v5509_v30 = vpop.f32.mrb[160].mxu0 }
 0x236   :  { %v5398_v53 = vpop.f32.mrb[161].mxu1  ;;  %v5510_v5 = vpop.f32.mrb[161].mxu0 }
 0x237   :  { %v5399_v63 = vadd.f32 %v5398_v53, %v5397_v21  ;;  %v5511_v49 = vadd.f32 %v5510_v5, %v5509_v30  ;;  %v5400_v50 = vpop.f32.mrb[162].mxu1  ;;  %v5512_v11 = vpop.f32.mrb[162].mxu0 }
 0x238   :  { %v5401_v14 = vpop.f32.mrb[163].mxu1  ;;  %v5513_v9 = vpop.f32.mrb[163].mxu0 }
 0x239   :  { %v3742_v3 = vadd.f32 %v5399_v63, %v7703_v0  ;;  %v5402_v55 = vadd.f32 %v5401_v14, %v5400_v50  ;;  %v5514_v62 = vadd.f32 %v5513_v9, %v5512_v11  ;;  %v6397_v0 = vld [vmem:[%s8289_s0 + $0x6f8] ss:$72 sps:$4 sm:$0xff]  }
 0x23a   :  { %4150 = vmatmul.mubr.bf16.gmra.mrb[12].mxu1 %v6391_v43  ;;  %4311 = vmatmul.mubr.bf16.gmra.mrb[12].mxu0 %v6394_v23 }
 0x23b   :  { %v7991_v17 = vadd.f32 %v5511_v49, %v3742_v3  ;;  %v3745_v22 = vadd.f32 %v5402_v55, %v7706_v38  ;;  %4157 = vmatprep.mubr.bf16.mxu1 %v6399_v34  ;;  %4318 = vmatprep.mubr.bf16.mxu0 %v6402_v51  ;;  %v6406_v34 = vld [vmem:[%s8289_s0 + $0x790] ss:$72 sps:$4 sm:$0xff]   ;;  %v6411_v3 = vld [vmem:[%s8289_s0 + $0x81c] ss:$72 sps:$4 sm:$0xff]  }
 0x23c   :  { %v6414_v55 = vld [vmem:[%s8289_s0 + $0x824] ss:$72 sps:$4 sm:$0xff]  }
 0x23d   :  { %v7994_v31 = vadd.f32 %v5514_v62, %v3745_v22  ;;  %v5403_v42 = vpop.f32.mrb[164].mxu1  ;;  %v5515_v8 = vpop.f32.mrb[164].mxu0 }
 0x23e   :  { %v5404_v29 = vpop.f32.mrb[165].mxu1  ;;  %v5516_v26 = vpop.f32.mrb[165].mxu0 }
 0x23f   :  { %v5405_v24 = vadd.f32 %v5404_v29, %v5403_v42  ;;  %v5517_v28 = vadd.f32 %v5516_v26, %v5515_v8  ;;  %v5406_v61 = vpop.f32.mrb[166].mxu1  ;;  %v5518_v38 = vpop.f32.mrb[166].mxu0 }
 0x240   :  { %v5407_v41 = vpop.f32.mrb[167].mxu1  ;;  %v5519_v4 = vpop.f32.mrb[167].mxu0 }
 0x241   :  { %v3750_v21 = vadd.f32 %v5405_v24, %v7721_v25  ;;  %v5408_v30 = vadd.f32 %v5407_v41, %v5406_v61  ;;  %v5520_v53 = vadd.f32 %v5519_v4, %v5518_v38  ;;  %v6403_v25 = vld [vmem:[%s8289_s0 + $0x788] ss:$72 sps:$4 sm:$0xff]  }
 0x242   :  { %4158 = vmatmul.mubr.bf16.gmra.mrb[16].mxu1 %v6397_v0  ;;  %4319 = vmatmul.mubr.bf16.gmra.mrb[16].mxu0 %v6400_v37 }
 0x243   :  { %v8009_v5 = vadd.f32 %v5517_v28, %v3750_v21  ;;  %v3753_v43 = vadd.f32 %v5408_v30, %v7724_v7  ;;  %4165 = vmatprep.mubr.bf16.mxu1 %v6405_v12  ;;  %4326 = vmatprep.mubr.bf16.mxu0 %v6408_v15  ;;  %v6412_v12 = vld [vmem:[%s8289_s0 + $0x820] ss:$72 sps:$4 sm:$0xff]   ;;  %v6417_v21 = vld [vmem:[%s8289_s0 + $0x8ac] ss:$72 sps:$4 sm:$0xff]  }
 0x244   :  { %v6420_v30 = vld [vmem:[%s8289_s0 + $0x8b4] ss:$72 sps:$4 sm:$0xff]  }
 0x245   :  { %v8012_v23 = vadd.f32 %v5520_v53, %v3753_v43  ;;  %v5409_v63 = vpop.f32.mrb[168].mxu1  ;;  %v5521_v49 = vpop.f32.mrb[168].mxu0 }
 0x246   :  { %v5410_v50 = vpop.f32.mrb[169].mxu1  ;;  %v5522_v11 = vpop.f32.mrb[169].mxu0 }
 0x247   :  { %v5411_v51 = vadd.f32 %v5410_v50, %v5409_v63  ;;  %v5523_v14 = vadd.f32 %v5522_v11, %v5521_v49  ;;  %v5412_v9 = vpop.f32.mrb[170].mxu1  ;;  %v5524_v7 = vpop.f32.mrb[170].mxu0 }
 0x248   :  { %v5413_v62 = vpop.f32.mrb[171].mxu1  ;;  %v5525_v22 = vpop.f32.mrb[171].mxu0 }
 0x249   :  { %v3758_v42 = vadd.f32 %v5411_v51, %v7739_v52  ;;  %v5414_v8 = vadd.f32 %v5413_v62, %v5412_v9  ;;  %v5526_v29 = vadd.f32 %v5525_v22, %v5524_v7  ;;  %v6409_v52 = vld [vmem:[%s8289_s0 + $0x818] ss:$72 sps:$4 sm:$0xff]  }
 0x24a   :  { %4166 = vmatmul.mubr.bf16.gmra.mrb[20].mxu1 %v6403_v25  ;;  %4327 = vmatmul.mubr.bf16.gmra.mrb[20].mxu0 %v6406_v34 }
 0x24b   :  { %v8027_v26 = vadd.f32 %v5523_v14, %v3758_v42  ;;  %v3761_v0 = vadd.f32 %v5414_v8, %v7742_v1  ;;  %4173 = vmatprep.mubr.bf16.mxu1 %v6411_v3  ;;  %4334 = vmatprep.mubr.bf16.mxu0 %v6414_v55  ;;  %v6418_v3 = vld [vmem:[%s8289_s0 + $0x8b0] ss:$72 sps:$4 sm:$0xff]  }
 0x24d   :  { %v8030_v37 = vadd.f32 %v5526_v29, %v3761_v0  ;;  %v5415_v24 = vpop.f32.mrb[172].mxu1  ;;  %v5527_v28 = vpop.f32.mrb[172].mxu0 }
 0x24e   :  { %v5416_v61 = vpop.f32.mrb[173].mxu1  ;;  %v5528_v38 = vpop.f32.mrb[173].mxu0 }
 0x24f   :  { %v5417_v15 = vadd.f32 %v5416_v61, %v5415_v24  ;;  %v5529_v41 = vadd.f32 %v5528_v38, %v5527_v28  ;;  %v5418_v4 = vpop.f32.mrb[174].mxu1  ;;  %v5530_v1 = vpop.f32.mrb[174].mxu0 }
 0x250   :  { %v5419_v53 = vpop.f32.mrb[175].mxu1  ;;  %v5531_v43 = vpop.f32.mrb[175].mxu0 }
 0x251   :  { %v3766_v63 = vadd.f32 %v5417_v15, %v7757_v16  ;;  %v5420_v49 = vadd.f32 %v5419_v53, %v5418_v4  ;;  %v5532_v50 = vadd.f32 %v5531_v43, %v5530_v1  ;;  %v6415_v16 = vld [vmem:[%s8289_s0 + $0x8a8] ss:$72 sps:$4 sm:$0xff]  }
 0x252   :  { %4174 = vmatmul.mubr.bf16.gmra.mrb[24].mxu1 %v6409_v52  ;;  %4335 = vmatmul.mubr.bf16.gmra.mrb[24].mxu0 %v6412_v12 }
 0x253   :  { %v8045_v11 = vadd.f32 %v5529_v41, %v3766_v63  ;;  %v3769_v25 = vadd.f32 %v5420_v49, %v7760_v20  ;;  %4181 = vmatprep.mubr.bf16.mxu1 %v6417_v21  ;;  %4342 = vmatprep.mubr.bf16.mxu0 %v6420_v30 }
 0x255   :  { %v8048_v34 = vadd.f32 %v5532_v50, %v3769_v25  ;;  %v5421_v51 = vpop.f32.mrb[176].mxu1  ;;  %v5533_v14 = vpop.f32.mrb[176].mxu0 }
 0x256   :  { %v5422_v9 = vpop.f32.mrb[177].mxu1  ;;  %v5534_v7 = vpop.f32.mrb[177].mxu0 }
 0x257   :  { %v5423_v55 = vadd.f32 %v5422_v9, %v5421_v51  ;;  %v5535_v62 = vadd.f32 %v5534_v7, %v5533_v14  ;;  %v5424_v22 = vpop.f32.mrb[178].mxu1  ;;  %v5536_v20 = vpop.f32.mrb[178].mxu0 }
 0x258   :  { %v5425_v42 = vpop.f32.mrb[179].mxu1  ;;  %v5537_v8 = vpop.f32.mrb[179].mxu0 }
 0x259   :  { %v3774_v29 = vadd.f32 %v5423_v55, %v7775_v57  ;;  %v5426_v0 = vadd.f32 %v5425_v42, %v5424_v22  ;;  %v5538_v24 = vadd.f32 %v5537_v8, %v5536_v20 }
 0x25a   :  { %4182 = vmatmul.mubr.bf16.gmra.mrb[28].mxu1 %v6415_v16  ;;  %4343 = vmatmul.mubr.bf16.gmra.mrb[28].mxu0 %v6418_v3 }
 0x25b   :  { %v8057_v28 = vadd.f32 %v5535_v62, %v3774_v29  ;;  %v3777_v61 = vadd.f32 %v5426_v0, %v7778_v56 }
 0x25d   :  { %v8060_v38 = vadd.f32 %v5538_v24, %v3777_v61  ;;  %v5427_v52 = vpop.f32.mrb[180].mxu1  ;;  %v5539_v12 = vpop.f32.mrb[180].mxu0 }
 0x25e   :  { %v5428_v15 = vpop.f32.mrb[181].mxu1  ;;  %v5540_v41 = vpop.f32.mrb[181].mxu0 }
 0x25f   :  { %v5429_v4 = vadd.f32 %v5428_v15, %v5427_v52  ;;  %v5541_v1 = vadd.f32 %v5540_v41, %v5539_v12  ;;  %v5430_v21 = vpop.f32.mrb[182].mxu1  ;;  %v5542_v30 = vpop.f32.mrb[182].mxu0 }
 0x260   :  { %v5431_v53 = vpop.f32.mrb[183].mxu1  ;;  %v5543_v57 = vpop.f32.mrb[183].mxu0 }
 0x261   :  { %v3782_v43 = vadd.f32 %v5429_v4, %v7793_v35  ;;  %v5432_v63 = vadd.f32 %v5431_v53, %v5430_v21  ;;  %v5544_v49 = vadd.f32 %v5543_v57, %v5542_v30 }
 0x263   :  { %v8063_v50 = vadd.f32 %v5541_v1, %v3782_v43  ;;  %v3785_v56 = vadd.f32 %v5432_v63, %v7796_v27 }
 0x265   :  { %v8066_v25 = vadd.f32 %v5544_v49, %v3785_v56  ;;  %v5433_v51 = vpop.f32.mrb[184].mxu1  ;;  %v5545_v14 = vpop.f32.mrb[184].mxu0 }
 0x266   :  { %v5434_v9 = vpop.f32.mrb[185].mxu1  ;;  %v5546_v7 = vpop.f32.mrb[185].mxu0 }
 0x267   :  { %v5435_v16 = vadd.f32 %v5434_v9, %v5433_v51  ;;  %v5547_v3 = vadd.f32 %v5546_v7, %v5545_v14  ;;  %v5436_v55 = vpop.f32.mrb[186].mxu1  ;;  %v5548_v62 = vpop.f32.mrb[186].mxu0 }
 0x268   :  { %v5437_v22 = vpop.f32.mrb[187].mxu1  ;;  %v5549_v20 = vpop.f32.mrb[187].mxu0 }
 0x269   :  { %v3790_v35 = vadd.f32 %v5435_v16, %v7811_v10  ;;  %v5438_v42 = vadd.f32 %v5437_v22, %v5436_v55  ;;  %v5550_v8 = vadd.f32 %v5549_v20, %v5548_v62 }
 0x26b   :  { %v8069_v29 = vadd.f32 %v5547_v3, %v3790_v35  ;;  %v3793_v27 = vadd.f32 %v5438_v42, %v7814_v60 }
 0x26d   :  { %v8072_v0 = vadd.f32 %v5550_v8, %v3793_v27  ;;  %v5439_v24 = vpop.f32.mrb[188].mxu1  ;;  %v5551_v61 = vpop.f32.mrb[188].mxu0 }
 0x26e   :  { %v5440_v52 = vpop.f32.mrb[189].mxu1  ;;  %v5552_v12 = vpop.f32.mrb[189].mxu0 }
 0x26f   :  { %v5441_v15 = vadd.f32 %v5440_v52, %v5439_v24  ;;  %v5553_v41 = vadd.f32 %v5552_v12, %v5551_v61  ;;  %v5442_v4 = vpop.f32.mrb[190].mxu1  ;;  %v5554_v1 = vpop.f32.mrb[190].mxu0 }
 0x270   :  { %v5443_v21 = vpop.f32.mrb[191].mxu1  ;;  %v5555_v30 = vpop.f32.mrb[191].mxu0 }
 0x271   :  { %v3798_v10 = vadd.f32 %v5441_v15, %v7829_v33  ;;  %v5444_v53 = vadd.f32 %v5443_v21, %v5442_v4  ;;  %v5556_v57 = vadd.f32 %v5555_v30, %v5554_v1 }
 0x273   :  { %v8075_v43 = vadd.f32 %v5553_v41, %v3798_v10  ;;  %v3801_v60 = vadd.f32 %v5444_v53, %v7832_v40 }
 0x275   :  { %v8078_v63 = vadd.f32 %v5556_v57, %v3801_v60  ;;  %v5445_v49 = vpop.f32.mrb[192].mxu1  ;;  %v5557_v56 = vpop.f32.mrb[192].mxu0 }
 0x276   :  { %v5446_v51 = vpop.f32.mrb[193].mxu1  ;;  %v5558_v14 = vpop.f32.mrb[193].mxu0 }
 0x277   :  { %v5447_v9 = vadd.f32 %v5446_v51, %v5445_v49  ;;  %v5559_v7 = vadd.f32 %v5558_v14, %v5557_v56  ;;  %v5448_v16 = vpop.f32.mrb[194].mxu1  ;;  %v5560_v3 = vpop.f32.mrb[194].mxu0 }
 0x278   :  { %v5449_v55 = vpop.f32.mrb[195].mxu1  ;;  %v5561_v62 = vpop.f32.mrb[195].mxu0 }
 0x279   :  { %v3806_v33 = vadd.f32 %v5447_v9, %v7847_v59  ;;  %v5450_v22 = vadd.f32 %v5449_v55, %v5448_v16  ;;  %v5562_v20 = vadd.f32 %v5561_v62, %v5560_v3 }
 0x27b   :  { %v8081_v35 = vadd.f32 %v5559_v7, %v3806_v33  ;;  %v3809_v40 = vadd.f32 %v5450_v22, %v7850_v32 }
 0x27d   :  { %v8084_v42 = vadd.f32 %v5562_v20, %v3809_v40  ;;  %v5451_v8 = vpop.f32.mrb[196].mxu1  ;;  %v5563_v27 = vpop.f32.mrb[196].mxu0 }
 0x27e   :  { %v5452_v24 = vpop.f32.mrb[197].mxu1  ;;  %v5564_v61 = vpop.f32.mrb[197].mxu0 }
 0x27f   :  { %v5453_v52 = vadd.f32 %v5452_v24, %v5451_v8  ;;  %v5565_v12 = vadd.f32 %v5564_v61, %v5563_v27  ;;  %v5454_v15 = vpop.f32.mrb[198].mxu1  ;;  %v5566_v41 = vpop.f32.mrb[198].mxu0 }
 0x280   :  { %v5455_v4 = vpop.f32.mrb[199].mxu1  ;;  %v5567_v1 = vpop.f32.mrb[199].mxu0 }
 0x281   :  { %v3814_v59 = vadd.f32 %v5453_v52, %v7865_v19  ;;  %v5456_v21 = vadd.f32 %v5455_v4, %v5454_v15  ;;  %v5568_v30 = vadd.f32 %v5567_v1, %v5566_v41 }
 0x283   :  { %v8087_v10 = vadd.f32 %v5565_v12, %v3814_v59  ;;  %v3817_v32 = vadd.f32 %v5456_v21, %v7868_v46 }
 0x285   :  { %v8090_v53 = vadd.f32 %v5568_v30, %v3817_v32  ;;  %v5457_v57 = vpop.f32.mrb[200].mxu1  ;;  %v5569_v60 = vpop.f32.mrb[200].mxu0 }
 0x286   :  { %v5458_v49 = vpop.f32.mrb[201].mxu1  ;;  %v5570_v56 = vpop.f32.mrb[201].mxu0 }
 0x287   :  { %v5459_v51 = vadd.f32 %v5458_v49, %v5457_v57  ;;  %v5571_v14 = vadd.f32 %v5570_v56, %v5569_v60  ;;  %v5460_v9 = vpop.f32.mrb[202].mxu1  ;;  %v5572_v7 = vpop.f32.mrb[202].mxu0 }
 0x288   :  { %v5461_v16 = vpop.f32.mrb[203].mxu1  ;;  %v5573_v3 = vpop.f32.mrb[203].mxu0 }
 0x289   :  { %v3822_v19 = vadd.f32 %v5459_v51, %v7883_v13  ;;  %v5462_v55 = vadd.f32 %v5461_v16, %v5460_v9  ;;  %v5574_v62 = vadd.f32 %v5573_v3, %v5572_v7 }
 0x28b   :  { %v8093_v33 = vadd.f32 %v5571_v14, %v3822_v19  ;;  %v3825_v46 = vadd.f32 %v5462_v55, %v7886_v18 }
 0x28d   :  { %v8096_v22 = vadd.f32 %v5574_v62, %v3825_v46  ;;  %v5463_v20 = vpop.f32.mrb[204].mxu1  ;;  %v5575_v40 = vpop.f32.mrb[204].mxu0 }
 0x28e   :  { %v5464_v8 = vpop.f32.mrb[205].mxu1  ;;  %v5576_v27 = vpop.f32.mrb[205].mxu0 }
 0x28f   :  { %v5465_v24 = vadd.f32 %v5464_v8, %v5463_v20  ;;  %v5577_v61 = vadd.f32 %v5576_v27, %v5575_v40  ;;  %v5466_v52 = vpop.f32.mrb[206].mxu1  ;;  %v5578_v12 = vpop.f32.mrb[206].mxu0 }
 0x290   :  { %v5467_v15 = vpop.f32.mrb[207].mxu1  ;;  %v5579_v41 = vpop.f32.mrb[207].mxu0 }
 0x291   :  { %v3830_v13 = vadd.f32 %v5465_v24, %v7901_v6  ;;  %v5468_v4 = vadd.f32 %v5467_v15, %v5466_v52  ;;  %v5580_v1 = vadd.f32 %v5579_v41, %v5578_v12 }
 0x293   :  { %v8099_v59 = vadd.f32 %v5577_v61, %v3830_v13  ;;  %v3833_v18 = vadd.f32 %v5468_v4, %v7904_v47 }
 0x295   :  { %v8102_v21 = vadd.f32 %v5580_v1, %v3833_v18  ;;  %v5469_v30 = vpop.f32.mrb[208].mxu1  ;;  %v5581_v32 = vpop.f32.mrb[208].mxu0 }
 0x296   :  { %v5470_v57 = vpop.f32.mrb[209].mxu1  ;;  %v5582_v60 = vpop.f32.mrb[209].mxu0 }
 0x297   :  { %v5471_v49 = vadd.f32 %v5470_v57, %v5469_v30  ;;  %v5583_v56 = vadd.f32 %v5582_v60, %v5581_v32  ;;  %v5472_v51 = vpop.f32.mrb[210].mxu1  ;;  %v5584_v14 = vpop.f32.mrb[210].mxu0 }
 0x298   :  { %v5473_v9 = vpop.f32.mrb[211].mxu1  ;;  %v5585_v7 = vpop.f32.mrb[211].mxu0 }
 0x299   :  { %v3838_v6 = vadd.f32 %v5471_v49, %v7919_v58  ;;  %v5474_v16 = vadd.f32 %v5473_v9, %v5472_v51  ;;  %v5586_v3 = vadd.f32 %v5585_v7, %v5584_v14 }
 0x29b   :  { %v8105_v19 = vadd.f32 %v5583_v56, %v3838_v6  ;;  %v3841_v47 = vadd.f32 %v5474_v16, %v7922_v54 }
 0x29d   :  { %v8108_v55 = vadd.f32 %v5586_v3, %v3841_v47  ;;  %v5475_v62 = vpop.f32.mrb[212].mxu1  ;;  %v5587_v46 = vpop.f32.mrb[212].mxu0 }
 0x29e   :  { %v5476_v20 = vpop.f32.mrb[213].mxu1  ;;  %v5588_v40 = vpop.f32.mrb[213].mxu0 }
 0x29f   :  { %v5477_v8 = vadd.f32 %v5476_v20, %v5475_v62  ;;  %v5589_v27 = vadd.f32 %v5588_v40, %v5587_v46  ;;  %v5478_v24 = vpop.f32.mrb[214].mxu1  ;;  %v5590_v61 = vpop.f32.mrb[214].mxu0 }
 0x2a0   :  { %v5479_v52 = vpop.f32.mrb[215].mxu1  ;;  %v5591_v12 = vpop.f32.mrb[215].mxu0 }
 0x2a1   :  { %v3846_v58 = vadd.f32 %v5477_v8, %v7937_v36  ;;  %v5480_v15 = vadd.f32 %v5479_v52, %v5478_v24  ;;  %v5592_v41 = vadd.f32 %v5591_v12, %v5590_v61 }
 0x2a3   :  { %v8111_v13 = vadd.f32 %v5589_v27, %v3846_v58  ;;  %v3849_v54 = vadd.f32 %v5480_v15, %v7940_v2 }
 0x2a5   :  { %v8114_v4 = vadd.f32 %v5592_v41, %v3849_v54  ;;  %v5481_v1 = vpop.f32.mrb[216].mxu1  ;;  %v5593_v18 = vpop.f32.mrb[216].mxu0 }
 0x2a6   :  { %v5482_v30 = vpop.f32.mrb[217].mxu1  ;;  %v5594_v32 = vpop.f32.mrb[217].mxu0 }
 0x2a7   :  { %v5483_v57 = vadd.f32 %v5482_v30, %v5481_v1  ;;  %v5595_v60 = vadd.f32 %v5594_v32, %v5593_v18  ;;  %v5484_v49 = vpop.f32.mrb[218].mxu1  ;;  %v5596_v56 = vpop.f32.mrb[218].mxu0 }
 0x2a8   :  { %v5485_v51 = vpop.f32.mrb[219].mxu1  ;;  %v5597_v14 = vpop.f32.mrb[219].mxu0 }
 0x2a9   :  { %v3854_v36 = vadd.f32 %v5483_v57, %v7955_v39  ;;  %v5486_v9 = vadd.f32 %v5485_v51, %v5484_v49  ;;  %v5598_v7 = vadd.f32 %v5597_v14, %v5596_v56 }
 0x2ab   :  { %v8117_v6 = vadd.f32 %v5595_v60, %v3854_v36  ;;  %v3857_v2 = vadd.f32 %v5486_v9, %v7958_v44 }
 0x2ad   :  { %v8120_v16 = vadd.f32 %v5598_v7, %v3857_v2  ;;  %v5487_v3 = vpop.f32.mrb[220].mxu1  ;;  %v5599_v47 = vpop.f32.mrb[220].mxu0 }
 0x2ae   :  { %v5488_v62 = vpop.f32.mrb[221].mxu1  ;;  %v5600_v46 = vpop.f32.mrb[221].mxu0 }
 0x2af   :  { %v5489_v20 = vadd.f32 %v5488_v62, %v5487_v3  ;;  %v5601_v40 = vadd.f32 %v5600_v46, %v5599_v47  ;;  %v5490_v8 = vpop.f32.mrb[222].mxu1  ;;  %v5602_v27 = vpop.f32.mrb[222].mxu0 }
 0x2b0   :  { %v5491_v24 = vpop.f32.mrb[223].mxu1  ;;  %v5603_v61 = vpop.f32.mrb[223].mxu0 }
 0x2b1   :  { %v3862_v39 = vadd.f32 %v5489_v20, %v7973_v45  ;;  %v5492_v52 = vadd.f32 %v5491_v24, %v5490_v8  ;;  %v5604_v12 = vadd.f32 %v5603_v61, %v5602_v27 }
 0x2b3   :  { %v8123_v58 = vadd.f32 %v5601_v40, %v3862_v39  ;;  %v3865_v44 = vadd.f32 %v5492_v52, %v7976_v48 }
 0x2b5   :  { %v8126_v15 = vadd.f32 %v5604_v12, %v3865_v44  ;;  %v5621_v41 = vpop.f32.mrb[224].mxu1  ;;  %v5733_v54 = vpop.f32.mrb[224].mxu0 }
 0x2b6   :  { %v5622_v1 = vpop.f32.mrb[225].mxu1  ;;  %v5734_v18 = vpop.f32.mrb[225].mxu0 }
 0x2b7   :  { %v5623_v30 = vadd.f32 %v5622_v1, %v5621_v41  ;;  %v5735_v32 = vadd.f32 %v5734_v18, %v5733_v54  ;;  %v5624_v57 = vpop.f32.mrb[226].mxu1  ;;  %v5736_v60 = vpop.f32.mrb[226].mxu0 }
 0x2b8   :  { %v5625_v49 = vpop.f32.mrb[227].mxu1  ;;  %v5737_v56 = vpop.f32.mrb[227].mxu0 }
 0x2b9   :  { %v4064_v45 = vadd.f32 %v5623_v30, %v7991_v17  ;;  %v5626_v51 = vadd.f32 %v5625_v49, %v5624_v57  ;;  %v5738_v14 = vadd.f32 %v5737_v56, %v5736_v60 }
 0x2bb   :  { %v4225_v36 = vadd.f32 %v5735_v32, %v4064_v45  ;;  %v4067_v48 = vadd.f32 %v5626_v51, %v7994_v31 }
 0x2bd   :  { %4352 = vst.msk [vmem:[%s8291_s3] sm:$0xff] %vm4351_vm0, %v4225_v36  ;;  %v4228_v9 = vadd.f32 %v5738_v14, %v4067_v48  ;;  %v5627_v7 = vpop.f32.mrb[228].mxu1  ;;  %v5739_v2 = vpop.f32.mrb[228].mxu0 }
 0x2be   :  { %v5628_v3 = vpop.f32.mrb[229].mxu1  ;;  %v5740_v47 = vpop.f32.mrb[229].mxu0 }
 0x2bf   :  { %4353 = vst.msk [vmem:[%s8291_s3 + $0x8] sm:$0xff] %vm4351_vm0, %v4228_v9  ;;  %v5629_v17 = vadd.f32 %v5628_v3, %v5627_v7  ;;  %v5741_v62 = vadd.f32 %v5740_v47, %v5739_v2  ;;  %v5630_v46 = vpop.f32.mrb[230].mxu1  ;;  %v5742_v20 = vpop.f32.mrb[230].mxu0 }
 0x2c0   :  { %v5631_v31 = vpop.f32.mrb[231].mxu1  ;;  %v5743_v40 = vpop.f32.mrb[231].mxu0 }
 0x2c1   :  { %v4072_v8 = vadd.f32 %v5629_v17, %v8009_v5  ;;  %v5632_v27 = vadd.f32 %v5631_v31, %v5630_v46  ;;  %v5744_v24 = vadd.f32 %v5743_v40, %v5742_v20 }
 0x2c3   :  { %v4233_v61 = vadd.f32 %v5741_v62, %v4072_v8  ;;  %v4075_v39 = vadd.f32 %v5632_v27, %v8012_v23 }
 0x2c5   :  { %4354 = vst.msk [vmem:[%s8291_s3 + $0x10] sm:$0xff] %vm4351_vm0, %v4233_v61  ;;  %v4236_v52 = vadd.f32 %v5744_v24, %v4075_v39  ;;  %v5633_v12 = vpop.f32.mrb[232].mxu1  ;;  %v5745_v44 = vpop.f32.mrb[232].mxu0 }
 0x2c6   :  { %v5634_v41 = vpop.f32.mrb[233].mxu1  ;;  %v5746_v54 = vpop.f32.mrb[233].mxu0 }
 0x2c7   :  { %4355 = vst.msk [vmem:[%s8291_s3 + $0x18] sm:$0xff] %vm4351_vm0, %v4236_v52  ;;  %v5635_v5 = vadd.f32 %v5634_v41, %v5633_v12  ;;  %v5747_v1 = vadd.f32 %v5746_v54, %v5745_v44  ;;  %v5636_v18 = vpop.f32.mrb[234].mxu1  ;;  %v5748_v30 = vpop.f32.mrb[234].mxu0 }
 0x2c8   :  { %v5637_v23 = vpop.f32.mrb[235].mxu1  ;;  %v5749_v32 = vpop.f32.mrb[235].mxu0 }
 0x2c9   :  { %v4080_v57 = vadd.f32 %v5635_v5, %v8027_v26  ;;  %v5638_v60 = vadd.f32 %v5637_v23, %v5636_v18  ;;  %v5750_v49 = vadd.f32 %v5749_v32, %v5748_v30 }
 0x2cb   :  { %v4241_v56 = vadd.f32 %v5747_v1, %v4080_v57  ;;  %v4083_v45 = vadd.f32 %v5638_v60, %v8030_v37 }
 0x2cd   :  { %4356 = vst.msk [vmem:[%s8291_s3 + $0x20] sm:$0xff] %vm4351_vm0, %v4241_v56  ;;  %v4244_v51 = vadd.f32 %v5750_v49, %v4083_v45  ;;  %v5639_v14 = vpop.f32.mrb[236].mxu1  ;;  %v5751_v36 = vpop.f32.mrb[236].mxu0 }
 0x2ce   :  { %v5640_v48 = vpop.f32.mrb[237].mxu1  ;;  %v5752_v9 = vpop.f32.mrb[237].mxu0 }
 0x2cf   :  { %4357 = vst.msk [vmem:[%s8291_s3 + $0x28] sm:$0xff] %vm4351_vm0, %v4244_v51  ;;  %v5641_v26 = vadd.f32 %v5640_v48, %v5639_v14  ;;  %v5753_v7 = vadd.f32 %v5752_v9, %v5751_v36  ;;  %v5642_v2 = vpop.f32.mrb[238].mxu1  ;;  %v5754_v3 = vpop.f32.mrb[238].mxu0 }
 0x2d0   :  { %v5643_v37 = vpop.f32.mrb[239].mxu1  ;;  %v5755_v47 = vpop.f32.mrb[239].mxu0 }
 0x2d1   :  { %v4088_v17 = vadd.f32 %v5641_v26, %v8045_v11  ;;  %v5644_v62 = vadd.f32 %v5643_v37, %v5642_v2  ;;  %v5756_v46 = vadd.f32 %v5755_v47, %v5754_v3 }
 0x2d3   :  { %v4249_v20 = vadd.f32 %v5753_v7, %v4088_v17  ;;  %v4091_v31 = vadd.f32 %v5644_v62, %v8048_v34 }
 0x2d5   :  { %4358 = vst.msk [vmem:[%s8291_s3 + $0x30] sm:$0xff] %vm4351_vm0, %v4249_v20  ;;  %v4252_v40 = vadd.f32 %v5756_v46, %v4091_v31  ;;  %v5645_v8 = vpop.f32.mrb[240].mxu1  ;;  %v5757_v27 = vpop.f32.mrb[240].mxu0 }
 0x2d6   :  { %v5646_v24 = vpop.f32.mrb[241].mxu1  ;;  %v5758_v61 = vpop.f32.mrb[241].mxu0 }
 0x2d7   :  { %4359 = vst.msk [vmem:[%s8291_s3 + $0x38] sm:$0xff] %vm4351_vm0, %v4252_v40  ;;  %v5647_v11 = vadd.f32 %v5646_v24, %v5645_v8  ;;  %v5759_v39 = vadd.f32 %v5758_v61, %v5757_v27  ;;  %v5648_v52 = vpop.f32.mrb[242].mxu1  ;;  %v5760_v12 = vpop.f32.mrb[242].mxu0 }
 0x2d8   :  { %v5649_v34 = vpop.f32.mrb[243].mxu1  ;;  %v5761_v44 = vpop.f32.mrb[243].mxu0 }
 0x2d9   :  { %v4096_v41 = vadd.f32 %v5647_v11, %v8057_v28  ;;  %v5650_v54 = vadd.f32 %v5649_v34, %v5648_v52  ;;  %v5762_v5 = vadd.f32 %v5761_v44, %v5760_v12 }
 0x2db   :  { %v4257_v1 = vadd.f32 %v5759_v39, %v4096_v41  ;;  %v4099_v18 = vadd.f32 %v5650_v54, %v8060_v38 }
 0x2dd   :  { %4360 = vst.msk [vmem:[%s8291_s3 + $0x40] sm:$0xff] %vm4351_vm0, %v4257_v1  ;;  %v4260_v30 = vadd.f32 %v5762_v5, %v4099_v18  ;;  %v5651_v23 = vpop.f32.mrb[244].mxu1  ;;  %v5763_v32 = vpop.f32.mrb[244].mxu0 }
 0x2de   :  { %v5652_v57 = vpop.f32.mrb[245].mxu1  ;;  %v5764_v60 = vpop.f32.mrb[245].mxu0 }
 0x2df   :  { %4361 = vst.msk [vmem:[%s8291_s3 + $0x48] sm:$0xff] %vm4351_vm0, %v4260_v30  ;;  %v5653_v28 = vadd.f32 %v5652_v57, %v5651_v23  ;;  %v5765_v49 = vadd.f32 %v5764_v60, %v5763_v32  ;;  %v5654_v56 = vpop.f32.mrb[246].mxu1  ;;  %v5766_v45 = vpop.f32.mrb[246].mxu0 }
 0x2e0   :  { %v5655_v38 = vpop.f32.mrb[247].mxu1  ;;  %v5767_v51 = vpop.f32.mrb[247].mxu0 }
 0x2e1   :  { %v4104_v14 = vadd.f32 %v5653_v28, %v8063_v50  ;;  %v5656_v36 = vadd.f32 %v5655_v38, %v5654_v56  ;;  %v5768_v48 = vadd.f32 %v5767_v51, %v5766_v45 }
 0x2e3   :  { %v4265_v9 = vadd.f32 %v5765_v49, %v4104_v14  ;;  %v4107_v26 = vadd.f32 %v5656_v36, %v8066_v25 }
 0x2e5   :  { %4362 = vst.msk [vmem:[%s8291_s3 + $0x50] sm:$0xff] %vm4351_vm0, %v4265_v9  ;;  %v4268_v7 = vadd.f32 %v5768_v48, %v4107_v26  ;;  %v5657_v2 = vpop.f32.mrb[248].mxu1  ;;  %v5769_v3 = vpop.f32.mrb[248].mxu0 }
 0x2e6   :  { %v5658_v37 = vpop.f32.mrb[249].mxu1  ;;  %v5770_v47 = vpop.f32.mrb[249].mxu0 }
 0x2e7   :  { %4363 = vst.msk [vmem:[%s8291_s3 + $0x58] sm:$0xff] %vm4351_vm0, %v4268_v7  ;;  %v5659_v50 = vadd.f32 %v5658_v37, %v5657_v2  ;;  %v5771_v17 = vadd.f32 %v5770_v47, %v5769_v3  ;;  %v5660_v62 = vpop.f32.mrb[250].mxu1  ;;  %v5772_v46 = vpop.f32.mrb[250].mxu0 }
 0x2e8   :  { %v5661_v25 = vpop.f32.mrb[251].mxu1  ;;  %v5773_v20 = vpop.f32.mrb[251].mxu0 }
 0x2e9   :  { %v4112_v31 = vadd.f32 %v5659_v50, %v8069_v29  ;;  %v5662_v40 = vadd.f32 %v5661_v25, %v5660_v62  ;;  %v5774_v8 = vadd.f32 %v5773_v20, %v5772_v46 }
 0x2eb   :  { %v4273_v27 = vadd.f32 %v5771_v17, %v4112_v31  ;;  %v4115_v24 = vadd.f32 %v5662_v40, %v8072_v0 }
 0x2ed   :  { %4364 = vst.msk [vmem:[%s8291_s3 + $0x60] sm:$0xff] %vm4351_vm0, %v4273_v27  ;;  %v4276_v61 = vadd.f32 %v5774_v8, %v4115_v24  ;;  %v5663_v11 = vpop.f32.mrb[252].mxu1  ;;  %v5775_v39 = vpop.f32.mrb[252].mxu0 }
 0x2ee   :  { %v5664_v52 = vpop.f32.mrb[253].mxu1  ;;  %v5776_v12 = vpop.f32.mrb[253].mxu0 }
 0x2ef   :  { %4365 = vst.msk [vmem:[%s8291_s3 + $0x68] sm:$0xff] %vm4351_vm0, %v4276_v61  ;;  %v5665_v29 = vadd.f32 %v5664_v52, %v5663_v11  ;;  %v5777_v34 = vadd.f32 %v5776_v12, %v5775_v39  ;;  %v5666_v44 = vpop.f32.mrb[254].mxu1  ;;  %v5778_v41 = vpop.f32.mrb[254].mxu0 }
 0x2f0   :  { %v5667_v0 = vpop.f32.mrb[255].mxu1  ;;  %v5779_v54 = vpop.f32.mrb[255].mxu0 }
 0x2f1   :  { %v4120_v5 = vadd.f32 %v5665_v29, %v8075_v43  ;;  %v5668_v1 = vadd.f32 %v5667_v0, %v5666_v44  ;;  %v5780_v18 = vadd.f32 %v5779_v54, %v5778_v41 }
 0x2f3   :  { %v4281_v30 = vadd.f32 %v5777_v34, %v4120_v5  ;;  %v4123_v23 = vadd.f32 %v5668_v1, %v8078_v63 }
 0x2f5   :  { %4366 = vst.msk [vmem:[%s8291_s3 + $0x70] sm:$0xff] %vm4351_vm0, %v4281_v30  ;;  %v4284_v32 = vadd.f32 %v5780_v18, %v4123_v23  ;;  %v5669_v57 = vpop.f32.mrb[0].mxu1  ;;  %v5781_v60 = vpop.f32.mrb[0].mxu0 }
 0x2f6   :  { %v5670_v28 = vpop.f32.mrb[1].mxu1  ;;  %v5782_v49 = vpop.f32.mrb[1].mxu0 }
 0x2f7   :  { %4367 = vst.msk [vmem:[%s8291_s3 + $0x78] sm:$0xff] %vm4351_vm0, %v4284_v32  ;;  %v5671_v43 = vadd.f32 %v5670_v28, %v5669_v57  ;;  %v5783_v56 = vadd.f32 %v5782_v49, %v5781_v60  ;;  %v5672_v45 = vpop.f32.mrb[2].mxu1  ;;  %v5784_v38 = vpop.f32.mrb[2].mxu0 }
 0x2f8   :  { %v5673_v63 = vpop.f32.mrb[3].mxu1  ;;  %v5785_v51 = vpop.f32.mrb[3].mxu0 }
 0x2f9   :  { %v4128_v14 = vadd.f32 %v5671_v43, %v8081_v35  ;;  %v5674_v36 = vadd.f32 %v5673_v63, %v5672_v45  ;;  %v5786_v48 = vadd.f32 %v5785_v51, %v5784_v38 }
 0x2fb   :  { %v4289_v9 = vadd.f32 %v5783_v56, %v4128_v14  ;;  %v4131_v26 = vadd.f32 %v5674_v36, %v8084_v42 }
 0x2fd   :  { %4368 = vst.msk [vmem:[%s8291_s3 + $0x80] sm:$0xff] %vm4351_vm0, %v4289_v9  ;;  %v4292_v7 = vadd.f32 %v5786_v48, %v4131_v26  ;;  %v5675_v2 = vpop.f32.mrb[4].mxu1  ;;  %v5787_v3 = vpop.f32.mrb[4].mxu0 }
 0x2fe   :  { %v5676_v37 = vpop.f32.mrb[5].mxu1  ;;  %v5788_v47 = vpop.f32.mrb[5].mxu0 }
 0x2ff   :  { %4369 = vst.msk [vmem:[%s8291_s3 + $0x88] sm:$0xff] %vm4351_vm0, %v4292_v7  ;;  %v5677_v35 = vadd.f32 %v5676_v37, %v5675_v2  ;;  %v5789_v50 = vadd.f32 %v5788_v47, %v5787_v3  ;;  %v5678_v17 = vpop.f32.mrb[6].mxu1  ;;  %v5790_v62 = vpop.f32.mrb[6].mxu0 }
 0x300   :  { %v5679_v42 = vpop.f32.mrb[7].mxu1  ;;  %v5791_v46 = vpop.f32.mrb[7].mxu0 }
 0x301   :  { %v4136_v25 = vadd.f32 %v5677_v35, %v8087_v10  ;;  %v5680_v20 = vadd.f32 %v5679_v42, %v5678_v17  ;;  %v5792_v31 = vadd.f32 %v5791_v46, %v5790_v62 }
 0x303   :  { %v4297_v40 = vadd.f32 %v5789_v50, %v4136_v25  ;;  %v4139_v8 = vadd.f32 %v5680_v20, %v8090_v53 }
 0x305   :  { %4370 = vst.msk [vmem:[%s8291_s3 + $0x90] sm:$0xff] %vm4351_vm0, %v4297_v40  ;;  %v4300_v27 = vadd.f32 %v5792_v31, %v4139_v8  ;;  %v5681_v24 = vpop.f32.mrb[8].mxu1  ;;  %v5793_v61 = vpop.f32.mrb[8].mxu0 }
 0x306   :  { %v5682_v11 = vpop.f32.mrb[9].mxu1  ;;  %v5794_v39 = vpop.f32.mrb[9].mxu0 }
 0x307   :  { %4371 = vst.msk [vmem:[%s8291_s3 + $0x98] sm:$0xff] %vm4351_vm0, %v4300_v27  ;;  %v5683_v10 = vadd.f32 %v5682_v11, %v5681_v24  ;;  %v5795_v52 = vadd.f32 %v5794_v39, %v5793_v61  ;;  %v5684_v12 = vpop.f32.mrb[10].mxu1  ;;  %v5796_v29 = vpop.f32.mrb[10].mxu0 }
 0x308   :  { %v5685_v53 = vpop.f32.mrb[11].mxu1  ;;  %v5797_v34 = vpop.f32.mrb[11].mxu0 }
 0x309   :  { %v4144_v44 = vadd.f32 %v5683_v10, %v8093_v33  ;;  %v5686_v41 = vadd.f32 %v5685_v53, %v5684_v12  ;;  %v5798_v0 = vadd.f32 %v5797_v34, %v5796_v29 }
 0x30b   :  { %v4305_v54 = vadd.f32 %v5795_v52, %v4144_v44  ;;  %v4147_v5 = vadd.f32 %v5686_v41, %v8096_v22 }
 0x30d   :  { %4372 = vst.msk [vmem:[%s8291_s3 + $0xa0] sm:$0xff] %vm4351_vm0, %v4305_v54  ;;  %v4308_v1 = vadd.f32 %v5798_v0, %v4147_v5  ;;  %v5687_v18 = vpop.f32.mrb[12].mxu1  ;;  %v5799_v30 = vpop.f32.mrb[12].mxu0 }
 0x30e   :  { %v5688_v23 = vpop.f32.mrb[13].mxu1  ;;  %v5800_v32 = vpop.f32.mrb[13].mxu0 }
 0x30f   :  { %4373 = vst.msk [vmem:[%s8291_s3 + $0xa8] sm:$0xff] %vm4351_vm0, %v4308_v1  ;;  %v5689_v33 = vadd.f32 %v5688_v23, %v5687_v18  ;;  %v5801_v57 = vadd.f32 %v5800_v32, %v5799_v30  ;;  %v5690_v60 = vpop.f32.mrb[14].mxu1  ;;  %v5802_v28 = vpop.f32.mrb[14].mxu0 }
 0x310   :  { %v5691_v22 = vpop.f32.mrb[15].mxu1  ;;  %v5803_v49 = vpop.f32.mrb[15].mxu0 }
 0x311   :  { %v4152_v43 = vadd.f32 %v5689_v33, %v8099_v59  ;;  %v5692_v56 = vadd.f32 %v5691_v22, %v5690_v60  ;;  %v5804_v45 = vadd.f32 %v5803_v49, %v5802_v28 }
 0x313   :  { %v4313_v38 = vadd.f32 %v5801_v57, %v4152_v43  ;;  %v4155_v63 = vadd.f32 %v5692_v56, %v8102_v21 }
 0x315   :  { %4374 = vst.msk [vmem:[%s8291_s3 + $0xb0] sm:$0xff] %vm4351_vm0, %v4313_v38  ;;  %v4316_v51 = vadd.f32 %v5804_v45, %v4155_v63  ;;  %v5693_v14 = vpop.f32.mrb[16].mxu1  ;;  %v5805_v36 = vpop.f32.mrb[16].mxu0 }
 0x316   :  { %v5694_v48 = vpop.f32.mrb[17].mxu1  ;;  %v5806_v9 = vpop.f32.mrb[17].mxu0 }
 0x317   :  { %4375 = vst.msk [vmem:[%s8291_s3 + $0xb8] sm:$0xff] %vm4351_vm0, %v4316_v51  ;;  %v5695_v59 = vadd.f32 %v5694_v48, %v5693_v14  ;;  %v5807_v26 = vadd.f32 %v5806_v9, %v5805_v36  ;;  %v5696_v7 = vpop.f32.mrb[18].mxu1  ;;  %v5808_v2 = vpop.f32.mrb[18].mxu0 }
 0x318   :  { %v5697_v21 = vpop.f32.mrb[19].mxu1  ;;  %v5809_v3 = vpop.f32.mrb[19].mxu0 }
 0x319   :  { %v4160_v37 = vadd.f32 %v5695_v59, %v8105_v19  ;;  %v5698_v47 = vadd.f32 %v5697_v21, %v5696_v7  ;;  %v5810_v35 = vadd.f32 %v5809_v3, %v5808_v2 }
 0x31b   :  { %v4321_v50 = vadd.f32 %v5807_v26, %v4160_v37  ;;  %v4163_v17 = vadd.f32 %v5698_v47, %v8108_v55 }
 0x31d   :  { %4376 = vst.msk [vmem:[%s8291_s3 + $0xc0] sm:$0xff] %vm4351_vm0, %v4321_v50  ;;  %v4324_v62 = vadd.f32 %v5810_v35, %v4163_v17  ;;  %v5699_v42 = vpop.f32.mrb[20].mxu1  ;;  %v5811_v46 = vpop.f32.mrb[20].mxu0 }
 0x31e   :  { %v5700_v25 = vpop.f32.mrb[21].mxu1  ;;  %v5812_v20 = vpop.f32.mrb[21].mxu0 }
 0x31f   :  { %4377 = vst.msk [vmem:[%s8291_s3 + $0xc8] sm:$0xff] %vm4351_vm0, %v4324_v62  ;;  %v5701_v19 = vadd.f32 %v5700_v25, %v5699_v42  ;;  %v5813_v31 = vadd.f32 %v5812_v20, %v5811_v46  ;;  %v5702_v40 = vpop.f32.mrb[22].mxu1  ;;  %v5814_v8 = vpop.f32.mrb[22].mxu0 }
 0x320   :  { %v5703_v55 = vpop.f32.mrb[23].mxu1  ;;  %v5815_v27 = vpop.f32.mrb[23].mxu0 }
 0x321   :  { %v4168_v24 = vadd.f32 %v5701_v19, %v8111_v13  ;;  %v5704_v61 = vadd.f32 %v5703_v55, %v5702_v40  ;;  %v5816_v11 = vadd.f32 %v5815_v27, %v5814_v8 }
 0x323   :  { %v4329_v39 = vadd.f32 %v5813_v31, %v4168_v24  ;;  %v4171_v10 = vadd.f32 %v5704_v61, %v8114_v4 }
 0x325   :  { %4378 = vst.msk [vmem:[%s8291_s3 + $0xd0] sm:$0xff] %vm4351_vm0, %v4329_v39  ;;  %v4332_v52 = vadd.f32 %v5816_v11, %v4171_v10  ;;  %v5705_v12 = vpop.f32.mrb[24].mxu1  ;;  %v5817_v29 = vpop.f32.mrb[24].mxu0 }
 0x326   :  { %v5706_v53 = vpop.f32.mrb[25].mxu1  ;;  %v5818_v34 = vpop.f32.mrb[25].mxu0 }
 0x327   :  { %4379 = vst.msk [vmem:[%s8291_s3 + $0xd8] sm:$0xff] %vm4351_vm0, %v4332_v52  ;;  %v5707_v13 = vadd.f32 %v5706_v53, %v5705_v12  ;;  %v5819_v44 = vadd.f32 %v5818_v34, %v5817_v29  ;;  %v5708_v41 = vpop.f32.mrb[26].mxu1  ;;  %v5820_v0 = vpop.f32.mrb[26].mxu0 }
 0x328   :  { %v5709_v4 = vpop.f32.mrb[27].mxu1  ;;  %v5821_v54 = vpop.f32.mrb[27].mxu0 }
 0x329   :  { %v4176_v5 = vadd.f32 %v5707_v13, %v8117_v6  ;;  %v5710_v1 = vadd.f32 %v5709_v4, %v5708_v41  ;;  %v5822_v18 = vadd.f32 %v5821_v54, %v5820_v0 }
 0x32b   :  { %v4337_v30 = vadd.f32 %v5819_v44, %v4176_v5  ;;  %v4179_v23 = vadd.f32 %v5710_v1, %v8120_v16 }
 0x32d   :  { %4380 = vst.msk [vmem:[%s8291_s3 + $0xe0] sm:$0xff] %vm4351_vm0, %v4337_v30  ;;  %v4340_v32 = vadd.f32 %v5822_v18, %v4179_v23  ;;  %v5711_v33 = vpop.f32.mrb[28].mxu1  ;;  %v5823_v57 = vpop.f32.mrb[28].mxu0 }
 0x32e   :  { %v5712_v60 = vpop.f32.mrb[29].mxu1  ;;  %v5824_v28 = vpop.f32.mrb[29].mxu0 }
 0x32f   :  { %4381 = vst.msk [vmem:[%s8291_s3 + $0xe8] sm:$0xff] %vm4351_vm0, %v4340_v32  ;;  %v5713_v6 = vadd.f32 %v5712_v60, %v5711_v33  ;;  %v5825_v22 = vadd.f32 %v5824_v28, %v5823_v57  ;;  %v5714_v49 = vpop.f32.mrb[30].mxu1  ;;  %v5826_v43 = vpop.f32.mrb[30].mxu0 }
 0x330   :  { %v5715_v16 = vpop.f32.mrb[31].mxu1  ;;  %v5827_v56 = vpop.f32.mrb[31].mxu0 }
 0x331   :  { %v4184_v45 = vadd.f32 %v5713_v6, %v8123_v58  ;;  %v5716_v38 = vadd.f32 %v5715_v16, %v5714_v49  ;;  %v5828_v63 = vadd.f32 %v5827_v56, %v5826_v43 }
 0x333   :  { %v4345_v51 = vadd.f32 %v5825_v22, %v4184_v45  ;;  %v4187_v14 = vadd.f32 %v5716_v38, %v8126_v15 }
 0x335   :  { %4382 = vst.msk [vmem:[%s8291_s3 + $0xf0] sm:$0xff] %vm4351_vm0, %v4345_v51  ;;  %v4348_v36 = vadd.f32 %v5828_v63, %v4187_v14 }
 0x337   :  { %4383 = vst.msk [vmem:[%s8291_s3 + $0xf8] sm:$0xff] %vm4351_vm0, %v4348_v36 }

// kernel: foreground_forward.32
= control target key start
LH: loop header
LB: loop body
LE: loop exit
PB: predicated region body
PF: predicated region fallthrough
CT: control target
= control target key end

     0   :  { %vm2191_vm0 = vcmask 523264   ;;  %s3794_s1 = inlined_call_operand.vmem [shape: bf16[2304,64], index: 1, kind: input, shape index: {}]   ;;  %s3795_s0 = inlined_call_operand.vmem [shape: bf16[64,2304], index: 0, kind: input, shape index: {}]   ;;  %s3796_s2 = inlined_call_operand.vmem [shape: f32[1,64], index: 2, kind: input, shape index: {}]   ;;  %s3797_s3 = inlined_call_operand.vmem [shape: f32[64,64], index: 3, kind: output, shape index: {}]  }
   0x1   :  { %v2797_v0 = vld [vmem:[%s3794_s1 + $0x40] sm:$0xff]   ;;  %v2801_v4 = vld [vmem:[%s3794_s1 + $0x48] sm:$0xff]   ;;  %v2805_v8 = vld [vmem:[%s3794_s1 + $0x50] sm:$0xff]  }
   0x2   :  { %v2798_v1 = vld [vmem:[%s3794_s1 + $0xc0] sm:$0xff]   ;;  %2421 = vmatprep.subr.bf16.mxu0 %v2797_v0  ;;  %v2802_v5 = vld [vmem:[%s3794_s1 + $0xc8] sm:$0xff]   ;;  %v2806_v9 = vld [vmem:[%s3794_s1 + $0xd0] sm:$0xff]  }
   0x3   :  { %v2799_v2 = vld [vmem:[%s3794_s1] sm:$0xff]   ;;  %2461 = vmatprep.subr.bf16.mxu1 %v2798_v1  ;;  %v2803_v6 = vld [vmem:[%s3794_s1 + $0x8] sm:$0xff]   ;;  %v2807_v10 = vld [vmem:[%s3794_s1 + $0x10] sm:$0xff]  }
   0x4   :  { %v2800_v3 = vld [vmem:[%s3794_s1 + $0x80] sm:$0xff]   ;;  %2422 = vmatpush3.bf16.msra.mxu0 %v2799_v2  ;;  %v2804_v7 = vld [vmem:[%s3794_s1 + $0x88] sm:$0xff]   ;;  %v2808_v11 = vld [vmem:[%s3794_s1 + $0x90] sm:$0xff]  }
   0x5   :  { %2462 = vmatpush3.bf16.msra.mxu1 %v2800_v3  ;;  %2423 = vmatprep.subr.bf16.mxu0 %v2801_v4  ;;  %v2809_v12 = vld [vmem:[%s3794_s1 + $0x58] sm:$0xff]   ;;  %v2813_v16 = vld [vmem:[%s3794_s1 + $0x60] sm:$0xff]   ;;  %v2817_v20 = vld [vmem:[%s3794_s1 + $0x68] sm:$0xff]  }
   0x6   :  { %2463 = vmatprep.subr.bf16.mxu1 %v2802_v5  ;;  %v2810_v13 = vld [vmem:[%s3794_s1 + $0xd8] sm:$0xff]   ;;  %v2814_v17 = vld [vmem:[%s3794_s1 + $0xe0] sm:$0xff]   ;;  %v2818_v21 = vld [vmem:[%s3794_s1 + $0xe8] sm:$0xff]  }
   0x7   :  { %v2811_v14 = vld [vmem:[%s3794_s1 + $0x18] sm:$0xff]   ;;  %v2815_v18 = vld [vmem:[%s3794_s1 + $0x20] sm:$0xff]   ;;  %v2819_v22 = vld [vmem:[%s3794_s1 + $0x28] sm:$0xff]  }
   0x8   :  { %2424 = vmatpush3.bf16.msra.mxu0 %v2803_v6  ;;  %v2812_v15 = vld [vmem:[%s3794_s1 + $0x98] sm:$0xff]   ;;  %v2816_v19 = vld [vmem:[%s3794_s1 + $0xa0] sm:$0xff]   ;;  %v2820_v23 = vld [vmem:[%s3794_s1 + $0xa8] sm:$0xff]  }
   0x9   :  { %2464 = vmatpush3.bf16.msra.mxu1 %v2804_v7  ;;  %2425 = vmatprep.subr.bf16.mxu0 %v2805_v8  ;;  %v2821_v24 = vld [vmem:[%s3794_s1 + $0x70] sm:$0xff]   ;;  %v2825_v28 = vld [vmem:[%s3794_s1 + $0x78] sm:$0xff]   ;;  %v2829_v32 = vld [vmem:[%s3795_s0] ss:$72 sps:$4 sm:$0xff]  }
   0xa   :  { %2465 = vmatprep.subr.bf16.mxu1 %v2806_v9  ;;  %v2822_v25 = vld [vmem:[%s3794_s1 + $0xf0] sm:$0xff]   ;;  %v2826_v29 = vld [vmem:[%s3794_s1 + $0xf8] sm:$0xff]   ;;  %v2831_v33 = vld [vmem:[%s3795_s0 + $0x4] ss:$72 sps:$4 sm:$0xff]  }
   0xb   :  { %v2823_v26 = vld [vmem:[%s3794_s1 + $0x30] sm:$0xff]   ;;  %v2827_v30 = vld [vmem:[%s3794_s1 + $0x38] sm:$0xff]   ;;  %1638 = vmatprep.mubr.bf16.mxu0 %v2831_v33  ;;  %v2835_v36 = vld [vmem:[%s3794_s1 + $0x140] sm:$0xff]  }
   0xc   :  { %2426 = vmatpush3.bf16.msra.mxu0 %v2807_v10  ;;  %v2824_v27 = vld [vmem:[%s3794_s1 + $0xb0] sm:$0xff]   ;;  %v2828_v31 = vld [vmem:[%s3794_s1 + $0xb8] sm:$0xff]   ;;  %v2836_v37 = vld [vmem:[%s3794_s1 + $0x1c0] sm:$0xff]  }
   0xd   :  { %2466 = vmatpush3.bf16.msra.mxu1 %v2808_v11  ;;  %2427 = vmatprep.subr.bf16.mxu0 %v2809_v12  ;;  %v2832_v34 = vld [vmem:[%s3795_s0 + $0x8] ss:$72 sps:$4 sm:$0xff]   ;;  %v2834_v35 = vld [vmem:[%s3795_s0 + $0xc] ss:$72 sps:$4 sm:$0xff]   ;;  %v2837_v38 = vld [vmem:[%s3794_s1 + $0x100] sm:$0xff]  }
   0xe   :  { %2467 = vmatprep.subr.bf16.mxu1 %v2810_v13  ;;  %1703 = vmatprep.mubr.bf16.mxu1 %v2834_v35  ;;  %v2838_v39 = vld [vmem:[%s3794_s1 + $0x180] sm:$0xff]   ;;  %v2839_v40 = vld [vmem:[%s3794_s1 + $0x148] sm:$0xff]   ;;  %v2843_v44 = vld [vmem:[%s3795_s0 + $0x94] ss:$72 sps:$4 sm:$0xff]  }
   0xf   :  { %v2840_v41 = vld [vmem:[%s3794_s1 + $0x1c8] sm:$0xff]   ;;  %v2845_v45 = vld [vmem:[%s3795_s0 + $0x9c] ss:$72 sps:$4 sm:$0xff]   ;;  %v2847_v46 = vld [vmem:[%s3795_s0 + $0x90] ss:$72 sps:$4 sm:$0xff]  }
  0x10   :  { %2428 = vmatpush3.bf16.msra.mxu0 %v2811_v14  ;;  %v2841_v42 = vld [vmem:[%s3794_s1 + $0x108] sm:$0xff]   ;;  %v2848_v47 = vld [vmem:[%s3795_s0 + $0x98] ss:$72 sps:$4 sm:$0xff]   ;;  %v2849_v48 = vld [vmem:[%s3794_s1 + $0x150] sm:$0xff]  }
  0x11   :  { %2468 = vmatpush3.bf16.msra.mxu1 %v2812_v15  ;;  %2429 = vmatprep.subr.bf16.mxu0 %v2813_v16  ;;  %v2842_v43 = vld [vmem:[%s3794_s1 + $0x188] sm:$0xff]   ;;  %v2850_v49 = vld [vmem:[%s3794_s1 + $0x1d0] sm:$0xff]   ;;  %v2853_v52 = vld [vmem:[%s3794_s1 + $0x158] sm:$0xff]  }
  0x12   :  { %2469 = vmatprep.subr.bf16.mxu1 %v2814_v17  ;;  %v2851_v50 = vld [vmem:[%s3794_s1 + $0x110] sm:$0xff]   ;;  %v2854_v53 = vld [vmem:[%s3794_s1 + $0x1d8] sm:$0xff]   ;;  %v2857_v56 = vld [vmem:[%s3795_s0 + $0x124] ss:$72 sps:$4 sm:$0xff]  }
  0x13   :  { %v2852_v51 = vld [vmem:[%s3794_s1 + $0x190] sm:$0xff]   ;;  %v2855_v54 = vld [vmem:[%s3794_s1 + $0x118] sm:$0xff]   ;;  %v2861_v58 = vld [vmem:[%s3795_s0 + $0x120] ss:$72 sps:$4 sm:$0xff]  }
  0x14   :  { %2430 = vmatpush3.bf16.msra.mxu0 %v2815_v18  ;;  %v2856_v55 = vld [vmem:[%s3794_s1 + $0x198] sm:$0xff]   ;;  %v2859_v57 = vld [vmem:[%s3795_s0 + $0x12c] ss:$72 sps:$4 sm:$0xff]   ;;  %v2862_v59 = vld [vmem:[%s3795_s0 + $0x128] ss:$72 sps:$4 sm:$0xff]  }
  0x15   :  { %2470 = vmatpush3.bf16.msra.mxu1 %v2816_v19  ;;  %2431 = vmatprep.subr.bf16.mxu0 %v2817_v20  ;;  %v2863_v60 = vld [vmem:[%s3794_s1 + $0x160] sm:$0xff]   ;;  %v2867_v0 = vld [vmem:[%s3794_s1 + $0x168] sm:$0xff]   ;;  %v2871_v4 = vld [vmem:[%s3795_s0 + $0x1b4] ss:$72 sps:$4 sm:$0xff]  }
  0x16   :  { %2471 = vmatprep.subr.bf16.mxu1 %v2818_v21  ;;  %v2864_v61 = vld [vmem:[%s3794_s1 + $0x1e0] sm:$0xff]   ;;  %v2868_v1 = vld [vmem:[%s3794_s1 + $0x1e8] sm:$0xff]   ;;  %v2875_v6 = vld [vmem:[%s3795_s0 + $0x1b0] ss:$72 sps:$4 sm:$0xff]  }
  0x17   :  { %v2865_v62 = vld [vmem:[%s3794_s1 + $0x120] sm:$0xff]   ;;  %v2869_v2 = vld [vmem:[%s3794_s1 + $0x128] sm:$0xff]   ;;  %v2877_v8 = vld [vmem:[%s3794_s1 + $0x170] sm:$0xff]  }
  0x18   :  { %2432 = vmatpush3.bf16.msra.mxu0 %v2819_v22  ;;  %v2866_v63 = vld [vmem:[%s3794_s1 + $0x1a0] sm:$0xff]   ;;  %v2870_v3 = vld [vmem:[%s3794_s1 + $0x1a8] sm:$0xff]   ;;  %v2878_v9 = vld [vmem:[%s3794_s1 + $0x1f0] sm:$0xff]  }
  0x19   :  { %2472 = vmatpush3.bf16.msra.mxu1 %v2820_v23  ;;  %2433 = vmatprep.subr.bf16.mxu0 %v2821_v24  ;;  %v2873_v5 = vld [vmem:[%s3795_s0 + $0x1bc] ss:$72 sps:$4 sm:$0xff]   ;;  %v2876_v7 = vld [vmem:[%s3795_s0 + $0x1b8] ss:$72 sps:$4 sm:$0xff]   ;;  %v2879_v10 = vld [vmem:[%s3794_s1 + $0x130] sm:$0xff]  }
  0x1a   :  { %2473 = vmatprep.subr.bf16.mxu1 %v2822_v25  ;;  %v2880_v11 = vld [vmem:[%s3794_s1 + $0x1b0] sm:$0xff]   ;;  %v2881_v12 = vld [vmem:[%s3794_s1 + $0x178] sm:$0xff]   ;;  %v2891_v20 = vld [vmem:[%s3794_s1 + $0x240] sm:$0xff]  }
  0x1b   :  { %v2882_v13 = vld [vmem:[%s3794_s1 + $0x1f8] sm:$0xff]   ;;  %v2892_v21 = vld [vmem:[%s3794_s1 + $0x2c0] sm:$0xff]   ;;  %v2895_v24 = vld [vmem:[%s3794_s1 + $0x248] sm:$0xff]  }
  0x1c   :  { %2434 = vmatpush3.bf16.msra.mxu0 %v2823_v26  ;;  %v2883_v14 = vld [vmem:[%s3794_s1 + $0x138] sm:$0xff]   ;;  %v2893_v22 = vld [vmem:[%s3794_s1 + $0x200] sm:$0xff]   ;;  %v2896_v25 = vld [vmem:[%s3794_s1 + $0x2c8] sm:$0xff]  }
  0x1d   :  { %2474 = vmatpush3.bf16.msra.mxu1 %v2824_v27  ;;  %2435 = vmatprep.subr.bf16.mxu0 %v2825_v28  ;;  %v2884_v15 = vld [vmem:[%s3794_s1 + $0x1b8] sm:$0xff]   ;;  %v2894_v23 = vld [vmem:[%s3794_s1 + $0x280] sm:$0xff]   ;;  %v2897_v26 = vld [vmem:[%s3794_s1 + $0x208] sm:$0xff]  }
  0x1e   :  { %2475 = vmatprep.subr.bf16.mxu1 %v2826_v29  ;;  %v2885_v16 = vld [vmem:[%s3795_s0 + $0x10] ss:$72 sps:$4 sm:$0xff]   ;;  %v2887_v17 = vld [vmem:[%s3795_s0 + $0x14] ss:$72 sps:$4 sm:$0xff]   ;;  %v2898_v27 = vld [vmem:[%s3794_s1 + $0x288] sm:$0xff]  }
  0x1f   :  { %v2888_v18 = vld [vmem:[%s3795_s0 + $0x18] ss:$72 sps:$4 sm:$0xff]   ;;  %v2890_v19 = vld [vmem:[%s3795_s0 + $0x1c] ss:$72 sps:$4 sm:$0xff]   ;;  %v2901_v29 = vld [vmem:[%s3795_s0 + $0xac] ss:$72 sps:$4 sm:$0xff]  }
  0x20   :  { %2436 = vmatpush3.bf16.msra.mxu0 %v2827_v30  ;;  %v2899_v28 = vld [vmem:[%s3795_s0 + $0xa4] ss:$72 sps:$4 sm:$0xff]   ;;  %v2903_v30 = vld [vmem:[%s3795_s0 + $0xa0] ss:$72 sps:$4 sm:$0xff]   ;;  %v2906_v33 = vld [vmem:[%s3794_s1 + $0x2d0] sm:$0xff]  }
  0x21   :  { %2476 = vmatpush3.bf16.msra.mxu1 %v2828_v31  ;;  %2501 = vmatprep.subr.bf16.mxu0 %v2835_v36  ;;  %v2904_v31 = vld [vmem:[%s3795_s0 + $0xa8] ss:$72 sps:$4 sm:$0xff]   ;;  %v2909_v36 = vld [vmem:[%s3794_s1 + $0x258] sm:$0xff]  }
  0x22   :  { %2541 = vmatprep.subr.bf16.mxu1 %v2836_v37  ;;  %v2908_v35 = vld [vmem:[%s3794_s1 + $0x290] sm:$0xff]   ;;  %v2910_v37 = vld [vmem:[%s3794_s1 + $0x2d8] sm:$0xff]  }
  0x23   :  { %1639 = vmatmul.mubr.bf16.vlgmr.msra.gmra.mrb[0].mxu0 %v2829_v32  ;;  %v2905_v32 = vld [vmem:[%s3794_s1 + $0x250] sm:$0xff]  }
  0x24   :  { %1704 = vmatmul.mubr.bf16.vlgmr.msra.gmra.mrb[0].mxu1 %v2832_v34  ;;  %2502 = vmatpush3.bf16.msra.mxu0 %v2837_v38  ;;  %v2907_v34 = vld [vmem:[%s3794_s1 + $0x210] sm:$0xff]   ;;  %v2911_v38 = vld [vmem:[%s3794_s1 + $0x218] sm:$0xff]  }
  0x25   :  { %2542 = vmatpush3.bf16.msra.mxu1 %v2838_v39  ;;  %2503 = vmatprep.subr.bf16.mxu0 %v2839_v40  ;;  %v2912_v39 = vld [vmem:[%s3794_s1 + $0x298] sm:$0xff]  }
  0x26   :  { %2543 = vmatprep.subr.bf16.mxu1 %v2840_v41  ;;  %1646 = vmatprep.mubr.bf16.mxu0 %v2843_v44  ;;  %v2913_v40 = vld [vmem:[%s3795_s0 + $0x134] ss:$72 sps:$4 sm:$0xff]   ;;  %v2919_v44 = vld [vmem:[%s3794_s1 + $0x260] sm:$0xff]  }
  0x27   :  { %1711 = vmatprep.mubr.bf16.mxu1 %v2845_v45  ;;  %v2915_v41 = vld [vmem:[%s3795_s0 + $0x13c] ss:$72 sps:$4 sm:$0xff]  }
  0x28   :  { %2504 = vmatpush3.bf16.msra.mxu0 %v2841_v42  ;;  %v2917_v42 = vld [vmem:[%s3795_s0 + $0x130] ss:$72 sps:$4 sm:$0xff]   ;;  %v2920_v45 = vld [vmem:[%s3794_s1 + $0x2e0] sm:$0xff]  }
  0x29   :  { %2544 = vmatpush3.bf16.msra.mxu1 %v2842_v43  ;;  %2505 = vmatprep.subr.bf16.mxu0 %v2849_v48  ;;  %v2918_v43 = vld [vmem:[%s3795_s0 + $0x138] ss:$72 sps:$4 sm:$0xff]   ;;  %v2923_v48 = vld [vmem:[%s3794_s1 + $0x268] sm:$0xff]  }
  0x2a   :  { %2545 = vmatprep.subr.bf16.mxu1 %v2850_v49  ;;  %v2924_v49 = vld [vmem:[%s3794_s1 + $0x2e8] sm:$0xff]  }
  0x2b   :  { %1647 = vmatmul.mubr.bf16.gmra.mrb[4].mxu0 %v2847_v46  ;;  %v2921_v46 = vld [vmem:[%s3794_s1 + $0x220] sm:$0xff]  }
  0x2c   :  { %1712 = vmatmul.mubr.bf16.gmra.mrb[4].mxu1 %v2848_v47  ;;  %2506 = vmatpush3.bf16.msra.mxu0 %v2851_v50  ;;  %v2922_v47 = vld [vmem:[%s3794_s1 + $0x2a0] sm:$0xff]   ;;  %v2925_v50 = vld [vmem:[%s3794_s1 + $0x228] sm:$0xff]  }
  0x2d   :  { %2546 = vmatpush3.bf16.msra.mxu1 %v2852_v51  ;;  %2507 = vmatprep.subr.bf16.mxu0 %v2853_v52  ;;  %v2926_v51 = vld [vmem:[%s3794_s1 + $0x2a8] sm:$0xff]  }
  0x2e   :  { %2547 = vmatprep.subr.bf16.mxu1 %v2854_v53  ;;  %1654 = vmatprep.mubr.bf16.mxu0 %v2857_v56  ;;  %v2927_v52 = vld [vmem:[%s3795_s0 + $0x1c4] ss:$72 sps:$4 sm:$0xff]   ;;  %v2933_v56 = vld [vmem:[%s3794_s1 + $0x270] sm:$0xff]  }
  0x2f   :  { %1719 = vmatprep.mubr.bf16.mxu1 %v2859_v57  ;;  %v2929_v53 = vld [vmem:[%s3795_s0 + $0x1cc] ss:$72 sps:$4 sm:$0xff]  }
  0x30   :  { %2508 = vmatpush3.bf16.msra.mxu0 %v2855_v54  ;;  %v2931_v54 = vld [vmem:[%s3795_s0 + $0x1c0] ss:$72 sps:$4 sm:$0xff]   ;;  %v2934_v57 = vld [vmem:[%s3794_s1 + $0x2f0] sm:$0xff]  }
  0x31   :  { %2548 = vmatpush3.bf16.msra.mxu1 %v2856_v55  ;;  %2509 = vmatprep.subr.bf16.mxu0 %v2863_v60  ;;  %v2932_v55 = vld [vmem:[%s3795_s0 + $0x1c8] ss:$72 sps:$4 sm:$0xff]   ;;  %v2937_v60 = vld [vmem:[%s3794_s1 + $0x278] sm:$0xff]  }
  0x32   :  { %2549 = vmatprep.subr.bf16.mxu1 %v2864_v61  ;;  %v2938_v61 = vld [vmem:[%s3794_s1 + $0x2f8] sm:$0xff]  }
  0x33   :  { %1655 = vmatmul.mubr.bf16.gmra.mrb[8].mxu0 %v2861_v58  ;;  %v2935_v58 = vld [vmem:[%s3794_s1 + $0x230] sm:$0xff]  }
  0x34   :  { %1720 = vmatmul.mubr.bf16.gmra.mrb[8].mxu1 %v2862_v59  ;;  %2510 = vmatpush3.bf16.msra.mxu0 %v2865_v62  ;;  %v2936_v59 = vld [vmem:[%s3794_s1 + $0x2b0] sm:$0xff]   ;;  %v2939_v62 = vld [vmem:[%s3794_s1 + $0x238] sm:$0xff]  }
  0x35   :  { %2550 = vmatpush3.bf16.msra.mxu1 %v2866_v63  ;;  %2511 = vmatprep.subr.bf16.mxu0 %v2867_v0  ;;  %v2940_v63 = vld [vmem:[%s3794_s1 + $0x2b8] sm:$0xff]   ;;  %v2941_v0 = vld [vmem:[%s3795_s0 + $0x20] ss:$72 sps:$4 sm:$0xff]  }
  0x36   :  { %2551 = vmatprep.subr.bf16.mxu1 %v2868_v1  ;;  %1662 = vmatprep.mubr.bf16.mxu0 %v2871_v4  ;;  %v2943_v1 = vld [vmem:[%s3795_s0 + $0x24] ss:$72 sps:$4 sm:$0xff]  }
  0x37   :  { %1727 = vmatprep.mubr.bf16.mxu1 %v2873_v5  ;;  %v2947_v4 = vld [vmem:[%s3794_s1 + $0x340] sm:$0xff]  }
  0x38   :  { %2512 = vmatpush3.bf16.msra.mxu0 %v2869_v2  ;;  %v2944_v2 = vld [vmem:[%s3795_s0 + $0x28] ss:$72 sps:$4 sm:$0xff]   ;;  %v2948_v5 = vld [vmem:[%s3794_s1 + $0x3c0] sm:$0xff]  }
  0x39   :  { %2552 = vmatpush3.bf16.msra.mxu1 %v2870_v3  ;;  %2513 = vmatprep.subr.bf16.mxu0 %v2877_v8  ;;  %v2946_v3 = vld [vmem:[%s3795_s0 + $0x2c] ss:$72 sps:$4 sm:$0xff]  }
  0x3a   :  { %2553 = vmatprep.subr.bf16.mxu1 %v2878_v9  ;;  %v2951_v8 = vld [vmem:[%s3794_s1 + $0x348] sm:$0xff]  }
  0x3b   :  { %1663 = vmatmul.mubr.bf16.gmra.mrb[12].mxu0 %v2875_v6  ;;  %v2949_v6 = vld [vmem:[%s3794_s1 + $0x300] sm:$0xff]   ;;  %v2952_v9 = vld [vmem:[%s3794_s1 + $0x3c8] sm:$0xff]  }
  0x3c   :  { %1728 = vmatmul.mubr.bf16.gmra.mrb[12].mxu1 %v2876_v7  ;;  %2514 = vmatpush3.bf16.msra.mxu0 %v2879_v10  ;;  %v2950_v7 = vld [vmem:[%s3794_s1 + $0x380] sm:$0xff]   ;;  %v2953_v10 = vld [vmem:[%s3794_s1 + $0x308] sm:$0xff]  }
  0x3d   :  { %2554 = vmatpush3.bf16.msra.mxu1 %v2880_v11  ;;  %2515 = vmatprep.subr.bf16.mxu0 %v2881_v12  ;;  %v2954_v11 = vld [vmem:[%s3794_s1 + $0x388] sm:$0xff]   ;;  %v2955_v12 = vld [vmem:[%s3795_s0 + $0xb4] ss:$72 sps:$4 sm:$0xff]  }
  0x3e   :  { %2555 = vmatprep.subr.bf16.mxu1 %v2882_v13  ;;  %1768 = vmatprep.mubr.bf16.mxu0 %v2887_v17  ;;  %v2957_v13 = vld [vmem:[%s3795_s0 + $0xbc] ss:$72 sps:$4 sm:$0xff]   ;;  %v2962_v17 = vld [vmem:[%s3794_s1 + $0x3d0] sm:$0xff]  }
  0x3f   :  { %1833 = vmatprep.mubr.bf16.mxu1 %v2890_v19  ;;  %v2964_v19 = vld [vmem:[%s3794_s1 + $0x390] sm:$0xff]  }
  0x40   :  { %2516 = vmatpush3.bf16.msra.mxu0 %v2883_v14  ;;  %v2959_v14 = vld [vmem:[%s3795_s0 + $0xb0] ss:$72 sps:$4 sm:$0xff]  }
  0x41   :  { %2556 = vmatpush3.bf16.msra.mxu1 %v2884_v15  ;;  %2581 = vmatprep.subr.bf16.mxu0 %v2891_v20  ;;  %v2960_v15 = vld [vmem:[%s3795_s0 + $0xb8] ss:$72 sps:$4 sm:$0xff]  }
  0x42   :  { %2621 = vmatprep.subr.bf16.mxu1 %v2892_v21  ;;  %v2965_v20 = vld [vmem:[%s3794_s1 + $0x358] sm:$0xff]  }
  0x43   :  { %1769 = vmatmul.mubr.bf16.vlgmr.msra.gmra.mrb[16].mxu0 %v2885_v16  ;;  %v2961_v16 = vld [vmem:[%s3794_s1 + $0x350] sm:$0xff]   ;;  %v2966_v21 = vld [vmem:[%s3794_s1 + $0x3d8] sm:$0xff]  }
  0x44   :  { %1834 = vmatmul.mubr.bf16.vlgmr.msra.gmra.mrb[16].mxu1 %v2888_v18  ;;  %2582 = vmatpush3.bf16.msra.mxu0 %v2893_v22  ;;  %v2963_v18 = vld [vmem:[%s3794_s1 + $0x310] sm:$0xff]   ;;  %v2967_v22 = vld [vmem:[%s3794_s1 + $0x318] sm:$0xff]  }
  0x45   :  { %2622 = vmatpush3.bf16.msra.mxu1 %v2894_v23  ;;  %2583 = vmatprep.subr.bf16.mxu0 %v2895_v24  ;;  %v2968_v23 = vld [vmem:[%s3794_s1 + $0x398] sm:$0xff]   ;;  %v2969_v24 = vld [vmem:[%s3795_s0 + $0x144] ss:$72 sps:$4 sm:$0xff]  }
  0x46   :  { %2623 = vmatprep.subr.bf16.mxu1 %v2896_v25  ;;  %1776 = vmatprep.mubr.bf16.mxu0 %v2899_v28  ;;  %v2971_v25 = vld [vmem:[%s3795_s0 + $0x14c] ss:$72 sps:$4 sm:$0xff]   ;;  %v2975_v28 = vld [vmem:[%s3794_s1 + $0x360] sm:$0xff]  }
  0x47   :  { %1841 = vmatprep.mubr.bf16.mxu1 %v2901_v29  ;;  %v2976_v29 = vld [vmem:[%s3794_s1 + $0x3e0] sm:$0xff]  }
  0x48   :  { %2584 = vmatpush3.bf16.msra.mxu0 %v2897_v26  ;;  %v2973_v26 = vld [vmem:[%s3795_s0 + $0x140] ss:$72 sps:$4 sm:$0xff]  }
  0x49   :  { %2624 = vmatpush3.bf16.msra.mxu1 %v2898_v27  ;;  %2585 = vmatprep.subr.bf16.mxu0 %v2905_v32  ;;  %v2974_v27 = vld [vmem:[%s3795_s0 + $0x148] ss:$72 sps:$4 sm:$0xff]  }
  0x4a   :  { %2625 = vmatprep.subr.bf16.mxu1 %v2906_v33  ;;  %v2979_v32 = vld [vmem:[%s3794_s1 + $0x368] sm:$0xff]  }
  0x4b   :  { %1777 = vmatmul.mubr.bf16.gmra.mrb[20].mxu0 %v2903_v30  ;;  %v2977_v30 = vld [vmem:[%s3794_s1 + $0x320] sm:$0xff]   ;;  %v2980_v33 = vld [vmem:[%s3794_s1 + $0x3e8] sm:$0xff]  }
  0x4c   :  { %1842 = vmatmul.mubr.bf16.gmra.mrb[20].mxu1 %v2904_v31  ;;  %2586 = vmatpush3.bf16.msra.mxu0 %v2907_v34  ;;  %v2978_v31 = vld [vmem:[%s3794_s1 + $0x3a0] sm:$0xff]   ;;  %v2981_v34 = vld [vmem:[%s3794_s1 + $0x328] sm:$0xff]  }
  0x4d   :  { %2626 = vmatpush3.bf16.msra.mxu1 %v2908_v35  ;;  %2587 = vmatprep.subr.bf16.mxu0 %v2909_v36  ;;  %v2982_v35 = vld [vmem:[%s3794_s1 + $0x3a8] sm:$0xff]   ;;  %v2983_v36 = vld [vmem:[%s3795_s0 + $0x1d4] ss:$72 sps:$4 sm:$0xff]  }
  0x4e   :  { %2627 = vmatprep.subr.bf16.mxu1 %v2910_v37  ;;  %1784 = vmatprep.mubr.bf16.mxu0 %v2913_v40  ;;  %v2985_v37 = vld [vmem:[%s3795_s0 + $0x1dc] ss:$72 sps:$4 sm:$0xff]   ;;  %v2989_v40 = vld [vmem:[%s3794_s1 + $0x370] sm:$0xff]  }
  0x4f   :  { %1849 = vmatprep.mubr.bf16.mxu1 %v2915_v41  ;;  %v2990_v41 = vld [vmem:[%s3794_s1 + $0x3f0] sm:$0xff]  }
  0x50   :  { %2588 = vmatpush3.bf16.msra.mxu0 %v2911_v38  ;;  %v2987_v38 = vld [vmem:[%s3795_s0 + $0x1d0] ss:$72 sps:$4 sm:$0xff]  }
  0x51   :  { %2628 = vmatpush3.bf16.msra.mxu1 %v2912_v39  ;;  %2589 = vmatprep.subr.bf16.mxu0 %v2919_v44  ;;  %v2988_v39 = vld [vmem:[%s3795_s0 + $0x1d8] ss:$72 sps:$4 sm:$0xff]  }
  0x52   :  { %2629 = vmatprep.subr.bf16.mxu1 %v2920_v45  ;;  %v2993_v44 = vld [vmem:[%s3794_s1 + $0x378] sm:$0xff]  }
  0x53   :  { %1785 = vmatmul.mubr.bf16.gmra.mrb[24].mxu0 %v2917_v42  ;;  %v2991_v42 = vld [vmem:[%s3794_s1 + $0x330] sm:$0xff]   ;;  %v2994_v45 = vld [vmem:[%s3794_s1 + $0x3f8] sm:$0xff]  }
  0x54   :  { %1850 = vmatmul.mubr.bf16.gmra.mrb[24].mxu1 %v2918_v43  ;;  %2590 = vmatpush3.bf16.msra.mxu0 %v2921_v46  ;;  %v2992_v43 = vld [vmem:[%s3794_s1 + $0x3b0] sm:$0xff]   ;;  %v2995_v46 = vld [vmem:[%s3794_s1 + $0x338] sm:$0xff]  }
  0x55   :  { %2630 = vmatpush3.bf16.msra.mxu1 %v2922_v47  ;;  %2591 = vmatprep.subr.bf16.mxu0 %v2923_v48  ;;  %v2996_v47 = vld [vmem:[%s3794_s1 + $0x3b8] sm:$0xff]  }
  0x56   :  { %2631 = vmatprep.subr.bf16.mxu1 %v2924_v49  ;;  %1792 = vmatprep.mubr.bf16.mxu0 %v2927_v52  ;;  %v2997_v48 = vld [vmem:[%s3795_s0 + $0x30] ss:$72 sps:$4 sm:$0xff]   ;;  %v2999_v49 = vld [vmem:[%s3795_s0 + $0x34] ss:$72 sps:$4 sm:$0xff]   ;;  %v3003_v52 = vld [vmem:[%s3794_s1 + $0x440] sm:$0xff]  }
  0x57   :  { %1857 = vmatprep.mubr.bf16.mxu1 %v2929_v53  ;;  %v3004_v53 = vld [vmem:[%s3794_s1 + $0x400] sm:$0xff]  }
  0x58   :  { %2592 = vmatpush3.bf16.msra.mxu0 %v2925_v50  ;;  %v3000_v50 = vld [vmem:[%s3795_s0 + $0x38] ss:$72 sps:$4 sm:$0xff]  }
  0x59   :  { %2632 = vmatpush3.bf16.msra.mxu1 %v2926_v51  ;;  %2593 = vmatprep.subr.bf16.mxu0 %v2933_v56  ;;  %v3002_v51 = vld [vmem:[%s3795_s0 + $0x3c] ss:$72 sps:$4 sm:$0xff]  }
  0x5a   :  { %2633 = vmatprep.subr.bf16.mxu1 %v2934_v57  ;;  %v3007_v56 = vld [vmem:[%s3795_s0 + $0xc4] ss:$72 sps:$4 sm:$0xff]  }
  0x5b   :  { %1793 = vmatmul.mubr.bf16.gmra.mrb[28].mxu0 %v2931_v54  ;;  %v3005_v54 = vld [vmem:[%s3794_s1 + $0x448] sm:$0xff]  }
  0x5c   :  { %1858 = vmatmul.mubr.bf16.gmra.mrb[28].mxu1 %v2932_v55  ;;  %2594 = vmatpush3.bf16.msra.mxu0 %v2935_v58  ;;  %v3006_v55 = vld [vmem:[%s3794_s1 + $0x408] sm:$0xff]  }
  0x5d   :  { %2634 = vmatpush3.bf16.msra.mxu1 %v2936_v59  ;;  %2595 = vmatprep.subr.bf16.mxu0 %v2937_v60  ;;  %v3009_v57 = vld [vmem:[%s3795_s0 + $0xcc] ss:$72 sps:$4 sm:$0xff]   ;;  %v3011_v58 = vld [vmem:[%s3795_s0 + $0xc0] ss:$72 sps:$4 sm:$0xff]  }
  0x5e   :  { %2635 = vmatprep.subr.bf16.mxu1 %v2938_v61  ;;  %1898 = vmatprep.mubr.bf16.mxu0 %v2943_v1  ;;  %v3012_v59 = vld [vmem:[%s3795_s0 + $0xc8] ss:$72 sps:$4 sm:$0xff]   ;;  %v3019_v1 = vld [vmem:[%s3795_s0 + $0x15c] ss:$72 sps:$4 sm:$0xff]  }
  0x5f   :  { %1963 = vmatprep.mubr.bf16.mxu1 %v2946_v3  ;;  %v3013_v60 = vld [vmem:[%s3794_s1 + $0x450] sm:$0xff]   ;;  %v3023_v3 = vld [vmem:[%s3794_s1 + $0x460] sm:$0xff]  }
  0x60   :  { %2596 = vmatpush3.bf16.msra.mxu0 %v2939_v62  ;;  %v3014_v61 = vld [vmem:[%s3794_s1 + $0x410] sm:$0xff]   ;;  %v3015_v62 = vld [vmem:[%s3794_s1 + $0x458] sm:$0xff]  }
  0x61   :  { %2636 = vmatpush3.bf16.msra.mxu1 %v2940_v63  ;;  %2661 = vmatprep.subr.bf16.mxu0 %v2947_v4  ;;  %v3016_v63 = vld [vmem:[%s3794_s1 + $0x418] sm:$0xff]  }
  0x62   :  { %2701 = vmatprep.subr.bf16.mxu1 %v2948_v5  ;;  %v3022_v4 = vld [vmem:[%s3795_s0 + $0x158] ss:$72 sps:$4 sm:$0xff]  }
  0x63   :  { %1899 = vmatmul.mubr.bf16.vlgmr.msra.gmra.mrb[32].mxu0 %v2941_v0  ;;  %v3017_v0 = vld [vmem:[%s3795_s0 + $0x154] ss:$72 sps:$4 sm:$0xff]   ;;  %v3024_v5 = vld [vmem:[%s3794_s1 + $0x420] sm:$0xff]  }
  0x64   :  { %1964 = vmatmul.mubr.bf16.vlgmr.msra.gmra.mrb[32].mxu1 %v2944_v2  ;;  %2662 = vmatpush3.bf16.msra.mxu0 %v2949_v6  ;;  %v3021_v2 = vld [vmem:[%s3795_s0 + $0x150] ss:$72 sps:$4 sm:$0xff]   ;;  %v3025_v6 = vld [vmem:[%s3794_s1 + $0x468] sm:$0xff]  }
  0x65   :  { %2702 = vmatpush3.bf16.msra.mxu1 %v2950_v7  ;;  %2663 = vmatprep.subr.bf16.mxu0 %v2951_v8  ;;  %v3027_v7 = vld [vmem:[%s3795_s0 + $0x1e4] ss:$72 sps:$4 sm:$0xff]  }
  0x66   :  { %2703 = vmatprep.subr.bf16.mxu1 %v2952_v9  ;;  %1906 = vmatprep.mubr.bf16.mxu0 %v2955_v12  ;;  %v3029_v8 = vld [vmem:[%s3795_s0 + $0x1ec] ss:$72 sps:$4 sm:$0xff]   ;;  %v3032_v12 = vld [vmem:[%s3795_s0 + $0x1e8] ss:$72 sps:$4 sm:$0xff]  }
  0x67   :  { %1971 = vmatprep.mubr.bf16.mxu1 %v2957_v13  ;;  %v3026_v9 = vld [vmem:[%s3794_s1 + $0x428] sm:$0xff]   ;;  %v3034_v13 = vld [vmem:[%s3794_s1 + $0x430] sm:$0xff]  }
  0x68   :  { %2664 = vmatpush3.bf16.msra.mxu0 %v2953_v10  ;;  %v3033_v10 = vld [vmem:[%s3794_s1 + $0x470] sm:$0xff]  }
  0x69   :  { %2704 = vmatpush3.bf16.msra.mxu1 %v2954_v11  ;;  %2665 = vmatprep.subr.bf16.mxu0 %v2961_v16  ;;  %v3031_v11 = vld [vmem:[%s3795_s0 + $0x1e0] ss:$72 sps:$4 sm:$0xff]   ;;  %v3042_v16 = vld [vmem:[%s3795_s0 + $0x164] ss:$72 sps:$4 sm:$0xff]  }
  0x6a   :  { %2705 = vmatprep.subr.bf16.mxu1 %v2962_v17  ;;  %v3036_v17 = vld [vmem:[%s3794_s1 + $0x438] sm:$0xff]  }
  0x6b   :  { %1907 = vmatmul.mubr.bf16.gmra.mrb[36].mxu0 %v2959_v14  ;;  %v3035_v14 = vld [vmem:[%s3794_s1 + $0x478] sm:$0xff]  }
  0x6c   :  { %1972 = vmatmul.mubr.bf16.gmra.mrb[36].mxu1 %v2960_v15  ;;  %2666 = vmatpush3.bf16.msra.mxu0 %v2963_v18  ;;  %v3039_v15 = vld [vmem:[%s3795_s0 + $0x44] ss:$72 sps:$4 sm:$0xff]   ;;  %v3037_v18 = vld [vmem:[%s3795_s0 + $0x40] ss:$72 sps:$4 sm:$0xff]  }
  0x6d   :  { %2706 = vmatpush3.bf16.msra.mxu1 %v2964_v19  ;;  %2667 = vmatprep.subr.bf16.mxu0 %v2965_v20  ;;  %v3040_v19 = vld [vmem:[%s3795_s0 + $0x160] ss:$72 sps:$4 sm:$0xff]   ;;  %v3043_v20 = vld [vmem:[%s3795_s0 + $0xd4] ss:$72 sps:$4 sm:$0xff]  }
  0x6e   :  { %2707 = vmatprep.subr.bf16.mxu1 %v2966_v21  ;;  %1914 = vmatprep.mubr.bf16.mxu0 %v2969_v24  ;;  %v3045_v21 = vld [vmem:[%s3795_s0 + $0x1f4] ss:$72 sps:$4 sm:$0xff]  }
  0x6f   :  { %1979 = vmatprep.mubr.bf16.mxu1 %v2971_v25 }
  0x70   :  { %2668 = vmatpush3.bf16.msra.mxu0 %v2967_v22  ;;  %v3047_v22 = vld [vmem:[%s3795_s0 + $0xd0] ss:$72 sps:$4 sm:$0xff]  }
  0x71   :  { %2708 = vmatpush3.bf16.msra.mxu1 %v2968_v23  ;;  %2669 = vmatprep.subr.bf16.mxu0 %v2975_v28  ;;  %v3048_v23 = vld [vmem:[%s3795_s0 + $0x1f0] ss:$72 sps:$4 sm:$0xff]  }
  0x72   :  { %2709 = vmatprep.subr.bf16.mxu1 %v2976_v29 }
  0x73   :  { %1915 = vmatmul.mubr.bf16.gmra.mrb[40].mxu0 %v2973_v26  ;;  %v2204_v26 = vld [vmem:[%s3796_s2] ss:$0 sm:$0xff] }
  0x74   :  { %1980 = vmatmul.mubr.bf16.gmra.mrb[40].mxu1 %v2974_v27  ;;  %2670 = vmatpush3.bf16.msra.mxu0 %v2977_v30 }
  0x75   :  { %2710 = vmatpush3.bf16.msra.mxu1 %v2978_v31  ;;  %2671 = vmatprep.subr.bf16.mxu0 %v2979_v32 }
  0x76   :  { %2711 = vmatprep.subr.bf16.mxu1 %v2980_v33  ;;  %1922 = vmatprep.mubr.bf16.mxu0 %v2983_v36 }
  0x77   :  { %1987 = vmatprep.mubr.bf16.mxu1 %v2985_v37 }
  0x78   :  { %2672 = vmatpush3.bf16.msra.mxu0 %v2981_v34 }
  0x79   :  { %2712 = vmatpush3.bf16.msra.mxu1 %v2982_v35  ;;  %2673 = vmatprep.subr.bf16.mxu0 %v2989_v40 }
  0x7a   :  { %2713 = vmatprep.subr.bf16.mxu1 %v2990_v41 }
  0x7b   :  { %1923 = vmatmul.mubr.bf16.gmra.mrb[44].mxu0 %v2987_v38 }
  0x7c   :  { %1988 = vmatmul.mubr.bf16.gmra.mrb[44].mxu1 %v2988_v39  ;;  %2674 = vmatpush3.bf16.msra.mxu0 %v2991_v42 }
  0x7d   :  { %2714 = vmatpush3.bf16.msra.mxu1 %v2992_v43  ;;  %2675 = vmatprep.subr.bf16.mxu0 %v2993_v44 }
  0x7e   :  { %2715 = vmatprep.subr.bf16.mxu1 %v2994_v45  ;;  %2028 = vmatprep.mubr.bf16.mxu0 %v2999_v49 }
  0x7f   :  { %2093 = vmatprep.mubr.bf16.mxu1 %v3002_v51 }
  0x80   :  { %2676 = vmatpush3.bf16.msra.mxu0 %v2995_v46 }
  0x81   :  { %2716 = vmatpush3.bf16.msra.mxu1 %v2996_v47  ;;  %2741 = vmatprep.subr.bf16.mxu0 %v3003_v52 }
  0x82   :  { %2781 = vmatprep.subr.bf16.mxu1 %v3003_v52 }
  0x83   :  { %2029 = vmatmul.mubr.bf16.vlgmr.msra.gmra.mrb[48].mxu0 %v2997_v48 }
  0x84   :  { %2094 = vmatmul.mubr.bf16.vlgmr.msra.gmra.mrb[48].mxu1 %v3000_v50  ;;  %2742 = vmatpush3.bf16.msra.mxu0 %v3004_v53 }
  0x85   :  { %2789 = vmatpush3.bf16.msra.mxu1 %v3004_v53  ;;  %2743 = vmatprep.subr.bf16.mxu0 %v3005_v54 }
  0x86   :  { %2782 = vmatprep.subr.bf16.mxu1 %v3005_v54  ;;  %2036 = vmatprep.mubr.bf16.mxu0 %v3007_v56 }
  0x87   :  { %2101 = vmatprep.mubr.bf16.mxu1 %v3009_v57 }
  0x88   :  { %2744 = vmatpush3.bf16.msra.mxu0 %v3006_v55 }
  0x89   :  { %2790 = vmatpush3.bf16.msra.mxu1 %v3006_v55  ;;  %2745 = vmatprep.subr.bf16.mxu0 %v3013_v60 }
  0x8a   :  { %2783 = vmatprep.subr.bf16.mxu1 %v3013_v60 }
  0x8b   :  { %2037 = vmatmul.mubr.bf16.gmra.mrb[52].mxu0 %v3011_v58 }
  0x8c   :  { %2102 = vmatmul.mubr.bf16.gmra.mrb[52].mxu1 %v3012_v59  ;;  %2746 = vmatpush3.bf16.msra.mxu0 %v3014_v61 }
  0x8d   :  { %2791 = vmatpush3.bf16.msra.mxu1 %v3014_v61  ;;  %2747 = vmatprep.subr.bf16.mxu0 %v3015_v62 }
  0x8e   :  { %2784 = vmatprep.subr.bf16.mxu1 %v3015_v62  ;;  %2044 = vmatprep.mubr.bf16.mxu0 %v3017_v0 }
  0x8f   :  { %2109 = vmatprep.mubr.bf16.mxu1 %v3019_v1 }
  0x90   :  { %2748 = vmatpush3.bf16.msra.mxu0 %v3016_v63 }
  0x91   :  { %2792 = vmatpush3.bf16.msra.mxu1 %v3016_v63  ;;  %2749 = vmatprep.subr.bf16.mxu0 %v3023_v3 }
  0x92   :  { %2785 = vmatprep.subr.bf16.mxu1 %v3023_v3 }
  0x93   :  { %2045 = vmatmul.mubr.bf16.gmra.mrb[56].mxu0 %v3021_v2 }
  0x94   :  { %2110 = vmatmul.mubr.bf16.gmra.mrb[56].mxu1 %v3022_v4  ;;  %2750 = vmatpush3.bf16.msra.mxu0 %v3024_v5 }
  0x95   :  { %2052 = vmatprep.mubr.bf16.mxu0 %v3027_v7  ;;  %2793 = vmatpush3.bf16.msra.mxu1 %v3024_v5 }
  0x96   :  { %2751 = vmatprep.subr.bf16.mxu0 %v3025_v6  ;;  %2786 = vmatprep.subr.bf16.mxu1 %v3025_v6 }
  0x97   :  { %2117 = vmatprep.mubr.bf16.mxu1 %v3029_v8 }
  0x98   :  { %2752 = vmatpush3.bf16.msra.mxu0 %v3026_v9 }
  0x99   :  { %2794 = vmatpush3.bf16.msra.mxu1 %v3026_v9  ;;  %2753 = vmatprep.subr.bf16.mxu0 %v3033_v10 }
  0x9a   :  { %2787 = vmatprep.subr.bf16.mxu1 %v3033_v10 }
  0x9b   :  { %2053 = vmatmul.mubr.bf16.gmra.mrb[60].mxu0 %v3031_v11 }
  0x9c   :  { %2118 = vmatmul.mubr.bf16.gmra.mrb[60].mxu1 %v3032_v12  ;;  %2158 = vmatprep.mubr.bf16.mxu0 %v3039_v15 }
  0x9d   :  { %2754 = vmatpush3.bf16.msra.mxu0 %v3034_v13  ;;  %2795 = vmatpush3.bf16.msra.mxu1 %v3034_v13 }
  0x9e   :  { %2755 = vmatprep.subr.bf16.mxu0 %v3035_v14  ;;  %2788 = vmatprep.subr.bf16.mxu1 %v3035_v14 }
  0x9f   :  { %2174 = vmatprep.mubr.bf16.mxu1 %v3042_v16 }
  0xa1   :  { %2756 = vmatpush3.bf16.msra.mxu0 %v3036_v17  ;;  %2796 = vmatpush3.bf16.msra.mxu1 %v3036_v17 }
  0xa4   :  { %2159 = vmatmul.mubr.bf16.vlgmr.msra.gmra.mrb[64].mxu0 %v3037_v18  ;;  %2175 = vmatmul.mubr.bf16.vlgmr.msra.gmra.mrb[64].mxu1 %v3040_v19 }
  0xa5   :  { %2166 = vmatprep.mubr.bf16.mxu0 %v3043_v20  ;;  %2182 = vmatprep.mubr.bf16.mxu1 %v3045_v21 }
  0xac   :  { %2167 = vmatmul.mubr.bf16.gmra.mrb[68].mxu0 %v3047_v22  ;;  %2183 = vmatmul.mubr.bf16.gmra.mrb[68].mxu1 %v3048_v23 }
  0xf6   :  { %v2437_v24 = vpop.f32.mrb[0].mxu0 }
  0xf7   :  { %v2477_v25 = vpop.f32.mrb[0].mxu1  ;;  %v2438_v27 = vpop.f32.mrb[1].mxu0 }
  0xf8   :  { %v2439_v28 = vadd.f32 %v2438_v27, %v2437_v24  ;;  %v2478_v29 = vpop.f32.mrb[1].mxu1  ;;  %v2440_v30 = vpop.f32.mrb[2].mxu0 }
  0xf9   :  { %v2479_v31 = vadd.f32 %v2478_v29, %v2477_v25  ;;  %v2480_v32 = vpop.f32.mrb[2].mxu1  ;;  %v2441_v33 = vpop.f32.mrb[3].mxu0 }
  0xfa   :  { %v1641_v34 = vadd.f32 %v2439_v28, %v2204_v26  ;;  %v2442_v35 = vadd.f32 %v2441_v33, %v2440_v30  ;;  %v2481_v36 = vpop.f32.mrb[3].mxu1 }
  0xfb   :  { %v2482_v37 = vadd.f32 %v2481_v36, %v2480_v32 }
  0xfc   :  { %v1706_v38 = vadd.f32 %v2479_v31, %v1641_v34  ;;  %v1644_v39 = vadd.f32 %v2442_v35, %v2204_v26 }
  0xfe   :  { %v1709_v40 = vadd.f32 %v2482_v37, %v1644_v39  ;;  %v2443_v41 = vpop.f32.mrb[4].mxu0 }
  0xff   :  { %v2483_v42 = vpop.f32.mrb[4].mxu1  ;;  %v2444_v43 = vpop.f32.mrb[5].mxu0 }
 0x100   :  { %v2445_v44 = vadd.f32 %v2444_v43, %v2443_v41  ;;  %v2484_v45 = vpop.f32.mrb[5].mxu1  ;;  %v2446_v46 = vpop.f32.mrb[6].mxu0 }
 0x101   :  { %v2485_v47 = vadd.f32 %v2484_v45, %v2483_v42  ;;  %v2486_v48 = vpop.f32.mrb[6].mxu1  ;;  %v2447_v49 = vpop.f32.mrb[7].mxu0 }
 0x102   :  { %v1649_v50 = vadd.f32 %v2445_v44, %v2204_v26  ;;  %v2448_v51 = vadd.f32 %v2447_v49, %v2446_v46  ;;  %v2487_v52 = vpop.f32.mrb[7].mxu1 }
 0x103   :  { %v2488_v53 = vadd.f32 %v2487_v52, %v2486_v48 }
 0x104   :  { %v1714_v54 = vadd.f32 %v2485_v47, %v1649_v50  ;;  %v1652_v55 = vadd.f32 %v2448_v51, %v2204_v26 }
 0x106   :  { %v3720_v56 = vadd.f32 %v2488_v53, %v1652_v55  ;;  %v2449_v57 = vpop.f32.mrb[8].mxu0 }
 0x107   :  { %v2489_v58 = vpop.f32.mrb[8].mxu1  ;;  %v2450_v59 = vpop.f32.mrb[9].mxu0 }
 0x108   :  { %v2451_v60 = vadd.f32 %v2450_v59, %v2449_v57  ;;  %v2490_v61 = vpop.f32.mrb[9].mxu1  ;;  %v2452_v62 = vpop.f32.mrb[10].mxu0 }
 0x109   :  { %v2491_v63 = vadd.f32 %v2490_v61, %v2489_v58  ;;  %v2492_v0 = vpop.f32.mrb[10].mxu1  ;;  %v2453_v1 = vpop.f32.mrb[11].mxu0 }
 0x10a   :  { %v1657_v2 = vadd.f32 %v2451_v60, %v2204_v26  ;;  %v2454_v3 = vadd.f32 %v2453_v1, %v2452_v62  ;;  %v2493_v4 = vpop.f32.mrb[11].mxu1 }
 0x10b   :  { %v2494_v5 = vadd.f32 %v2493_v4, %v2492_v0 }
 0x10c   :  { %v1722_v6 = vadd.f32 %v2491_v63, %v1657_v2  ;;  %v1660_v7 = vadd.f32 %v2454_v3, %v2204_v26 }
 0x10e   :  { %v3722_v8 = vadd.f32 %v2494_v5, %v1660_v7  ;;  %v2455_v9 = vpop.f32.mrb[12].mxu0 }
 0x10f   :  { %v2495_v10 = vpop.f32.mrb[12].mxu1  ;;  %v2456_v11 = vpop.f32.mrb[13].mxu0 }
 0x110   :  { %v2496_v12 = vpop.f32.mrb[13].mxu1  ;;  %v2457_v13 = vadd.f32 %v2456_v11, %v2455_v9  ;;  %v2458_v15 = vpop.f32.mrb[14].mxu0 }
 0x111   :  { %v2497_v14 = vadd.f32 %v2496_v12, %v2495_v10  ;;  %v2498_v16 = vpop.f32.mrb[14].mxu1  ;;  %v2459_v17 = vpop.f32.mrb[15].mxu0 }
 0x112   :  { %v2499_v18 = vpop.f32.mrb[15].mxu1  ;;  %v1665_v19 = vadd.f32 %v2457_v13, %v2204_v26  ;;  %v2460_v20 = vadd.f32 %v2459_v17, %v2458_v15 }
 0x113   :  { %v2500_v21 = vadd.f32 %v2499_v18, %v2498_v16 }
 0x114   :  { %v1730_v22 = vadd.f32 %v2497_v14, %v1665_v19  ;;  %v1668_v23 = vadd.f32 %v2460_v20, %v2204_v26 }
 0x116   :  { %v3724_v24 = vadd.f32 %v2500_v21, %v1668_v23  ;;  %v2517_v25 = vpop.f32.mrb[16].mxu0 }
 0x117   :  { %v2518_v27 = vpop.f32.mrb[17].mxu0  ;;  %v2557_v28 = vpop.f32.mrb[16].mxu1 }
 0x118   :  { %v2519_v29 = vadd.f32 %v2518_v27, %v2517_v25  ;;  %v2520_v30 = vpop.f32.mrb[18].mxu0  ;;  %v2558_v31 = vpop.f32.mrb[17].mxu1 }
 0x119   :  { %v2521_v32 = vpop.f32.mrb[19].mxu0  ;;  %v2559_v34 = vadd.f32 %v2558_v31, %v2557_v28  ;;  %v2560_v35 = vpop.f32.mrb[18].mxu1 }
 0x11a   :  { %v1771_v33 = vadd.f32 %v2519_v29, %v1706_v38  ;;  %v2522_v36 = vadd.f32 %v2521_v32, %v2520_v30  ;;  %v2561_v37 = vpop.f32.mrb[19].mxu1 }
 0x11b   :  { %v2562_v42 = vadd.f32 %v2561_v37, %v2560_v35 }
 0x11c   :  { %v1836_v39 = vadd.f32 %v2559_v34, %v1771_v33  ;;  %v1774_v41 = vadd.f32 %v2522_v36, %v1709_v40 }
 0x11e   :  { %v3726_v43 = vadd.f32 %v2562_v42, %v1774_v41  ;;  %v2523_v26 = vpop.f32.mrb[20].mxu0 }
 0x11f   :  { %v2563_v44 = vpop.f32.mrb[20].mxu1  ;;  %v2524_v45 = vpop.f32.mrb[21].mxu0 }
 0x120   :  { %v2525_v46 = vadd.f32 %v2524_v45, %v2523_v26  ;;  %v2564_v47 = vpop.f32.mrb[21].mxu1  ;;  %v2526_v48 = vpop.f32.mrb[22].mxu0 }
 0x121   :  { %v2565_v49 = vadd.f32 %v2564_v47, %v2563_v44  ;;  %v2566_v50 = vpop.f32.mrb[22].mxu1  ;;  %v2527_v51 = vpop.f32.mrb[23].mxu0 }
 0x122   :  { %v1779_v52 = vadd.f32 %v2525_v46, %v1714_v54  ;;  %v2528_v38 = vadd.f32 %v2527_v51, %v2526_v48  ;;  %v2567_v53 = vpop.f32.mrb[23].mxu1 }
 0x123   :  { %v2568_v55 = vadd.f32 %v2567_v53, %v2566_v50 }
 0x124   :  { %v1844_v57 = vadd.f32 %v2565_v49, %v1779_v52  ;;  %v1782_v58 = vadd.f32 %v2528_v38, %v3720_v56 }
 0x126   :  { %v3729_v40 = vadd.f32 %v2568_v55, %v1782_v58  ;;  %v2529_v59 = vpop.f32.mrb[24].mxu0 }
 0x127   :  { %v2569_v60 = vpop.f32.mrb[24].mxu1  ;;  %v2530_v61 = vpop.f32.mrb[25].mxu0 }
 0x128   :  { %v2570_v62 = vpop.f32.mrb[25].mxu1  ;;  %v2531_v63 = vadd.f32 %v2530_v61, %v2529_v59  ;;  %v2532_v1 = vpop.f32.mrb[26].mxu0 }
 0x129   :  { %v2571_v0 = vadd.f32 %v2570_v62, %v2569_v60  ;;  %v2572_v2 = vpop.f32.mrb[26].mxu1  ;;  %v2533_v3 = vpop.f32.mrb[27].mxu0 }
 0x12a   :  { %v2573_v4 = vpop.f32.mrb[27].mxu1  ;;  %v1787_v5 = vadd.f32 %v2531_v63, %v1722_v6  ;;  %v2534_v54 = vadd.f32 %v2533_v3, %v2532_v1 }
 0x12b   :  { %v2574_v7 = vadd.f32 %v2573_v4, %v2572_v2 }
 0x12c   :  { %v1852_v9 = vadd.f32 %v2571_v0, %v1787_v5  ;;  %v1790_v10 = vadd.f32 %v2534_v54, %v3722_v8 }
 0x12e   :  { %v3732_v11 = vadd.f32 %v2574_v7, %v1790_v10  ;;  %v2535_v56 = vpop.f32.mrb[28].mxu0 }
 0x12f   :  { %v2575_v12 = vpop.f32.mrb[28].mxu1  ;;  %v2536_v13 = vpop.f32.mrb[29].mxu0 }
 0x130   :  { %v2537_v14 = vadd.f32 %v2536_v13, %v2535_v56  ;;  %v2576_v15 = vpop.f32.mrb[29].mxu1  ;;  %v2538_v16 = vpop.f32.mrb[30].mxu0 }
 0x131   :  { %v2577_v17 = vadd.f32 %v2576_v15, %v2575_v12  ;;  %v2578_v18 = vpop.f32.mrb[30].mxu1  ;;  %v2539_v19 = vpop.f32.mrb[31].mxu0 }
 0x132   :  { %v1795_v20 = vadd.f32 %v2537_v14, %v1730_v22  ;;  %v2540_v21 = vadd.f32 %v2539_v19, %v2538_v16  ;;  %v2579_v23 = vpop.f32.mrb[31].mxu1 }
 0x133   :  { %v2580_v6 = vadd.f32 %v2579_v23, %v2578_v18 }
 0x134   :  { %v1860_v25 = vadd.f32 %v2577_v17, %v1795_v20  ;;  %v1798_v27 = vadd.f32 %v2540_v21, %v3724_v24 }
 0x136   :  { %v3735_v28 = vadd.f32 %v2580_v6, %v1798_v27  ;;  %v2597_v8 = vpop.f32.mrb[32].mxu0 }
 0x137   :  { %v2637_v29 = vpop.f32.mrb[32].mxu1  ;;  %v2598_v30 = vpop.f32.mrb[33].mxu0 }
 0x138   :  { %v2599_v31 = vadd.f32 %v2598_v30, %v2597_v8  ;;  %v2638_v32 = vpop.f32.mrb[33].mxu1  ;;  %v2600_v33 = vpop.f32.mrb[34].mxu0 }
 0x139   :  { %v2639_v34 = vadd.f32 %v2638_v32, %v2637_v29  ;;  %v2640_v35 = vpop.f32.mrb[34].mxu1  ;;  %v2601_v36 = vpop.f32.mrb[35].mxu0 }
 0x13a   :  { %v1901_v37 = vadd.f32 %v2599_v31, %v1836_v39  ;;  %v2602_v41 = vadd.f32 %v2601_v36, %v2600_v33  ;;  %v2641_v22 = vpop.f32.mrb[35].mxu1 }
 0x13b   :  { %v2642_v42 = vadd.f32 %v2641_v22, %v2640_v35 }
 0x13c   :  { %v1966_v26 = vadd.f32 %v2639_v34, %v1901_v37  ;;  %v1904_v44 = vadd.f32 %v2602_v41, %v3726_v43 }
 0x13e   :  { %v3738_v45 = vadd.f32 %v2642_v42, %v1904_v44  ;;  %v2603_v24 = vpop.f32.mrb[36].mxu0 }
 0x13f   :  { %v2643_v46 = vpop.f32.mrb[36].mxu1  ;;  %v2604_v47 = vpop.f32.mrb[37].mxu0 }
 0x140   :  { %v2644_v48 = vpop.f32.mrb[37].mxu1  ;;  %v2605_v49 = vadd.f32 %v2604_v47, %v2603_v24  ;;  %v2606_v51 = vpop.f32.mrb[38].mxu0 }
 0x141   :  { %v2645_v50 = vadd.f32 %v2644_v48, %v2643_v46  ;;  %v2646_v52 = vpop.f32.mrb[38].mxu1  ;;  %v2607_v38 = vpop.f32.mrb[39].mxu0 }
 0x142   :  { %v2647_v53 = vpop.f32.mrb[39].mxu1  ;;  %v1909_v55 = vadd.f32 %v2605_v49, %v1844_v57  ;;  %v2608_v39 = vadd.f32 %v2607_v38, %v2606_v51 }
 0x143   :  { %v2648_v58 = vadd.f32 %v2647_v53, %v2646_v52 }
 0x144   :  { %v1974_v59 = vadd.f32 %v2645_v50, %v1909_v55  ;;  %v1912_v60 = vadd.f32 %v2608_v39, %v3729_v40 }
 0x146   :  { %v3741_v61 = vadd.f32 %v2648_v58, %v1912_v60  ;;  %v2609_v43 = vpop.f32.mrb[40].mxu0 }
 0x147   :  { %v2649_v62 = vpop.f32.mrb[40].mxu1  ;;  %v2610_v63 = vpop.f32.mrb[41].mxu0 }
 0x148   :  { %v2611_v0 = vadd.f32 %v2610_v63, %v2609_v43  ;;  %v2650_v1 = vpop.f32.mrb[41].mxu1  ;;  %v2612_v2 = vpop.f32.mrb[42].mxu0 }
 0x149   :  { %v2651_v3 = vadd.f32 %v2650_v1, %v2649_v62  ;;  %v2652_v4 = vpop.f32.mrb[42].mxu1  ;;  %v2613_v5 = vpop.f32.mrb[43].mxu0 }
 0x14a   :  { %v1917_v54 = vadd.f32 %v2611_v0, %v1852_v9  ;;  %v2614_v7 = vadd.f32 %v2613_v5, %v2612_v2  ;;  %v2653_v10 = vpop.f32.mrb[43].mxu1 }
 0x14b   :  { %v2654_v57 = vadd.f32 %v2653_v10, %v2652_v4 }
 0x14c   :  { %v1982_v56 = vadd.f32 %v2651_v3, %v1917_v54  ;;  %v1920_v12 = vadd.f32 %v2614_v7, %v3732_v11 }
 0x14e   :  { %v3744_v13 = vadd.f32 %v2654_v57, %v1920_v12  ;;  %v2615_v40 = vpop.f32.mrb[44].mxu0 }
 0x14f   :  { %v2655_v14 = vpop.f32.mrb[44].mxu1  ;;  %v2616_v15 = vpop.f32.mrb[45].mxu0 }
 0x150   :  { %v2617_v16 = vadd.f32 %v2616_v15, %v2615_v40  ;;  %v2656_v17 = vpop.f32.mrb[45].mxu1  ;;  %v2618_v18 = vpop.f32.mrb[46].mxu0 }
 0x151   :  { %v2657_v19 = vadd.f32 %v2656_v17, %v2655_v14  ;;  %v2658_v20 = vpop.f32.mrb[46].mxu1  ;;  %v2619_v21 = vpop.f32.mrb[47].mxu0 }
 0x152   :  { %v1925_v23 = vadd.f32 %v2617_v16, %v1860_v25  ;;  %v2620_v6 = vadd.f32 %v2619_v21, %v2618_v18  ;;  %v2659_v9 = vpop.f32.mrb[47].mxu1 }
 0x153   :  { %v2660_v27 = vadd.f32 %v2659_v9, %v2658_v20 }
 0x154   :  { %v1990_v8 = vadd.f32 %v2657_v19, %v1925_v23  ;;  %v1928_v29 = vadd.f32 %v2620_v6, %v3735_v28 }
 0x156   :  { %v3747_v30 = vadd.f32 %v2660_v27, %v1928_v29  ;;  %v2677_v11 = vpop.f32.mrb[48].mxu0 }
 0x157   :  { %v2717_v31 = vpop.f32.mrb[48].mxu1  ;;  %v2678_v32 = vpop.f32.mrb[49].mxu0 }
 0x158   :  { %v2679_v33 = vadd.f32 %v2678_v32, %v2677_v11  ;;  %v2718_v34 = vpop.f32.mrb[49].mxu1  ;;  %v2680_v35 = vpop.f32.mrb[50].mxu0 }
 0x159   :  { %v2719_v36 = vadd.f32 %v2718_v34, %v2717_v31  ;;  %v2720_v37 = vpop.f32.mrb[50].mxu1  ;;  %v2681_v41 = vpop.f32.mrb[51].mxu0 }
 0x15a   :  { %v2031_v22 = vadd.f32 %v2679_v33, %v1966_v26  ;;  %v2682_v42 = vadd.f32 %v2681_v41, %v2680_v35  ;;  %v2721_v25 = vpop.f32.mrb[51].mxu1 }
 0x15b   :  { %v2722_v44 = vadd.f32 %v2721_v25, %v2720_v37 }
 0x15c   :  { %v2096_v24 = vadd.f32 %v2719_v36, %v2031_v22  ;;  %v2034_v46 = vadd.f32 %v2682_v42, %v3738_v45 }
 0x15e   :  { %v3750_v47 = vadd.f32 %v2722_v44, %v2034_v46  ;;  %v2683_v28 = vpop.f32.mrb[52].mxu0 }
 0x15f   :  { %v2723_v48 = vpop.f32.mrb[52].mxu1  ;;  %v2684_v49 = vpop.f32.mrb[53].mxu0 }
 0x160   :  { %v2685_v50 = vadd.f32 %v2684_v49, %v2683_v28  ;;  %v2724_v51 = vpop.f32.mrb[53].mxu1  ;;  %v2686_v52 = vpop.f32.mrb[54].mxu0 }
 0x161   :  { %v2725_v38 = vadd.f32 %v2724_v51, %v2723_v48  ;;  %v2726_v53 = vpop.f32.mrb[54].mxu1  ;;  %v2687_v55 = vpop.f32.mrb[55].mxu0 }
 0x162   :  { %v2039_v39 = vadd.f32 %v2685_v50, %v1974_v59  ;;  %v2688_v58 = vadd.f32 %v2687_v55, %v2686_v52  ;;  %v2727_v26 = vpop.f32.mrb[55].mxu1 }
 0x163   :  { %v2728_v60 = vadd.f32 %v2727_v26, %v2726_v53 }
 0x164   :  { %v3752_v43 = vadd.f32 %v2725_v38, %v2039_v39  ;;  %v2042_v62 = vadd.f32 %v2688_v58, %v3741_v61 }
 0x166   :  { %v3755_v45 = vadd.f32 %v2728_v60, %v2042_v62  ;;  %v2689_v63 = vpop.f32.mrb[56].mxu0 }
 0x167   :  { %v2729_v0 = vpop.f32.mrb[56].mxu1  ;;  %v2690_v1 = vpop.f32.mrb[57].mxu0 }
 0x168   :  { %v2691_v2 = vadd.f32 %v2690_v1, %v2689_v63  ;;  %v2730_v3 = vpop.f32.mrb[57].mxu1  ;;  %v2692_v4 = vpop.f32.mrb[58].mxu0 }
 0x169   :  { %v2731_v5 = vadd.f32 %v2730_v3, %v2729_v0  ;;  %v2732_v54 = vpop.f32.mrb[58].mxu1  ;;  %v2693_v7 = vpop.f32.mrb[59].mxu0 }
 0x16a   :  { %v2047_v10 = vadd.f32 %v2691_v2, %v1982_v56  ;;  %v2694_v59 = vadd.f32 %v2693_v7, %v2692_v4  ;;  %v2733_v57 = vpop.f32.mrb[59].mxu1 }
 0x16b   :  { %v2734_v12 = vadd.f32 %v2733_v57, %v2732_v54 }
 0x16c   :  { %v2112_v40 = vadd.f32 %v2731_v5, %v2047_v10  ;;  %v2050_v14 = vadd.f32 %v2694_v59, %v3744_v13 }
 0x16e   :  { %v2115_v15 = vadd.f32 %v2734_v12, %v2050_v14  ;;  %v2695_v61 = vpop.f32.mrb[60].mxu0 }
 0x16f   :  { %v2735_v16 = vpop.f32.mrb[60].mxu1  ;;  %v2696_v17 = vpop.f32.mrb[61].mxu0 }
 0x170   :  { %v2697_v18 = vadd.f32 %v2696_v17, %v2695_v61  ;;  %v2736_v19 = vpop.f32.mrb[61].mxu1  ;;  %v2698_v20 = vpop.f32.mrb[62].mxu0 }
 0x171   :  { %v2737_v21 = vadd.f32 %v2736_v19, %v2735_v16  ;;  %v2738_v23 = vpop.f32.mrb[62].mxu1  ;;  %v2699_v6 = vpop.f32.mrb[63].mxu0 }
 0x172   :  { %v2055_v9 = vadd.f32 %v2697_v18, %v1990_v8  ;;  %v2700_v27 = vadd.f32 %v2699_v6, %v2698_v20  ;;  %v2739_v29 = vpop.f32.mrb[63].mxu1 }
 0x173   :  { %v2740_v56 = vadd.f32 %v2739_v29, %v2738_v23 }
 0x174   :  { %v2120_v11 = vadd.f32 %v2737_v21, %v2055_v9  ;;  %v2058_v31 = vadd.f32 %v2700_v27, %v3747_v30 }
 0x176   :  { %v2123_v32 = vadd.f32 %v2740_v56, %v2058_v31 }
 0x177   :  { %v2757_v33 = vpop.f32.mrb[64].mxu0  ;;  %v2769_v13 = vpop.f32.mrb[64].mxu1 }
 0x178   :  { %v2758_v34 = vpop.f32.mrb[65].mxu0  ;;  %v2770_v36 = vpop.f32.mrb[65].mxu1 }
 0x179   :  { %v2759_v35 = vadd.f32 %v2758_v34, %v2757_v33  ;;  %v2760_v37 = vpop.f32.mrb[66].mxu0  ;;  %v2771_v41 = vadd.f32 %v2770_v36, %v2769_v13  ;;  %v2772_v22 = vpop.f32.mrb[66].mxu1 }
 0x17a   :  { %v2761_v42 = vpop.f32.mrb[67].mxu0  ;;  %v2773_v8 = vpop.f32.mrb[67].mxu1 }
 0x17b   :  { %v2161_v25 = vadd.f32 %v2759_v35, %v2096_v24  ;;  %v2762_v44 = vadd.f32 %v2761_v42, %v2760_v37  ;;  %v2177_v46 = vadd.f32 %v2771_v41, %v2112_v40  ;;  %v2774_v28 = vadd.f32 %v2773_v8, %v2772_v22 }
 0x17d   :  { %2192 = vst.msk [vmem:[%s3797_s3] sm:$0xff] %vm2191_vm0, %v2161_v25  ;;  %v2164_v30 = vadd.f32 %v2762_v44, %v3750_v47  ;;  %2196 = vst.msk [vmem:[%s3797_s3 + $0x20] sm:$0xff] %vm2191_vm0, %v2177_v46  ;;  %v2180_v48 = vadd.f32 %v2774_v28, %v2115_v15 }
 0x17f   :  { %2193 = vst.msk [vmem:[%s3797_s3 + $0x8] sm:$0xff] %vm2191_vm0, %v2164_v30  ;;  %v2763_v24 = vpop.f32.mrb[68].mxu0  ;;  %2197 = vst.msk [vmem:[%s3797_s3 + $0x28] sm:$0xff] %vm2191_vm0, %v2180_v48  ;;  %v2775_v49 = vpop.f32.mrb[68].mxu1 }
 0x180   :  { %v2764_v50 = vpop.f32.mrb[69].mxu0  ;;  %v2776_v51 = vpop.f32.mrb[69].mxu1 }
 0x181   :  { %v2765_v47 = vadd.f32 %v2764_v50, %v2763_v24  ;;  %v2766_v52 = vpop.f32.mrb[70].mxu0  ;;  %v2777_v38 = vadd.f32 %v2776_v51, %v2775_v49  ;;  %v2778_v53 = vpop.f32.mrb[70].mxu1 }
 0x182   :  { %v2767_v55 = vpop.f32.mrb[71].mxu0  ;;  %v2779_v26 = vpop.f32.mrb[71].mxu1 }
 0x183   :  { %v2169_v39 = vadd.f32 %v2765_v47, %v3752_v43  ;;  %v2768_v58 = vadd.f32 %v2767_v55, %v2766_v52  ;;  %v2185_v60 = vadd.f32 %v2777_v38, %v2120_v11  ;;  %v2780_v62 = vadd.f32 %v2779_v26, %v2778_v53 }
 0x185   :  { %2194 = vst.msk [vmem:[%s3797_s3 + $0x10] sm:$0xff] %vm2191_vm0, %v2169_v39  ;;  %v2172_v63 = vadd.f32 %v2768_v58, %v3755_v45  ;;  %2198 = vst.msk [vmem:[%s3797_s3 + $0x30] sm:$0xff] %vm2191_vm0, %v2185_v60  ;;  %v2188_v0 = vadd.f32 %v2780_v62, %v2123_v32 }
 0x187   :  { %2195 = vst.msk [vmem:[%s3797_s3 + $0x18] sm:$0xff] %vm2191_vm0, %v2172_v63  ;;  %2199 = vst.msk [vmem:[%s3797_s3 + $0x38] sm:$0xff] %vm2191_vm0, %v2188_v0 }

// kernel: foreground_forward.20
= control target key start
LH: loop header
LB: loop body
LE: loop exit
PB: predicated region body
PF: predicated region fallthrough
CT: control target
= control target key end

     0   :  { %vm158_vm0 = vcmask 392192   ;;  %vm464_vm1 = vcmask 130048   ;;  %s877_s1 = inlined_call_operand.vmem [shape: bf16[48,16], index: 1, kind: input, shape index: {}]   ;;  %s878_s0 = inlined_call_operand.vmem [shape: bf16[256,48], index: 0, kind: input, shape index: {}]   ;;  %s879_s2 = inlined_call_operand.vmem [shape: f32[1,16], index: 2, kind: input, shape index: {}]   ;;  %s880_s3 = inlined_call_operand.vmem [shape: f32[256,16], index: 3, kind: output, shape index: {}]  }
   0x1   :  { %v600_v0 = vld [vmem:[%s877_s1] sm:$0xff]   ;;  %v601_v1 = vld [vmem:[%s877_s1 + $0x8] sm:$0xff]   ;;  %v602_v2 = vld [vmem:[%s877_s1 + $0x10] sm:$0xff]  }
   0x2   :  { %556 = vmatprep.subr.bf16.mxu0 %v600_v0  ;;  %594 = vmatprep.subr.bf16.mxu1 %v600_v0  ;;  %v603_v3 = vld [vmem:[%s878_s0] sm:$0xff]   ;;  %v605_v5 = vld [vmem:[%s878_s0 + $0x8] sm:$0xff]   ;;  %v607_v7 = vld [vmem:[%s878_s0 + $0x10] sm:$0xff]  }
   0x3   :  { %557 = vmatpush3.bf16.msra.mxu0 %v600_v0  ;;  %597 = vmatpush3.bf16.msra.mxu1 %v600_v0  ;;  %v604_v4 = vld [vmem:[%s878_s0 + $0x40] sm:$0xff]   ;;  %v606_v6 = vld [vmem:[%s878_s0 + $0x48] sm:$0xff]   ;;  %v608_v8 = vld [vmem:[%s878_s0 + $0x50] sm:$0xff]  }
   0x4   :  { %558 = vmatprep.subr.bf16.mxu0 %v601_v1  ;;  %595 = vmatprep.subr.bf16.mxu1 %v601_v1  ;;  %v609_v9 = vld [vmem:[%s878_s0 + $0x18] sm:$0xff]   ;;  %v611_v11 = vld [vmem:[%s878_s0 + $0x20] sm:$0xff]   ;;  %v613_v13 = vld [vmem:[%s878_s0 + $0x28] sm:$0xff]  }
   0x5   :  { %562 = vmatprep.mubr.msk.bf16.mxu0 %vm158_vm0, %v603_v3  ;;  %578 = vmatprep.mubr.msk.bf16.mxu1 %vm158_vm0, %v604_v4  ;;  %v610_v10 = vld [vmem:[%s878_s0 + $0x58] sm:$0xff]   ;;  %v612_v12 = vld [vmem:[%s878_s0 + $0x60] sm:$0xff]   ;;  %v614_v14 = vld [vmem:[%s878_s0 + $0x68] sm:$0xff]  }
   0x6   :  { %v615_v15 = vld [vmem:[%s878_s0 + $0x30] sm:$0xff]   ;;  %v617_v17 = vld [vmem:[%s878_s0 + $0x38] sm:$0xff]   ;;  %v715_v19 = vld [vmem:[%s879_s2] ss:$0 sm:$0xff] }
   0x7   :  { %559 = vmatpush3.bf16.msra.mxu0 %v601_v1  ;;  %598 = vmatpush3.bf16.msra.mxu1 %v601_v1  ;;  %v616_v16 = vld [vmem:[%s878_s0 + $0x70] sm:$0xff]   ;;  %v618_v18 = vld [vmem:[%s878_s0 + $0x78] sm:$0xff]  }
   0x8   :  { %560 = vmatprep.subr.bf16.mxu0 %v602_v2  ;;  %596 = vmatprep.subr.bf16.mxu1 %v602_v2 }
   0xb   :  { %561 = vmatpush3.bf16.msra.mxu0 %v602_v2  ;;  %599 = vmatpush3.bf16.msra.mxu1 %v602_v2 }
   0xe   :  { %563 = vmatmul.mubr.msk.bf16.vlgmr.msra.gmra.mrb[0].mxu0 %vm158_vm0, %v605_v5  ;;  %579 = vmatmul.mubr.msk.bf16.vlgmr.msra.gmra.mrb[0].mxu1 %vm158_vm0, %v606_v6 }
   0xf   :  { %566 = vmatprep.mubr.msk.bf16.mxu0 %vm158_vm0, %v607_v7  ;;  %582 = vmatprep.mubr.msk.bf16.mxu1 %vm158_vm0, %v608_v8 }
  0x16   :  { %567 = vmatmul.mubr.msk.bf16.gmra.mrb[4].mxu0 %vm158_vm0, %v609_v9  ;;  %583 = vmatmul.mubr.msk.bf16.gmra.mrb[4].mxu1 %vm158_vm0, %v610_v10 }
  0x17   :  { %570 = vmatprep.mubr.msk.bf16.mxu0 %vm158_vm0, %v611_v11  ;;  %586 = vmatprep.mubr.msk.bf16.mxu1 %vm158_vm0, %v612_v12 }
  0x1e   :  { %571 = vmatmul.mubr.msk.bf16.gmra.mrb[8].mxu0 %vm158_vm0, %v613_v13  ;;  %587 = vmatmul.mubr.msk.bf16.gmra.mrb[8].mxu1 %vm158_vm0, %v614_v14 }
  0x1f   :  { %574 = vmatprep.mubr.msk.bf16.mxu0 %vm158_vm0, %v615_v15  ;;  %590 = vmatprep.mubr.msk.bf16.mxu1 %vm158_vm0, %v616_v16 }
  0x26   :  { %575 = vmatmul.mubr.msk.bf16.gmra.mrb[12].mxu0 %vm158_vm0, %v617_v17  ;;  %591 = vmatmul.mubr.msk.bf16.gmra.mrb[12].mxu1 %vm158_vm0, %v618_v18 }
  0xe1   :  { %v564_v20 = vpop.f32.mrb[0].mxu0  ;;  %v580_v21 = vpop.f32.mrb[0].mxu1 }
  0xe2   :  { %v250_v22 = vadd.f32 %v564_v20, %v715_v19  ;;  %v314_v23 = vadd.f32 %v580_v21, %v715_v19  ;;  %v241_v24 = vpop.f32.mrb[1].mxu0  ;;  %v305_v25 = vpop.f32.mrb[1].mxu1 }
  0xe3   :  { %v242_v26 = vadd.f32 %v715_v19, %v241_v24  ;;  %v306_v27 = vadd.f32 %v715_v19, %v305_v25  ;;  %v565_v28 = vpop.f32.mrb[2].mxu0  ;;  %v581_v29 = vpop.f32.mrb[2].mxu1 }
  0xe4   :  { %vm370_vm2 = vcmp.ge.f32.partialorder %v250_v22, 0.0  ;;  %v402_v30 = vmul.f32 0.01, %v250_v22  ;;  %vm386_vm3 = vcmp.ge.f32.partialorder %v314_v23, 0.0  ;;  %v418_v31 = vmul.f32 0.01, %v314_v23 }
  0xe5   :  { %vm368_vm4 = vcmp.ge.f32.partialorder %v242_v26, 0.0  ;;  %v400_v32 = vmul.f32 0.01, %v242_v26  ;;  %vm384_vm5 = vcmp.ge.f32.partialorder %v306_v27, 0.0  ;;  %v416_v33 = vmul.f32 0.01, %v306_v27 }
  0xe6   :  { %v434_v34 = vsel %vm370_vm2, %v250_v22, %v402_v30  ;;  %v450_v35 = vsel %vm386_vm3, %v314_v23, %v418_v31  ;;  %v253_v36 = vadd.f32 %v565_v28, %v715_v19  ;;  %v317_v37 = vadd.f32 %v581_v29, %v715_v19  ;;  %v244_v38 = vpop.f32.mrb[3].mxu0  ;;  %v308_v39 = vpop.f32.mrb[3].mxu1 }
  0xe7   :  { %467 = vst.msk [vmem:[%s880_s3 + $0x10] sm:$0xff] %vm464_vm1, %v434_v34  ;;  %483 = vst.msk [vmem:[%s880_s3 + $0x90] sm:$0xff] %vm464_vm1, %v450_v35  ;;  %v432_v40 = vsel %vm368_vm4, %v242_v26, %v400_v32  ;;  %v448_v41 = vsel %vm384_vm5, %v306_v27, %v416_v33  ;;  %v245_v42 = vadd.f32 %v715_v19, %v244_v38 }
  0xe8   :  { %v309_v43 = vadd.f32 %v715_v19, %v308_v39  ;;  %465 = vst.msk [vmem:[%s880_s3] sm:$0xff] %vm464_vm1, %v432_v40  ;;  %481 = vst.msk [vmem:[%s880_s3 + $0x80] sm:$0xff] %vm464_vm1, %v448_v41  ;;  %vm371_vm6 = vcmp.ge.f32.partialorder %v253_v36, 0.0  ;;  %v403_v44 = vmul.f32 0.01, %v253_v36  ;;  %vm387_vm7 = vcmp.ge.f32.partialorder %v317_v37, 0.0 }
  0xe9   :  { %v419_v45 = vmul.f32 0.01, %v317_v37  ;;  %vm369_vm8 = vcmp.ge.f32.partialorder %v245_v42, 0.0  ;;  %v401_v46 = vmul.f32 0.01, %v245_v42  ;;  %v568_v50 = vpop.f32.mrb[4].mxu0 }
  0xea   :  { %vm385_vm9 = vcmp.ge.f32.partialorder %v309_v43, 0.0  ;;  %v417_v47 = vmul.f32 0.01, %v309_v43  ;;  %v435_v48 = vsel %vm371_vm6, %v253_v36, %v403_v44  ;;  %v584_v51 = vpop.f32.mrb[4].mxu1  ;;  %v266_v54 = vadd.f32 %v568_v50, %v715_v19  ;;  %v257_v56 = vpop.f32.mrb[5].mxu0 }
  0xeb   :  { %v451_v49 = vsel %vm387_vm7, %v317_v37, %v419_v45  ;;  %468 = vst.msk [vmem:[%s880_s3 + $0x18] sm:$0xff] %vm464_vm1, %v435_v48  ;;  %v433_v52 = vsel %vm369_vm8, %v245_v42, %v401_v46  ;;  %v330_v55 = vadd.f32 %v584_v51, %v715_v19  ;;  %v321_v57 = vpop.f32.mrb[5].mxu1  ;;  %v258_v58 = vadd.f32 %v715_v19, %v257_v56  ;;  %v569_v60 = vpop.f32.mrb[6].mxu0 }
  0xec   :  { %484 = vst.msk [vmem:[%s880_s3 + $0x98] sm:$0xff] %vm464_vm1, %v451_v49  ;;  %v449_v53 = vsel %vm385_vm9, %v309_v43, %v417_v47  ;;  %466 = vst.msk [vmem:[%s880_s3 + $0x8] sm:$0xff] %vm464_vm1, %v433_v52  ;;  %v322_v59 = vadd.f32 %v715_v19, %v321_v57  ;;  %v585_v61 = vpop.f32.mrb[6].mxu1  ;;  %vm374_vm10 = vcmp.ge.f32.partialorder %v266_v54, 0.0  ;;  %v406_v62 = vmul.f32 0.01, %v266_v54 }
  0xed   :  { %482 = vst.msk [vmem:[%s880_s3 + $0x88] sm:$0xff] %vm464_vm1, %v449_v53  ;;  %vm390_vm11 = vcmp.ge.f32.partialorder %v330_v55, 0.0  ;;  %v422_v63 = vmul.f32 0.01, %v330_v55  ;;  %vm372_vm12 = vcmp.ge.f32.partialorder %v258_v58, 0.0  ;;  %v269_v4 = vadd.f32 %v569_v60, %v715_v19  ;;  %v260_v6 = vpop.f32.mrb[7].mxu0 }
  0xee   :  { %v404_v0 = vmul.f32 0.01, %v258_v58  ;;  %vm388_vm13 = vcmp.ge.f32.partialorder %v322_v59, 0.0  ;;  %v420_v1 = vmul.f32 0.01, %v322_v59  ;;  %v438_v2 = vsel %vm374_vm10, %v266_v54, %v406_v62  ;;  %v324_v7 = vpop.f32.mrb[7].mxu1 }
  0xef   :  { %v454_v3 = vsel %vm390_vm11, %v330_v55, %v422_v63  ;;  %v333_v5 = vadd.f32 %v585_v61, %v715_v19  ;;  %471 = vst.msk [vmem:[%s880_s3 + $0x30] sm:$0xff] %vm464_vm1, %v438_v2  ;;  %v261_v10 = vadd.f32 %v715_v19, %v260_v6  ;;  %v325_v11 = vadd.f32 %v715_v19, %v324_v7 }
  0xf0   :  { %487 = vst.msk [vmem:[%s880_s3 + $0xb0] sm:$0xff] %vm464_vm1, %v454_v3  ;;  %v436_v8 = vsel %vm372_vm12, %v258_v58, %v404_v0  ;;  %v452_v9 = vsel %vm388_vm13, %v322_v59, %v420_v1  ;;  %vm375_vm14 = vcmp.ge.f32.partialorder %v269_v4, 0.0  ;;  %v407_v12 = vmul.f32 0.01, %v269_v4 }
  0xf1   :  { %469 = vst.msk [vmem:[%s880_s3 + $0x20] sm:$0xff] %vm464_vm1, %v436_v8  ;;  %485 = vst.msk [vmem:[%s880_s3 + $0xa0] sm:$0xff] %vm464_vm1, %v452_v9  ;;  %vm391_vm15 = vcmp.ge.f32.partialorder %v333_v5, 0.0  ;;  %v423_v13 = vmul.f32 0.01, %v333_v5  ;;  %vm373_vm0 = vcmp.ge.f32.partialorder %v261_v10, 0.0 }
  0xf2   :  { %v405_v14 = vmul.f32 0.01, %v261_v10  ;;  %vm389_vm2 = vcmp.ge.f32.partialorder %v325_v11, 0.0  ;;  %v421_v15 = vmul.f32 0.01, %v325_v11  ;;  %v439_v16 = vsel %vm375_vm14, %v269_v4, %v407_v12  ;;  %v572_v18 = vpop.f32.mrb[8].mxu0 }
  0xf3   :  { %v455_v17 = vsel %vm391_vm15, %v333_v5, %v423_v13  ;;  %v588_v20 = vpop.f32.mrb[8].mxu1  ;;  %472 = vst.msk [vmem:[%s880_s3 + $0x38] sm:$0xff] %vm464_vm1, %v439_v16  ;;  %v282_v23 = vadd.f32 %v572_v18, %v715_v19  ;;  %v273_v25 = vpop.f32.mrb[9].mxu0 }
  0xf4   :  { %488 = vst.msk [vmem:[%s880_s3 + $0xb8] sm:$0xff] %vm464_vm1, %v455_v17  ;;  %v437_v21 = vsel %vm373_vm0, %v261_v10, %v405_v14  ;;  %v453_v22 = vsel %vm389_vm2, %v325_v11, %v421_v15  ;;  %v346_v24 = vadd.f32 %v588_v20, %v715_v19  ;;  %v337_v26 = vpop.f32.mrb[9].mxu1  ;;  %v274_v27 = vadd.f32 %v715_v19, %v273_v25  ;;  %v573_v29 = vpop.f32.mrb[10].mxu0 }
  0xf5   :  { %470 = vst.msk [vmem:[%s880_s3 + $0x28] sm:$0xff] %vm464_vm1, %v437_v21  ;;  %486 = vst.msk [vmem:[%s880_s3 + $0xa8] sm:$0xff] %vm464_vm1, %v453_v22  ;;  %v338_v28 = vadd.f32 %v715_v19, %v337_v26  ;;  %v589_v30 = vpop.f32.mrb[10].mxu1  ;;  %vm378_vm3 = vcmp.ge.f32.partialorder %v282_v23, 0.0  ;;  %v410_v31 = vmul.f32 0.01, %v282_v23  ;;  %v285_v37 = vadd.f32 %v573_v29, %v715_v19 }
  0xf6   :  { %vm394_vm4 = vcmp.ge.f32.partialorder %v346_v24, 0.0  ;;  %v426_v32 = vmul.f32 0.01, %v346_v24  ;;  %vm376_vm5 = vcmp.ge.f32.partialorder %v274_v27, 0.0  ;;  %v408_v33 = vmul.f32 0.01, %v274_v27 }
  0xf7   :  { %vm392_vm6 = vcmp.ge.f32.partialorder %v338_v28, 0.0  ;;  %v424_v34 = vmul.f32 0.01, %v338_v28  ;;  %v442_v35 = vsel %vm378_vm3, %v282_v23, %v410_v31  ;;  %v349_v38 = vadd.f32 %v589_v30, %v715_v19  ;;  %v276_v39 = vpop.f32.mrb[11].mxu0  ;;  %v340_v40 = vpop.f32.mrb[11].mxu1 }
  0xf8   :  { %v458_v36 = vsel %vm394_vm4, %v346_v24, %v426_v32  ;;  %475 = vst.msk [vmem:[%s880_s3 + $0x50] sm:$0xff] %vm464_vm1, %v442_v35  ;;  %v440_v41 = vsel %vm376_vm5, %v274_v27, %v408_v33  ;;  %v277_v43 = vadd.f32 %v715_v19, %v276_v39  ;;  %v341_v44 = vadd.f32 %v715_v19, %v340_v40 }
  0xf9   :  { %491 = vst.msk [vmem:[%s880_s3 + $0xd0] sm:$0xff] %vm464_vm1, %v458_v36  ;;  %v456_v42 = vsel %vm392_vm6, %v338_v28, %v424_v34  ;;  %v576_v45 = vpop.f32.mrb[12].mxu0  ;;  %v592_v46 = vpop.f32.mrb[12].mxu1  ;;  %473 = vst.msk [vmem:[%s880_s3 + $0x40] sm:$0xff] %vm464_vm1, %v440_v41  ;;  %vm379_vm7 = vcmp.ge.f32.partialorder %v285_v37, 0.0  ;;  %vm395_vm8 = vcmp.ge.f32.partialorder %v349_v38, 0.0 }
  0xfa   :  { %489 = vst.msk [vmem:[%s880_s3 + $0xc0] sm:$0xff] %vm464_vm1, %v456_v42  ;;  %v411_v47 = vmul.f32 0.01, %v285_v37  ;;  %v427_v48 = vmul.f32 0.01, %v349_v38  ;;  %vm377_vm9 = vcmp.ge.f32.partialorder %v277_v43, 0.0  ;;  %v298_v53 = vadd.f32 %v576_v45, %v715_v19 }
  0xfb   :  { %v409_v49 = vmul.f32 0.01, %v277_v43  ;;  %vm393_vm10 = vcmp.ge.f32.partialorder %v341_v44, 0.0  ;;  %v425_v50 = vmul.f32 0.01, %v341_v44  ;;  %v362_v54 = vadd.f32 %v592_v46, %v715_v19  ;;  %v289_v55 = vpop.f32.mrb[13].mxu0 }
  0xfc   :  { %v443_v51 = vsel %vm379_vm7, %v285_v37, %v411_v47  ;;  %v459_v52 = vsel %vm395_vm8, %v349_v38, %v427_v48  ;;  %v353_v56 = vpop.f32.mrb[13].mxu1  ;;  %v290_v59 = vadd.f32 %v715_v19, %v289_v55  ;;  %v577_v61 = vpop.f32.mrb[14].mxu0  ;;  %vm382_vm11 = vcmp.ge.f32.partialorder %v298_v53, 0.0 }
  0xfd   :  { %476 = vst.msk [vmem:[%s880_s3 + $0x58] sm:$0xff] %vm464_vm1, %v443_v51  ;;  %492 = vst.msk [vmem:[%s880_s3 + $0xd8] sm:$0xff] %vm464_vm1, %v459_v52  ;;  %v441_v57 = vsel %vm377_vm9, %v277_v43, %v409_v49  ;;  %v457_v58 = vsel %vm393_vm10, %v341_v44, %v425_v50  ;;  %v354_v60 = vadd.f32 %v715_v19, %v353_v56  ;;  %v593_v62 = vpop.f32.mrb[14].mxu1  ;;  %v414_v63 = vmul.f32 0.01, %v298_v53  ;;  %v292_v7 = vpop.f32.mrb[15].mxu0 }
  0xfe   :  { %474 = vst.msk [vmem:[%s880_s3 + $0x48] sm:$0xff] %vm464_vm1, %v441_v57  ;;  %490 = vst.msk [vmem:[%s880_s3 + $0xc8] sm:$0xff] %vm464_vm1, %v457_v58  ;;  %vm398_vm12 = vcmp.ge.f32.partialorder %v362_v54, 0.0  ;;  %v430_v0 = vmul.f32 0.01, %v362_v54  ;;  %vm380_vm13 = vcmp.ge.f32.partialorder %v290_v59, 0.0  ;;  %v301_v5 = vadd.f32 %v577_v61, %v715_v19 }
  0xff   :  { %v412_v1 = vmul.f32 0.01, %v290_v59  ;;  %vm396_vm14 = vcmp.ge.f32.partialorder %v354_v60, 0.0  ;;  %v428_v2 = vmul.f32 0.01, %v354_v60  ;;  %v446_v3 = vsel %vm382_vm11, %v298_v53, %v414_v63  ;;  %v356_v8 = vpop.f32.mrb[15].mxu1 }
 0x100   :  { %v462_v4 = vsel %vm398_vm12, %v362_v54, %v430_v0  ;;  %v365_v6 = vadd.f32 %v593_v62, %v715_v19  ;;  %479 = vst.msk [vmem:[%s880_s3 + $0x70] sm:$0xff] %vm464_vm1, %v446_v3  ;;  %v293_v11 = vadd.f32 %v715_v19, %v292_v7  ;;  %v357_v12 = vadd.f32 %v715_v19, %v356_v8 }
 0x101   :  { %495 = vst.msk [vmem:[%s880_s3 + $0xf0] sm:$0xff] %vm464_vm1, %v462_v4  ;;  %v444_v9 = vsel %vm380_vm13, %v290_v59, %v412_v1  ;;  %v460_v10 = vsel %vm396_vm14, %v354_v60, %v428_v2  ;;  %vm383_vm15 = vcmp.ge.f32.partialorder %v301_v5, 0.0  ;;  %v415_v13 = vmul.f32 0.01, %v301_v5 }
 0x102   :  { %477 = vst.msk [vmem:[%s880_s3 + $0x60] sm:$0xff] %vm464_vm1, %v444_v9  ;;  %493 = vst.msk [vmem:[%s880_s3 + $0xe0] sm:$0xff] %vm464_vm1, %v460_v10  ;;  %vm399_vm0 = vcmp.ge.f32.partialorder %v365_v6, 0.0  ;;  %v431_v14 = vmul.f32 0.01, %v365_v6  ;;  %vm381_vm2 = vcmp.ge.f32.partialorder %v293_v11, 0.0 }
 0x103   :  { %v413_v15 = vmul.f32 0.01, %v293_v11  ;;  %vm397_vm3 = vcmp.ge.f32.partialorder %v357_v12, 0.0  ;;  %v429_v16 = vmul.f32 0.01, %v357_v12  ;;  %v447_v17 = vsel %vm383_vm15, %v301_v5, %v415_v13 }
 0x104   :  { %v463_v19 = vsel %vm399_vm0, %v365_v6, %v431_v14  ;;  %480 = vst.msk [vmem:[%s880_s3 + $0x78] sm:$0xff] %vm464_vm1, %v447_v17 }
 0x105   :  { %496 = vst.msk [vmem:[%s880_s3 + $0xf8] sm:$0xff] %vm464_vm1, %v463_v19  ;;  %v445_v18 = vsel %vm381_vm2, %v293_v11, %v413_v15  ;;  %v461_v20 = vsel %vm397_vm3, %v357_v12, %v429_v16 }
 0x106   :  { %478 = vst.msk [vmem:[%s880_s3 + $0x68] sm:$0xff] %vm464_vm1, %v445_v18  ;;  %494 = vst.msk [vmem:[%s880_s3 + $0xe8] sm:$0xff] %vm464_vm1, %v461_v20 }

// kernel: foreground_forward.21
= control target key start
LH: loop header
LB: loop body
LE: loop exit
PB: predicated region body
PF: predicated region fallthrough
CT: control target
= control target key end

     0   :  { %vm287_vm0 = vcmask 261120   ;;  %s536_s1 = inlined_call_operand.vmem [shape: bf16[256,32], index: 1, kind: input, shape index: {}]   ;;  %s537_s0 = inlined_call_operand.vmem [shape: bf16[64,256], index: 0, kind: input, shape index: {}]   ;;  %s538_s2 = inlined_call_operand.vmem [shape: f32[1,32], index: 2, kind: input, shape index: {}]   ;;  %s539_s3 = inlined_call_operand.vmem [shape: f32[64,32], index: 3, kind: output, shape index: {}]  }
   0x1   :  { %v381_v0 = vld [vmem:[%s536_s1 + $0x40] sm:$0xff]   ;;  %v383_v2 = vld [vmem:[%s536_s1 + $0x48] sm:$0xff]   ;;  %v385_v4 = vld [vmem:[%s536_s1 + $0x50] sm:$0xff]  }
   0x2   :  { %v382_v1 = vld [vmem:[%s536_s1] sm:$0xff]   ;;  %325 = vmatprep.subr.bf16.mxu0 %v381_v0  ;;  %365 = vmatprep.subr.bf16.mxu1 %v381_v0  ;;  %v384_v3 = vld [vmem:[%s536_s1 + $0x8] sm:$0xff]   ;;  %v386_v5 = vld [vmem:[%s536_s1 + $0x10] sm:$0xff]  }
   0x3   :  { %326 = vmatpush3.bf16.msra.mxu0 %v382_v1  ;;  %373 = vmatpush3.bf16.msra.mxu1 %v382_v1  ;;  %v387_v6 = vld [vmem:[%s536_s1 + $0x58] sm:$0xff]   ;;  %v389_v8 = vld [vmem:[%s536_s1 + $0x60] sm:$0xff]   ;;  %v391_v10 = vld [vmem:[%s536_s1 + $0x68] sm:$0xff]  }
   0x4   :  { %327 = vmatprep.subr.bf16.mxu0 %v383_v2  ;;  %366 = vmatprep.subr.bf16.mxu1 %v383_v2  ;;  %v388_v7 = vld [vmem:[%s536_s1 + $0x18] sm:$0xff]   ;;  %v390_v9 = vld [vmem:[%s536_s1 + $0x20] sm:$0xff]   ;;  %v392_v13 = vld [vmem:[%s536_s1 + $0x28] sm:$0xff]  }
   0x5   :  { %v399_v11 = vld [vmem:[%s537_s0 + $0x4] ss:$8 sps:$4 sm:$0xff]   ;;  %v393_v14 = vld [vmem:[%s536_s1 + $0x70] sm:$0xff]   ;;  %v395_v16 = vld [vmem:[%s536_s1 + $0x78] sm:$0xff]  }
   0x6   :  { %v402_v12 = vld [vmem:[%s537_s0 + $0x24] ss:$8 sps:$4 sm:$0xff]   ;;  %230 = vmatprep.mubr.bf16.mxu0 %v399_v11  ;;  %v394_v15 = vld [vmem:[%s536_s1 + $0x30] sm:$0xff]   ;;  %v396_v17 = vld [vmem:[%s536_s1 + $0x38] sm:$0xff]  }
   0x7   :  { %328 = vmatpush3.bf16.msra.mxu0 %v384_v3  ;;  %374 = vmatpush3.bf16.msra.mxu1 %v384_v3  ;;  %v397_v18 = vld [vmem:[%s537_s0] ss:$8 sps:$4 sm:$0xff]   ;;  %v403_v20 = vld [vmem:[%s537_s0 + $0x14] ss:$8 sps:$4 sm:$0xff]   ;;  %v407_v22 = vld [vmem:[%s537_s0 + $0x10] ss:$8 sps:$4 sm:$0xff]  }
   0x8   :  { %329 = vmatprep.subr.bf16.mxu0 %v385_v4  ;;  %367 = vmatprep.subr.bf16.mxu1 %v385_v4  ;;  %v400_v19 = vld [vmem:[%s537_s0 + $0x20] ss:$8 sps:$4 sm:$0xff]   ;;  %v405_v21 = vld [vmem:[%s537_s0 + $0x34] ss:$8 sps:$4 sm:$0xff]   ;;  %v408_v23 = vld [vmem:[%s537_s0 + $0x30] ss:$8 sps:$4 sm:$0xff]  }
   0x9   :  { %246 = vmatprep.mubr.bf16.mxu1 %v402_v12  ;;  %v300_v26 = vld [vmem:[%s538_s2] ss:$0 sm:$0xff] }
   0xb   :  { %330 = vmatpush3.bf16.msra.mxu0 %v386_v5  ;;  %375 = vmatpush3.bf16.msra.mxu1 %v386_v5 }
   0xc   :  { %331 = vmatprep.subr.bf16.mxu0 %v387_v6  ;;  %368 = vmatprep.subr.bf16.mxu1 %v387_v6 }
   0xf   :  { %332 = vmatpush3.bf16.msra.mxu0 %v388_v7  ;;  %376 = vmatpush3.bf16.msra.mxu1 %v388_v7 }
  0x10   :  { %333 = vmatprep.subr.bf16.mxu0 %v389_v8  ;;  %369 = vmatprep.subr.bf16.mxu1 %v389_v8 }
  0x13   :  { %334 = vmatpush3.bf16.msra.mxu0 %v390_v9  ;;  %377 = vmatpush3.bf16.msra.mxu1 %v390_v9 }
  0x14   :  { %335 = vmatprep.subr.bf16.mxu0 %v391_v10  ;;  %370 = vmatprep.subr.bf16.mxu1 %v391_v10 }
  0x17   :  { %336 = vmatpush3.bf16.msra.mxu0 %v392_v13  ;;  %378 = vmatpush3.bf16.msra.mxu1 %v392_v13 }
  0x18   :  { %337 = vmatprep.subr.bf16.mxu0 %v393_v14  ;;  %371 = vmatprep.subr.bf16.mxu1 %v393_v14 }
  0x1b   :  { %338 = vmatpush3.bf16.msra.mxu0 %v394_v15  ;;  %379 = vmatpush3.bf16.msra.mxu1 %v394_v15 }
  0x1c   :  { %339 = vmatprep.subr.bf16.mxu0 %v395_v16  ;;  %372 = vmatprep.subr.bf16.mxu1 %v395_v16 }
  0x1f   :  { %340 = vmatpush3.bf16.msra.mxu0 %v396_v17  ;;  %380 = vmatpush3.bf16.msra.mxu1 %v396_v17 }
  0x22   :  { %231 = vmatmul.mubr.bf16.vlgmr.msra.gmra.mrb[0].mxu0 %v397_v18  ;;  %247 = vmatmul.mubr.bf16.vlgmr.msra.gmra.mrb[0].mxu1 %v400_v19 }
  0x23   :  { %238 = vmatprep.mubr.bf16.mxu0 %v403_v20  ;;  %254 = vmatprep.mubr.bf16.mxu1 %v405_v21 }
  0x2a   :  { %239 = vmatmul.mubr.bf16.gmra.mrb[4].mxu0 %v407_v22  ;;  %255 = vmatmul.mubr.bf16.gmra.mrb[4].mxu1 %v408_v23 }
  0xf5   :  { %v341_v24 = vpop.f32.mrb[0].mxu0  ;;  %v353_v25 = vpop.f32.mrb[0].mxu1 }
  0xf6   :  { %v342_v27 = vpop.f32.mrb[1].mxu0  ;;  %v354_v28 = vpop.f32.mrb[1].mxu1 }
  0xf7   :  { %v343_v29 = vadd.f32 %v342_v27, %v341_v24  ;;  %v355_v30 = vadd.f32 %v354_v28, %v353_v25  ;;  %v344_v31 = vpop.f32.mrb[2].mxu0  ;;  %v356_v32 = vpop.f32.mrb[2].mxu1 }
  0xf8   :  { %v345_v33 = vpop.f32.mrb[3].mxu0  ;;  %v357_v34 = vpop.f32.mrb[3].mxu1 }
  0xf9   :  { %v233_v35 = vadd.f32 %v343_v29, %v300_v26  ;;  %v249_v36 = vadd.f32 %v355_v30, %v300_v26  ;;  %v346_v37 = vadd.f32 %v345_v33, %v344_v31  ;;  %v358_v38 = vadd.f32 %v357_v34, %v356_v32 }
  0xfb   :  { %vm263_vm1 = vcmp.ge.f32.partialorder %v233_v35, 0.0  ;;  %v271_v39 = vmul.f32 0.01, %v233_v35  ;;  %vm267_vm2 = vcmp.ge.f32.partialorder %v249_v36, 0.0  ;;  %v275_v40 = vmul.f32 0.01, %v249_v36 }
  0xfc   :  { %v236_v41 = vadd.f32 %v346_v37, %v300_v26  ;;  %v252_v42 = vadd.f32 %v358_v38, %v300_v26 }
  0xfd   :  { %v279_v43 = vsel %vm263_vm1, %v233_v35, %v271_v39  ;;  %v283_v44 = vsel %vm267_vm2, %v249_v36, %v275_v40  ;;  %v347_v45 = vpop.f32.mrb[4].mxu0  ;;  %v359_v46 = vpop.f32.mrb[4].mxu1 }
  0xfe   :  { %288 = vst.msk [vmem:[%s539_s3] sm:$0xff] %vm287_vm0, %v279_v43  ;;  %292 = vst.msk [vmem:[%s539_s3 + $0x20] sm:$0xff] %vm287_vm0, %v283_v44  ;;  %vm264_vm3 = vcmp.ge.f32.partialorder %v236_v41, 0.0  ;;  %v272_v47 = vmul.f32 0.01, %v236_v41  ;;  %vm268_vm4 = vcmp.ge.f32.partialorder %v252_v42, 0.0 }
  0xff   :  { %v276_v48 = vmul.f32 0.01, %v252_v42  ;;  %v348_v49 = vpop.f32.mrb[5].mxu0  ;;  %v360_v50 = vpop.f32.mrb[5].mxu1 }
 0x100   :  { %v280_v51 = vsel %vm264_vm3, %v236_v41, %v272_v47  ;;  %v349_v53 = vadd.f32 %v348_v49, %v347_v45  ;;  %v361_v54 = vadd.f32 %v360_v50, %v359_v46  ;;  %v350_v55 = vpop.f32.mrb[6].mxu0  ;;  %v362_v56 = vpop.f32.mrb[6].mxu1 }
 0x101   :  { %v284_v52 = vsel %vm268_vm4, %v252_v42, %v276_v48  ;;  %289 = vst.msk [vmem:[%s539_s3 + $0x8] sm:$0xff] %vm287_vm0, %v280_v51  ;;  %v351_v57 = vpop.f32.mrb[7].mxu0  ;;  %v363_v58 = vpop.f32.mrb[7].mxu1 }
 0x102   :  { %293 = vst.msk [vmem:[%s539_s3 + $0x28] sm:$0xff] %vm287_vm0, %v284_v52  ;;  %v241_v59 = vadd.f32 %v349_v53, %v300_v26  ;;  %v257_v60 = vadd.f32 %v361_v54, %v300_v26  ;;  %v352_v61 = vadd.f32 %v351_v57, %v350_v55  ;;  %v364_v62 = vadd.f32 %v363_v58, %v362_v56 }
 0x104   :  { %vm265_vm5 = vcmp.ge.f32.partialorder %v241_v59, 0.0  ;;  %v273_v63 = vmul.f32 0.01, %v241_v59  ;;  %vm269_vm6 = vcmp.ge.f32.partialorder %v257_v60, 0.0  ;;  %v277_v0 = vmul.f32 0.01, %v257_v60 }
 0x105   :  { %v244_v1 = vadd.f32 %v352_v61, %v300_v26  ;;  %v260_v2 = vadd.f32 %v364_v62, %v300_v26 }
 0x106   :  { %v281_v3 = vsel %vm265_vm5, %v241_v59, %v273_v63  ;;  %v285_v4 = vsel %vm269_vm6, %v257_v60, %v277_v0 }
 0x107   :  { %290 = vst.msk [vmem:[%s539_s3 + $0x10] sm:$0xff] %vm287_vm0, %v281_v3  ;;  %294 = vst.msk [vmem:[%s539_s3 + $0x30] sm:$0xff] %vm287_vm0, %v285_v4  ;;  %vm266_vm7 = vcmp.ge.f32.partialorder %v244_v1, 0.0  ;;  %v274_v5 = vmul.f32 0.01, %v244_v1  ;;  %vm270_vm8 = vcmp.ge.f32.partialorder %v260_v2, 0.0 }
 0x108   :  { %v278_v6 = vmul.f32 0.01, %v260_v2 }
 0x109   :  { %v282_v7 = vsel %vm266_vm7, %v244_v1, %v274_v5 }
 0x10a   :  { %v286_v8 = vsel %vm270_vm8, %v260_v2, %v278_v6  ;;  %291 = vst.msk [vmem:[%s539_s3 + $0x18] sm:$0xff] %vm287_vm0, %v282_v7 }
 0x10b   :  { %295 = vst.msk [vmem:[%s539_s3 + $0x38] sm:$0xff] %vm287_vm0, %v286_v8 }

// kernel: foreground_forward.22
= control target key start
LH: loop header
LB: loop body
LE: loop exit
PB: predicated region body
PF: predicated region fallthrough
CT: control target
= control target key end

     0   :  { %vm390_vm1 = vcmask 523264   ;;  %s653_s1 = inlined_call_operand.vmem [shape: bf16[512,64], index: 1, kind: input, shape index: {}]   ;;  %s654_s0 = inlined_call_operand.vmem [shape: bf16[16,512], index: 0, kind: input, shape index: {}]   ;;  %s655_s2 = inlined_call_operand.vmem [shape: f32[1,64], index: 2, kind: input, shape index: {}]   ;;  %s656_s3 = inlined_call_operand.vmem [shape: f32[16,64], index: 3, kind: output, shape index: {}]  }
   0x1   :  { %v478_v0 = vld [vmem:[%s653_s1 + $0x40] sm:$0xff]   ;;  %v482_v4 = vld [vmem:[%s653_s1 + $0x48] sm:$0xff]   ;;  %v486_v8 = vld [vmem:[%s653_s1 + $0x50] sm:$0xff]  }
   0x2   :  { %v479_v1 = vld [vmem:[%s653_s1 + $0xc0] sm:$0xff]   ;;  %434 = vmatprep.subr.bf16.mxu0 %v478_v0  ;;  %v483_v5 = vld [vmem:[%s653_s1 + $0xc8] sm:$0xff]   ;;  %v487_v9 = vld [vmem:[%s653_s1 + $0xd0] sm:$0xff]  }
   0x3   :  { %v480_v2 = vld [vmem:[%s653_s1] sm:$0xff]   ;;  %456 = vmatprep.subr.bf16.mxu1 %v479_v1  ;;  %v484_v6 = vld [vmem:[%s653_s1 + $0x8] sm:$0xff]   ;;  %v488_v10 = vld [vmem:[%s653_s1 + $0x10] sm:$0xff]  }
   0x4   :  { %v481_v3 = vld [vmem:[%s653_s1 + $0x80] sm:$0xff]   ;;  %435 = vmatpush3.bf16.msra.mxu0 %v480_v2  ;;  %v485_v7 = vld [vmem:[%s653_s1 + $0x88] sm:$0xff]   ;;  %v489_v11 = vld [vmem:[%s653_s1 + $0x90] sm:$0xff]  }
   0x5   :  { %457 = vmatpush3.bf16.msra.mxu1 %v481_v3  ;;  %436 = vmatprep.subr.bf16.mxu0 %v482_v4  ;;  %v490_v12 = vld [vmem:[%s653_s1 + $0x58] sm:$0xff]   ;;  %v494_v16 = vld [vmem:[%s653_s1 + $0x60] sm:$0xff]   ;;  %v498_v20 = vld [vmem:[%s653_s1 + $0x68] sm:$0xff]  }
   0x6   :  { %458 = vmatprep.subr.bf16.mxu1 %v483_v5  ;;  %v491_v13 = vld [vmem:[%s653_s1 + $0xd8] sm:$0xff]   ;;  %v495_v17 = vld [vmem:[%s653_s1 + $0xe0] sm:$0xff]   ;;  %v499_v21 = vld [vmem:[%s653_s1 + $0xe8] sm:$0xff]  }
   0x7   :  { %v492_v14 = vld [vmem:[%s653_s1 + $0x18] sm:$0xff]   ;;  %v496_v18 = vld [vmem:[%s653_s1 + $0x20] sm:$0xff]   ;;  %v500_v22 = vld [vmem:[%s653_s1 + $0x28] sm:$0xff]  }
   0x8   :  { %437 = vmatpush3.bf16.msra.mxu0 %v484_v6  ;;  %v493_v15 = vld [vmem:[%s653_s1 + $0x98] sm:$0xff]   ;;  %v497_v19 = vld [vmem:[%s653_s1 + $0xa0] sm:$0xff]   ;;  %v501_v23 = vld [vmem:[%s653_s1 + $0xa8] sm:$0xff]  }
   0x9   :  { %459 = vmatpush3.bf16.msra.mxu1 %v485_v7  ;;  %438 = vmatprep.subr.bf16.mxu0 %v486_v8  ;;  %v502_v24 = vld [vmem:[%s653_s1 + $0x70] sm:$0xff]   ;;  %v506_v28 = vld [vmem:[%s653_s1 + $0x78] sm:$0xff]   ;;  %v397_v38 = vld [vmem:[%s655_s2] ss:$0 sm:$0xff] }
   0xa   :  { %460 = vmatprep.subr.bf16.mxu1 %v487_v9  ;;  %v503_v25 = vld [vmem:[%s653_s1 + $0xf0] sm:$0xff]   ;;  %v507_v29 = vld [vmem:[%s653_s1 + $0xf8] sm:$0xff]  }
   0xb   :  { %v504_v26 = vld [vmem:[%s653_s1 + $0x30] sm:$0xff]   ;;  %v508_v30 = vld [vmem:[%s653_s1 + $0x38] sm:$0xff]  }
   0xc   :  { %439 = vmatpush3.bf16.msra.mxu0 %v488_v10  ;;  %v505_v27 = vld [vmem:[%s653_s1 + $0xb0] sm:$0xff]   ;;  %v509_v31 = vld [vmem:[%s653_s1 + $0xb8] sm:$0xff]  }
   0xd   :  { %461 = vmatpush3.bf16.msra.mxu1 %v489_v11  ;;  %440 = vmatprep.subr.bf16.mxu0 %v490_v12  ;;  %v510_v32 = vld [vmem:[%s654_s0] ss:$16 sps:$4 sm:$0xff]   ;;  %v512_v33 = vld [vmem:[%s654_s0 + $0x4] ss:$16 sps:$4 sm:$0xff]   ;;  %v513_v34 = vld [vmem:[%s654_s0 + $0x8] ss:$16 sps:$4 sm:$0xff]  }
   0xe   :  { %462 = vmatprep.subr.bf16.mxu1 %v491_v13  ;;  %v515_v35 = vld [vmem:[%s654_s0 + $0xc] ss:$16 sps:$4 sm:$0xff]   ;;  %334 = vmatprep.mubr.bf16.mxu0 %v512_v33 }
   0xf   :  { %375 = vmatprep.mubr.bf16.mxu1 %v515_v35 }
  0x10   :  { %441 = vmatpush3.bf16.msra.mxu0 %v492_v14 }
  0x11   :  { %463 = vmatpush3.bf16.msra.mxu1 %v493_v15  ;;  %442 = vmatprep.subr.bf16.mxu0 %v494_v16 }
  0x12   :  { %464 = vmatprep.subr.bf16.mxu1 %v495_v17 }
  0x14   :  { %443 = vmatpush3.bf16.msra.mxu0 %v496_v18 }
  0x15   :  { %465 = vmatpush3.bf16.msra.mxu1 %v497_v19  ;;  %444 = vmatprep.subr.bf16.mxu0 %v498_v20 }
  0x16   :  { %466 = vmatprep.subr.bf16.mxu1 %v499_v21 }
  0x18   :  { %445 = vmatpush3.bf16.msra.mxu0 %v500_v22 }
  0x19   :  { %467 = vmatpush3.bf16.msra.mxu1 %v501_v23  ;;  %446 = vmatprep.subr.bf16.mxu0 %v502_v24 }
  0x1a   :  { %468 = vmatprep.subr.bf16.mxu1 %v503_v25 }
  0x1c   :  { %447 = vmatpush3.bf16.msra.mxu0 %v504_v26 }
  0x1d   :  { %469 = vmatpush3.bf16.msra.mxu1 %v505_v27  ;;  %448 = vmatprep.subr.bf16.mxu0 %v506_v28 }
  0x1e   :  { %470 = vmatprep.subr.bf16.mxu1 %v507_v29 }
  0x20   :  { %449 = vmatpush3.bf16.msra.mxu0 %v508_v30 }
  0x21   :  { %471 = vmatpush3.bf16.msra.mxu1 %v509_v31 }
  0x23   :  { %335 = vmatmul.mubr.bf16.vlgmr.msra.gmra.mrb[0].mxu0 %v510_v32 }
  0x24   :  { %376 = vmatmul.mubr.bf16.vlgmr.msra.gmra.mrb[0].mxu1 %v513_v34 }
  0xf6   :  { %v450_v36 = vpop.f32.mrb[0].mxu0 }
  0xf7   :  { %v472_v37 = vpop.f32.mrb[0].mxu1  ;;  %v451_v39 = vpop.f32.mrb[1].mxu0 }
  0xf8   :  { %v452_v40 = vadd.f32 %v451_v39, %v450_v36  ;;  %v473_v41 = vpop.f32.mrb[1].mxu1  ;;  %v453_v42 = vpop.f32.mrb[2].mxu0 }
  0xf9   :  { %v474_v43 = vadd.f32 %v473_v41, %v472_v37  ;;  %v475_v44 = vpop.f32.mrb[2].mxu1  ;;  %v454_v45 = vpop.f32.mrb[3].mxu0 }
  0xfa   :  { %v337_v46 = vadd.f32 %v452_v40, %v397_v38  ;;  %v455_v47 = vadd.f32 %v454_v45, %v453_v42  ;;  %v476_v48 = vpop.f32.mrb[3].mxu1 }
  0xfb   :  { %v477_v49 = vadd.f32 %v476_v48, %v475_v44 }
  0xfc   :  { %v378_v50 = vadd.f32 %v474_v43, %v337_v46  ;;  %v340_v51 = vadd.f32 %v455_v47, %v397_v38 }
  0xfe   :  { %vm384_vm0 = vcmp.ge.f32.partialorder %v378_v50, 0.0  ;;  %v386_v52 = vmul.f32 0.01, %v378_v50  ;;  %v381_v53 = vadd.f32 %v477_v49, %v340_v51 }
 0x100   :  { %v388_v54 = vsel %vm384_vm0, %v378_v50, %v386_v52  ;;  %vm385_vm2 = vcmp.ge.f32.partialorder %v381_v53, 0.0  ;;  %v387_v55 = vmul.f32 0.01, %v381_v53 }
 0x101   :  { %391 = vst.msk [vmem:[%s656_s3] sm:$0xff] %vm390_vm1, %v388_v54 }
 0x102   :  { %v389_v56 = vsel %vm385_vm2, %v381_v53, %v387_v55 }
 0x103   :  { %392 = vst.msk [vmem:[%s656_s3 + $0x8] sm:$0xff] %vm390_vm1, %v389_v56 }

// kernel: tile.14
= control target key start
LH: loop header
LB: loop body
LE: loop exit
PB: predicated region body
PF: predicated region fallthrough
CT: control target
= control target key end

     0   :  { %s22_s0 = inlined_call_operand.vmem [shape: f32[32], index: 0, kind: input, shape index: {}]   ;;  %s23_s1 = inlined_call_operand.vmem [shape: f32[4,32], index: 1, kind: output, shape index: {}]  }
   0x1   :  { %v4_v0 = vld [vmem:[%s22_s0] ss:$0 sm:$0xff] }
   0x2   :  { %5 = vst [vmem:[%s23_s1] sm:$0xf] %v4_v0 }

// kernel: tile.15
= control target key start
LH: loop header
LB: loop body
LE: loop exit
PB: predicated region body
PF: predicated region fallthrough
CT: control target
= control target key end

     0   :  { %vm7_vm0 = vcmask 261120   ;;  %s37_s8 = smov 32   ;;  %s38_s9 = smov 64   ;;  %vm13_vm1 = vcmask 1048320   ;;  %vm19_vm2 = vcmask 785920   ;;  %vm25_vm3 = vcmask 523520   ;;  %s55_s0 = inlined_call_operand.vmem [shape: f32[4,32], index: 0, kind: input, shape index: {}]   ;;  %s56_s1 = inlined_call_operand.vmem [shape: f32[1,128], index: 1, kind: output, shape index: {}]  }
   0x1   :  { %v4_v0 = vld [vmem:[%s55_s0] sm:$0xf]  ;;  %s36_s0 = smov 96  }
   0x2   :  { %5 = vst [vmem:[#allocation1] sm:$0xf] %v4_v0 }
   0x9   :  { %v10_v1 = vld [vmem:[#allocation1 + $0x3] sm:$0x1]   ;;  %v22_v2 = vld [vmem:[#allocation1 + $0x1] sm:$0x1]   ;;  %v6_v3 = vld [vmem:[#allocation1] sm:$0x1]  }
   0xa   :  { %11 = vrot.lane.b32.xlu0 %v10_v1, %s36_s0  ;;  %23 = vrot.lane.b32.xlu1 %v22_v2, %s37_s8  ;;  %v16_v4 = vld [vmem:[#allocation1 + $0x2] sm:$0x1]   ;;  %8 = vst.msk [vmem:[#allocation0] sm:$0x1] %vm7_vm0, %v6_v3  }
   0xe   :  { %17 = vrot.lane.b32.xlu0 %v16_v4, %s38_s9 }
  0x7c   :  { %v12_v5 = vpop.permute.xlu0 %11   ;;  %v24_v6 = vpop.permute.xlu1 %23  }
  0x7d   :  { %14 = vst.msk [vmem:[#allocation0] sm:$0x1] %vm13_vm1, %v12_v5  }
  0x80   :  { %v18_v7 = vpop.permute.xlu0 %17  }
  0x81   :  { %20 = vst.msk [vmem:[#allocation0] sm:$0x1] %vm19_vm2, %v18_v7  }
  0x82   :  { %26 = vst.msk [vmem:[#allocation0] sm:$0x1] %vm25_vm3, %v24_v6  }
  0x89   :  { %v30_v8 = vld [vmem:[#allocation0] sm:$0x1] }
  0x8a   :  { %32 = vst [vmem:[%s56_s1] sm:$0x1] %v30_v8 }

// kernel: foreground_forward.23
= control target key start
LH: loop header
LB: loop body
LE: loop exit
PB: predicated region body
PF: predicated region fallthrough
CT: control target
= control target key end

     0   :  { %v629_v33 = vmov 0.0   ;;  %vm630_vm0 = vmmov 0   ;;  %vm341_vm1 = vcmask 523264   ;;  %s786_s1 = inlined_call_operand.vmem [shape: bf16[576,64], index: 1, kind: input, shape index: {}]   ;;  %s787_s0 = inlined_call_operand.vmem [shape: bf16[16,576], index: 0, kind: input, shape index: {}]   ;;  %s788_s2 = inlined_call_operand.vmem [shape: f32[1,64], index: 2, kind: input, shape index: {}]   ;;  %s789_s3 = inlined_call_operand.vmem [shape: f32[16,64], index: 3, kind: output, shape index: {}]  }
   0x1   :  { %v586_v0 = vld [vmem:[%s786_s1 + $0x40] sm:$0xff]   ;;  %v590_v4 = vld [vmem:[%s786_s1 + $0x48] sm:$0xff]   ;;  %v594_v8 = vld [vmem:[%s786_s1 + $0x50] sm:$0xff]  }
   0x2   :  { %v587_v1 = vld [vmem:[%s786_s1] sm:$0xff]   ;;  %523 = vmatprep.subr.bf16.mxu0 %v586_v0  ;;  %v591_v5 = vld [vmem:[%s786_s1 + $0x8] sm:$0xff]   ;;  %v595_v9 = vld [vmem:[%s786_s1 + $0x10] sm:$0xff]  }
   0x3   :  { %v588_v2 = vld [vmem:[%s786_s1 + $0xc0] sm:$0xff]   ;;  %524 = vmatpush3.bf16.msra.mxu0 %v587_v1  ;;  %v592_v6 = vld [vmem:[%s786_s1 + $0xc8] sm:$0xff]   ;;  %v596_v10 = vld [vmem:[%s786_s1 + $0xd0] sm:$0xff]  }
   0x4   :  { %v589_v3 = vld [vmem:[%s786_s1 + $0x80] sm:$0xff]   ;;  %545 = vmatprep.subr.bf16.mxu1 %v588_v2  ;;  %525 = vmatprep.subr.bf16.mxu0 %v590_v4  ;;  %v593_v7 = vld [vmem:[%s786_s1 + $0x88] sm:$0xff]   ;;  %v597_v11 = vld [vmem:[%s786_s1 + $0x90] sm:$0xff]  }
   0x5   :  { %546 = vmatpush3.bf16.msra.mxu1 %v589_v3  ;;  %v598_v12 = vld [vmem:[%s786_s1 + $0x58] sm:$0xff]   ;;  %v602_v16 = vld [vmem:[%s786_s1 + $0x60] sm:$0xff]   ;;  %v606_v20 = vld [vmem:[%s786_s1 + $0x68] sm:$0xff]  }
   0x6   :  { %547 = vmatprep.subr.bf16.mxu1 %v592_v6  ;;  %v599_v13 = vld [vmem:[%s786_s1 + $0x18] sm:$0xff]   ;;  %v603_v17 = vld [vmem:[%s786_s1 + $0x20] sm:$0xff]   ;;  %v607_v21 = vld [vmem:[%s786_s1 + $0x28] sm:$0xff]  }
   0x7   :  { %526 = vmatpush3.bf16.msra.mxu0 %v591_v5  ;;  %v600_v14 = vld [vmem:[%s786_s1 + $0xd8] sm:$0xff]   ;;  %v604_v18 = vld [vmem:[%s786_s1 + $0xe0] sm:$0xff]   ;;  %v608_v22 = vld [vmem:[%s786_s1 + $0xe8] sm:$0xff]  }
   0x8   :  { %527 = vmatprep.subr.bf16.mxu0 %v594_v8  ;;  %v601_v15 = vld [vmem:[%s786_s1 + $0x98] sm:$0xff]   ;;  %v605_v19 = vld [vmem:[%s786_s1 + $0xa0] sm:$0xff]   ;;  %v609_v23 = vld [vmem:[%s786_s1 + $0xa8] sm:$0xff]  }
   0x9   :  { %548 = vmatpush3.bf16.msra.mxu1 %v593_v7  ;;  %v610_v24 = vld [vmem:[%s786_s1 + $0x70] sm:$0xff]   ;;  %v614_v28 = vld [vmem:[%s786_s1 + $0x78] sm:$0xff]   ;;  %v623_v36 = vld [vmem:[%s787_s0 + $0xc] ss:$20 sps:$4 sm:$0xff]  }
   0xa   :  { %549 = vmatprep.subr.bf16.mxu1 %v596_v10  ;;  %v611_v25 = vld [vmem:[%s786_s1 + $0x30] sm:$0xff]   ;;  %v615_v29 = vld [vmem:[%s786_s1 + $0x38] sm:$0xff]   ;;  %v624_v37 = vld [vmem:[%s786_s1 + $0x100] sm:$0xff]   ;;  %418 = vmatprep.mubr.bf16.mxu1 %v623_v36 }
   0xb   :  { %528 = vmatpush3.bf16.msra.mxu0 %v595_v9  ;;  %v612_v26 = vld [vmem:[%s786_s1 + $0xf0] sm:$0xff]   ;;  %v616_v30 = vld [vmem:[%s786_s1 + $0xf8] sm:$0xff]   ;;  %v625_v38 = vld [vmem:[%s786_s1 + $0x108] sm:$0xff]  }
   0xc   :  { %529 = vmatprep.subr.bf16.mxu0 %v598_v12  ;;  %v613_v27 = vld [vmem:[%s786_s1 + $0xb0] sm:$0xff]   ;;  %v619_v32 = vld [vmem:[%s787_s0 + $0x4] ss:$20 sps:$4 sm:$0xff]   ;;  %v621_v35 = vld [vmem:[%s787_s0 + $0x8] ss:$20 sps:$4 sm:$0xff]  }
   0xd   :  { %550 = vmatpush3.bf16.msra.mxu1 %v597_v11  ;;  %v617_v31 = vld [vmem:[%s787_s0] ss:$20 sps:$4 sm:$0xff]   ;;  %v620_v34 = vld [vmem:[%s786_s1 + $0xb8] sm:$0xff]   ;;  %377 = vmatprep.mubr.bf16.mxu0 %v619_v32  ;;  %v628_v41 = vld [vmem:[%s787_s0 + $0x10] ss:$20 sps:$4 sm:$0xff]  }
   0xe   :  { %551 = vmatprep.subr.bf16.mxu1 %v600_v14  ;;  %v626_v39 = vld [vmem:[%s786_s1 + $0x110] sm:$0xff]   ;;  %v627_v40 = vld [vmem:[%s786_s1 + $0x118] sm:$0xff]   ;;  %v480_v43 = vld [vmem:[%s788_s2] ss:$0 sm:$0xff] }
   0xf   :  { %530 = vmatpush3.bf16.msra.mxu0 %v599_v13 }
  0x10   :  { %531 = vmatprep.subr.bf16.mxu0 %v602_v16 }
  0x11   :  { %552 = vmatpush3.bf16.msra.mxu1 %v601_v15 }
  0x12   :  { %553 = vmatprep.subr.bf16.mxu1 %v604_v18 }
  0x13   :  { %532 = vmatpush3.bf16.msra.mxu0 %v603_v17 }
  0x14   :  { %533 = vmatprep.subr.bf16.mxu0 %v606_v20 }
  0x15   :  { %554 = vmatpush3.bf16.msra.mxu1 %v605_v19 }
  0x16   :  { %555 = vmatprep.subr.bf16.mxu1 %v608_v22 }
  0x17   :  { %534 = vmatpush3.bf16.msra.mxu0 %v607_v21 }
  0x18   :  { %535 = vmatprep.subr.bf16.mxu0 %v610_v24 }
  0x19   :  { %556 = vmatpush3.bf16.msra.mxu1 %v609_v23 }
  0x1a   :  { %557 = vmatprep.subr.bf16.mxu1 %v612_v26 }
  0x1b   :  { %536 = vmatpush3.bf16.msra.mxu0 %v611_v25 }
  0x1c   :  { %537 = vmatprep.subr.bf16.mxu0 %v614_v28 }
  0x1d   :  { %558 = vmatpush3.bf16.msra.mxu1 %v613_v27 }
  0x1e   :  { %559 = vmatprep.subr.bf16.mxu1 %v616_v30 }
  0x1f   :  { %538 = vmatpush3.bf16.msra.mxu0 %v615_v29 }
  0x20   :  { %572 = vmatprep.subr.bf16.mxu0 %v629_v33 }
  0x21   :  { %560 = vmatpush3.bf16.msra.mxu1 %v620_v34 }
  0x22   :  { %378 = vmatmul.mubr.bf16.vlgmr.msra.gmra.mrb[0].mxu0 %v617_v31 }
  0x23   :  { %580 = vmatprep.mubr.msk.bf16.mxu0 %vm630_vm0, %v629_v33  ;;  %573 = vmatpush3.bf16.msra.mxu0 %v624_v37 }
  0x24   :  { %419 = vmatmul.mubr.bf16.vlgmr.msra.gmra.mrb[0].mxu1 %v621_v35  ;;  %574 = vmatprep.subr.bf16.mxu0 %v629_v33 }
  0x27   :  { %575 = vmatpush3.bf16.msra.mxu0 %v625_v38 }
  0x28   :  { %576 = vmatprep.subr.bf16.mxu0 %v629_v33 }
  0x2b   :  { %577 = vmatpush3.bf16.msra.mxu0 %v626_v39 }
  0x2c   :  { %578 = vmatprep.subr.bf16.mxu0 %v629_v33 }
  0x2f   :  { %579 = vmatpush3.bf16.msra.mxu0 %v627_v40 }
  0x32   :  { %581 = vmatmul.mubr.msk.bf16.vlgmr.msra.gmra.mrb[4].mxu0 %vm341_vm1, %v628_v41 }
  0xf5   :  { %v539_v42 = vpop.f32.mrb[0].mxu0 }
  0xf6   :  { %v540_v44 = vpop.f32.mrb[1].mxu0 }
  0xf7   :  { %v541_v45 = vadd.f32 %v540_v44, %v539_v42  ;;  %v542_v46 = vpop.f32.mrb[2].mxu0  ;;  %v561_v47 = vpop.f32.mrb[0].mxu1 }
  0xf8   :  { %v543_v48 = vpop.f32.mrb[3].mxu0  ;;  %v562_v51 = vpop.f32.mrb[1].mxu1 }
  0xf9   :  { %v380_v49 = vadd.f32 %v541_v45, %v480_v43  ;;  %v544_v50 = vadd.f32 %v543_v48, %v542_v46  ;;  %v563_v52 = vadd.f32 %v562_v51, %v561_v47  ;;  %v564_v53 = vpop.f32.mrb[2].mxu1 }
  0xfa   :  { %v565_v55 = vpop.f32.mrb[3].mxu1 }
  0xfb   :  { %v383_v54 = vadd.f32 %v544_v50, %v480_v43  ;;  %v566_v56 = vadd.f32 %v565_v55, %v564_v53  ;;  %v421_v57 = vadd.f32 %v563_v52, %v380_v49 }
  0xfd   :  { %v424_v58 = vadd.f32 %v566_v56, %v383_v54 }
 0x105   :  { %v461_v59 = vpop.f32.mrb[4].mxu0 }
 0x106   :  { %v462_v60 = vadd.f32 %v461_v59, %v421_v57  ;;  %v582_v61 = vpop.f32.mrb[5].mxu0 }
 0x107   :  { %v464_v62 = vpop.f32.mrb[6].mxu0 }
 0x108   :  { %vm468_vm2 = vcmp.ge.f32.partialorder %v462_v60, 0.0  ;;  %v470_v63 = vmul.f32 0.01, %v462_v60  ;;  %v465_v0 = vadd.f32 %v464_v62, %v424_v58  ;;  %v583_v1 = vpop.f32.mrb[7].mxu0 }
 0x10a   :  { %v472_v2 = vsel %vm468_vm2, %v462_v60, %v470_v63  ;;  %vm469_vm3 = vcmp.ge.f32.partialorder %v465_v0, 0.0  ;;  %v471_v3 = vmul.f32 0.01, %v465_v0 }
 0x10b   :  { %474 = vst.msk [vmem:[%s789_s3] sm:$0xff] %vm341_vm1, %v472_v2 }
 0x10c   :  { %v473_v4 = vsel %vm469_vm3, %v465_v0, %v471_v3 }
 0x10d   :  { %475 = vst.msk [vmem:[%s789_s3 + $0x8] sm:$0xff] %vm341_vm1, %v473_v4 }

// kernel: foreground_forward.25
= control target key start
LH: loop header
LB: loop body
LE: loop exit
PB: predicated region body
PF: predicated region fallthrough
CT: control target
= control target key end

     0   :  { %v359_v0 = vmov 0.0|0.0   ;;  %vm360_vm0 = vmmov 0   ;;  %v361_v4 = vmov 0.0   ;;  %vm87_vm1 = vcmask 523264   ;;  %s443_s3 = inlined_call_operand.vmem [shape: f32[64,4], index: 3, kind: input, shape index: {}]   ;;  %s444_s2 = inlined_call_operand.vmem [shape: f32[1,64], index: 2, kind: input, shape index: {}]   ;;  %s445_s4 = inlined_call_operand.vmem [shape: f32[4,64], index: 4, kind: input, shape index: {}]   ;;  %s446_s0 = inlined_call_operand.vmem [shape: f32[16,64], index: 0, kind: input, shape index: {}]   ;;  %s447_s1 = inlined_call_operand.vmem [shape: f32[16,64], index: 1, kind: input, shape index: {}]   ;;  %s448_s5 = inlined_call_operand.vmem [shape: f32[16,64], index: 5, kind: output, shape index: {}]  }
   0x1   :  { %340 = vmatprep.subr.bf16.mxu0 %v359_v0  ;;  %v79_v1 = vld [vmem:[%s443_s3] sm:$0xff]  ;;  %v80_v2 = vld [vmem:[%s443_s3 + $0x8] sm:$0xff]  ;;  %v81_v3 = vld [vmem:[%s443_s3 + $0x10] sm:$0xff]  ;;  %332 = vmatprep.mubr.msk.f32.mxu0 %vm360_vm0, %v361_v4  ;;  %vm169_vm2 = vcmask 1043456   ;;  %vm165_vm4 = vcmask 31744   ;;  %v251_v25 = vlaneseq }
   0x2   :  { %v341_v5 = vpack.c.bf16 %v80_v2, %v79_v1  ;;  %v82_v6 = vld [vmem:[%s443_s3 + $0x18] sm:$0xff]  ;;  %335 = vmatprep.subr.mxu1 %v361_v4  ;;  %337 = vmatprep.mubr.msk.f32.mxu1 %vm360_vm0, %v361_v4  ;;  %v83_v8 = vld [vmem:[%s443_s3 + $0x20] sm:$0xff]  ;;  %v84_v9 = vld [vmem:[%s443_s3 + $0x28] sm:$0xff] }
   0x3   :  { %v344_v7 = vpack.c.bf16 %v82_v6, %v81_v3  ;;  %v347_v10 = vpack.c.bf16 %v84_v9, %v83_v8  ;;  %v85_v11 = vld [vmem:[%s443_s3 + $0x30] sm:$0xff]  ;;  %v86_v12 = vld [vmem:[%s443_s3 + $0x38] sm:$0xff]  ;;  %v78_v14 = vld [vmem:[%s444_s2] sm:$0x1]  ;;  %v252_v26 = vshrl.u32 %v251_v25, 7 }
   0x4   :  { %342 = vmatpush3.bf16.msra.mxu0 %v341_v5  ;;  %v350_v13 = vpack.c.bf16 %v86_v12, %v85_v11  ;;  %v164_v15 = vld [vmem:[%s445_s4] sm:$0xf]  ;;  %v250_v30 = vld [vmem:[%s446_s0 + $0x8] sm:$0xff] }
   0x5   :  { %343 = vmatprep.subr.bf16.mxu0 %v359_v0  ;;  %336 = vmatpush3.msk.msra.mxu1 %vm169_vm2, %v164_v15  ;;  %v253_v27 = vsub.s32 0, %v252_v26  ;;  %v249_v29 = vld [vmem:[%s446_s0] sm:$0xff]  ;;  %v258_v33 = vld [vmem:[%s447_s1 + $0x8] sm:$0xff] }
   0x6   :  { %v257_v32 = vld [vmem:[%s447_s1] sm:$0xff] }
   0x8   :  { %345 = vmatpush3.bf16.msra.mxu0 %v344_v7 }
   0x9   :  { %346 = vmatprep.subr.bf16.mxu0 %v359_v0 }
   0xc   :  { %348 = vmatpush3.bf16.msra.mxu0 %v347_v10 }
   0xd   :  { %349 = vmatprep.subr.bf16.mxu0 %v359_v0 }
  0x10   :  { %351 = vmatpush3.bf16.msra.mxu0 %v350_v13 }
  0x13   :  { %333 = vmatmul.mubr.msk.f32.vlgmr.msra.gmra.mrb[0].mxu0 %vm87_vm1, %v78_v14 }
  0xe6   :  { %v157_v16 = vpop.f32.mrb[0].mxu0 }
  0xe7   :  { %vm161_vm3 = vcmp.ge.f32.partialorder %v157_v16, 0.0  ;;  %v162_v17 = vmul.f32 0.01, %v157_v16  ;;  %v334_v18 = vpop.f32.mrb[1].mxu0 }
  0xe9   :  { %v163_v19 = vsel %vm161_vm3, %v157_v16, %v162_v17 }
  0xea   :  { %338 = vmatmul.mubr.msk.f32.vlgmr.msra.gmra.mrb[0].mxu1 %vm165_vm4, %v163_v19 }
 0x1bd   :  { %v239_v20 = vpop.f32.mrb[0].mxu1 }
 0x1be   :  { %v304_v21 = vmul.f32 -1.442695, %v239_v20  ;;  %v339_v22 = vpop.f32.mrb[1].mxu1 }
 0x1c0   :  { %355 = vpow2.f32 %v304_v21 }
 0x1ca   :  { %v356_v23 = vpop.eup %355 }
 0x1cb   :  { %v246_v24 = vadd.f32 1.0, %v356_v23 }
 0x1cd   :  { %357 = vrcp.f32 %v246_v24 }
 0x1d7   :  { %v358_v28 = vpop.eup %357 }
 0x1d8   :  { %v254_v31 = vrot.slane %v358_v28, %v253_v27 }
 0x1da   :  { %v255_v34 = vmul.f32 %v254_v31, %v249_v29  ;;  %v256_v35 = vmul.f32 %v254_v31, %v250_v30 }
 0x1dc   :  { %v259_v36 = vadd.f32 %v257_v32, %v255_v34  ;;  %v260_v37 = vadd.f32 %v258_v33, %v256_v35 }
 0x1de   :  { %261 = vst.msk [vmem:[%s448_s5] sm:$0xff] %vm87_vm1, %v259_v36  ;;  %262 = vst.msk [vmem:[%s448_s5 + $0x8] sm:$0xff] %vm87_vm1, %v260_v37 }

// kernel: foreground_forward.24
= control target key start
LH: loop header
LB: loop body
LE: loop exit
PB: predicated region body
PF: predicated region fallthrough
CT: control target
= control target key end

     0   :  { %v623_v33 = vmov 0.0   ;;  %vm624_vm0 = vmmov 0   ;;  %vm341_vm1 = vcmask 523264   ;;  %s780_s1 = inlined_call_operand.vmem [shape: bf16[576,64], index: 1, kind: input, shape index: {}]   ;;  %s781_s0 = inlined_call_operand.vmem [shape: bf16[16,576], index: 0, kind: input, shape index: {}]   ;;  %s782_s2 = inlined_call_operand.vmem [shape: f32[1,64], index: 2, kind: input, shape index: {}]   ;;  %s783_s3 = inlined_call_operand.vmem [shape: f32[16,64], index: 3, kind: output, shape index: {}]  }
   0x1   :  { %v580_v0 = vld [vmem:[%s780_s1 + $0x40] sm:$0xff]   ;;  %v584_v4 = vld [vmem:[%s780_s1 + $0x48] sm:$0xff]   ;;  %v588_v8 = vld [vmem:[%s780_s1 + $0x50] sm:$0xff]  }
   0x2   :  { %v581_v1 = vld [vmem:[%s780_s1] sm:$0xff]   ;;  %517 = vmatprep.subr.bf16.mxu0 %v580_v0  ;;  %v585_v5 = vld [vmem:[%s780_s1 + $0x8] sm:$0xff]   ;;  %v589_v9 = vld [vmem:[%s780_s1 + $0x10] sm:$0xff]  }
   0x3   :  { %v582_v2 = vld [vmem:[%s780_s1 + $0xc0] sm:$0xff]   ;;  %518 = vmatpush3.bf16.msra.mxu0 %v581_v1  ;;  %v586_v6 = vld [vmem:[%s780_s1 + $0xc8] sm:$0xff]   ;;  %v590_v10 = vld [vmem:[%s780_s1 + $0xd0] sm:$0xff]  }
   0x4   :  { %v583_v3 = vld [vmem:[%s780_s1 + $0x80] sm:$0xff]   ;;  %539 = vmatprep.subr.bf16.mxu1 %v582_v2  ;;  %519 = vmatprep.subr.bf16.mxu0 %v584_v4  ;;  %v587_v7 = vld [vmem:[%s780_s1 + $0x88] sm:$0xff]   ;;  %v591_v11 = vld [vmem:[%s780_s1 + $0x90] sm:$0xff]  }
   0x5   :  { %540 = vmatpush3.bf16.msra.mxu1 %v583_v3  ;;  %v592_v12 = vld [vmem:[%s780_s1 + $0x58] sm:$0xff]   ;;  %v596_v16 = vld [vmem:[%s780_s1 + $0x60] sm:$0xff]   ;;  %v600_v20 = vld [vmem:[%s780_s1 + $0x68] sm:$0xff]  }
   0x6   :  { %541 = vmatprep.subr.bf16.mxu1 %v586_v6  ;;  %v593_v13 = vld [vmem:[%s780_s1 + $0x18] sm:$0xff]   ;;  %v597_v17 = vld [vmem:[%s780_s1 + $0x20] sm:$0xff]   ;;  %v601_v21 = vld [vmem:[%s780_s1 + $0x28] sm:$0xff]  }
   0x7   :  { %520 = vmatpush3.bf16.msra.mxu0 %v585_v5  ;;  %v594_v14 = vld [vmem:[%s780_s1 + $0xd8] sm:$0xff]   ;;  %v598_v18 = vld [vmem:[%s780_s1 + $0xe0] sm:$0xff]   ;;  %v602_v22 = vld [vmem:[%s780_s1 + $0xe8] sm:$0xff]  }
   0x8   :  { %521 = vmatprep.subr.bf16.mxu0 %v588_v8  ;;  %v595_v15 = vld [vmem:[%s780_s1 + $0x98] sm:$0xff]   ;;  %v599_v19 = vld [vmem:[%s780_s1 + $0xa0] sm:$0xff]   ;;  %v603_v23 = vld [vmem:[%s780_s1 + $0xa8] sm:$0xff]  }
   0x9   :  { %542 = vmatpush3.bf16.msra.mxu1 %v587_v7  ;;  %v604_v24 = vld [vmem:[%s780_s1 + $0x70] sm:$0xff]   ;;  %v608_v28 = vld [vmem:[%s780_s1 + $0x78] sm:$0xff]   ;;  %v617_v36 = vld [vmem:[%s781_s0 + $0xc] ss:$20 sps:$4 sm:$0xff]  }
   0xa   :  { %543 = vmatprep.subr.bf16.mxu1 %v590_v10  ;;  %v605_v25 = vld [vmem:[%s780_s1 + $0x30] sm:$0xff]   ;;  %v609_v29 = vld [vmem:[%s780_s1 + $0x38] sm:$0xff]   ;;  %v618_v37 = vld [vmem:[%s780_s1 + $0x100] sm:$0xff]   ;;  %418 = vmatprep.mubr.bf16.mxu1 %v617_v36 }
   0xb   :  { %522 = vmatpush3.bf16.msra.mxu0 %v589_v9  ;;  %v606_v26 = vld [vmem:[%s780_s1 + $0xf0] sm:$0xff]   ;;  %v610_v30 = vld [vmem:[%s780_s1 + $0xf8] sm:$0xff]   ;;  %v619_v38 = vld [vmem:[%s780_s1 + $0x108] sm:$0xff]  }
   0xc   :  { %523 = vmatprep.subr.bf16.mxu0 %v592_v12  ;;  %v607_v27 = vld [vmem:[%s780_s1 + $0xb0] sm:$0xff]   ;;  %v613_v32 = vld [vmem:[%s781_s0 + $0x4] ss:$20 sps:$4 sm:$0xff]   ;;  %v615_v35 = vld [vmem:[%s781_s0 + $0x8] ss:$20 sps:$4 sm:$0xff]  }
   0xd   :  { %544 = vmatpush3.bf16.msra.mxu1 %v591_v11  ;;  %v611_v31 = vld [vmem:[%s781_s0] ss:$20 sps:$4 sm:$0xff]   ;;  %v614_v34 = vld [vmem:[%s780_s1 + $0xb8] sm:$0xff]   ;;  %377 = vmatprep.mubr.bf16.mxu0 %v613_v32  ;;  %v622_v41 = vld [vmem:[%s781_s0 + $0x10] ss:$20 sps:$4 sm:$0xff]  }
   0xe   :  { %545 = vmatprep.subr.bf16.mxu1 %v594_v14  ;;  %v620_v39 = vld [vmem:[%s780_s1 + $0x110] sm:$0xff]   ;;  %v621_v40 = vld [vmem:[%s780_s1 + $0x118] sm:$0xff]   ;;  %v474_v43 = vld [vmem:[%s782_s2] ss:$0 sm:$0xff] }
   0xf   :  { %524 = vmatpush3.bf16.msra.mxu0 %v593_v13 }
  0x10   :  { %525 = vmatprep.subr.bf16.mxu0 %v596_v16 }
  0x11   :  { %546 = vmatpush3.bf16.msra.mxu1 %v595_v15 }
  0x12   :  { %547 = vmatprep.subr.bf16.mxu1 %v598_v18 }
  0x13   :  { %526 = vmatpush3.bf16.msra.mxu0 %v597_v17 }
  0x14   :  { %527 = vmatprep.subr.bf16.mxu0 %v600_v20 }
  0x15   :  { %548 = vmatpush3.bf16.msra.mxu1 %v599_v19 }
  0x16   :  { %549 = vmatprep.subr.bf16.mxu1 %v602_v22 }
  0x17   :  { %528 = vmatpush3.bf16.msra.mxu0 %v601_v21 }
  0x18   :  { %529 = vmatprep.subr.bf16.mxu0 %v604_v24 }
  0x19   :  { %550 = vmatpush3.bf16.msra.mxu1 %v603_v23 }
  0x1a   :  { %551 = vmatprep.subr.bf16.mxu1 %v606_v26 }
  0x1b   :  { %530 = vmatpush3.bf16.msra.mxu0 %v605_v25 }
  0x1c   :  { %531 = vmatprep.subr.bf16.mxu0 %v608_v28 }
  0x1d   :  { %552 = vmatpush3.bf16.msra.mxu1 %v607_v27 }
  0x1e   :  { %553 = vmatprep.subr.bf16.mxu1 %v610_v30 }
  0x1f   :  { %532 = vmatpush3.bf16.msra.mxu0 %v609_v29 }
  0x20   :  { %566 = vmatprep.subr.bf16.mxu0 %v623_v33 }
  0x21   :  { %554 = vmatpush3.bf16.msra.mxu1 %v614_v34 }
  0x22   :  { %378 = vmatmul.mubr.bf16.vlgmr.msra.gmra.mrb[0].mxu0 %v611_v31 }
  0x23   :  { %574 = vmatprep.mubr.msk.bf16.mxu0 %vm624_vm0, %v623_v33  ;;  %567 = vmatpush3.bf16.msra.mxu0 %v618_v37 }
  0x24   :  { %419 = vmatmul.mubr.bf16.vlgmr.msra.gmra.mrb[0].mxu1 %v615_v35  ;;  %568 = vmatprep.subr.bf16.mxu0 %v623_v33 }
  0x27   :  { %569 = vmatpush3.bf16.msra.mxu0 %v619_v38 }
  0x28   :  { %570 = vmatprep.subr.bf16.mxu0 %v623_v33 }
  0x2b   :  { %571 = vmatpush3.bf16.msra.mxu0 %v620_v39 }
  0x2c   :  { %572 = vmatprep.subr.bf16.mxu0 %v623_v33 }
  0x2f   :  { %573 = vmatpush3.bf16.msra.mxu0 %v621_v40 }
  0x32   :  { %575 = vmatmul.mubr.msk.bf16.vlgmr.msra.gmra.mrb[4].mxu0 %vm341_vm1, %v622_v41 }
  0xf5   :  { %v533_v42 = vpop.f32.mrb[0].mxu0 }
  0xf6   :  { %v534_v44 = vpop.f32.mrb[1].mxu0 }
  0xf7   :  { %v535_v45 = vadd.f32 %v534_v44, %v533_v42  ;;  %v536_v46 = vpop.f32.mrb[2].mxu0  ;;  %v555_v47 = vpop.f32.mrb[0].mxu1 }
  0xf8   :  { %v537_v48 = vpop.f32.mrb[3].mxu0  ;;  %v556_v51 = vpop.f32.mrb[1].mxu1 }
  0xf9   :  { %v380_v49 = vadd.f32 %v535_v45, %v474_v43  ;;  %v538_v50 = vadd.f32 %v537_v48, %v536_v46  ;;  %v557_v52 = vadd.f32 %v556_v51, %v555_v47  ;;  %v558_v53 = vpop.f32.mrb[2].mxu1 }
  0xfa   :  { %v559_v55 = vpop.f32.mrb[3].mxu1 }
  0xfb   :  { %v383_v54 = vadd.f32 %v538_v50, %v474_v43  ;;  %v560_v56 = vadd.f32 %v559_v55, %v558_v53  ;;  %v421_v57 = vadd.f32 %v557_v52, %v380_v49 }
  0xfd   :  { %v424_v58 = vadd.f32 %v560_v56, %v383_v54 }
 0x105   :  { %v461_v59 = vpop.f32.mrb[4].mxu0 }
 0x106   :  { %v462_v60 = vadd.f32 %v461_v59, %v421_v57  ;;  %v576_v61 = vpop.f32.mrb[5].mxu0 }
 0x107   :  { %v464_v62 = vpop.f32.mrb[6].mxu0 }
 0x108   :  { %468 = vst.msk [vmem:[%s783_s3] sm:$0xff] %vm341_vm1, %v462_v60  ;;  %v465_v63 = vadd.f32 %v464_v62, %v424_v58  ;;  %v577_v0 = vpop.f32.mrb[7].mxu0 }
 0x10a   :  { %469 = vst.msk [vmem:[%s783_s3 + $0x8] sm:$0xff] %vm341_vm1, %v465_v63 }

// kernel: foreground_forward.29
= control target key start
LH: loop header
LB: loop body
LE: loop exit
PB: predicated region body
PF: predicated region fallthrough
CT: control target
= control target key end

     0   :  { %v623_v33 = vmov 0.0   ;;  %vm624_vm0 = vmmov 0   ;;  %vm341_vm1 = vcmask 523264   ;;  %s777_s1 = inlined_call_operand.vmem [shape: bf16[576,128], index: 1, kind: input, shape index: {}]   ;;  %s778_s0 = inlined_call_operand.vmem [shape: bf16[16,576], index: 0, kind: input, shape index: {}]   ;;  %s779_s2 = inlined_call_operand.vmem [shape: f32[1,128], index: 2, kind: input, shape index: {}]   ;;  %s780_s3 = inlined_call_operand.vmem [shape: f32[16,128], index: 3, kind: output, shape index: {}]  }
   0x1   :  { %v580_v0 = vld [vmem:[%s777_s1 + $0x40] sm:$0xff]   ;;  %v584_v4 = vld [vmem:[%s777_s1 + $0x48] sm:$0xff]   ;;  %v588_v8 = vld [vmem:[%s777_s1 + $0x50] sm:$0xff]  }
   0x2   :  { %v581_v1 = vld [vmem:[%s777_s1] sm:$0xff]   ;;  %517 = vmatprep.subr.bf16.mxu0 %v580_v0  ;;  %v585_v5 = vld [vmem:[%s777_s1 + $0x8] sm:$0xff]   ;;  %v589_v9 = vld [vmem:[%s777_s1 + $0x10] sm:$0xff]  }
   0x3   :  { %v582_v2 = vld [vmem:[%s777_s1 + $0xc0] sm:$0xff]   ;;  %518 = vmatpush3.bf16.msra.mxu0 %v581_v1  ;;  %v586_v6 = vld [vmem:[%s777_s1 + $0xc8] sm:$0xff]   ;;  %v590_v10 = vld [vmem:[%s777_s1 + $0xd0] sm:$0xff]  }
   0x4   :  { %v583_v3 = vld [vmem:[%s777_s1 + $0x80] sm:$0xff]   ;;  %539 = vmatprep.subr.bf16.mxu1 %v582_v2  ;;  %519 = vmatprep.subr.bf16.mxu0 %v584_v4  ;;  %v587_v7 = vld [vmem:[%s777_s1 + $0x88] sm:$0xff]   ;;  %v591_v11 = vld [vmem:[%s777_s1 + $0x90] sm:$0xff]  }
   0x5   :  { %540 = vmatpush3.bf16.msra.mxu1 %v583_v3  ;;  %v592_v12 = vld [vmem:[%s777_s1 + $0x58] sm:$0xff]   ;;  %v596_v16 = vld [vmem:[%s777_s1 + $0x60] sm:$0xff]   ;;  %v600_v20 = vld [vmem:[%s777_s1 + $0x68] sm:$0xff]  }
   0x6   :  { %541 = vmatprep.subr.bf16.mxu1 %v586_v6  ;;  %v593_v13 = vld [vmem:[%s777_s1 + $0x18] sm:$0xff]   ;;  %v597_v17 = vld [vmem:[%s777_s1 + $0x20] sm:$0xff]   ;;  %v601_v21 = vld [vmem:[%s777_s1 + $0x28] sm:$0xff]  }
   0x7   :  { %520 = vmatpush3.bf16.msra.mxu0 %v585_v5  ;;  %v594_v14 = vld [vmem:[%s777_s1 + $0xd8] sm:$0xff]   ;;  %v598_v18 = vld [vmem:[%s777_s1 + $0xe0] sm:$0xff]   ;;  %v602_v22 = vld [vmem:[%s777_s1 + $0xe8] sm:$0xff]  }
   0x8   :  { %521 = vmatprep.subr.bf16.mxu0 %v588_v8  ;;  %v595_v15 = vld [vmem:[%s777_s1 + $0x98] sm:$0xff]   ;;  %v599_v19 = vld [vmem:[%s777_s1 + $0xa0] sm:$0xff]   ;;  %v603_v23 = vld [vmem:[%s777_s1 + $0xa8] sm:$0xff]  }
   0x9   :  { %542 = vmatpush3.bf16.msra.mxu1 %v587_v7  ;;  %v604_v24 = vld [vmem:[%s777_s1 + $0x70] sm:$0xff]   ;;  %v608_v28 = vld [vmem:[%s777_s1 + $0x78] sm:$0xff]   ;;  %v617_v36 = vld [vmem:[%s778_s0 + $0xc] ss:$20 sps:$4 sm:$0xff]  }
   0xa   :  { %543 = vmatprep.subr.bf16.mxu1 %v590_v10  ;;  %v605_v25 = vld [vmem:[%s777_s1 + $0x30] sm:$0xff]   ;;  %v609_v29 = vld [vmem:[%s777_s1 + $0x38] sm:$0xff]   ;;  %v618_v37 = vld [vmem:[%s777_s1 + $0x100] sm:$0xff]   ;;  %418 = vmatprep.mubr.bf16.mxu1 %v617_v36 }
   0xb   :  { %522 = vmatpush3.bf16.msra.mxu0 %v589_v9  ;;  %v606_v26 = vld [vmem:[%s777_s1 + $0xf0] sm:$0xff]   ;;  %v610_v30 = vld [vmem:[%s777_s1 + $0xf8] sm:$0xff]   ;;  %v619_v38 = vld [vmem:[%s777_s1 + $0x108] sm:$0xff]  }
   0xc   :  { %523 = vmatprep.subr.bf16.mxu0 %v592_v12  ;;  %v607_v27 = vld [vmem:[%s777_s1 + $0xb0] sm:$0xff]   ;;  %v613_v32 = vld [vmem:[%s778_s0 + $0x4] ss:$20 sps:$4 sm:$0xff]   ;;  %v615_v35 = vld [vmem:[%s778_s0 + $0x8] ss:$20 sps:$4 sm:$0xff]  }
   0xd   :  { %544 = vmatpush3.bf16.msra.mxu1 %v591_v11  ;;  %v611_v31 = vld [vmem:[%s778_s0] ss:$20 sps:$4 sm:$0xff]   ;;  %v614_v34 = vld [vmem:[%s777_s1 + $0xb8] sm:$0xff]   ;;  %377 = vmatprep.mubr.bf16.mxu0 %v613_v32  ;;  %v622_v41 = vld [vmem:[%s778_s0 + $0x10] ss:$20 sps:$4 sm:$0xff]  }
   0xe   :  { %545 = vmatprep.subr.bf16.mxu1 %v594_v14  ;;  %v620_v39 = vld [vmem:[%s777_s1 + $0x110] sm:$0xff]   ;;  %v621_v40 = vld [vmem:[%s777_s1 + $0x118] sm:$0xff]   ;;  %v474_v43 = vld [vmem:[%s779_s2] ss:$0 sm:$0xff] }
   0xf   :  { %524 = vmatpush3.bf16.msra.mxu0 %v593_v13 }
  0x10   :  { %525 = vmatprep.subr.bf16.mxu0 %v596_v16 }
  0x11   :  { %546 = vmatpush3.bf16.msra.mxu1 %v595_v15 }
  0x12   :  { %547 = vmatprep.subr.bf16.mxu1 %v598_v18 }
  0x13   :  { %526 = vmatpush3.bf16.msra.mxu0 %v597_v17 }
  0x14   :  { %527 = vmatprep.subr.bf16.mxu0 %v600_v20 }
  0x15   :  { %548 = vmatpush3.bf16.msra.mxu1 %v599_v19 }
  0x16   :  { %549 = vmatprep.subr.bf16.mxu1 %v602_v22 }
  0x17   :  { %528 = vmatpush3.bf16.msra.mxu0 %v601_v21 }
  0x18   :  { %529 = vmatprep.subr.bf16.mxu0 %v604_v24 }
  0x19   :  { %550 = vmatpush3.bf16.msra.mxu1 %v603_v23 }
  0x1a   :  { %551 = vmatprep.subr.bf16.mxu1 %v606_v26 }
  0x1b   :  { %530 = vmatpush3.bf16.msra.mxu0 %v605_v25 }
  0x1c   :  { %531 = vmatprep.subr.bf16.mxu0 %v608_v28 }
  0x1d   :  { %552 = vmatpush3.bf16.msra.mxu1 %v607_v27 }
  0x1e   :  { %553 = vmatprep.subr.bf16.mxu1 %v610_v30 }
  0x1f   :  { %532 = vmatpush3.bf16.msra.mxu0 %v609_v29 }
  0x20   :  { %566 = vmatprep.subr.bf16.mxu0 %v623_v33 }
  0x21   :  { %554 = vmatpush3.bf16.msra.mxu1 %v614_v34 }
  0x22   :  { %378 = vmatmul.mubr.bf16.vlgmr.msra.gmra.mrb[0].mxu0 %v611_v31 }
  0x23   :  { %574 = vmatprep.mubr.msk.bf16.mxu0 %vm624_vm0, %v623_v33  ;;  %567 = vmatpush3.bf16.msra.mxu0 %v618_v37 }
  0x24   :  { %419 = vmatmul.mubr.bf16.vlgmr.msra.gmra.mrb[0].mxu1 %v615_v35  ;;  %568 = vmatprep.subr.bf16.mxu0 %v623_v33 }
  0x27   :  { %569 = vmatpush3.bf16.msra.mxu0 %v619_v38 }
  0x28   :  { %570 = vmatprep.subr.bf16.mxu0 %v623_v33 }
  0x2b   :  { %571 = vmatpush3.bf16.msra.mxu0 %v620_v39 }
  0x2c   :  { %572 = vmatprep.subr.bf16.mxu0 %v623_v33 }
  0x2f   :  { %573 = vmatpush3.bf16.msra.mxu0 %v621_v40 }
  0x32   :  { %575 = vmatmul.mubr.msk.bf16.vlgmr.msra.gmra.mrb[4].mxu0 %vm341_vm1, %v622_v41 }
  0xf5   :  { %v533_v42 = vpop.f32.mrb[0].mxu0 }
  0xf6   :  { %v534_v44 = vpop.f32.mrb[1].mxu0 }
  0xf7   :  { %v535_v45 = vadd.f32 %v534_v44, %v533_v42  ;;  %v536_v46 = vpop.f32.mrb[2].mxu0  ;;  %v555_v47 = vpop.f32.mrb[0].mxu1 }
  0xf8   :  { %v537_v48 = vpop.f32.mrb[3].mxu0  ;;  %v556_v51 = vpop.f32.mrb[1].mxu1 }
  0xf9   :  { %v380_v49 = vadd.f32 %v535_v45, %v474_v43  ;;  %v538_v50 = vadd.f32 %v537_v48, %v536_v46  ;;  %v557_v52 = vadd.f32 %v556_v51, %v555_v47  ;;  %v558_v53 = vpop.f32.mrb[2].mxu1 }
  0xfa   :  { %v559_v55 = vpop.f32.mrb[3].mxu1 }
  0xfb   :  { %v383_v54 = vadd.f32 %v538_v50, %v474_v43  ;;  %v560_v56 = vadd.f32 %v559_v55, %v558_v53  ;;  %v421_v57 = vadd.f32 %v557_v52, %v380_v49 }
  0xfd   :  { %v424_v58 = vadd.f32 %v560_v56, %v383_v54 }
 0x105   :  { %v461_v59 = vpop.f32.mrb[4].mxu0 }
 0x106   :  { %v462_v60 = vadd.f32 %v461_v59, %v421_v57  ;;  %v576_v61 = vpop.f32.mrb[5].mxu0 }
 0x107   :  { %v464_v62 = vpop.f32.mrb[6].mxu0 }
 0x108   :  { %468 = vst [vmem:[%s780_s3] sm:$0xff] %v462_v60  ;;  %v465_v63 = vadd.f32 %v464_v62, %v424_v58  ;;  %v577_v0 = vpop.f32.mrb[7].mxu0 }
 0x10a   :  { %469 = vst [vmem:[%s780_s3 + $0x8] sm:$0xff] %v465_v63 }

// kernel: tile.18
= control target key start
LH: loop header
LB: loop body
LE: loop exit
PB: predicated region body
PF: predicated region fallthrough
CT: control target
= control target key end

     0   :  { %s22_s0 = inlined_call_operand.vmem [shape: f32[16], index: 0, kind: input, shape index: {}]   ;;  %s23_s1 = inlined_call_operand.vmem [shape: f32[4,16], index: 1, kind: output, shape index: {}]  }
   0x1   :  { %v4_v0 = vld [vmem:[%s22_s0] ss:$0 sm:$0xff] }
   0x2   :  { %5 = vst [vmem:[%s23_s1] sm:$0xf] %v4_v0 }

// kernel: tile.19
= control target key start
LH: loop header
LB: loop body
LE: loop exit
PB: predicated region body
PF: predicated region fallthrough
CT: control target
= control target key end

     0   :  { %vm7_vm0 = vcmask 130048   ;;  %s37_s8 = smov 16   ;;  %s38_s9 = smov 32   ;;  %vm13_vm1 = vcmask 523648   ;;  %vm19_vm2 = vcmask 392448   ;;  %vm25_vm3 = vcmask 261248   ;;  %s55_s0 = inlined_call_operand.vmem [shape: f32[4,16], index: 0, kind: input, shape index: {}]   ;;  %s56_s1 = inlined_call_operand.vmem [shape: f32[1,64], index: 1, kind: output, shape index: {}]  }
   0x1   :  { %v4_v0 = vld [vmem:[%s55_s0] sm:$0xf]  ;;  %s36_s0 = smov 48  }
   0x2   :  { %5 = vst [vmem:[#allocation1] sm:$0xf] %v4_v0 }
   0x9   :  { %v10_v1 = vld [vmem:[#allocation1 + $0x3] sm:$0x1]   ;;  %v22_v2 = vld [vmem:[#allocation1 + $0x1] sm:$0x1]   ;;  %v6_v3 = vld [vmem:[#allocation1] sm:$0x1]  }
   0xa   :  { %11 = vrot.lane.b32.xlu0 %v10_v1, %s36_s0  ;;  %23 = vrot.lane.b32.xlu1 %v22_v2, %s37_s8  ;;  %v16_v4 = vld [vmem:[#allocation1 + $0x2] sm:$0x1]   ;;  %8 = vst.msk [vmem:[#allocation0] sm:$0x1] %vm7_vm0, %v6_v3  }
   0xe   :  { %17 = vrot.lane.b32.xlu0 %v16_v4, %s38_s9 }
  0x7c   :  { %v12_v5 = vpop.permute.xlu0 %11   ;;  %v24_v6 = vpop.permute.xlu1 %23  }
  0x7d   :  { %14 = vst.msk [vmem:[#allocation0] sm:$0x1] %vm13_vm1, %v12_v5  }
  0x80   :  { %v18_v7 = vpop.permute.xlu0 %17  }
  0x81   :  { %20 = vst.msk [vmem:[#allocation0] sm:$0x1] %vm19_vm2, %v18_v7  }
  0x82   :  { %26 = vst.msk [vmem:[#allocation0] sm:$0x1] %vm25_vm3, %v24_v6  }
  0x89   :  { %v30_v8 = vld [vmem:[#allocation0] sm:$0x1] }
  0x8a   :  { %32 = vst [vmem:[%s56_s1] sm:$0x1] %v30_v8 }

// kernel: foreground_forward.33
= control target key start
LH: loop header
LB: loop body
LE: loop exit
PB: predicated region body
PF: predicated region fallthrough
CT: control target
= control target key end

     0   :  { %s251_s19 = smov 96   ;;  %vm201_vm0 = vcmask 261120   ;;  %s363_s1 = inlined_call_operand.vmem [shape: f32[64,64], index: 1, kind: input, shape index: {}]   ;;  %s364_s2 = inlined_call_operand.vmem [shape: f32[1,32], index: 2, kind: input, shape index: {}]   ;;  %s365_s0 = inlined_call_operand.vmem [shape: f32[64,32], index: 0, kind: input, shape index: {}]   ;;  %s366_s3 = inlined_call_operand.vmem [shape: f32[1,32], index: 3, kind: input, shape index: {}]   ;;  %s367_s4 = inlined_call_operand.vmem [shape: f32[64,32], index: 4, kind: output, shape index: {}]  }
   0x1   :  { %v115_v0 = vld [vmem:[%s363_s1 + $0x10] sm:$0xff]  ;;  %v113_v1 = vld [vmem:[%s363_s1] sm:$0xff]  ;;  %v116_v2 = vld [vmem:[%s363_s1 + $0x18] sm:$0xff] }
   0x2   :  { %149 = vrot.lane.b32.xlu1 %v115_v0, %s251_s19  ;;  %145 = vrot.lane.b32.xlu0 %v113_v1, %s251_s19  ;;  %v114_v3 = vld [vmem:[%s363_s1 + $0x8] sm:$0xff]  ;;  %v117_v5 = vld [vmem:[%s363_s1 + $0x20] sm:$0xff]  ;;  %v123_v16 = vadd.f32 1.0, %v115_v0  ;;  %v121_v17 = vadd.f32 1.0, %v113_v1  ;;  %v124_v24 = vadd.f32 1.0, %v116_v2 }
   0x3   :  { %v118_v4 = vld [vmem:[%s363_s1 + $0x28] sm:$0xff]  ;;  %v120_v6 = vld [vmem:[%s363_s1 + $0x38] sm:$0xff]  ;;  %v119_v7 = vld [vmem:[%s363_s1 + $0x30] sm:$0xff]  ;;  %v122_v25 = vadd.f32 1.0, %v114_v3  ;;  %v125_v35 = vadd.f32 1.0, %v117_v5 }
   0x4   :  { %v248_v8 = vld [vmem:[%s364_s2] ss:$0 sm:$0xff]  ;;  %v77_v9 = vld [vmem:[%s365_s0 + $0x10] sm:$0xff]  ;;  %v78_v14 = vld [vmem:[%s365_s0 + $0x18] sm:$0xff]  ;;  %v126_v34 = vadd.f32 1.0, %v118_v4  ;;  %v128_v46 = vadd.f32 1.0, %v120_v6 }
   0x5   :  { %v75_v10 = vld [vmem:[%s365_s0] sm:$0xff]  ;;  %v92_v11 = vsub.f32 %v77_v9, %v248_v8  ;;  %v76_v15 = vld [vmem:[%s365_s0 + $0x8] sm:$0xff]  ;;  %v93_v20 = vsub.f32 %v78_v14, %v248_v8  ;;  %v82_v32 = vld [vmem:[%s365_s0 + $0x38] sm:$0xff]  ;;  %v127_v47 = vadd.f32 1.0, %v119_v7 }
   0x6   :  { %151 = vrot.lane.b32.xlu1 %v116_v2, %s251_s19  ;;  %147 = vrot.lane.b32.xlu0 %v114_v3, %s251_s19  ;;  %v90_v12 = vsub.f32 %v75_v10, %v248_v8  ;;  %v249_v13 = vld [vmem:[%s366_s3] ss:$0 sm:$0xff]  ;;  %v91_v21 = vsub.f32 %v76_v15, %v248_v8  ;;  %v80_v22 = vld [vmem:[%s365_s0 + $0x28] sm:$0xff]  ;;  %v97_v40 = vsub.f32 %v82_v32, %v248_v8 }
   0x7   :  { %v107_v18 = vmul.f32 %v249_v13, %v92_v11  ;;  %v79_v23 = vld [vmem:[%s365_s0 + $0x20] sm:$0xff]  ;;  %v95_v26 = vsub.f32 %v80_v22, %v248_v8  ;;  %v108_v30 = vmul.f32 %v249_v13, %v93_v20  ;;  %v81_v33 = vld [vmem:[%s365_s0 + $0x30] sm:$0xff] }
   0x8   :  { %v105_v19 = vmul.f32 %v249_v13, %v90_v12  ;;  %v94_v27 = vsub.f32 %v79_v23, %v248_v8  ;;  %v106_v31 = vmul.f32 %v249_v13, %v91_v21  ;;  %v96_v41 = vsub.f32 %v81_v33, %v248_v8 }
   0x9   :  { %v131_v28 = vmul.f32 %v123_v16, %v107_v18  ;;  %v110_v38 = vmul.f32 %v249_v13, %v95_v26  ;;  %v132_v44 = vmul.f32 %v124_v24, %v108_v30  ;;  %v112_v54 = vmul.f32 %v249_v13, %v97_v40 }
   0xa   :  { %155 = vrot.lane.b32.xlu1 %v118_v4, %s251_s19  ;;  %153 = vrot.lane.b32.xlu0 %v117_v5, %s251_s19  ;;  %v129_v29 = vmul.f32 %v121_v17, %v105_v19  ;;  %v109_v39 = vmul.f32 %v249_v13, %v94_v27  ;;  %v130_v45 = vmul.f32 %v122_v25, %v106_v31 }
   0xb   :  { %v134_v52 = vmul.f32 %v126_v34, %v110_v38  ;;  %v111_v55 = vmul.f32 %v249_v13, %v96_v41  ;;  %v136_v0 = vmul.f32 %v128_v46, %v112_v54 }
   0xc   :  { %v133_v53 = vmul.f32 %v125_v35, %v109_v39 }
   0xd   :  { %v135_v1 = vmul.f32 %v127_v47, %v111_v55 }
   0xe   :  { %159 = vrot.lane.b32.xlu1 %v120_v6, %s251_s19  ;;  %157 = vrot.lane.b32.xlu0 %v119_v7, %s251_s19 }
  0x74   :  { %v150_v36 = vpop.permute.xlu1 %149  ;;  %v146_v37 = vpop.permute.xlu0 %145 }
  0x75   :  { %v171_v42 = vadd.f32 %v150_v36, %v131_v28  ;;  %v169_v43 = vadd.f32 %v146_v37, %v129_v29 }
  0x77   :  { %vm179_vm1 = vcmp.ge.f32.partialorder %v171_v42, 0.0  ;;  %v187_v48 = vmul.f32 0.01, %v171_v42  ;;  %vm177_vm2 = vcmp.ge.f32.partialorder %v169_v43, 0.0  ;;  %v185_v49 = vmul.f32 0.01, %v169_v43 }
  0x78   :  { %v152_v50 = vpop.permute.xlu1 %151  ;;  %v148_v51 = vpop.permute.xlu0 %147 }
  0x79   :  { %v195_v56 = vsel %vm179_vm1, %v171_v42, %v187_v48  ;;  %v193_v57 = vsel %vm177_vm2, %v169_v43, %v185_v49  ;;  %v172_v58 = vadd.f32 %v152_v50, %v132_v44  ;;  %v170_v59 = vadd.f32 %v148_v51, %v130_v45 }
  0x7a   :  { %204 = vst.msk [vmem:[%s367_s4 + $0x10] sm:$0xff] %vm201_vm0, %v195_v56  ;;  %202 = vst.msk [vmem:[%s367_s4] sm:$0xff] %vm201_vm0, %v193_v57 }
  0x7b   :  { %vm180_vm3 = vcmp.ge.f32.partialorder %v172_v58, 0.0  ;;  %v188_v60 = vmul.f32 0.01, %v172_v58  ;;  %vm178_vm4 = vcmp.ge.f32.partialorder %v170_v59, 0.0  ;;  %v186_v61 = vmul.f32 0.01, %v170_v59 }
  0x7c   :  { %v156_v62 = vpop.permute.xlu1 %155  ;;  %v154_v63 = vpop.permute.xlu0 %153 }
  0x7d   :  { %v196_v2 = vsel %vm180_vm3, %v172_v58, %v188_v60  ;;  %v194_v3 = vsel %vm178_vm4, %v170_v59, %v186_v61  ;;  %v174_v4 = vadd.f32 %v156_v62, %v134_v52  ;;  %v173_v5 = vadd.f32 %v154_v63, %v133_v53 }
  0x7e   :  { %205 = vst.msk [vmem:[%s367_s4 + $0x18] sm:$0xff] %vm201_vm0, %v196_v2  ;;  %203 = vst.msk [vmem:[%s367_s4 + $0x8] sm:$0xff] %vm201_vm0, %v194_v3 }
  0x7f   :  { %vm182_vm5 = vcmp.ge.f32.partialorder %v174_v4, 0.0  ;;  %v190_v6 = vmul.f32 0.01, %v174_v4  ;;  %vm181_vm6 = vcmp.ge.f32.partialorder %v173_v5, 0.0  ;;  %v189_v7 = vmul.f32 0.01, %v173_v5 }
  0x80   :  { %v160_v8 = vpop.permute.xlu1 %159  ;;  %v158_v9 = vpop.permute.xlu0 %157 }
  0x81   :  { %v198_v10 = vsel %vm182_vm5, %v174_v4, %v190_v6  ;;  %v197_v11 = vsel %vm181_vm6, %v173_v5, %v189_v7  ;;  %v176_v12 = vadd.f32 %v160_v8, %v136_v0  ;;  %v175_v13 = vadd.f32 %v158_v9, %v135_v1 }
  0x82   :  { %207 = vst.msk [vmem:[%s367_s4 + $0x28] sm:$0xff] %vm201_vm0, %v198_v10  ;;  %206 = vst.msk [vmem:[%s367_s4 + $0x20] sm:$0xff] %vm201_vm0, %v197_v11 }
  0x83   :  { %vm184_vm7 = vcmp.ge.f32.partialorder %v176_v12, 0.0  ;;  %v192_v14 = vmul.f32 0.01, %v176_v12  ;;  %vm183_vm8 = vcmp.ge.f32.partialorder %v175_v13, 0.0  ;;  %v191_v15 = vmul.f32 0.01, %v175_v13 }
  0x85   :  { %v200_v16 = vsel %vm184_vm7, %v176_v12, %v192_v14  ;;  %v199_v17 = vsel %vm183_vm8, %v175_v13, %v191_v15 }
  0x86   :  { %209 = vst.msk [vmem:[%s367_s4 + $0x38] sm:$0xff] %vm201_vm0, %v200_v16  ;;  %208 = vst.msk [vmem:[%s367_s4 + $0x30] sm:$0xff] %vm201_vm0, %v199_v17 }

// kernel: foreground_forward.34
= control target key start
LH: loop header
LB: loop body
LE: loop exit
PB: predicated region body
PF: predicated region fallthrough
CT: control target
= control target key end

     0   :  { %vm242_vm0 = vcmask 261120   ;;  %vm385_vm1 = vcmask 523264   ;;  %s690_s1 = inlined_call_operand.vmem [shape: bf16[288,64], index: 1, kind: input, shape index: {}]   ;;  %s691_s0 = inlined_call_operand.vmem [shape: bf16[64,288], index: 0, kind: input, shape index: {}]   ;;  %s692_s2 = inlined_call_operand.vmem [shape: f32[1,64], index: 2, kind: input, shape index: {}]   ;;  %s693_s3 = inlined_call_operand.vmem [shape: f32[64,64], index: 3, kind: output, shape index: {}]  }
   0x1   :  { %v507_v0 = vld [vmem:[%s690_s1 + $0x40] sm:$0xff]   ;;  %v509_v2 = vld [vmem:[%s690_s1 + $0x48] sm:$0xff]   ;;  %v511_v4 = vld [vmem:[%s690_s1 + $0x50] sm:$0xff]  }
   0x2   :  { %v508_v1 = vld [vmem:[%s690_s1] sm:$0xff]   ;;  %433 = vmatprep.subr.bf16.mxu0 %v507_v0  ;;  %491 = vmatprep.subr.bf16.mxu1 %v507_v0  ;;  %v510_v3 = vld [vmem:[%s690_s1 + $0x8] sm:$0xff]   ;;  %v512_v5 = vld [vmem:[%s690_s1 + $0x10] sm:$0xff]  }
   0x3   :  { %434 = vmatpush3.bf16.msra.mxu0 %v508_v1  ;;  %499 = vmatpush3.bf16.msra.mxu1 %v508_v1  ;;  %v513_v6 = vld [vmem:[%s690_s1 + $0x58] sm:$0xff]   ;;  %v515_v8 = vld [vmem:[%s690_s1 + $0x60] sm:$0xff]   ;;  %v517_v10 = vld [vmem:[%s690_s1 + $0x68] sm:$0xff]  }
   0x4   :  { %435 = vmatprep.subr.bf16.mxu0 %v509_v2  ;;  %492 = vmatprep.subr.bf16.mxu1 %v509_v2  ;;  %v514_v7 = vld [vmem:[%s690_s1 + $0x18] sm:$0xff]   ;;  %v516_v9 = vld [vmem:[%s690_s1 + $0x20] sm:$0xff]   ;;  %v518_v13 = vld [vmem:[%s690_s1 + $0x28] sm:$0xff]  }
   0x5   :  { %v525_v11 = vld [vmem:[%s691_s0 + $0x4] ss:$12 sps:$4 sm:$0xff]   ;;  %v528_v12 = vld [vmem:[%s691_s0 + $0x4c] ss:$12 sps:$4 sm:$0xff]   ;;  %v526_v20 = vld [vmem:[%s691_s0 + $0x48] ss:$12 sps:$4 sm:$0xff]  }
   0x6   :  { %v519_v14 = vld [vmem:[%s690_s1 + $0x70] sm:$0xff]   ;;  %287 = vmatprep.mubr.bf16.mxu0 %v525_v11  ;;  %311 = vmatprep.mubr.bf16.mxu1 %v528_v12  ;;  %v521_v16 = vld [vmem:[%s690_s1 + $0x78] sm:$0xff]   ;;  %v529_v18 = vld [vmem:[%s690_s1 + $0x80] sm:$0xff]  }
   0x7   :  { %436 = vmatpush3.bf16.msra.mxu0 %v510_v3  ;;  %500 = vmatpush3.bf16.msra.mxu1 %v510_v3  ;;  %v520_v15 = vld [vmem:[%s690_s1 + $0x30] sm:$0xff]   ;;  %v522_v17 = vld [vmem:[%s690_s1 + $0x38] sm:$0xff]   ;;  %v523_v19 = vld [vmem:[%s691_s0] ss:$12 sps:$4 sm:$0xff]  }
   0x8   :  { %437 = vmatprep.subr.bf16.mxu0 %v511_v4  ;;  %493 = vmatprep.subr.bf16.mxu1 %v511_v4  ;;  %v531_v21 = vld [vmem:[%s691_s0 + $0x1c] ss:$12 sps:$4 sm:$0xff]   ;;  %v534_v24 = vld [vmem:[%s691_s0 + $0x18] ss:$12 sps:$4 sm:$0xff]   ;;  %v535_v25 = vld [vmem:[%s691_s0 + $0x20] ss:$12 sps:$4 sm:$0xff]  }
   0x9   :  { %v530_v22 = vld [vmem:[%s690_s1 + $0x88] sm:$0xff]   ;;  %v536_v26 = vld [vmem:[%s691_s0 + $0x34] ss:$12 sps:$4 sm:$0xff]   ;;  %v538_v27 = vld [vmem:[%s691_s0 + $0x38] ss:$12 sps:$4 sm:$0xff]  }
   0xa   :  { %v533_v23 = vld [vmem:[%s691_s0 + $0x8] ss:$12 sps:$4 sm:$0xff]   ;;  %v539_v28 = vld [vmem:[%s691_s0 + $0x30] ss:$12 sps:$4 sm:$0xff]   ;;  %v398_v42 = vld [vmem:[%s692_s2] ss:$0 sm:$0xff] }
   0xb   :  { %438 = vmatpush3.bf16.msra.mxu0 %v512_v5  ;;  %501 = vmatpush3.bf16.msra.mxu1 %v512_v5  ;;  %v540_v29 = vld [vmem:[%s691_s0 + $0x50] ss:$12 sps:$4 sm:$0xff]  }
   0xc   :  { %439 = vmatprep.subr.bf16.mxu0 %v513_v6  ;;  %494 = vmatprep.subr.bf16.mxu1 %v513_v6 }
   0xf   :  { %440 = vmatpush3.bf16.msra.mxu0 %v514_v7  ;;  %502 = vmatpush3.bf16.msra.mxu1 %v514_v7 }
  0x10   :  { %441 = vmatprep.subr.bf16.mxu0 %v515_v8  ;;  %495 = vmatprep.subr.bf16.mxu1 %v515_v8 }
  0x13   :  { %442 = vmatpush3.bf16.msra.mxu0 %v516_v9  ;;  %503 = vmatpush3.bf16.msra.mxu1 %v516_v9 }
  0x14   :  { %443 = vmatprep.subr.bf16.mxu0 %v517_v10  ;;  %496 = vmatprep.subr.bf16.mxu1 %v517_v10 }
  0x17   :  { %444 = vmatpush3.bf16.msra.mxu0 %v518_v13  ;;  %504 = vmatpush3.bf16.msra.mxu1 %v518_v13 }
  0x18   :  { %445 = vmatprep.subr.bf16.mxu0 %v519_v14  ;;  %497 = vmatprep.subr.bf16.mxu1 %v519_v14 }
  0x1b   :  { %446 = vmatpush3.bf16.msra.mxu0 %v520_v15  ;;  %505 = vmatpush3.bf16.msra.mxu1 %v520_v15 }
  0x1c   :  { %447 = vmatprep.subr.bf16.mxu0 %v521_v16  ;;  %498 = vmatprep.subr.bf16.mxu1 %v521_v16 }
  0x1f   :  { %448 = vmatpush3.bf16.msra.mxu0 %v522_v17  ;;  %506 = vmatpush3.bf16.msra.mxu1 %v522_v17 }
  0x20   :  { %479 = vmatprep.subr.bf16.mxu1 %v529_v18 }
  0x22   :  { %288 = vmatmul.mubr.bf16.vlgmr.msra.gmra.mrb[0].mxu0 %v523_v19  ;;  %312 = vmatmul.mubr.bf16.vlgmr.msra.gmra.mrb[0].mxu1 %v526_v20 }
  0x23   :  { %480 = vmatpush3.bf16.msra.mxu1 %v529_v18  ;;  %295 = vmatprep.mubr.bf16.mxu0 %v531_v21 }
  0x24   :  { %481 = vmatprep.subr.bf16.mxu1 %v530_v22  ;;  %483 = vmatprep.mubr.msk.bf16.mxu1 %vm242_vm0, %v533_v23 }
  0x27   :  { %482 = vmatpush3.bf16.msra.mxu1 %v530_v22 }
  0x2a   :  { %296 = vmatmul.mubr.bf16.gmra.mrb[4].mxu0 %v534_v24  ;;  %484 = vmatmul.mubr.msk.bf16.vlgmr.msra.gmra.mrb[4].mxu1 %vm242_vm0, %v535_v25 }
  0x2b   :  { %303 = vmatprep.mubr.bf16.mxu0 %v536_v26  ;;  %487 = vmatprep.mubr.msk.bf16.mxu1 %vm242_vm0, %v538_v27 }
  0x32   :  { %304 = vmatmul.mubr.bf16.gmra.mrb[8].mxu0 %v539_v28  ;;  %488 = vmatmul.mubr.msk.bf16.gmra.mrb[8].mxu1 %vm242_vm0, %v540_v29 }
  0xf5   :  { %v449_v30 = vpop.f32.mrb[0].mxu0  ;;  %v467_v31 = vpop.f32.mrb[0].mxu1 }
  0xf6   :  { %v450_v32 = vpop.f32.mrb[1].mxu0  ;;  %v468_v33 = vpop.f32.mrb[1].mxu1 }
  0xf7   :  { %v451_v34 = vadd.f32 %v450_v32, %v449_v30  ;;  %v452_v35 = vpop.f32.mrb[2].mxu0  ;;  %v469_v36 = vadd.f32 %v468_v33, %v467_v31  ;;  %v470_v37 = vpop.f32.mrb[2].mxu1 }
  0xf8   :  { %v453_v38 = vpop.f32.mrb[3].mxu0  ;;  %v471_v39 = vpop.f32.mrb[3].mxu1 }
  0xf9   :  { %v454_v40 = vadd.f32 %v453_v38, %v452_v35  ;;  %v472_v41 = vadd.f32 %v471_v39, %v470_v37  ;;  %v290_v45 = vadd.f32 %v451_v34, %v398_v42  ;;  %v314_v60 = vadd.f32 %v469_v36, %v398_v42 }
  0xfb   :  { %v293_v52 = vadd.f32 %v454_v40, %v398_v42  ;;  %v317_v3 = vadd.f32 %v472_v41, %v398_v42 }
  0xfd   :  { %v455_v43 = vpop.f32.mrb[4].mxu0  ;;  %v485_v44 = vpop.f32.mrb[4].mxu1 }
  0xfe   :  { %v456_v46 = vpop.f32.mrb[5].mxu0  ;;  %v354_v47 = vpop.f32.mrb[5].mxu1 }
  0xff   :  { %v457_v48 = vadd.f32 %v456_v46, %v455_v43  ;;  %v355_v49 = vadd.f32 %v354_v47, %v290_v45  ;;  %v458_v50 = vpop.f32.mrb[6].mxu0  ;;  %v486_v51 = vpop.f32.mrb[6].mxu1 }
 0x100   :  { %v459_v53 = vpop.f32.mrb[7].mxu0  ;;  %v357_v54 = vpop.f32.mrb[7].mxu1 }
 0x101   :  { %v298_v55 = vadd.f32 %v457_v48, %v398_v42  ;;  %386 = vst.msk [vmem:[%s693_s3] sm:$0xff] %vm385_vm1, %v355_v49  ;;  %v460_v56 = vadd.f32 %v459_v53, %v458_v50  ;;  %v358_v57 = vadd.f32 %v357_v54, %v293_v52 }
 0x103   :  { %v363_v58 = vadd.f32 %v485_v44, %v298_v55  ;;  %v301_v59 = vadd.f32 %v460_v56, %v398_v42  ;;  %387 = vst.msk [vmem:[%s693_s3 + $0x8] sm:$0xff] %vm385_vm1, %v358_v57 }
 0x105   :  { %388 = vst.msk [vmem:[%s693_s3 + $0x10] sm:$0xff] %vm385_vm1, %v363_v58  ;;  %v366_v61 = vadd.f32 %v486_v51, %v301_v59  ;;  %v461_v62 = vpop.f32.mrb[8].mxu0  ;;  %v489_v63 = vpop.f32.mrb[8].mxu1 }
 0x106   :  { %v379_v0 = vadd.f32 %v489_v63, %v314_v60  ;;  %v462_v1 = vpop.f32.mrb[9].mxu0  ;;  %v370_v2 = vpop.f32.mrb[9].mxu1 }
 0x107   :  { %389 = vst.msk [vmem:[%s693_s3 + $0x18] sm:$0xff] %vm385_vm1, %v366_v61  ;;  %v463_v4 = vadd.f32 %v462_v1, %v461_v62  ;;  %v464_v5 = vpop.f32.mrb[10].mxu0  ;;  %v490_v6 = vpop.f32.mrb[10].mxu1 }
 0x108   :  { %392 = vst.msk [vmem:[%s693_s3 + $0x30] sm:$0xff] %vm385_vm1, %v379_v0  ;;  %v382_v7 = vadd.f32 %v490_v6, %v317_v3  ;;  %v465_v8 = vpop.f32.mrb[11].mxu0  ;;  %v373_v9 = vpop.f32.mrb[11].mxu1 }
 0x109   :  { %v306_v10 = vadd.f32 %v463_v4, %v398_v42  ;;  %v466_v11 = vadd.f32 %v465_v8, %v464_v5 }
 0x10a   :  { %393 = vst.msk [vmem:[%s693_s3 + $0x38] sm:$0xff] %vm385_vm1, %v382_v7 }
 0x10b   :  { %v371_v12 = vadd.f32 %v370_v2, %v306_v10  ;;  %v309_v13 = vadd.f32 %v466_v11, %v398_v42 }
 0x10d   :  { %390 = vst.msk [vmem:[%s693_s3 + $0x20] sm:$0xff] %vm385_vm1, %v371_v12  ;;  %v374_v14 = vadd.f32 %v373_v9, %v309_v13 }
 0x10f   :  { %391 = vst.msk [vmem:[%s693_s3 + $0x28] sm:$0xff] %vm385_vm1, %v374_v14 }

// kernel: tile.22
= control target key start
LH: loop header
LB: loop body
LE: loop exit
PB: predicated region body
PF: predicated region fallthrough
CT: control target
= control target key end

     0   :  { %s22_s0 = inlined_call_operand.vmem [shape: f32[4], index: 0, kind: input, shape index: {}]   ;;  %s23_s1 = inlined_call_operand.vmem [shape: f32[4,4], index: 1, kind: output, shape index: {}]  }
   0x1   :  { %v4_v0 = vld [vmem:[%s22_s0] ss:$0 sm:$0xff] }
   0x2   :  { %5 = vst [vmem:[%s23_s1] sm:$0xf] %v4_v0 }

// kernel: tile.23
= control target key start
LH: loop header
LB: loop body
LE: loop exit
PB: predicated region body
PF: predicated region fallthrough
CT: control target
= control target key end

     0   :  { %vm7_vm0 = vcmask 31744   ;;  %s37_s8 = smov 4   ;;  %s38_s9 = smov 8   ;;  %vm13_vm1 = vcmask 130144   ;;  %vm19_vm2 = vcmask 97344   ;;  %vm25_vm3 = vcmask 64544   ;;  %s55_s0 = inlined_call_operand.vmem [shape: f32[4,4], index: 0, kind: input, shape index: {}]   ;;  %s56_s1 = inlined_call_operand.vmem [shape: f32[1,16], index: 1, kind: output, shape index: {}]  }
   0x1   :  { %v4_v0 = vld [vmem:[%s55_s0] sm:$0xf]  ;;  %s36_s0 = smov 12  }
   0x2   :  { %5 = vst [vmem:[#allocation1] sm:$0xf] %v4_v0 }
   0x9   :  { %v10_v1 = vld [vmem:[#allocation1 + $0x3] sm:$0x1]   ;;  %v22_v2 = vld [vmem:[#allocation1 + $0x1] sm:$0x1]   ;;  %v6_v3 = vld [vmem:[#allocation1] sm:$0x1]  }
   0xa   :  { %11 = vrot.lane.b32.xlu0 %v10_v1, %s36_s0  ;;  %23 = vrot.lane.b32.xlu1 %v22_v2, %s37_s8  ;;  %v16_v4 = vld [vmem:[#allocation1 + $0x2] sm:$0x1]   ;;  %8 = vst.msk [vmem:[#allocation0] sm:$0x1] %vm7_vm0, %v6_v3  }
   0xe   :  { %17 = vrot.lane.b32.xlu0 %v16_v4, %s38_s9 }
  0x7c   :  { %v12_v5 = vpop.permute.xlu0 %11   ;;  %v24_v6 = vpop.permute.xlu1 %23  }
  0x7d   :  { %14 = vst.msk [vmem:[#allocation0] sm:$0x1] %vm13_vm1, %v12_v5  }
  0x80   :  { %v18_v7 = vpop.permute.xlu0 %17  }
  0x81   :  { %20 = vst.msk [vmem:[#allocation0] sm:$0x1] %vm19_vm2, %v18_v7  }
  0x82   :  { %26 = vst.msk [vmem:[#allocation0] sm:$0x1] %vm25_vm3, %v24_v6  }
  0x89   :  { %v30_v8 = vld [vmem:[#allocation0] sm:$0x1] }
  0x8a   :  { %32 = vst [vmem:[%s56_s1] sm:$0x1] %v30_v8 }

// kernel: foreground_forward.38
= control target key start
LH: loop header
LB: loop body
LE: loop exit
PB: predicated region body
PF: predicated region fallthrough
CT: control target
= control target key end

     0   :  { %s611_s19 = smov 112   ;;  %vm537_vm0 = vcmask 130048   ;;  %s1191_s1 = inlined_call_operand.vmem [shape: f32[256,32], index: 1, kind: input, shape index: {}]   ;;  %s1192_s2 = inlined_call_operand.vmem [shape: f32[1,16], index: 2, kind: input, shape index: {}]   ;;  %s1193_s0 = inlined_call_operand.vmem [shape: f32[256,16], index: 0, kind: input, shape index: {}]   ;;  %s1194_s3 = inlined_call_operand.vmem [shape: f32[1,16], index: 3, kind: input, shape index: {}]   ;;  %s1195_s4 = inlined_call_operand.vmem [shape: f32[256,16], index: 4, kind: output, shape index: {}]  }
   0x1   :  { %v640_v0 = vld [vmem:[%s1191_s1 + $0x10] sm:$0xff]  ;;  %v645_v1 = vld [vmem:[%s1191_s1] sm:$0xff]  ;;  %v654_v2 = vld [vmem:[%s1191_s1 + $0x18] sm:$0xff] }
   0x2   :  { %317 = vrot.lane.b32.xlu1 %v640_v0, %s611_s19  ;;  %313 = vrot.lane.b32.xlu0 %v645_v1, %s611_s19  ;;  %v659_v3 = vld [vmem:[%s1191_s1 + $0x8] sm:$0xff]  ;;  %v673_v5 = vld [vmem:[%s1191_s1 + $0x20] sm:$0xff]  ;;  %v219_v41 = vadd.f32 1.0, %v640_v0  ;;  %v217_v42 = vadd.f32 1.0, %v645_v1  ;;  %v220_v50 = vadd.f32 1.0, %v654_v2 }
   0x3   :  { %v668_v4 = vld [vmem:[%s1191_s1 + $0x28] sm:$0xff]  ;;  %v682_v6 = vld [vmem:[%s1191_s1 + $0x38] sm:$0xff]  ;;  %v687_v7 = vld [vmem:[%s1191_s1 + $0x30] sm:$0xff]  ;;  %v218_v51 = vadd.f32 1.0, %v659_v3  ;;  %v221_v61 = vadd.f32 1.0, %v673_v5 }
   0x4   :  { %v696_v8 = vld [vmem:[%s1191_s1 + $0x48] sm:$0xff]  ;;  %v701_v9 = vld [vmem:[%s1191_s1 + $0x40] sm:$0xff]  ;;  %v710_v10 = vld [vmem:[%s1191_s1 + $0x58] sm:$0xff]  ;;  %v222_v58 = vadd.f32 1.0, %v668_v4 }
   0x5   :  { %v715_v11 = vld [vmem:[%s1191_s1 + $0x50] sm:$0xff]  ;;  %v724_v12 = vld [vmem:[%s1191_s1 + $0x68] sm:$0xff]  ;;  %v729_v13 = vld [vmem:[%s1191_s1 + $0x60] sm:$0xff] }
   0x6   :  { %319 = vrot.lane.b32.xlu1 %v654_v2, %s611_s19  ;;  %315 = vrot.lane.b32.xlu0 %v659_v3, %s611_s19  ;;  %v738_v14 = vld [vmem:[%s1191_s1 + $0x78] sm:$0xff]  ;;  %v743_v15 = vld [vmem:[%s1191_s1 + $0x70] sm:$0xff] }
   0x7   :  { %v752_v16 = vld [vmem:[%s1191_s1 + $0x88] sm:$0xff]  ;;  %v757_v17 = vld [vmem:[%s1191_s1 + $0x80] sm:$0xff]  ;;  %v766_v18 = vld [vmem:[%s1191_s1 + $0x98] sm:$0xff] }
   0x8   :  { %v771_v19 = vld [vmem:[%s1191_s1 + $0x90] sm:$0xff]  ;;  %v780_v20 = vld [vmem:[%s1191_s1 + $0xa8] sm:$0xff]  ;;  %v785_v21 = vld [vmem:[%s1191_s1 + $0xa0] sm:$0xff] }
   0x9   :  { %v794_v22 = vld [vmem:[%s1191_s1 + $0xb8] sm:$0xff]  ;;  %v799_v23 = vld [vmem:[%s1191_s1 + $0xb0] sm:$0xff]  ;;  %v808_v24 = vld [vmem:[%s1191_s1 + $0xc8] sm:$0xff] }
   0xa   :  { %323 = vrot.lane.b32.xlu1 %v668_v4, %s611_s19  ;;  %321 = vrot.lane.b32.xlu0 %v673_v5, %s611_s19  ;;  %v813_v25 = vld [vmem:[%s1191_s1 + $0xc0] sm:$0xff]  ;;  %v822_v26 = vld [vmem:[%s1191_s1 + $0xd8] sm:$0xff]  ;;  %v224_v5 = vadd.f32 1.0, %v682_v6 }
   0xb   :  { %v827_v27 = vld [vmem:[%s1191_s1 + $0xd0] sm:$0xff]  ;;  %v836_v28 = vld [vmem:[%s1191_s1 + $0xe8] sm:$0xff]  ;;  %v841_v29 = vld [vmem:[%s1191_s1 + $0xe0] sm:$0xff] }
   0xc   :  { %v850_v30 = vld [vmem:[%s1191_s1 + $0xf8] sm:$0xff]  ;;  %v855_v31 = vld [vmem:[%s1191_s1 + $0xf0] sm:$0xff]  ;;  %v864_v32 = vld [vmem:[%s1192_s2] ss:$0 sm:$0xff] }
   0xd   :  { %v77_v33 = vld [vmem:[%s1193_s0 + $0x10] sm:$0xff]  ;;  %v75_v34 = vld [vmem:[%s1193_s0] sm:$0xff]  ;;  %v78_v38 = vld [vmem:[%s1193_s0 + $0x18] sm:$0xff] }
   0xe   :  { %327 = vrot.lane.b32.xlu1 %v682_v6, %s611_s19  ;;  %325 = vrot.lane.b32.xlu0 %v687_v7, %s611_s19  ;;  %v116_v35 = vsub.f32 %v77_v33, %v864_v32  ;;  %v114_v36 = vsub.f32 %v75_v34, %v864_v32  ;;  %v877_v37 = vld [vmem:[%s1194_s3] ss:$0 sm:$0xff]  ;;  %v76_v39 = vld [vmem:[%s1193_s0 + $0x8] sm:$0xff]  ;;  %v117_v45 = vsub.f32 %v78_v38, %v864_v32 }
   0xf   :  { %v80_v40 = vld [vmem:[%s1193_s0 + $0x28] sm:$0xff]  ;;  %v115_v46 = vsub.f32 %v76_v39, %v864_v32  ;;  %v79_v47 = vld [vmem:[%s1193_s0 + $0x20] sm:$0xff]  ;;  %v82_v49 = vld [vmem:[%s1193_s0 + $0x38] sm:$0xff] }
  0x10   :  { %v155_v43 = vmul.f32 %v877_v37, %v116_v35  ;;  %v153_v44 = vmul.f32 %v877_v37, %v114_v36  ;;  %v119_v48 = vsub.f32 %v80_v40, %v864_v32  ;;  %v118_v52 = vsub.f32 %v79_v47, %v864_v32  ;;  %v81_v57 = vld [vmem:[%s1193_s0 + $0x30] sm:$0xff]  ;;  %v84_v4 = vld [vmem:[%s1193_s0 + $0x48] sm:$0xff]  ;;  %v83_v35 = vld [vmem:[%s1193_s0 + $0x40] sm:$0xff] }
  0x11   :  { %v156_v55 = vmul.f32 %v877_v37, %v117_v45  ;;  %v154_v56 = vmul.f32 %v877_v37, %v115_v46  ;;  %v121_v60 = vsub.f32 %v82_v49, %v864_v32  ;;  %v120_v1 = vsub.f32 %v81_v57, %v864_v32  ;;  %v86_v40 = vld [vmem:[%s1193_s0 + $0x58] sm:$0xff] }
  0x12   :  { %331 = vrot.lane.b32.xlu1 %v696_v8, %s611_s19  ;;  %329 = vrot.lane.b32.xlu0 %v701_v9, %s611_s19  ;;  %v251_v53 = vmul.f32 %v219_v41, %v155_v43  ;;  %v249_v54 = vmul.f32 %v217_v42, %v153_v44  ;;  %v158_v59 = vmul.f32 %v877_v37, %v119_v48  ;;  %v223_v36 = vadd.f32 1.0, %v687_v7 }
  0x13   :  { %v157_v0 = vmul.f32 %v877_v37, %v118_v52  ;;  %v252_v33 = vmul.f32 %v220_v50, %v156_v55  ;;  %v250_v34 = vmul.f32 %v218_v51, %v154_v56  ;;  %v160_v39 = vmul.f32 %v877_v37, %v121_v60  ;;  %v85_v51 = vld [vmem:[%s1193_s0 + $0x50] sm:$0xff]  ;;  %v88_v56 = vld [vmem:[%s1193_s0 + $0x68] sm:$0xff] }
  0x14   :  { %v254_v38 = vmul.f32 %v222_v58, %v158_v59  ;;  %v159_v46 = vmul.f32 %v877_v37, %v120_v1  ;;  %v123_v6 = vsub.f32 %v84_v4, %v864_v32  ;;  %v122_v7 = vsub.f32 %v83_v35, %v864_v32 }
  0x15   :  { %v253_v45 = vmul.f32 %v221_v61, %v157_v0  ;;  %v226_v52 = vadd.f32 1.0, %v696_v8  ;;  %v125_v55 = vsub.f32 %v86_v40, %v864_v32  ;;  %v127_v35 = vsub.f32 %v88_v56, %v864_v32 }
  0x16   :  { %335 = vrot.lane.b32.xlu1 %v710_v10, %s611_s19  ;;  %333 = vrot.lane.b32.xlu0 %v715_v11, %s611_s19  ;;  %v255_v59 = vmul.f32 %v223_v36, %v159_v46  ;;  %v162_v60 = vmul.f32 %v877_v37, %v123_v6  ;;  %v161_v61 = vmul.f32 %v877_v37, %v122_v7  ;;  %v230_v7 = vadd.f32 1.0, %v724_v12 }
  0x17   :  { %v164_v4 = vmul.f32 %v877_v37, %v125_v55 }
  0x18   :  { %v258_v40 = vmul.f32 %v226_v52, %v162_v60  ;;  %v232_v60 = vadd.f32 1.0, %v738_v14 }
  0x1a   :  { %339 = vrot.lane.b32.xlu1 %v724_v12, %s611_s19  ;;  %337 = vrot.lane.b32.xlu0 %v729_v13, %s611_s19 }
  0x1e   :  { %343 = vrot.lane.b32.xlu1 %v738_v14, %s611_s19  ;;  %341 = vrot.lane.b32.xlu0 %v743_v15, %s611_s19 }
  0x22   :  { %347 = vrot.lane.b32.xlu1 %v752_v16, %s611_s19  ;;  %345 = vrot.lane.b32.xlu0 %v757_v17, %s611_s19 }
  0x26   :  { %351 = vrot.lane.b32.xlu1 %v766_v18, %s611_s19  ;;  %349 = vrot.lane.b32.xlu0 %v771_v19, %s611_s19 }
  0x2a   :  { %355 = vrot.lane.b32.xlu1 %v780_v20, %s611_s19  ;;  %353 = vrot.lane.b32.xlu0 %v785_v21, %s611_s19 }
  0x2e   :  { %359 = vrot.lane.b32.xlu1 %v794_v22, %s611_s19  ;;  %357 = vrot.lane.b32.xlu0 %v799_v23, %s611_s19 }
  0x32   :  { %363 = vrot.lane.b32.xlu1 %v808_v24, %s611_s19  ;;  %361 = vrot.lane.b32.xlu0 %v813_v25, %s611_s19 }
  0x36   :  { %367 = vrot.lane.b32.xlu1 %v822_v26, %s611_s19  ;;  %365 = vrot.lane.b32.xlu0 %v827_v27, %s611_s19 }
  0x3a   :  { %371 = vrot.lane.b32.xlu1 %v836_v28, %s611_s19  ;;  %369 = vrot.lane.b32.xlu0 %v841_v29, %s611_s19 }
  0x3e   :  { %375 = vrot.lane.b32.xlu1 %v850_v30, %s611_s19  ;;  %373 = vrot.lane.b32.xlu0 %v855_v31, %s611_s19 }
  0x74   :  { %v318_v62 = vpop.permute.xlu1 %317  ;;  %v314_v63 = vpop.permute.xlu0 %313 }
  0x75   :  { %v411_v2 = vadd.f32 %v318_v62, %v251_v53  ;;  %v409_v3 = vadd.f32 %v314_v63, %v249_v54  ;;  %v225_v53 = vadd.f32 1.0, %v701_v9  ;;  %v256_v54 = vmul.f32 %v224_v5, %v160_v39 }
  0x76   :  { %v124_v62 = vsub.f32 %v85_v51, %v864_v32 }
  0x77   :  { %vm443_vm1 = vcmp.ge.f32.partialorder %v411_v2, 0.0  ;;  %v475_v41 = vmul.f32 0.01, %v411_v2  ;;  %vm441_vm2 = vcmp.ge.f32.partialorder %v409_v3, 0.0  ;;  %v473_v42 = vmul.f32 0.01, %v409_v3 }
  0x78   :  { %v320_v43 = vpop.permute.xlu1 %319  ;;  %v316_v44 = vpop.permute.xlu0 %315 }
  0x79   :  { %v507_v47 = vsel %vm443_vm1, %v411_v2, %v475_v41  ;;  %v505_v48 = vsel %vm441_vm2, %v409_v3, %v473_v42  ;;  %v412_v49 = vadd.f32 %v320_v43, %v252_v33  ;;  %v410_v50 = vadd.f32 %v316_v44, %v250_v34  ;;  %v87_v3 = vld [vmem:[%s1193_s0 + $0x60] sm:$0xff] }
  0x7a   :  { %540 = vst.msk [vmem:[%s1195_s4 + $0x10] sm:$0xff] %vm537_vm0, %v507_v47  ;;  %538 = vst.msk [vmem:[%s1195_s4] sm:$0xff] %vm537_vm0, %v505_v48  ;;  %v228_v33 = vadd.f32 1.0, %v710_v10  ;;  %v227_v34 = vadd.f32 1.0, %v715_v11  ;;  %v90_v10 = vld [vmem:[%s1193_s0 + $0x78] sm:$0xff]  ;;  %v89_v11 = vld [vmem:[%s1193_s0 + $0x70] sm:$0xff]  ;;  %v257_v41 = vmul.f32 %v225_v53, %v161_v61  ;;  %v163_v42 = vmul.f32 %v877_v37, %v124_v62 }
  0x7b   :  { %vm444_vm3 = vcmp.ge.f32.partialorder %v412_v49, 0.0  ;;  %v476_v8 = vmul.f32 0.01, %v412_v49  ;;  %vm442_vm4 = vcmp.ge.f32.partialorder %v410_v50, 0.0  ;;  %v474_v9 = vmul.f32 0.01, %v410_v50 }
  0x7c   :  { %v324_v57 = vpop.permute.xlu1 %323  ;;  %v322_v58 = vpop.permute.xlu0 %321  ;;  %v126_v43 = vsub.f32 %v87_v3, %v864_v32  ;;  %v229_v47 = vadd.f32 1.0, %v729_v13  ;;  %v129_v48 = vsub.f32 %v90_v10, %v864_v32  ;;  %v260_v52 = vmul.f32 %v228_v33, %v164_v4 }
  0x7d   :  { %v508_v63 = vsel %vm444_vm3, %v412_v49, %v476_v8  ;;  %v506_v0 = vsel %vm442_vm4, %v410_v50, %v474_v9  ;;  %v414_v1 = vadd.f32 %v324_v57, %v254_v38  ;;  %v413_v2 = vadd.f32 %v322_v58, %v253_v45  ;;  %v92_v58 = vld [vmem:[%s1193_s0 + $0x88] sm:$0xff] }
  0x7e   :  { %541 = vst.msk [vmem:[%s1195_s4 + $0x18] sm:$0xff] %vm537_vm0, %v508_v63  ;;  %539 = vst.msk [vmem:[%s1195_s4 + $0x8] sm:$0xff] %vm537_vm0, %v506_v0  ;;  %v128_v49 = vsub.f32 %v89_v11, %v864_v32  ;;  %v259_v53 = vmul.f32 %v227_v34, %v163_v42  ;;  %v165_v55 = vmul.f32 %v877_v37, %v126_v43  ;;  %v231_v61 = vadd.f32 1.0, %v743_v15  ;;  %v96_v42 = vld [vmem:[%s1193_s0 + $0xa8] sm:$0xff] }
  0x7f   :  { %vm446_vm5 = vcmp.ge.f32.partialorder %v414_v1, 0.0  ;;  %v478_v5 = vmul.f32 0.01, %v414_v1  ;;  %vm445_vm6 = vcmp.ge.f32.partialorder %v413_v2, 0.0  ;;  %v477_v36 = vmul.f32 0.01, %v413_v2 }
  0x80   :  { %v328_v38 = vpop.permute.xlu1 %327  ;;  %v326_v39 = vpop.permute.xlu0 %325  ;;  %v168_v62 = vmul.f32 %v877_v37, %v129_v48  ;;  %v167_v63 = vmul.f32 %v877_v37, %v128_v49  ;;  %v261_v3 = vmul.f32 %v229_v47, %v165_v55  ;;  %v131_v33 = vsub.f32 %v92_v58, %v864_v32 }
  0x81   :  { %v510_v44 = vsel %vm446_vm5, %v414_v1, %v478_v5  ;;  %v509_v45 = vsel %vm445_vm6, %v413_v2, %v477_v36  ;;  %v416_v46 = vadd.f32 %v328_v38, %v256_v54  ;;  %v415_v6 = vadd.f32 %v326_v39, %v255_v59  ;;  %v91_v59 = vld [vmem:[%s1193_s0 + $0x80] sm:$0xff]  ;;  %v94_v5 = vld [vmem:[%s1193_s0 + $0x98] sm:$0xff]  ;;  %v93_v36 = vld [vmem:[%s1193_s0 + $0x90] sm:$0xff] }
  0x82   :  { %543 = vst.msk [vmem:[%s1195_s4 + $0x28] sm:$0xff] %vm537_vm0, %v510_v44  ;;  %542 = vst.msk [vmem:[%s1195_s4 + $0x20] sm:$0xff] %vm537_vm0, %v509_v45  ;;  %v166_v54 = vmul.f32 %v877_v37, %v127_v35  ;;  %v130_v34 = vsub.f32 %v91_v59, %v864_v32  ;;  %v234_v38 = vadd.f32 1.0, %v752_v16  ;;  %v233_v39 = vadd.f32 1.0, %v757_v17  ;;  %v95_v16 = vld [vmem:[%s1193_s0 + $0xa0] sm:$0xff] }
  0x83   :  { %vm448_vm7 = vcmp.ge.f32.partialorder %v416_v46, 0.0  ;;  %v480_v50 = vmul.f32 0.01, %v416_v46  ;;  %vm447_vm8 = vcmp.ge.f32.partialorder %v415_v6, 0.0  ;;  %v479_v12 = vmul.f32 0.01, %v415_v6 }
  0x84   :  { %v332_v51 = vpop.permute.xlu1 %331  ;;  %v330_v13 = vpop.permute.xlu0 %329  ;;  %v262_v2 = vmul.f32 %v230_v7, %v166_v54  ;;  %v133_v7 = vsub.f32 %v94_v5, %v864_v32  ;;  %v132_v47 = vsub.f32 %v93_v36, %v864_v32 }
  0x85   :  { %v512_v56 = vsel %vm448_vm7, %v416_v46, %v480_v50  ;;  %v511_v8 = vsel %vm447_vm8, %v415_v6, %v479_v12  ;;  %v418_v9 = vadd.f32 %v332_v51, %v258_v40  ;;  %v417_v57 = vadd.f32 %v330_v13, %v257_v41 }
  0x86   :  { %545 = vst.msk [vmem:[%s1195_s4 + $0x38] sm:$0xff] %vm537_vm0, %v512_v56  ;;  %544 = vst.msk [vmem:[%s1195_s4 + $0x30] sm:$0xff] %vm537_vm0, %v511_v8  ;;  %v264_v40 = vmul.f32 %v232_v60, %v168_v62  ;;  %v263_v41 = vmul.f32 %v231_v61, %v167_v63  ;;  %v170_v46 = vmul.f32 %v877_v37, %v131_v33  ;;  %v236_v51 = vadd.f32 1.0, %v766_v18  ;;  %v98_v18 = vld [vmem:[%s1193_s0 + $0xb8] sm:$0xff]  ;;  %v97_v63 = vld [vmem:[%s1193_s0 + $0xb0] sm:$0xff] }
  0x87   :  { %vm450_vm9 = vcmp.ge.f32.partialorder %v418_v9, 0.0  ;;  %v482_v0 = vmul.f32 0.01, %v418_v9  ;;  %vm449_vm10 = vcmp.ge.f32.partialorder %v417_v57, 0.0  ;;  %v481_v14 = vmul.f32 0.01, %v417_v57 }
  0x88   :  { %v336_v1 = vpop.permute.xlu1 %335  ;;  %v334_v15 = vpop.permute.xlu0 %333  ;;  %v169_v6 = vmul.f32 %v877_v37, %v130_v34  ;;  %v235_v13 = vadd.f32 1.0, %v771_v19  ;;  %v266_v8 = vmul.f32 %v234_v38, %v170_v46  ;;  %v171_v58 = vmul.f32 %v877_v37, %v132_v47  ;;  %v100_v38 = vld [vmem:[%s1193_s0 + $0xc8] sm:$0xff] }
  0x89   :  { %v514_v4 = vsel %vm450_vm9, %v418_v9, %v482_v0  ;;  %v513_v35 = vsel %vm449_vm10, %v417_v57, %v481_v14  ;;  %v420_v10 = vadd.f32 %v336_v1, %v260_v52  ;;  %v419_v11 = vadd.f32 %v334_v15, %v259_v53 }
  0x8a   :  { %547 = vst.msk [vmem:[%s1195_s4 + $0x48] sm:$0xff] %vm537_vm0, %v514_v4  ;;  %546 = vst.msk [vmem:[%s1195_s4 + $0x40] sm:$0xff] %vm537_vm0, %v513_v35  ;;  %v135_v52 = vsub.f32 %v96_v42, %v864_v32  ;;  %v134_v53 = vsub.f32 %v95_v16, %v864_v32  ;;  %v265_v9 = vmul.f32 %v233_v39, %v169_v6  ;;  %v238_v0 = vadd.f32 1.0, %v780_v20  ;;  %v99_v39 = vld [vmem:[%s1193_s0 + $0xc0] sm:$0xff] }
  0x8b   :  { %vm452_vm11 = vcmp.ge.f32.partialorder %v420_v10, 0.0  ;;  %v484_v17 = vmul.f32 0.01, %v420_v10  ;;  %vm451_vm12 = vcmp.ge.f32.partialorder %v419_v11, 0.0  ;;  %v483_v43 = vmul.f32 0.01, %v419_v11 }
  0x8c   :  { %v340_v44 = vpop.permute.xlu1 %339  ;;  %v338_v45 = vpop.permute.xlu0 %337  ;;  %v172_v57 = vmul.f32 %v877_v37, %v133_v7  ;;  %v237_v14 = vadd.f32 1.0, %v785_v21  ;;  %v174_v1 = vmul.f32 %v877_v37, %v135_v52  ;;  %v137_v15 = vsub.f32 %v98_v18, %v864_v32 }
  0x8d   :  { %v516_v48 = vsel %vm452_vm11, %v420_v10, %v484_v17  ;;  %v515_v49 = vsel %vm451_vm12, %v419_v11, %v483_v43  ;;  %v422_v50 = vadd.f32 %v340_v44, %v262_v2  ;;  %v421_v12 = vadd.f32 %v338_v45, %v261_v3  ;;  %v102_v17 = vld [vmem:[%s1193_s0 + $0xd8] sm:$0xff] }
  0x8e   :  { %549 = vst.msk [vmem:[%s1195_s4 + $0x58] sm:$0xff] %vm537_vm0, %v516_v48  ;;  %548 = vst.msk [vmem:[%s1195_s4 + $0x50] sm:$0xff] %vm537_vm0, %v515_v49  ;;  %v268_v33 = vmul.f32 %v236_v51, %v172_v57  ;;  %v267_v34 = vmul.f32 %v235_v13, %v171_v58  ;;  %v173_v4 = vmul.f32 %v877_v37, %v134_v53  ;;  %v242_v51 = vadd.f32 1.0, %v808_v24 }
  0x8f   :  { %vm454_vm13 = vcmp.ge.f32.partialorder %v422_v50, 0.0  ;;  %v486_v19 = vmul.f32 0.01, %v422_v50  ;;  %vm453_vm14 = vcmp.ge.f32.partialorder %v421_v12, 0.0  ;;  %v485_v54 = vmul.f32 0.01, %v421_v12 }
  0x90   :  { %v344_v55 = vpop.permute.xlu1 %343  ;;  %v342_v56 = vpop.permute.xlu0 %341  ;;  %v136_v35 = vsub.f32 %v97_v63, %v864_v32  ;;  %v270_v42 = vmul.f32 %v238_v0, %v174_v1  ;;  %v176_v16 = vmul.f32 %v877_v37, %v137_v15  ;;  %v269_v46 = vmul.f32 %v237_v14, %v173_v4 }
  0x91   :  { %v518_v59 = vsel %vm454_vm13, %v422_v50, %v486_v19  ;;  %v517_v60 = vsel %vm453_vm14, %v421_v12, %v485_v54  ;;  %v424_v61 = vadd.f32 %v344_v55, %v264_v40  ;;  %v423_v62 = vadd.f32 %v342_v56, %v263_v41 }
  0x92   :  { %551 = vst.msk [vmem:[%s1195_s4 + $0x68] sm:$0xff] %vm537_vm0, %v518_v59  ;;  %550 = vst.msk [vmem:[%s1195_s4 + $0x60] sm:$0xff] %vm537_vm0, %v517_v60  ;;  %v240_v40 = vadd.f32 1.0, %v794_v22  ;;  %v239_v41 = vadd.f32 1.0, %v799_v23  ;;  %v101_v22 = vld [vmem:[%s1193_s0 + $0xd0] sm:$0xff]  ;;  %v175_v6 = vmul.f32 %v877_v37, %v136_v35  ;;  %v139_v7 = vsub.f32 %v100_v38, %v864_v32  ;;  %v104_v60 = vld [vmem:[%s1193_s0 + $0xe8] sm:$0xff] }
  0x93   :  { %vm456_vm15 = vcmp.ge.f32.partialorder %v424_v61, 0.0  ;;  %v488_v2 = vmul.f32 0.01, %v424_v61  ;;  %vm455_vm1 = vcmp.ge.f32.partialorder %v423_v62, 0.0  ;;  %v487_v20 = vmul.f32 0.01, %v423_v62 }
  0x94   :  { %v348_v3 = vpop.permute.xlu1 %347  ;;  %v346_v21 = vpop.permute.xlu0 %345  ;;  %v138_v47 = vsub.f32 %v99_v39, %v864_v32  ;;  %v241_v13 = vadd.f32 1.0, %v813_v25  ;;  %v141_v52 = vsub.f32 %v102_v17, %v864_v32  ;;  %v140_v53 = vsub.f32 %v101_v22, %v864_v32 }
  0x95   :  { %v520_v10 = vsel %vm456_vm15, %v424_v61, %v488_v2  ;;  %v519_v11 = vsel %vm455_vm1, %v423_v62, %v487_v20  ;;  %v426_v5 = vadd.f32 %v348_v3, %v266_v8  ;;  %v425_v36 = vadd.f32 %v346_v21, %v265_v9  ;;  %v103_v61 = vld [vmem:[%s1193_s0 + $0xe0] sm:$0xff] }
  0x96   :  { %553 = vst.msk [vmem:[%s1195_s4 + $0x78] sm:$0xff] %vm537_vm0, %v520_v10  ;;  %552 = vst.msk [vmem:[%s1195_s4 + $0x70] sm:$0xff] %vm537_vm0, %v519_v11  ;;  %v272_v54 = vmul.f32 %v240_v40, %v176_v16  ;;  %v271_v55 = vmul.f32 %v239_v41, %v175_v6  ;;  %v178_v56 = vmul.f32 %v877_v37, %v139_v7  ;;  %v244_v62 = vadd.f32 1.0, %v822_v26  ;;  %v106_v10 = vld [vmem:[%s1193_s0 + $0xf8] sm:$0xff]  ;;  %v105_v11 = vld [vmem:[%s1193_s0 + $0xf0] sm:$0xff] }
  0x97   :  { %vm458_vm2 = vcmp.ge.f32.partialorder %v426_v5, 0.0  ;;  %v490_v23 = vmul.f32 0.01, %v426_v5  ;;  %vm457_vm3 = vcmp.ge.f32.partialorder %v425_v36, 0.0  ;;  %v489_v43 = vmul.f32 0.01, %v425_v36 }
  0x98   :  { %v352_v44 = vpop.permute.xlu1 %351  ;;  %v350_v45 = vpop.permute.xlu0 %349  ;;  %v177_v8 = vmul.f32 %v877_v37, %v138_v47  ;;  %v243_v63 = vadd.f32 1.0, %v827_v27  ;;  %v180_v0 = vmul.f32 %v877_v37, %v141_v52  ;;  %v179_v14 = vmul.f32 %v877_v37, %v140_v53 }
  0x99   :  { %v522_v48 = vsel %vm458_vm2, %v426_v5, %v490_v23  ;;  %v521_v49 = vsel %vm457_vm3, %v425_v36, %v489_v43  ;;  %v428_v50 = vadd.f32 %v352_v44, %v268_v33  ;;  %v427_v12 = vadd.f32 %v350_v45, %v267_v34 }
  0x9a   :  { %555 = vst.msk [vmem:[%s1195_s4 + $0x88] sm:$0xff] %vm537_vm0, %v522_v48  ;;  %554 = vst.msk [vmem:[%s1195_s4 + $0x80] sm:$0xff] %vm537_vm0, %v521_v49  ;;  %v274_v2 = vmul.f32 %v242_v51, %v178_v56  ;;  %v273_v20 = vmul.f32 %v241_v13, %v177_v8  ;;  %v143_v3 = vsub.f32 %v104_v60, %v864_v32  ;;  %v246_v5 = vadd.f32 1.0, %v836_v28 }
  0x9b   :  { %vm460_vm4 = vcmp.ge.f32.partialorder %v428_v50, 0.0  ;;  %v492_v18 = vmul.f32 0.01, %v428_v50  ;;  %vm459_vm5 = vcmp.ge.f32.partialorder %v427_v12, 0.0  ;;  %v491_v24 = vmul.f32 0.01, %v427_v12 }
  0x9c   :  { %v356_v19 = vpop.permute.xlu1 %355  ;;  %v354_v25 = vpop.permute.xlu0 %353  ;;  %v142_v21 = vsub.f32 %v103_v61, %v864_v32  ;;  %v245_v36 = vadd.f32 1.0, %v841_v29  ;;  %v276_v38 = vmul.f32 %v244_v62, %v180_v0  ;;  %v275_v39 = vmul.f32 %v243_v63, %v179_v14 }
  0x9d   :  { %v524_v9 = vsel %vm460_vm4, %v428_v50, %v492_v18  ;;  %v523_v57 = vsel %vm459_vm5, %v427_v12, %v491_v24  ;;  %v430_v58 = vadd.f32 %v356_v19, %v270_v42  ;;  %v429_v59 = vadd.f32 %v354_v25, %v269_v46 }
  0x9e   :  { %557 = vst.msk [vmem:[%s1195_s4 + $0x98] sm:$0xff] %vm537_vm0, %v524_v9  ;;  %556 = vst.msk [vmem:[%s1195_s4 + $0x90] sm:$0xff] %vm537_vm0, %v523_v57  ;;  %v182_v29 = vmul.f32 %v877_v37, %v143_v3  ;;  %v181_v16 = vmul.f32 %v877_v37, %v142_v21  ;;  %v145_v17 = vsub.f32 %v106_v10, %v864_v32  ;;  %v248_v46 = vadd.f32 1.0, %v850_v30 }
  0x9f   :  { %vm462_vm6 = vcmp.ge.f32.partialorder %v430_v58, 0.0  ;;  %v494_v1 = vmul.f32 0.01, %v430_v58  ;;  %vm461_vm7 = vcmp.ge.f32.partialorder %v429_v59, 0.0  ;;  %v493_v26 = vmul.f32 0.01, %v429_v59 }
  0xa0   :  { %v360_v15 = vpop.permute.xlu1 %359  ;;  %v358_v27 = vpop.permute.xlu0 %357  ;;  %v144_v22 = vsub.f32 %v105_v11, %v864_v32  ;;  %v247_v6 = vadd.f32 1.0, %v855_v31  ;;  %v278_v49 = vmul.f32 %v246_v5, %v182_v29  ;;  %v277_v30 = vmul.f32 %v245_v36, %v181_v16 }
  0xa1   :  { %v526_v33 = vsel %vm462_vm6, %v430_v58, %v494_v1  ;;  %v525_v34 = vsel %vm461_vm7, %v429_v59, %v493_v26  ;;  %v432_v4 = vadd.f32 %v360_v15, %v272_v54  ;;  %v431_v35 = vadd.f32 %v358_v27, %v271_v55 }
  0xa2   :  { %559 = vst.msk [vmem:[%s1195_s4 + $0xa8] sm:$0xff] %vm537_vm0, %v526_v33  ;;  %558 = vst.msk [vmem:[%s1195_s4 + $0xa0] sm:$0xff] %vm537_vm0, %v525_v34  ;;  %v184_v31 = vmul.f32 %v877_v37, %v145_v17  ;;  %v183_v50 = vmul.f32 %v877_v37, %v144_v22 }
  0xa3   :  { %vm464_vm8 = vcmp.ge.f32.partialorder %v432_v4, 0.0  ;;  %v496_v40 = vmul.f32 0.01, %v432_v4  ;;  %vm463_vm9 = vcmp.ge.f32.partialorder %v431_v35, 0.0  ;;  %v495_v41 = vmul.f32 0.01, %v431_v35 }
  0xa4   :  { %v364_v42 = vpop.permute.xlu1 %363  ;;  %v362_v28 = vpop.permute.xlu0 %361  ;;  %v280_v19 = vmul.f32 %v248_v46, %v184_v31  ;;  %v279_v25 = vmul.f32 %v247_v6, %v183_v50 }
  0xa5   :  { %v528_v23 = vsel %vm464_vm8, %v432_v4, %v496_v40  ;;  %v527_v43 = vsel %vm463_vm9, %v431_v35, %v495_v41  ;;  %v434_v44 = vadd.f32 %v364_v42, %v274_v2  ;;  %v433_v45 = vadd.f32 %v362_v28, %v273_v20 }
  0xa6   :  { %561 = vst.msk [vmem:[%s1195_s4 + $0xb8] sm:$0xff] %vm537_vm0, %v528_v23  ;;  %560 = vst.msk [vmem:[%s1195_s4 + $0xb0] sm:$0xff] %vm537_vm0, %v527_v43 }
  0xa7   :  { %vm466_vm10 = vcmp.ge.f32.partialorder %v434_v44, 0.0  ;;  %v498_v32 = vmul.f32 0.01, %v434_v44  ;;  %vm465_vm11 = vcmp.ge.f32.partialorder %v433_v45, 0.0  ;;  %v497_v7 = vmul.f32 0.01, %v433_v45 }
  0xa8   :  { %v368_v47 = vpop.permute.xlu1 %367  ;;  %v366_v48 = vpop.permute.xlu0 %365 }
  0xa9   :  { %v530_v12 = vsel %vm466_vm10, %v434_v44, %v498_v32  ;;  %v529_v51 = vsel %vm465_vm11, %v433_v45, %v497_v7  ;;  %v436_v13 = vadd.f32 %v368_v47, %v276_v38  ;;  %v435_v52 = vadd.f32 %v366_v48, %v275_v39 }
  0xaa   :  { %563 = vst.msk [vmem:[%s1195_s4 + $0xc8] sm:$0xff] %vm537_vm0, %v530_v12  ;;  %562 = vst.msk [vmem:[%s1195_s4 + $0xc0] sm:$0xff] %vm537_vm0, %v529_v51 }
  0xab   :  { %vm468_vm12 = vcmp.ge.f32.partialorder %v436_v13, 0.0  ;;  %v500_v53 = vmul.f32 0.01, %v436_v13  ;;  %vm467_vm13 = vcmp.ge.f32.partialorder %v435_v52, 0.0  ;;  %v499_v18 = vmul.f32 0.01, %v435_v52 }
  0xac   :  { %v372_v24 = vpop.permute.xlu1 %371  ;;  %v370_v37 = vpop.permute.xlu0 %369 }
  0xad   :  { %v532_v54 = vsel %vm468_vm12, %v436_v13, %v500_v53  ;;  %v531_v55 = vsel %vm467_vm13, %v435_v52, %v499_v18  ;;  %v438_v56 = vadd.f32 %v372_v24, %v278_v49  ;;  %v437_v8 = vadd.f32 %v370_v37, %v277_v30 }
  0xae   :  { %565 = vst.msk [vmem:[%s1195_s4 + $0xd8] sm:$0xff] %vm537_vm0, %v532_v54  ;;  %564 = vst.msk [vmem:[%s1195_s4 + $0xd0] sm:$0xff] %vm537_vm0, %v531_v55 }
  0xaf   :  { %vm470_vm14 = vcmp.ge.f32.partialorder %v438_v56, 0.0  ;;  %v502_v9 = vmul.f32 0.01, %v438_v56  ;;  %vm469_vm15 = vcmp.ge.f32.partialorder %v437_v8, 0.0  ;;  %v501_v57 = vmul.f32 0.01, %v437_v8 }
  0xb0   :  { %v376_v58 = vpop.permute.xlu1 %375  ;;  %v374_v59 = vpop.permute.xlu0 %373 }
  0xb1   :  { %v534_v60 = vsel %vm470_vm14, %v438_v56, %v502_v9  ;;  %v533_v61 = vsel %vm469_vm15, %v437_v8, %v501_v57  ;;  %v440_v62 = vadd.f32 %v376_v58, %v280_v19  ;;  %v439_v63 = vadd.f32 %v374_v59, %v279_v25 }
  0xb2   :  { %567 = vst.msk [vmem:[%s1195_s4 + $0xe8] sm:$0xff] %vm537_vm0, %v534_v60  ;;  %566 = vst.msk [vmem:[%s1195_s4 + $0xe0] sm:$0xff] %vm537_vm0, %v533_v61 }
  0xb3   :  { %vm472_vm1 = vcmp.ge.f32.partialorder %v440_v62, 0.0  ;;  %v504_v0 = vmul.f32 0.01, %v440_v62  ;;  %vm471_vm2 = vcmp.ge.f32.partialorder %v439_v63, 0.0  ;;  %v503_v14 = vmul.f32 0.01, %v439_v63 }
  0xb5   :  { %v536_v1 = vsel %vm472_vm1, %v440_v62, %v504_v0  ;;  %v535_v26 = vsel %vm471_vm2, %v439_v63, %v503_v14 }
  0xb6   :  { %569 = vst.msk [vmem:[%s1195_s4 + $0xf8] sm:$0xff] %vm537_vm0, %v536_v1  ;;  %568 = vst.msk [vmem:[%s1195_s4 + $0xf0] sm:$0xff] %vm537_vm0, %v535_v26 }

// kernel: foreground_forward.39
= control target key start
LH: loop header
LB: loop body
LE: loop exit
PB: predicated region body
PF: predicated region fallthrough
CT: control target
= control target key end

     0   :  { %v746_v0 = vmov 0   ;;  %vm270_vm0 = vcmask 130048   ;;  %s1071_s1 = inlined_call_operand.vmem [shape: bf16[144,16], index: 1, kind: input, shape index: {}]   ;;  %s1072_s0 = inlined_call_operand.vmem [shape: bf16[256,144], index: 0, kind: input, shape index: {}]   ;;  %s1073_s2 = inlined_call_operand.vmem [shape: f32[1,16], index: 2, kind: input, shape index: {}]   ;;  %s1074_s3 = inlined_call_operand.vmem [shape: f32[256,16], index: 3, kind: output, shape index: {}]  }
   0x1   :  { %319 = vmatprep.subr.bf16.mxu0 %v746_v0  ;;  %606 = vmatprep.subr.bf16.mxu1 %v746_v0  ;;  %v625_v1 = vld [vmem:[%s1071_s1] sm:$0xff]   ;;  %v626_v2 = vld [vmem:[%s1071_s1 + $0x8] sm:$0xff]   ;;  %v627_v3 = vld [vmem:[%s1071_s1 + $0x10] sm:$0xff]  }
   0x2   :  { %320 = vmatpush1.bf16.msra.mxu0 %v625_v1  ;;  %615 = vmatpush1.bf16.msra.mxu1 %v625_v1  ;;  %v628_v4 = vld [vmem:[%s1071_s1 + $0x18] sm:$0xff]   ;;  %v636_v5 = vld [vmem:[%s1072_s0 + $0x4] ss:$8 sps:$4 sm:$0xff]   ;;  %v631_v9 = vld [vmem:[%s1071_s1 + $0x30] sm:$0xff]  }
   0x3   :  { %321 = vmatprep.subr.bf16.mxu0 %v746_v0  ;;  %607 = vmatprep.subr.bf16.mxu1 %v746_v0  ;;  %v639_v6 = vld [vmem:[%s1072_s0 + $0x84] ss:$8 sps:$4 sm:$0xff]   ;;  %v632_v10 = vld [vmem:[%s1071_s1 + $0x38] sm:$0xff]   ;;  %v634_v12 = vld [vmem:[%s1072_s0] ss:$8 sps:$4 sm:$0xff]  }
   0x4   :  { %590 = vmatprep.mubr.msk.bf16.mxu0 %vm270_vm0, %v636_v5  ;;  %598 = vmatprep.mubr.msk.bf16.mxu1 %vm270_vm0, %v639_v6  ;;  %v629_v7 = vld [vmem:[%s1071_s1 + $0x20] sm:$0xff]   ;;  %v630_v8 = vld [vmem:[%s1071_s1 + $0x28] sm:$0xff]   ;;  %v640_v14 = vld [vmem:[%s1072_s0 + $0x14] ss:$8 sps:$4 sm:$0xff]  }
   0x5   :  { %v633_v11 = vld [vmem:[%s1071_s1 + $0x40] sm:$0xff]   ;;  %v642_v15 = vld [vmem:[%s1072_s0 + $0x94] ss:$8 sps:$4 sm:$0xff]   ;;  %v644_v16 = vld [vmem:[%s1072_s0 + $0x10] ss:$8 sps:$4 sm:$0xff]  }
   0x6   :  { %322 = vmatpush1.bf16.msra.mxu0 %v626_v2  ;;  %616 = vmatpush1.bf16.msra.mxu1 %v626_v2  ;;  %v637_v13 = vld [vmem:[%s1072_s0 + $0x80] ss:$8 sps:$4 sm:$0xff]   ;;  %v645_v17 = vld [vmem:[%s1072_s0 + $0x90] ss:$8 sps:$4 sm:$0xff]   ;;  %v646_v18 = vld [vmem:[%s1072_s0 + $0x24] ss:$8 sps:$4 sm:$0xff]  }
   0x7   :  { %323 = vmatprep.subr.bf16.mxu0 %v746_v0  ;;  %608 = vmatprep.subr.bf16.mxu1 %v746_v0  ;;  %v648_v19 = vld [vmem:[%s1072_s0 + $0xa4] ss:$8 sps:$4 sm:$0xff]   ;;  %v650_v20 = vld [vmem:[%s1072_s0 + $0x20] ss:$8 sps:$4 sm:$0xff]   ;;  %v652_v22 = vld [vmem:[%s1072_s0 + $0x34] ss:$8 sps:$4 sm:$0xff]  }
   0x8   :  { %v651_v21 = vld [vmem:[%s1072_s0 + $0xa0] ss:$8 sps:$4 sm:$0xff]   ;;  %v654_v23 = vld [vmem:[%s1072_s0 + $0xb4] ss:$8 sps:$4 sm:$0xff]   ;;  %v656_v24 = vld [vmem:[%s1072_s0 + $0x30] ss:$8 sps:$4 sm:$0xff]  }
   0x9   :  { %v657_v25 = vld [vmem:[%s1072_s0 + $0xb0] ss:$8 sps:$4 sm:$0xff]   ;;  %v658_v26 = vld [vmem:[%s1072_s0 + $0x44] ss:$8 sps:$4 sm:$0xff]   ;;  %v662_v28 = vld [vmem:[%s1072_s0 + $0x40] ss:$8 sps:$4 sm:$0xff]  }
   0xa   :  { %324 = vmatpush1.bf16.msra.mxu0 %v627_v3  ;;  %617 = vmatpush1.bf16.msra.mxu1 %v627_v3  ;;  %v660_v27 = vld [vmem:[%s1072_s0 + $0xc4] ss:$8 sps:$4 sm:$0xff]   ;;  %v663_v29 = vld [vmem:[%s1072_s0 + $0xc0] ss:$8 sps:$4 sm:$0xff]   ;;  %v664_v30 = vld [vmem:[%s1072_s0 + $0x54] ss:$8 sps:$4 sm:$0xff]  }
   0xb   :  { %325 = vmatprep.subr.bf16.mxu0 %v746_v0  ;;  %609 = vmatprep.subr.bf16.mxu1 %v746_v0  ;;  %v666_v31 = vld [vmem:[%s1072_s0 + $0xd4] ss:$8 sps:$4 sm:$0xff]   ;;  %v668_v32 = vld [vmem:[%s1072_s0 + $0x50] ss:$8 sps:$4 sm:$0xff]   ;;  %v670_v34 = vld [vmem:[%s1072_s0 + $0x64] ss:$8 sps:$4 sm:$0xff]  }
   0xc   :  { %v669_v33 = vld [vmem:[%s1072_s0 + $0xd0] ss:$8 sps:$4 sm:$0xff]   ;;  %v672_v35 = vld [vmem:[%s1072_s0 + $0xe4] ss:$8 sps:$4 sm:$0xff]   ;;  %v674_v36 = vld [vmem:[%s1072_s0 + $0x60] ss:$8 sps:$4 sm:$0xff]  }
   0xd   :  { %v675_v37 = vld [vmem:[%s1072_s0 + $0xe0] ss:$8 sps:$4 sm:$0xff]   ;;  %v676_v38 = vld [vmem:[%s1072_s0 + $0x74] ss:$8 sps:$4 sm:$0xff]   ;;  %v680_v40 = vld [vmem:[%s1072_s0 + $0x70] ss:$8 sps:$4 sm:$0xff]  }
   0xe   :  { %326 = vmatpush1.bf16.msra.mxu0 %v628_v4  ;;  %618 = vmatpush1.bf16.msra.mxu1 %v628_v4  ;;  %v678_v39 = vld [vmem:[%s1072_s0 + $0xf4] ss:$8 sps:$4 sm:$0xff]   ;;  %v681_v41 = vld [vmem:[%s1072_s0 + $0xf0] ss:$8 sps:$4 sm:$0xff]   ;;  %v909_v42 = vld [vmem:[%s1073_s2] ss:$0 sm:$0xff] }
   0xf   :  { %327 = vmatprep.subr.bf16.mxu0 %v746_v0  ;;  %610 = vmatprep.subr.bf16.mxu1 %v746_v0 }
  0x12   :  { %328 = vmatpush1.bf16.msra.mxu0 %v629_v7  ;;  %619 = vmatpush1.bf16.msra.mxu1 %v629_v7 }
  0x13   :  { %329 = vmatprep.subr.bf16.mxu0 %v746_v0  ;;  %611 = vmatprep.subr.bf16.mxu1 %v746_v0 }
  0x16   :  { %330 = vmatpush1.bf16.msra.mxu0 %v630_v8  ;;  %620 = vmatpush1.bf16.msra.mxu1 %v630_v8 }
  0x17   :  { %331 = vmatprep.subr.bf16.mxu0 %v746_v0  ;;  %612 = vmatprep.subr.bf16.mxu1 %v746_v0 }
  0x1a   :  { %332 = vmatpush1.bf16.msra.mxu0 %v631_v9  ;;  %621 = vmatpush1.bf16.msra.mxu1 %v631_v9 }
  0x1b   :  { %333 = vmatprep.subr.bf16.mxu0 %v746_v0  ;;  %613 = vmatprep.subr.bf16.mxu1 %v746_v0 }
  0x1e   :  { %334 = vmatpush1.bf16.msra.mxu0 %v632_v10  ;;  %622 = vmatpush1.bf16.msra.mxu1 %v632_v10 }
  0x1f   :  { %335 = vmatprep.subr.bf16.mxu0 %v746_v0  ;;  %614 = vmatprep.subr.bf16.mxu1 %v746_v0 }
  0x22   :  { %336 = vmatpush1.bf16.msra.mxu0 %v633_v11  ;;  %623 = vmatpush1.bf16.msra.mxu1 %v633_v11 }
  0x25   :  { %352 = vmatmul.mubr.bf16.vlgmr.msra.gmra.mrb[0].mxu0 %v634_v12  ;;  %416 = vmatmul.mubr.bf16.vlgmr.msra.gmra.mrb[0].mxu1 %v637_v13 }
  0x26   :  { %591 = vmatprep.mubr.msk.bf16.mxu0 %vm270_vm0, %v640_v14  ;;  %599 = vmatprep.mubr.msk.bf16.mxu1 %vm270_vm0, %v642_v15 }
  0x2d   :  { %360 = vmatmul.mubr.bf16.gmra.mrb[4].mxu0 %v644_v16  ;;  %424 = vmatmul.mubr.bf16.gmra.mrb[4].mxu1 %v645_v17 }
  0x2e   :  { %592 = vmatprep.mubr.msk.bf16.mxu0 %vm270_vm0, %v646_v18  ;;  %600 = vmatprep.mubr.msk.bf16.mxu1 %vm270_vm0, %v648_v19 }
  0x35   :  { %368 = vmatmul.mubr.bf16.gmra.mrb[8].mxu0 %v650_v20  ;;  %432 = vmatmul.mubr.bf16.gmra.mrb[8].mxu1 %v651_v21 }
  0x36   :  { %593 = vmatprep.mubr.msk.bf16.mxu0 %vm270_vm0, %v652_v22  ;;  %601 = vmatprep.mubr.msk.bf16.mxu1 %vm270_vm0, %v654_v23 }
  0x3d   :  { %376 = vmatmul.mubr.bf16.gmra.mrb[12].mxu0 %v656_v24  ;;  %440 = vmatmul.mubr.bf16.gmra.mrb[12].mxu1 %v657_v25 }
  0x3e   :  { %594 = vmatprep.mubr.msk.bf16.mxu0 %vm270_vm0, %v658_v26  ;;  %602 = vmatprep.mubr.msk.bf16.mxu1 %vm270_vm0, %v660_v27 }
  0x45   :  { %384 = vmatmul.mubr.bf16.gmra.mrb[16].mxu0 %v662_v28  ;;  %448 = vmatmul.mubr.bf16.gmra.mrb[16].mxu1 %v663_v29 }
  0x46   :  { %595 = vmatprep.mubr.msk.bf16.mxu0 %vm270_vm0, %v664_v30  ;;  %603 = vmatprep.mubr.msk.bf16.mxu1 %vm270_vm0, %v666_v31 }
  0x4d   :  { %392 = vmatmul.mubr.bf16.gmra.mrb[20].mxu0 %v668_v32  ;;  %456 = vmatmul.mubr.bf16.gmra.mrb[20].mxu1 %v669_v33 }
  0x4e   :  { %596 = vmatprep.mubr.msk.bf16.mxu0 %vm270_vm0, %v670_v34  ;;  %604 = vmatprep.mubr.msk.bf16.mxu1 %vm270_vm0, %v672_v35 }
  0x55   :  { %400 = vmatmul.mubr.bf16.gmra.mrb[24].mxu0 %v674_v36  ;;  %464 = vmatmul.mubr.bf16.gmra.mrb[24].mxu1 %v675_v37 }
  0x56   :  { %597 = vmatprep.mubr.msk.bf16.mxu0 %vm270_vm0, %v676_v38  ;;  %605 = vmatprep.mubr.msk.bf16.mxu1 %vm270_vm0, %v678_v39 }
  0x5d   :  { %408 = vmatmul.mubr.bf16.gmra.mrb[28].mxu0 %v680_v40  ;;  %472 = vmatmul.mubr.bf16.gmra.mrb[28].mxu1 %v681_v41 }
  0xf8   :  { %v353_v43 = vpop.f32.mrb[0].mxu0  ;;  %v417_v44 = vpop.f32.mrb[0].mxu1 }
  0xf9   :  { %v354_v45 = vadd.f32 %v909_v42, %v353_v43  ;;  %v418_v46 = vadd.f32 %v909_v42, %v417_v44  ;;  %v355_v47 = vpop.f32.mrb[1].mxu0  ;;  %v419_v48 = vpop.f32.mrb[1].mxu1 }
  0xfa   :  { %v356_v49 = vpop.f32.mrb[2].mxu0  ;;  %v420_v50 = vpop.f32.mrb[2].mxu1 }
  0xfb   :  { %682 = vtanh.f32 %v354_v45  ;;  %v357_v51 = vadd.f32 %v909_v42, %v356_v49  ;;  %v421_v52 = vadd.f32 %v909_v42, %v420_v50  ;;  %v358_v53 = vpop.f32.mrb[3].mxu0  ;;  %v422_v54 = vpop.f32.mrb[3].mxu1 }
  0xfc   :  { %684 = vtanh.f32 %v418_v46 }
  0xfd   :  { %686 = vtanh.f32 %v357_v51 }
  0xfe   :  { %688 = vtanh.f32 %v421_v52 }
 0x100   :  { %v361_v55 = vpop.f32.mrb[4].mxu0  ;;  %v425_v56 = vpop.f32.mrb[4].mxu1 }
 0x101   :  { %v362_v57 = vadd.f32 %v909_v42, %v361_v55  ;;  %v426_v58 = vadd.f32 %v909_v42, %v425_v56  ;;  %v363_v59 = vpop.f32.mrb[5].mxu0  ;;  %v427_v60 = vpop.f32.mrb[5].mxu1 }
 0x102   :  { %v364_v61 = vpop.f32.mrb[6].mxu0  ;;  %v428_v62 = vpop.f32.mrb[6].mxu1 }
 0x103   :  { %690 = vtanh.f32 %v362_v57  ;;  %v365_v63 = vadd.f32 %v909_v42, %v364_v61  ;;  %v429_v0 = vadd.f32 %v909_v42, %v428_v62  ;;  %v366_v1 = vpop.f32.mrb[7].mxu0  ;;  %v430_v2 = vpop.f32.mrb[7].mxu1 }
 0x104   :  { %692 = vtanh.f32 %v426_v58 }
 0x105   :  { %v683_v3 = vpop.eup %682  ;;  %694 = vtanh.f32 %v365_v63 }
 0x106   :  { %v685_v4 = vpop.eup %684  ;;  %512 = vst.msk [vmem:[%s1074_s3] sm:$0xff] %vm270_vm0, %v683_v3  ;;  %696 = vtanh.f32 %v429_v0 }
 0x107   :  { %v687_v5 = vpop.eup %686  ;;  %528 = vst.msk [vmem:[%s1074_s3 + $0x80] sm:$0xff] %vm270_vm0, %v685_v4 }
 0x108   :  { %v689_v6 = vpop.eup %688  ;;  %513 = vst.msk [vmem:[%s1074_s3 + $0x8] sm:$0xff] %vm270_vm0, %v687_v5  ;;  %v369_v7 = vpop.f32.mrb[8].mxu0 }
 0x109   :  { %v433_v8 = vpop.f32.mrb[8].mxu1  ;;  %529 = vst.msk [vmem:[%s1074_s3 + $0x88] sm:$0xff] %vm270_vm0, %v689_v6  ;;  %v370_v9 = vadd.f32 %v909_v42, %v369_v7  ;;  %v371_v11 = vpop.f32.mrb[9].mxu0 }
 0x10a   :  { %v434_v10 = vadd.f32 %v909_v42, %v433_v8  ;;  %v435_v12 = vpop.f32.mrb[9].mxu1  ;;  %v372_v13 = vpop.f32.mrb[10].mxu0 }
 0x10b   :  { %v436_v14 = vpop.f32.mrb[10].mxu1  ;;  %698 = vtanh.f32 %v370_v9  ;;  %v373_v15 = vadd.f32 %v909_v42, %v372_v13  ;;  %v374_v17 = vpop.f32.mrb[11].mxu0 }
 0x10c   :  { %v437_v16 = vadd.f32 %v909_v42, %v436_v14  ;;  %v438_v18 = vpop.f32.mrb[11].mxu1  ;;  %700 = vtanh.f32 %v434_v10 }
 0x10d   :  { %v691_v19 = vpop.eup %690  ;;  %702 = vtanh.f32 %v373_v15 }
 0x10e   :  { %v693_v20 = vpop.eup %692  ;;  %514 = vst.msk [vmem:[%s1074_s3 + $0x10] sm:$0xff] %vm270_vm0, %v691_v19  ;;  %704 = vtanh.f32 %v437_v16 }
 0x10f   :  { %v695_v21 = vpop.eup %694  ;;  %530 = vst.msk [vmem:[%s1074_s3 + $0x90] sm:$0xff] %vm270_vm0, %v693_v20 }
 0x110   :  { %v697_v22 = vpop.eup %696  ;;  %515 = vst.msk [vmem:[%s1074_s3 + $0x18] sm:$0xff] %vm270_vm0, %v695_v21  ;;  %v377_v23 = vpop.f32.mrb[12].mxu0 }
 0x111   :  { %v441_v24 = vpop.f32.mrb[12].mxu1  ;;  %531 = vst.msk [vmem:[%s1074_s3 + $0x98] sm:$0xff] %vm270_vm0, %v697_v22  ;;  %v378_v25 = vadd.f32 %v909_v42, %v377_v23  ;;  %v379_v27 = vpop.f32.mrb[13].mxu0 }
 0x112   :  { %v442_v26 = vadd.f32 %v909_v42, %v441_v24  ;;  %v443_v28 = vpop.f32.mrb[13].mxu1  ;;  %v380_v29 = vpop.f32.mrb[14].mxu0 }
 0x113   :  { %v444_v30 = vpop.f32.mrb[14].mxu1  ;;  %706 = vtanh.f32 %v378_v25  ;;  %v381_v31 = vadd.f32 %v909_v42, %v380_v29  ;;  %v382_v33 = vpop.f32.mrb[15].mxu0 }
 0x114   :  { %v445_v32 = vadd.f32 %v909_v42, %v444_v30  ;;  %v446_v34 = vpop.f32.mrb[15].mxu1  ;;  %708 = vtanh.f32 %v442_v26 }
 0x115   :  { %v699_v35 = vpop.eup %698  ;;  %710 = vtanh.f32 %v381_v31 }
 0x116   :  { %v701_v36 = vpop.eup %700  ;;  %516 = vst.msk [vmem:[%s1074_s3 + $0x20] sm:$0xff] %vm270_vm0, %v699_v35  ;;  %712 = vtanh.f32 %v445_v32 }
 0x117   :  { %v703_v37 = vpop.eup %702  ;;  %532 = vst.msk [vmem:[%s1074_s3 + $0xa0] sm:$0xff] %vm270_vm0, %v701_v36 }
 0x118   :  { %v705_v38 = vpop.eup %704  ;;  %517 = vst.msk [vmem:[%s1074_s3 + $0x28] sm:$0xff] %vm270_vm0, %v703_v37  ;;  %v385_v39 = vpop.f32.mrb[16].mxu0 }
 0x119   :  { %v449_v40 = vpop.f32.mrb[16].mxu1  ;;  %533 = vst.msk [vmem:[%s1074_s3 + $0xa8] sm:$0xff] %vm270_vm0, %v705_v38  ;;  %v386_v41 = vadd.f32 %v909_v42, %v385_v39  ;;  %v387_v44 = vpop.f32.mrb[17].mxu0 }
 0x11a   :  { %v450_v43 = vadd.f32 %v909_v42, %v449_v40  ;;  %v451_v45 = vpop.f32.mrb[17].mxu1  ;;  %v388_v46 = vpop.f32.mrb[18].mxu0 }
 0x11b   :  { %v452_v47 = vpop.f32.mrb[18].mxu1  ;;  %714 = vtanh.f32 %v386_v41  ;;  %v389_v48 = vadd.f32 %v909_v42, %v388_v46  ;;  %v390_v50 = vpop.f32.mrb[19].mxu0 }
 0x11c   :  { %v453_v49 = vadd.f32 %v909_v42, %v452_v47  ;;  %v454_v51 = vpop.f32.mrb[19].mxu1  ;;  %716 = vtanh.f32 %v450_v43 }
 0x11d   :  { %v707_v52 = vpop.eup %706  ;;  %718 = vtanh.f32 %v389_v48 }
 0x11e   :  { %v709_v53 = vpop.eup %708  ;;  %518 = vst.msk [vmem:[%s1074_s3 + $0x30] sm:$0xff] %vm270_vm0, %v707_v52  ;;  %720 = vtanh.f32 %v453_v49 }
 0x11f   :  { %v711_v54 = vpop.eup %710  ;;  %534 = vst.msk [vmem:[%s1074_s3 + $0xb0] sm:$0xff] %vm270_vm0, %v709_v53 }
 0x120   :  { %v713_v55 = vpop.eup %712  ;;  %519 = vst.msk [vmem:[%s1074_s3 + $0x38] sm:$0xff] %vm270_vm0, %v711_v54  ;;  %v393_v56 = vpop.f32.mrb[20].mxu0 }
 0x121   :  { %v457_v57 = vpop.f32.mrb[20].mxu1  ;;  %535 = vst.msk [vmem:[%s1074_s3 + $0xb8] sm:$0xff] %vm270_vm0, %v713_v55  ;;  %v394_v58 = vadd.f32 %v909_v42, %v393_v56  ;;  %v395_v60 = vpop.f32.mrb[21].mxu0 }
 0x122   :  { %v458_v59 = vadd.f32 %v909_v42, %v457_v57  ;;  %v459_v61 = vpop.f32.mrb[21].mxu1  ;;  %v396_v62 = vpop.f32.mrb[22].mxu0 }
 0x123   :  { %v460_v63 = vpop.f32.mrb[22].mxu1  ;;  %722 = vtanh.f32 %v394_v58  ;;  %v397_v0 = vadd.f32 %v909_v42, %v396_v62  ;;  %v398_v2 = vpop.f32.mrb[23].mxu0 }
 0x124   :  { %v461_v1 = vadd.f32 %v909_v42, %v460_v63  ;;  %v462_v3 = vpop.f32.mrb[23].mxu1  ;;  %724 = vtanh.f32 %v458_v59 }
 0x125   :  { %v715_v4 = vpop.eup %714  ;;  %726 = vtanh.f32 %v397_v0 }
 0x126   :  { %v717_v5 = vpop.eup %716  ;;  %520 = vst.msk [vmem:[%s1074_s3 + $0x40] sm:$0xff] %vm270_vm0, %v715_v4  ;;  %728 = vtanh.f32 %v461_v1 }
 0x127   :  { %v719_v6 = vpop.eup %718  ;;  %536 = vst.msk [vmem:[%s1074_s3 + $0xc0] sm:$0xff] %vm270_vm0, %v717_v5 }
 0x128   :  { %v721_v7 = vpop.eup %720  ;;  %521 = vst.msk [vmem:[%s1074_s3 + $0x48] sm:$0xff] %vm270_vm0, %v719_v6  ;;  %v401_v8 = vpop.f32.mrb[24].mxu0 }
 0x129   :  { %v465_v9 = vpop.f32.mrb[24].mxu1  ;;  %537 = vst.msk [vmem:[%s1074_s3 + $0xc8] sm:$0xff] %vm270_vm0, %v721_v7  ;;  %v402_v10 = vadd.f32 %v909_v42, %v401_v8  ;;  %v403_v12 = vpop.f32.mrb[25].mxu0 }
 0x12a   :  { %v466_v11 = vadd.f32 %v909_v42, %v465_v9  ;;  %v467_v13 = vpop.f32.mrb[25].mxu1  ;;  %v404_v14 = vpop.f32.mrb[26].mxu0 }
 0x12b   :  { %v468_v15 = vpop.f32.mrb[26].mxu1  ;;  %730 = vtanh.f32 %v402_v10  ;;  %v405_v16 = vadd.f32 %v909_v42, %v404_v14  ;;  %v406_v18 = vpop.f32.mrb[27].mxu0 }
 0x12c   :  { %v469_v17 = vadd.f32 %v909_v42, %v468_v15  ;;  %v470_v19 = vpop.f32.mrb[27].mxu1  ;;  %732 = vtanh.f32 %v466_v11 }
 0x12d   :  { %v723_v20 = vpop.eup %722  ;;  %734 = vtanh.f32 %v405_v16 }
 0x12e   :  { %v725_v21 = vpop.eup %724  ;;  %522 = vst.msk [vmem:[%s1074_s3 + $0x50] sm:$0xff] %vm270_vm0, %v723_v20  ;;  %736 = vtanh.f32 %v469_v17 }
 0x12f   :  { %v727_v22 = vpop.eup %726  ;;  %538 = vst.msk [vmem:[%s1074_s3 + $0xd0] sm:$0xff] %vm270_vm0, %v725_v21 }
 0x130   :  { %v729_v23 = vpop.eup %728  ;;  %523 = vst.msk [vmem:[%s1074_s3 + $0x58] sm:$0xff] %vm270_vm0, %v727_v22  ;;  %v409_v24 = vpop.f32.mrb[28].mxu0 }
 0x131   :  { %v473_v25 = vpop.f32.mrb[28].mxu1  ;;  %539 = vst.msk [vmem:[%s1074_s3 + $0xd8] sm:$0xff] %vm270_vm0, %v729_v23  ;;  %v410_v26 = vadd.f32 %v909_v42, %v409_v24  ;;  %v411_v28 = vpop.f32.mrb[29].mxu0 }
 0x132   :  { %v474_v27 = vadd.f32 %v909_v42, %v473_v25  ;;  %v475_v29 = vpop.f32.mrb[29].mxu1  ;;  %v412_v30 = vpop.f32.mrb[30].mxu0 }
 0x133   :  { %v476_v31 = vpop.f32.mrb[30].mxu1  ;;  %738 = vtanh.f32 %v410_v26  ;;  %v413_v32 = vadd.f32 %v909_v42, %v412_v30  ;;  %v414_v34 = vpop.f32.mrb[31].mxu0 }
 0x134   :  { %v477_v33 = vadd.f32 %v909_v42, %v476_v31  ;;  %v478_v35 = vpop.f32.mrb[31].mxu1  ;;  %740 = vtanh.f32 %v474_v27 }
 0x135   :  { %v731_v36 = vpop.eup %730  ;;  %742 = vtanh.f32 %v413_v32 }
 0x136   :  { %v733_v37 = vpop.eup %732  ;;  %524 = vst.msk [vmem:[%s1074_s3 + $0x60] sm:$0xff] %vm270_vm0, %v731_v36  ;;  %744 = vtanh.f32 %v477_v33 }
 0x137   :  { %v735_v38 = vpop.eup %734  ;;  %540 = vst.msk [vmem:[%s1074_s3 + $0xe0] sm:$0xff] %vm270_vm0, %v733_v37 }
 0x138   :  { %v737_v39 = vpop.eup %736  ;;  %525 = vst.msk [vmem:[%s1074_s3 + $0x68] sm:$0xff] %vm270_vm0, %v735_v38 }
 0x139   :  { %541 = vst.msk [vmem:[%s1074_s3 + $0xe8] sm:$0xff] %vm270_vm0, %v737_v39 }
 0x13d   :  { %v739_v42 = vpop.eup %738 }
 0x13e   :  { %v741_v40 = vpop.eup %740  ;;  %526 = vst.msk [vmem:[%s1074_s3 + $0x70] sm:$0xff] %vm270_vm0, %v739_v42 }
 0x13f   :  { %v743_v41 = vpop.eup %742  ;;  %542 = vst.msk [vmem:[%s1074_s3 + $0xf0] sm:$0xff] %vm270_vm0, %v741_v40 }
 0x140   :  { %v745_v43 = vpop.eup %744  ;;  %527 = vst.msk [vmem:[%s1074_s3 + $0x78] sm:$0xff] %vm270_vm0, %v743_v41 }
 0x141   :  { %543 = vst.msk [vmem:[%s1074_s3 + $0xf8] sm:$0xff] %vm270_vm0, %v745_v43 }

</bundles_post_ra>
